<compile_context>
chip_gen: v7x
topology: tpu7x:2x2x1
jax: 0.10.0
libtpu: 0.0.40
codegen_flags: <defaults>
</compile_context>

<pallas_src>
import jax
import jax.numpy as jnp
from jax.experimental import pallas as pl
from jax.experimental.pallas import tpu as pltpu

S = 8            # sequence length
D = 32           # model dim
H = 4            # attention heads
HD = D // H      # head dim = 8
FFN = 64         # feed-forward hidden dim
VOCAB = 39       # vocab size (embedding rows and fc_out columns)
OUT_PAD = 128    # fc_out columns padded to one full lane tile (dense stores)
EPS = 1e-5       # torch LayerNorm default eps
NEG_INF = -1e30  # additive mask value (stands in for masked_fill(-inf))
INV_SQRT_HD = 1.0 / (HD ** 0.5)

PARAM_ORDER = [
    "emw", "emb", "emln",                 # encoder multi-head (3 layers)
    "ew1", "eb1", "ew2", "eb2", "efln",   # encoder FFN (3 layers)
    "dmw", "dmb", "dmln",                 # decoder layer_1 multi-heads (self, cross)
    "dw1", "db1", "dw2", "db2", "dfln",   # decoder layer_1 FFN
    "ow", "ob",                           # fc_out (padded to OUT_PAD columns)
]


# ---------------------------------------------------------------------------
# in-kernel building blocks
# ---------------------------------------------------------------------------
def _layernorm(v, gamma, beta):
    mu = jnp.mean(v, axis=-1, keepdims=True)
    var = jnp.mean((v - mu) ** 2, axis=-1, keepdims=True)
    return (v - mu) * jax.lax.rsqrt(var + EPS) * gamma + beta


def _softmax_last(s):
    m = jnp.max(s, axis=-1, keepdims=True)
    e = jnp.exp(s - m)
    return e * pl.reciprocal(jnp.sum(e, axis=-1, keepdims=True), approx=True)


def _attend(Q, K, V, mask_add, wo, bo, resid):
    """Multi-head scaled dot-product attention with residual + out-proj folded in.

    Q/K/V: [BS, D]; mask_add: [BS, BS] additive (0 or NEG_INF); wo: [D, D]; bo: [D].
    The per-head output projection is accumulated directly
    (out += ctx_h @ Wo[h*HD:(h+1)*HD, :]), removing the lane-axis concat of heads.
    Dropout(p=0.1) treated as identity (eval mode).
    """
    out = resid + bo
    for h in range(H):
        sl = slice(h * HD, (h + 1) * HD)
        s = jnp.einsum("qd,kd->qk", Q[:, sl], K[:, sl],
                       preferred_element_type=jnp.float32) * INV_SQRT_HD + mask_add
        p = _softmax_last(s)
        ctx = jnp.dot(p, V[:, sl], preferred_element_type=jnp.float32)   # [BS, HD]
        out = out + jnp.dot(ctx, wo[sl, :], preferred_element_type=jnp.float32)
    return out


# ---------------------------------------------------------------------------
# the fused kernel: one grid step for the whole (batch-folded) problem
# ---------------------------------------------------------------------------
def transformer_kernel(x_ref, y_ref, mpad_ref, mtril_ref,
                       emw_r, emb_r, emln_r,
                       ew1_r, eb1_r, ew2_r, eb2_r, efln_r,
                       dmw_r, dmb_r, dmln_r,
                       dw1_r, db1_r, dw2_r, db2_r, dfln_r,
                       ow_r, ob_r,
                       o_ref):
    x = x_ref[...]          # [BS, D]  embedded source (batch folded into rows)
    y = y_ref[...]          # [BS, D]  embedded target
    mpad = mpad_ref[...]    # [BS, BS] additive key-pad mask (block-diag over batch)
    mtril = mtril_ref[...]  # [BS, BS] additive causal + pad mask

    # ------------------------- encoder: 3 distinct layers -------------------
    for i in range(3):
        ln = emln_r[i]                       # [2, D]   (lazy per-layer loads)
        w = emw_r[i]                         # [4, D, D]
        b = emb_r[i]                         # [4, D]
        xn = _layernorm(x, ln[0], ln[1])     # q = k = v -> single layernorm
        Q = jnp.dot(xn, w[0], preferred_element_type=jnp.float32) + b[0]
        K = jnp.dot(xn, w[1], preferred_element_type=jnp.float32) + b[1]
        V = jnp.dot(xn, w[2], preferred_element_type=jnp.float32) + b[2]
        x = _attend(Q, K, V, mpad, w[3], b[3], x)

        fln = efln_r[i]
        xn = _layernorm(x, fln[0], fln[1])
        hid = jnp.maximum(
            jnp.dot(xn, ew1_r[i], preferred_element_type=jnp.float32) + eb1_r[i], 0.0)
        x = x + jnp.dot(hid, ew2_r[i], preferred_element_type=jnp.float32) + eb2_r[i]

    # -------- decoder: layer_1 applied 3 times (reference module behavior) --
    # Cross-attention K/V depend only on x and layer_1 weights -> hoist them.
    cln = dmln_r[1]                          # [2, D]
    cw = dmw_r[1]                            # [4, D, D]  (cross-attn weights)
    cb = dmb_r[1]                            # [4, D]
    xkn = _layernorm(x, cln[0], cln[1])      # k = v -> single layernorm, done once
    cK = jnp.dot(xkn, cw[1], preferred_element_type=jnp.float32) + cb[1]
    cV = jnp.dot(xkn, cw[2], preferred_element_type=jnp.float32) + cb[2]

    for _ in range(3):
        # masked self-attention (q = k = v = y)
        sln = dmln_r[0]
        sw = dmw_r[0]
        sb = dmb_r[0]
        yn = _layernorm(y, sln[0], sln[1])
        Q = jnp.dot(yn, sw[0], preferred_element_type=jnp.float32) + sb[0]
        K = jnp.dot(yn, sw[1], preferred_element_type=jnp.float32) + sb[1]
        V = jnp.dot(yn, sw[2], preferred_element_type=jnp.float32) + sb[2]
        y = _attend(Q, K, V, mtril, sw[3], sb[3], y)

        # cross-attention: only the query projection depends on y
        yqn = _layernorm(y, cln[0], cln[1])
        Qc = jnp.dot(yqn, cw[0], preferred_element_type=jnp.float32) + cb[0]
        y = _attend(Qc, cK, cV, mpad, cw[3], cb[3], y)

        # FFN
        fln = dfln_r[...]
        yn = _layernorm(y, fln[0], fln[1])
        hid = jnp.maximum(
            jnp.dot(yn, dw1_r[...], preferred_element_type=jnp.float32) + db1_r[...],
            0.0)
        y = y + jnp.dot(hid, dw2_r[...], preferred_element_type=jnp.float32) + db2_r[...]

    # fc_out: Linear(32, 39) padded to 128 lanes -> dense (unmasked) stores.
    o_ref[...] = jnp.dot(y, ow_r[...], preferred_element_type=jnp.float32) + ob_r[...]


# ---------------------------------------------------------------------------
# glue: parameters, embeddings, masks, pallas_call wrapper
# ---------------------------------------------------------------------------
def _make_pe(seq, dim):
    pos = jnp.arange(seq, dtype=jnp.float32)[:, None]
    i = jnp.arange(dim // 2, dtype=jnp.float32)[None, :]
    div = jnp.power(1e4, 2.0 * i / dim)
    pe = jnp.zeros((seq, dim), jnp.float32)
    pe = pe.at[:, 0::2].set(jnp.sin(pos / div))
    pe = pe.at[:, 1::2].set(jnp.cos(pos / div))
    return pe


def init_params(key):
    keys = iter(jax.random.split(key, 256))

    def lin(fan_in, fan_out):
        lim = 1.0 / (fan_in ** 0.5)
        w = jax.random.uniform(next(keys), (fan_in, fan_out), jnp.float32, -lim, lim)
        b = jax.random.uniform(next(keys), (fan_out,), jnp.float32, -lim, lim)
        return w, b

    def mh():
        ws, bs = zip(*[lin(D, D) for _ in range(4)])       # Wq, Wk, Wv, Wo
        ln = jnp.stack([jnp.ones((D,), jnp.float32), jnp.zeros((D,), jnp.float32)])
        return jnp.stack(ws), jnp.stack(bs), ln

    def fc():
        w1, b1 = lin(D, FFN)
        w2, b2 = lin(FFN, D)
        ln = jnp.stack([jnp.ones((D,), jnp.float32), jnp.zeros((D,), jnp.float32)])
        return w1, b1, w2, b2, ln

    enc_mh = [mh() for _ in range(3)]
    enc_fc = [fc() for _ in range(3)]
    dec_mh = [mh() for _ in range(2)]     # decoder layer_1: self-attn + cross-attn
    dec_fc = fc()
    ow, ob = lin(D, VOCAB)
    ow_pad = jnp.zeros((D, OUT_PAD), jnp.float32).at[:, :VOCAB].set(ow)
    ob_pad = jnp.zeros((1, OUT_PAD), jnp.float32).at[:, :VOCAB].set(ob)

    params = dict(
        emw=jnp.stack([m[0] for m in enc_mh]),            # [3,4,D,D]
        emb=jnp.stack([m[1] for m in enc_mh]),            # [3,4,D]
        emln=jnp.stack([m[2] for m in enc_mh]),           # [3,2,D]
        ew1=jnp.stack([f[0] for f in enc_fc]),            # [3,D,FFN]
        eb1=jnp.stack([f[1][None, :] for f in enc_fc]),   # [3,1,FFN]
        ew2=jnp.stack([f[2] for f in enc_fc]),            # [3,FFN,D]
        eb2=jnp.stack([f[3][None, :] for f in enc_fc]),   # [3,1,D]
        efln=jnp.stack([f[4] for f in enc_fc]),           # [3,2,D]
        dmw=jnp.stack([m[0] for m in dec_mh]),            # [2,4,D,D]
        dmb=jnp.stack([m[1] for m in dec_mh]),            # [2,4,D]
        dmln=jnp.stack([m[2] for m in dec_mh]),           # [2,2,D]
        dw1=dec_fc[0], db1=dec_fc[1][None, :],            # [D,FFN], [1,FFN]
        dw2=dec_fc[2], db2=dec_fc[3][None, :],            # [FFN,D], [1,D]
        dfln=dec_fc[4],                                   # [2,D]
        ow=ow_pad, ob=ob_pad,                             # [D,128], [1,128]
    )
    embed_x_w = jax.random.normal(next(keys), (VOCAB, D), jnp.float32) * 0.1
    embed_y_w = jax.random.normal(next(keys), (VOCAB, D), jnp.float32) * 0.1
    return params, embed_x_w, embed_y_w


@jax.jit
def transformer_forward(x_tok, y_tok, params, embed_x_w, embed_y_w):
    B = x_tok.shape[0]
    BS = B * S
    pe = _make_pe(S, D)

    # PositionEmbedding: embedding lookup (gather) + sinusoidal PE (JAX glue),
    # then fold the batch into the row axis: [B, S, D] -> [B*S, D].
    x_emb = (jnp.take(embed_x_w, x_tok, axis=0) + pe[None]).reshape(BS, D)
    y_emb = (jnp.take(embed_y_w, y_tok, axis=0) + pe[None]).reshape(BS, D)

    # Block-diagonal ADDITIVE masks over the folded rows (0 = attend, NEG_INF = masked).
    rows = jnp.arange(BS)
    rbatch = rows // S
    rpos = rows % S
    same = rbatch[:, None] == rbatch[None, :]
    x_ok = x_tok.reshape(-1) != 0
    y_ok = y_tok.reshape(-1) != 0
    causal = rpos[None, :] <= rpos[:, None]
    # mask_pad(x): keys with source token == 0 are masked (plus cross-batch blocking)
    mpad_add = jnp.where(same & x_ok[None, :], 0.0, NEG_INF).astype(jnp.float32)
    # mask_tril(y): key-pad mask + strictly-upper-triangular causal mask
    mtril_add = jnp.where(same & y_ok[None, :] & causal, 0.0, NEG_INF).astype(jnp.float32)

    weights = [params[k] for k in PARAM_ORDER]
    inputs = [x_emb, y_emb, mpad_add, mtril_add] + weights

    in_specs = [
        pl.BlockSpec(a.shape, (lambda nd: (lambda g: (0,) * nd))(a.ndim))
        for a in inputs
    ]

    out = pl.pallas_call(
        transformer_kernel,
        out_shape=jax.ShapeDtypeStruct((BS, OUT_PAD), jnp.float32),
        grid=(1,),                               # whole problem in one grid step
        in_specs=in_specs,
        out_specs=pl.BlockSpec((BS, OUT_PAD), lambda g: (0, 0)),
        compiler_params=pltpu.CompilerParams(
            dimension_semantics=("arbitrary",),
        ),
    )(*inputs)

    # un-fold batch and drop the lane padding of fc_out
    return out.reshape(B, S, OUT_PAD)[:, :, :VOCAB]


if __name__ == "__main__":
    key = jax.random.PRNGKey(0)
    kx, ky, kp = jax.random.split(key, 3)
    B = 2

    # token ids in [1, VOCAB); trailing positions set to 0 to exercise padding masks
    x_tok = jax.random.randint(kx, (B, S), 1, VOCAB)
    y_tok = jax.random.randint(ky, (B, S), 1, VOCAB)
    x_tok = x_tok.at[:, -2:].set(0)
    y_tok = y_tok.at[:, -1:].set(0)

    params, embed_x_w, embed_y_w = init_params(kp)

    out = transformer_forward(x_tok, y_tok, params, embed_x_w, embed_y_w)
    out = jax.block_until_ready(out)

    assert out.shape == (B, S, VOCAB), out.shape
    assert bool(jnp.all(jnp.isfinite(out)))
    print("KERNEL_OK")
</pallas_src>

<mosaic_0001>
module attributes {stable_mosaic.version = 11 : i64} {
  func.func @transformer_kernel(%arg0: i32, %arg1: memref<16x32xf32, #tpu.memory_space<vmem>>, %arg2: memref<16x32xf32, #tpu.memory_space<vmem>>, %arg3: memref<16x16xf32, #tpu.memory_space<vmem>>, %arg4: memref<16x16xf32, #tpu.memory_space<vmem>>, %arg5: memref<3x4x32x32xf32, #tpu.memory_space<vmem>>, %arg6: memref<3x4x32xf32, #tpu.memory_space<vmem>>, %arg7: memref<3x2x32xf32, #tpu.memory_space<vmem>>, %arg8: memref<3x32x64xf32, #tpu.memory_space<vmem>>, %arg9: memref<3x1x64xf32, #tpu.memory_space<vmem>>, %arg10: memref<3x64x32xf32, #tpu.memory_space<vmem>>, %arg11: memref<3x1x32xf32, #tpu.memory_space<vmem>>, %arg12: memref<3x2x32xf32, #tpu.memory_space<vmem>>, %arg13: memref<2x4x32x32xf32, #tpu.memory_space<vmem>>, %arg14: memref<2x4x32xf32, #tpu.memory_space<vmem>>, %arg15: memref<2x2x32xf32, #tpu.memory_space<vmem>>, %arg16: memref<32x64xf32, #tpu.memory_space<vmem>>, %arg17: memref<1x64xf32, #tpu.memory_space<vmem>>, %arg18: memref<64x32xf32, #tpu.memory_space<vmem>>, %arg19: memref<1x32xf32, #tpu.memory_space<vmem>>, %arg20: memref<2x32xf32, #tpu.memory_space<vmem>>, %arg21: memref<32x128xf32, #tpu.memory_space<vmem>>, %arg22: memref<1x128xf32, #tpu.memory_space<vmem>>, %arg23: memref<16x128xf32, #tpu.memory_space<vmem>>) attributes {dimension_semantics = [#tpu.dimension_semantics<arbitrary>], iteration_bounds = array<i64: 1>, scalar_prefetch = 0 : i64, scratch_operands = 0 : i64, tpu.core_type = #tpu.core_type<tc>, window_params = [{pipeline_mode = #tpu.pipeline_mode<synchronous>, transform_indices = @transform_0, window_bounds = array<i64: 16, 32>}, {pipeline_mode = #tpu.pipeline_mode<synchronous>, transform_indices = @transform_1, window_bounds = array<i64: 16, 32>}, {pipeline_mode = #tpu.pipeline_mode<synchronous>, transform_indices = @transform_2, window_bounds = array<i64: 16, 16>}, {pipeline_mode = #tpu.pipeline_mode<synchronous>, transform_indices = @transform_3, window_bounds = array<i64: 16, 16>}, {pipeline_mode = #tpu.pipeline_mode<synchronous>, transform_indices = @transform_4, window_bounds = array<i64: 3, 4, 32, 32>}, {pipeline_mode = #tpu.pipeline_mode<synchronous>, transform_indices = @transform_5, window_bounds = array<i64: 3, 4, 32>}, {pipeline_mode = #tpu.pipeline_mode<synchronous>, transform_indices = @transform_6, window_bounds = array<i64: 3, 2, 32>}, {pipeline_mode = #tpu.pipeline_mode<synchronous>, transform_indices = @transform_7, window_bounds = array<i64: 3, 32, 64>}, {pipeline_mode = #tpu.pipeline_mode<synchronous>, transform_indices = @transform_8, window_bounds = array<i64: 3, 1, 64>}, {pipeline_mode = #tpu.pipeline_mode<synchronous>, transform_indices = @transform_9, window_bounds = array<i64: 3, 64, 32>}, {pipeline_mode = #tpu.pipeline_mode<synchronous>, transform_indices = @transform_10, window_bounds = array<i64: 3, 1, 32>}, {pipeline_mode = #tpu.pipeline_mode<synchronous>, transform_indices = @transform_11, window_bounds = array<i64: 3, 2, 32>}, {pipeline_mode = #tpu.pipeline_mode<synchronous>, transform_indices = @transform_12, window_bounds = array<i64: 2, 4, 32, 32>}, {pipeline_mode = #tpu.pipeline_mode<synchronous>, transform_indices = @transform_13, window_bounds = array<i64: 2, 4, 32>}, {pipeline_mode = #tpu.pipeline_mode<synchronous>, transform_indices = @transform_14, window_bounds = array<i64: 2, 2, 32>}, {pipeline_mode = #tpu.pipeline_mode<synchronous>, transform_indices = @transform_15, window_bounds = array<i64: 32, 64>}, {pipeline_mode = #tpu.pipeline_mode<synchronous>, transform_indices = @transform_16, window_bounds = array<i64: 1, 64>}, {pipeline_mode = #tpu.pipeline_mode<synchronous>, transform_indices = @transform_17, window_bounds = array<i64: 64, 32>}, {pipeline_mode = #tpu.pipeline_mode<synchronous>, transform_indices = @transform_18, window_bounds = array<i64: 1, 32>}, {pipeline_mode = #tpu.pipeline_mode<synchronous>, transform_indices = @transform_19, window_bounds = array<i64: 2, 32>}, {pipeline_mode = #tpu.pipeline_mode<synchronous>, transform_indices = @transform_20, window_bounds = array<i64: 32, 128>}, {pipeline_mode = #tpu.pipeline_mode<synchronous>, transform_indices = @transform_21, window_bounds = array<i64: 1, 128>}, {pipeline_mode = #tpu.pipeline_mode<synchronous>, transform_indices = @transform_22, window_bounds = array<i64: 16, 128>}]} {
    %c0 = arith.constant 0 : index
    %c0_0 = arith.constant 0 : index
    %0 = vector.load %arg1[%c0, %c0_0] : memref<16x32xf32, #tpu.memory_space<vmem>>, vector<16x32xf32>
    %c0_1 = arith.constant 0 : index
    %c0_2 = arith.constant 0 : index
    %1 = vector.load %arg2[%c0_1, %c0_2] : memref<16x32xf32, #tpu.memory_space<vmem>>, vector<16x32xf32>
    %c0_3 = arith.constant 0 : index
    %c0_4 = arith.constant 0 : index
    %2 = vector.load %arg3[%c0_3, %c0_4] : memref<16x16xf32, #tpu.memory_space<vmem>>, vector<16x16xf32>
    %c0_5 = arith.constant 0 : index
    %c0_6 = arith.constant 0 : index
    %3 = vector.load %arg4[%c0_5, %c0_6] : memref<16x16xf32, #tpu.memory_space<vmem>>, vector<16x16xf32>
    %c0_7 = arith.constant 0 : index
    %c0_8 = arith.constant 0 : index
    %c0_9 = arith.constant 0 : index
    %4 = vector.load %arg7[%c0_7, %c0_8, %c0_9] : memref<3x2x32xf32, #tpu.memory_space<vmem>>, vector<1x2x32xf32>
    %5 = vector.shape_cast %4 : vector<1x2x32xf32> to vector<2x32xf32>
    %c0_10 = arith.constant 0 : index
    %c0_11 = arith.constant 0 : index
    %c0_12 = arith.constant 0 : index
    %c0_13 = arith.constant 0 : index
    %6 = vector.load %arg5[%c0_10, %c0_11, %c0_12, %c0_13] : memref<3x4x32x32xf32, #tpu.memory_space<vmem>>, vector<1x4x32x32xf32>
    %7 = vector.shape_cast %6 : vector<1x4x32x32xf32> to vector<4x32x32xf32>
    %c0_14 = arith.constant 0 : index
    %c0_15 = arith.constant 0 : index
    %c0_16 = arith.constant 0 : index
    %8 = vector.load %arg6[%c0_14, %c0_15, %c0_16] : memref<3x4x32xf32, #tpu.memory_space<vmem>>, vector<1x4x32xf32>
    %9 = vector.shape_cast %8 : vector<1x4x32xf32> to vector<4x32xf32>
    %10 = vector.extract_strided_slice %5 {offsets = [0, 0], sizes = [1, 32], strides = [1, 1]} : vector<2x32xf32> to vector<1x32xf32>
    %11 = vector.shape_cast %10 : vector<1x32xf32> to vector<32xf32>
    %12 = vector.extract_strided_slice %5 {offsets = [1, 0], sizes = [1, 32], strides = [1, 1]} : vector<2x32xf32> to vector<1x32xf32>
    %13 = vector.shape_cast %12 : vector<1x32xf32> to vector<32xf32>
    %cst = arith.constant dense<0.000000e+00> : vector<16xf32>
    %14 = vector.multi_reduction <add>, %0, %cst [1] : vector<16x32xf32> to vector<16xf32>
    %15 = vector.shape_cast %14 : vector<16xf32> to vector<16x1xf32>
    %cst_17 = arith.constant 3.200000e+01 : f32
    %16 = vector.broadcast %cst_17 : f32 to vector<16x1xf32>
    %17 = arith.divf %15, %16 : vector<16x1xf32>
    %18 = vector.broadcast %17 : vector<16x1xf32> to vector<16x32xf32>
    %19 = arith.subf %0, %18 : vector<16x32xf32>
    %20 = arith.mulf %19, %19 : vector<16x32xf32>
    %cst_18 = arith.constant dense<0.000000e+00> : vector<16xf32>
    %21 = vector.multi_reduction <add>, %20, %cst_18 [1] : vector<16x32xf32> to vector<16xf32>
    %22 = vector.shape_cast %21 : vector<16xf32> to vector<16x1xf32>
    %cst_19 = arith.constant 3.200000e+01 : f32
    %23 = vector.broadcast %cst_19 : f32 to vector<16x1xf32>
    %24 = arith.divf %22, %23 : vector<16x1xf32>
    %25 = vector.broadcast %17 : vector<16x1xf32> to vector<16x32xf32>
    %26 = arith.subf %0, %25 : vector<16x32xf32>
    %cst_20 = arith.constant 9.99999974E-6 : f32
    %27 = vector.broadcast %cst_20 : f32 to vector<16x1xf32>
    %28 = arith.addf %24, %27 : vector<16x1xf32>
    %29 = math.rsqrt %28 : vector<16x1xf32>
    %30 = vector.broadcast %29 : vector<16x1xf32> to vector<16x32xf32>
    %31 = arith.mulf %26, %30 : vector<16x32xf32>
    %32 = vector.shape_cast %11 : vector<32xf32> to vector<1x32xf32>
    %33 = vector.broadcast %32 : vector<1x32xf32> to vector<16x32xf32>
    %34 = arith.mulf %31, %33 : vector<16x32xf32>
    %35 = vector.shape_cast %13 : vector<32xf32> to vector<1x32xf32>
    %36 = vector.broadcast %35 : vector<1x32xf32> to vector<16x32xf32>
    %37 = arith.addf %34, %36 : vector<16x32xf32>
    %38 = vector.extract_strided_slice %7 {offsets = [0, 0, 0], sizes = [1, 32, 32], strides = [1, 1, 1]} : vector<4x32x32xf32> to vector<1x32x32xf32>
    %39 = vector.shape_cast %38 : vector<1x32x32xf32> to vector<32x32xf32>
    %cst_21 = arith.constant dense<0.000000e+00> : vector<16x32xf32>
    %40 = tpu.matmul %37, %39, %cst_21 {dimension_numbers = #tpu.dot_dimension_numbers<[1], [0], [0], [1], [0, 0, 1, 1], [], []>} : vector<16x32xf32>, vector<32x32xf32>, vector<16x32xf32> -> vector<16x32xf32>
    %41 = vector.extract_strided_slice %9 {offsets = [0, 0], sizes = [1, 32], strides = [1, 1]} : vector<4x32xf32> to vector<1x32xf32>
    %42 = vector.shape_cast %41 : vector<1x32xf32> to vector<32xf32>
    %43 = vector.shape_cast %42 : vector<32xf32> to vector<1x32xf32>
    %44 = vector.broadcast %43 : vector<1x32xf32> to vector<16x32xf32>
    %45 = arith.addf %40, %44 : vector<16x32xf32>
    %46 = vector.extract_strided_slice %7 {offsets = [1, 0, 0], sizes = [1, 32, 32], strides = [1, 1, 1]} : vector<4x32x32xf32> to vector<1x32x32xf32>
    %47 = vector.shape_cast %46 : vector<1x32x32xf32> to vector<32x32xf32>
    %cst_22 = arith.constant dense<0.000000e+00> : vector<16x32xf32>
    %48 = tpu.matmul %37, %47, %cst_22 {dimension_numbers = #tpu.dot_dimension_numbers<[1], [0], [0], [1], [0, 0, 1, 1], [], []>} : vector<16x32xf32>, vector<32x32xf32>, vector<16x32xf32> -> vector<16x32xf32>
    %49 = vector.extract_strided_slice %9 {offsets = [1, 0], sizes = [1, 32], strides = [1, 1]} : vector<4x32xf32> to vector<1x32xf32>
    %50 = vector.shape_cast %49 : vector<1x32xf32> to vector<32xf32>
    %51 = vector.shape_cast %50 : vector<32xf32> to vector<1x32xf32>
    %52 = vector.broadcast %51 : vector<1x32xf32> to vector<16x32xf32>
    %53 = arith.addf %48, %52 : vector<16x32xf32>
    %54 = vector.extract_strided_slice %7 {offsets = [2, 0, 0], sizes = [1, 32, 32], strides = [1, 1, 1]} : vector<4x32x32xf32> to vector<1x32x32xf32>
    %55 = vector.shape_cast %54 : vector<1x32x32xf32> to vector<32x32xf32>
    %cst_23 = arith.constant dense<0.000000e+00> : vector<16x32xf32>
    %56 = tpu.matmul %37, %55, %cst_23 {dimension_numbers = #tpu.dot_dimension_numbers<[1], [0], [0], [1], [0, 0, 1, 1], [], []>} : vector<16x32xf32>, vector<32x32xf32>, vector<16x32xf32> -> vector<16x32xf32>
    %57 = vector.extract_strided_slice %9 {offsets = [2, 0], sizes = [1, 32], strides = [1, 1]} : vector<4x32xf32> to vector<1x32xf32>
    %58 = vector.shape_cast %57 : vector<1x32xf32> to vector<32xf32>
    %59 = vector.shape_cast %58 : vector<32xf32> to vector<1x32xf32>
    %60 = vector.broadcast %59 : vector<1x32xf32> to vector<16x32xf32>
    %61 = arith.addf %56, %60 : vector<16x32xf32>
    %62 = vector.extract_strided_slice %7 {offsets = [3, 0, 0], sizes = [1, 32, 32], strides = [1, 1, 1]} : vector<4x32x32xf32> to vector<1x32x32xf32>
    %63 = vector.shape_cast %62 : vector<1x32x32xf32> to vector<32x32xf32>
    %64 = vector.extract_strided_slice %9 {offsets = [3, 0], sizes = [1, 32], strides = [1, 1]} : vector<4x32xf32> to vector<1x32xf32>
    %65 = vector.shape_cast %64 : vector<1x32xf32> to vector<32xf32>
    %66 = vector.shape_cast %65 : vector<32xf32> to vector<1x32xf32>
    %67 = vector.broadcast %66 : vector<1x32xf32> to vector<16x32xf32>
    %68 = arith.addf %0, %67 : vector<16x32xf32>
    %69 = vector.extract_strided_slice %45 {offsets = [0, 0], sizes = [16, 8], strides = [1, 1]} : vector<16x32xf32> to vector<16x8xf32>
    %70 = vector.extract_strided_slice %53 {offsets = [0, 0], sizes = [16, 8], strides = [1, 1]} : vector<16x32xf32> to vector<16x8xf32>
    "tpu.trace_start"() <{level = 10 : i32, message = "qd,kd->qk"}> : () -> ()
    %cst_24 = arith.constant dense<0.000000e+00> : vector<16x16xf32>
    %71 = tpu.matmul %69, %70, %cst_24 {dimension_numbers = #tpu.dot_dimension_numbers<[1], [1], [0], [0], [0, 0, 1, 0], [], []>} : vector<16x8xf32>, vector<16x8xf32>, vector<16x16xf32> -> vector<16x16xf32>
    "tpu.trace_stop"() : () -> ()
    %cst_25 = arith.constant 0.353553385 : f32
    %72 = vector.broadcast %cst_25 : f32 to vector<16x16xf32>
    %73 = arith.mulf %71, %72 : vector<16x16xf32>
    %74 = arith.addf %73, %2 : vector<16x16xf32>
    %cst_26 = arith.constant dense<0xFF800000> : vector<16xf32>
    %75 = vector.multi_reduction <maximumf>, %74, %cst_26 [1] : vector<16x16xf32> to vector<16xf32>
    %76 = vector.shape_cast %75 : vector<16xf32> to vector<16x1xf32>
    %77 = vector.broadcast %76 : vector<16x1xf32> to vector<16x16xf32>
    %78 = arith.subf %74, %77 : vector<16x16xf32>
    %79 = math.exp %78 : vector<16x16xf32>
    %cst_27 = arith.constant dense<0.000000e+00> : vector<16xf32>
    %80 = vector.multi_reduction <add>, %79, %cst_27 [1] : vector<16x16xf32> to vector<16xf32>
    %81 = vector.shape_cast %80 : vector<16xf32> to vector<16x1xf32>
    %82 = tpu.reciprocal %81 {approx = true} : vector<16x1xf32> -> vector<16x1xf32>
    %83 = vector.broadcast %82 : vector<16x1xf32> to vector<16x16xf32>
    %84 = arith.mulf %79, %83 : vector<16x16xf32>
    %85 = vector.extract_strided_slice %61 {offsets = [0, 0], sizes = [16, 8], strides = [1, 1]} : vector<16x32xf32> to vector<16x8xf32>
    %cst_28 = arith.constant dense<0.000000e+00> : vector<16x8xf32>
    %86 = tpu.matmul %84, %85, %cst_28 {dimension_numbers = #tpu.dot_dimension_numbers<[1], [0], [0], [1], [0, 0, 1, 1], [], []>} : vector<16x16xf32>, vector<16x8xf32>, vector<16x8xf32> -> vector<16x8xf32>
    %87 = vector.extract_strided_slice %63 {offsets = [0, 0], sizes = [8, 32], strides = [1, 1]} : vector<32x32xf32> to vector<8x32xf32>
    %cst_29 = arith.constant dense<0.000000e+00> : vector<16x32xf32>
    %88 = tpu.matmul %86, %87, %cst_29 {dimension_numbers = #tpu.dot_dimension_numbers<[1], [0], [0], [1], [0, 0, 1, 1], [], []>} : vector<16x8xf32>, vector<8x32xf32>, vector<16x32xf32> -> vector<16x32xf32>
    %89 = arith.addf %68, %88 : vector<16x32xf32>
    %90 = vector.extract_strided_slice %45 {offsets = [0, 8], sizes = [16, 8], strides = [1, 1]} : vector<16x32xf32> to vector<16x8xf32>
    %91 = vector.extract_strided_slice %53 {offsets = [0, 8], sizes = [16, 8], strides = [1, 1]} : vector<16x32xf32> to vector<16x8xf32>
    "tpu.trace_start"() <{level = 10 : i32, message = "qd,kd->qk"}> : () -> ()
    %cst_30 = arith.constant dense<0.000000e+00> : vector<16x16xf32>
    %92 = tpu.matmul %90, %91, %cst_30 {dimension_numbers = #tpu.dot_dimension_numbers<[1], [1], [0], [0], [0, 0, 1, 0], [], []>} : vector<16x8xf32>, vector<16x8xf32>, vector<16x16xf32> -> vector<16x16xf32>
    "tpu.trace_stop"() : () -> ()
    %cst_31 = arith.constant 0.353553385 : f32
    %93 = vector.broadcast %cst_31 : f32 to vector<16x16xf32>
    %94 = arith.mulf %92, %93 : vector<16x16xf32>
    %95 = arith.addf %94, %2 : vector<16x16xf32>
    %cst_32 = arith.constant dense<0xFF800000> : vector<16xf32>
    %96 = vector.multi_reduction <maximumf>, %95, %cst_32 [1] : vector<16x16xf32> to vector<16xf32>
    %97 = vector.shape_cast %96 : vector<16xf32> to vector<16x1xf32>
    %98 = vector.broadcast %97 : vector<16x1xf32> to vector<16x16xf32>
    %99 = arith.subf %95, %98 : vector<16x16xf32>
    %100 = math.exp %99 : vector<16x16xf32>
    %cst_33 = arith.constant dense<0.000000e+00> : vector<16xf32>
    %101 = vector.multi_reduction <add>, %100, %cst_33 [1] : vector<16x16xf32> to vector<16xf32>
    %102 = vector.shape_cast %101 : vector<16xf32> to vector<16x1xf32>
    %103 = tpu.reciprocal %102 {approx = true} : vector<16x1xf32> -> vector<16x1xf32>
    %104 = vector.broadcast %103 : vector<16x1xf32> to vector<16x16xf32>
    %105 = arith.mulf %100, %104 : vector<16x16xf32>
    %106 = vector.extract_strided_slice %61 {offsets = [0, 8], sizes = [16, 8], strides = [1, 1]} : vector<16x32xf32> to vector<16x8xf32>
    %cst_34 = arith.constant dense<0.000000e+00> : vector<16x8xf32>
    %107 = tpu.matmul %105, %106, %cst_34 {dimension_numbers = #tpu.dot_dimension_numbers<[1], [0], [0], [1], [0, 0, 1, 1], [], []>} : vector<16x16xf32>, vector<16x8xf32>, vector<16x8xf32> -> vector<16x8xf32>
    %108 = vector.extract_strided_slice %63 {offsets = [8, 0], sizes = [8, 32], strides = [1, 1]} : vector<32x32xf32> to vector<8x32xf32>
    %cst_35 = arith.constant dense<0.000000e+00> : vector<16x32xf32>
    %109 = tpu.matmul %107, %108, %cst_35 {dimension_numbers = #tpu.dot_dimension_numbers<[1], [0], [0], [1], [0, 0, 1, 1], [], []>} : vector<16x8xf32>, vector<8x32xf32>, vector<16x32xf32> -> vector<16x32xf32>
    %110 = arith.addf %89, %109 : vector<16x32xf32>
    %111 = vector.extract_strided_slice %45 {offsets = [0, 16], sizes = [16, 8], strides = [1, 1]} : vector<16x32xf32> to vector<16x8xf32>
    %112 = vector.extract_strided_slice %53 {offsets = [0, 16], sizes = [16, 8], strides = [1, 1]} : vector<16x32xf32> to vector<16x8xf32>
    "tpu.trace_start"() <{level = 10 : i32, message = "qd,kd->qk"}> : () -> ()
    %cst_36 = arith.constant dense<0.000000e+00> : vector<16x16xf32>
    %113 = tpu.matmul %111, %112, %cst_36 {dimension_numbers = #tpu.dot_dimension_numbers<[1], [1], [0], [0], [0, 0, 1, 0], [], []>} : vector<16x8xf32>, vector<16x8xf32>, vector<16x16xf32> -> vector<16x16xf32>
    "tpu.trace_stop"() : () -> ()
    %cst_37 = arith.constant 0.353553385 : f32
    %114 = vector.broadcast %cst_37 : f32 to vector<16x16xf32>
    %115 = arith.mulf %113, %114 : vector<16x16xf32>
    %116 = arith.addf %115, %2 : vector<16x16xf32>
    %cst_38 = arith.constant dense<0xFF800000> : vector<16xf32>
    %117 = vector.multi_reduction <maximumf>, %116, %cst_38 [1] : vector<16x16xf32> to vector<16xf32>
    %118 = vector.shape_cast %117 : vector<16xf32> to vector<16x1xf32>
    %119 = vector.broadcast %118 : vector<16x1xf32> to vector<16x16xf32>
    %120 = arith.subf %116, %119 : vector<16x16xf32>
    %121 = math.exp %120 : vector<16x16xf32>
    %cst_39 = arith.constant dense<0.000000e+00> : vector<16xf32>
    %122 = vector.multi_reduction <add>, %121, %cst_39 [1] : vector<16x16xf32> to vector<16xf32>
    %123 = vector.shape_cast %122 : vector<16xf32> to vector<16x1xf32>
    %124 = tpu.reciprocal %123 {approx = true} : vector<16x1xf32> -> vector<16x1xf32>
    %125 = vector.broadcast %124 : vector<16x1xf32> to vector<16x16xf32>
    %126 = arith.mulf %121, %125 : vector<16x16xf32>
    %127 = vector.extract_strided_slice %61 {offsets = [0, 16], sizes = [16, 8], strides = [1, 1]} : vector<16x32xf32> to vector<16x8xf32>
    %cst_40 = arith.constant dense<0.000000e+00> : vector<16x8xf32>
    %128 = tpu.matmul %126, %127, %cst_40 {dimension_numbers = #tpu.dot_dimension_numbers<[1], [0], [0], [1], [0, 0, 1, 1], [], []>} : vector<16x16xf32>, vector<16x8xf32>, vector<16x8xf32> -> vector<16x8xf32>
    %129 = vector.extract_strided_slice %63 {offsets = [16, 0], sizes = [8, 32], strides = [1, 1]} : vector<32x32xf32> to vector<8x32xf32>
    %cst_41 = arith.constant dense<0.000000e+00> : vector<16x32xf32>
    %130 = tpu.matmul %128, %129, %cst_41 {dimension_numbers = #tpu.dot_dimension_numbers<[1], [0], [0], [1], [0, 0, 1, 1], [], []>} : vector<16x8xf32>, vector<8x32xf32>, vector<16x32xf32> -> vector<16x32xf32>
    %131 = arith.addf %110, %130 : vector<16x32xf32>
    %132 = vector.extract_strided_slice %45 {offsets = [0, 24], sizes = [16, 8], strides = [1, 1]} : vector<16x32xf32> to vector<16x8xf32>
    %133 = vector.extract_strided_slice %53 {offsets = [0, 24], sizes = [16, 8], strides = [1, 1]} : vector<16x32xf32> to vector<16x8xf32>
    "tpu.trace_start"() <{level = 10 : i32, message = "qd,kd->qk"}> : () -> ()
    %cst_42 = arith.constant dense<0.000000e+00> : vector<16x16xf32>
    %134 = tpu.matmul %132, %133, %cst_42 {dimension_numbers = #tpu.dot_dimension_numbers<[1], [1], [0], [0], [0, 0, 1, 0], [], []>} : vector<16x8xf32>, vector<16x8xf32>, vector<16x16xf32> -> vector<16x16xf32>
    "tpu.trace_stop"() : () -> ()
    %cst_43 = arith.constant 0.353553385 : f32
    %135 = vector.broadcast %cst_43 : f32 to vector<16x16xf32>
    %136 = arith.mulf %134, %135 : vector<16x16xf32>
    %137 = arith.addf %136, %2 : vector<16x16xf32>
    %cst_44 = arith.constant dense<0xFF800000> : vector<16xf32>
    %138 = vector.multi_reduction <maximumf>, %137, %cst_44 [1] : vector<16x16xf32> to vector<16xf32>
    %139 = vector.shape_cast %138 : vector<16xf32> to vector<16x1xf32>
    %140 = vector.broadcast %139 : vector<16x1xf32> to vector<16x16xf32>
    %141 = arith.subf %137, %140 : vector<16x16xf32>
    %142 = math.exp %141 : vector<16x16xf32>
    %cst_45 = arith.constant dense<0.000000e+00> : vector<16xf32>
    %143 = vector.multi_reduction <add>, %142, %cst_45 [1] : vector<16x16xf32> to vector<16xf32>
    %144 = vector.shape_cast %143 : vector<16xf32> to vector<16x1xf32>
    %145 = tpu.reciprocal %144 {approx = true} : vector<16x1xf32> -> vector<16x1xf32>
    %146 = vector.broadcast %145 : vector<16x1xf32> to vector<16x16xf32>
    %147 = arith.mulf %142, %146 : vector<16x16xf32>
    %148 = vector.extract_strided_slice %61 {offsets = [0, 24], sizes = [16, 8], strides = [1, 1]} : vector<16x32xf32> to vector<16x8xf32>
    %cst_46 = arith.constant dense<0.000000e+00> : vector<16x8xf32>
    %149 = tpu.matmul %147, %148, %cst_46 {dimension_numbers = #tpu.dot_dimension_numbers<[1], [0], [0], [1], [0, 0, 1, 1], [], []>} : vector<16x16xf32>, vector<16x8xf32>, vector<16x8xf32> -> vector<16x8xf32>
    %150 = vector.extract_strided_slice %63 {offsets = [24, 0], sizes = [8, 32], strides = [1, 1]} : vector<32x32xf32> to vector<8x32xf32>
    %cst_47 = arith.constant dense<0.000000e+00> : vector<16x32xf32>
    %151 = tpu.matmul %149, %150, %cst_47 {dimension_numbers = #tpu.dot_dimension_numbers<[1], [0], [0], [1], [0, 0, 1, 1], [], []>} : vector<16x8xf32>, vector<8x32xf32>, vector<16x32xf32> -> vector<16x32xf32>
    %152 = arith.addf %131, %151 : vector<16x32xf32>
    %c0_48 = arith.constant 0 : index
    %c0_49 = arith.constant 0 : index
    %c0_50 = arith.constant 0 : index
    %153 = vector.load %arg12[%c0_48, %c0_49, %c0_50] : memref<3x2x32xf32, #tpu.memory_space<vmem>>, vector<1x2x32xf32>
    %154 = vector.shape_cast %153 : vector<1x2x32xf32> to vector<2x32xf32>
    %155 = vector.extract_strided_slice %154 {offsets = [0, 0], sizes = [1, 32], strides = [1, 1]} : vector<2x32xf32> to vector<1x32xf32>
    %156 = vector.shape_cast %155 : vector<1x32xf32> to vector<32xf32>
    %157 = vector.extract_strided_slice %154 {offsets = [1, 0], sizes = [1, 32], strides = [1, 1]} : vector<2x32xf32> to vector<1x32xf32>
    %158 = vector.shape_cast %157 : vector<1x32xf32> to vector<32xf32>
    %cst_51 = arith.constant dense<0.000000e+00> : vector<16xf32>
    %159 = vector.multi_reduction <add>, %152, %cst_51 [1] : vector<16x32xf32> to vector<16xf32>
    %160 = vector.shape_cast %159 : vector<16xf32> to vector<16x1xf32>
    %cst_52 = arith.constant 3.200000e+01 : f32
    %161 = vector.broadcast %cst_52 : f32 to vector<16x1xf32>
    %162 = arith.divf %160, %161 : vector<16x1xf32>
    %163 = vector.broadcast %162 : vector<16x1xf32> to vector<16x32xf32>
    %164 = arith.subf %152, %163 : vector<16x32xf32>
    %165 = arith.mulf %164, %164 : vector<16x32xf32>
    %cst_53 = arith.constant dense<0.000000e+00> : vector<16xf32>
    %166 = vector.multi_reduction <add>, %165, %cst_53 [1] : vector<16x32xf32> to vector<16xf32>
    %167 = vector.shape_cast %166 : vector<16xf32> to vector<16x1xf32>
    %cst_54 = arith.constant 3.200000e+01 : f32
    %168 = vector.broadcast %cst_54 : f32 to vector<16x1xf32>
    %169 = arith.divf %167, %168 : vector<16x1xf32>
    %170 = vector.broadcast %162 : vector<16x1xf32> to vector<16x32xf32>
    %171 = arith.subf %152, %170 : vector<16x32xf32>
    %cst_55 = arith.constant 9.99999974E-6 : f32
    %172 = vector.broadcast %cst_55 : f32 to vector<16x1xf32>
    %173 = arith.addf %169, %172 : vector<16x1xf32>
    %174 = math.rsqrt %173 : vector<16x1xf32>
    %175 = vector.broadcast %174 : vector<16x1xf32> to vector<16x32xf32>
    %176 = arith.mulf %171, %175 : vector<16x32xf32>
    %177 = vector.shape_cast %156 : vector<32xf32> to vector<1x32xf32>
    %178 = vector.broadcast %177 : vector<1x32xf32> to vector<16x32xf32>
    %179 = arith.mulf %176, %178 : vector<16x32xf32>
    %180 = vector.shape_cast %158 : vector<32xf32> to vector<1x32xf32>
    %181 = vector.broadcast %180 : vector<1x32xf32> to vector<16x32xf32>
    %182 = arith.addf %179, %181 : vector<16x32xf32>
    %c0_56 = arith.constant 0 : index
    %c0_57 = arith.constant 0 : index
    %c0_58 = arith.constant 0 : index
    %183 = vector.load %arg8[%c0_56, %c0_57, %c0_58] : memref<3x32x64xf32, #tpu.memory_space<vmem>>, vector<1x32x64xf32>
    %184 = vector.shape_cast %183 : vector<1x32x64xf32> to vector<32x64xf32>
    %cst_59 = arith.constant dense<0.000000e+00> : vector<16x64xf32>
    %185 = tpu.matmul %182, %184, %cst_59 {dimension_numbers = #tpu.dot_dimension_numbers<[1], [0], [0], [1], [0, 0, 1, 1], [], []>} : vector<16x32xf32>, vector<32x64xf32>, vector<16x64xf32> -> vector<16x64xf32>
    %c0_60 = arith.constant 0 : index
    %c0_61 = arith.constant 0 : index
    %c0_62 = arith.constant 0 : index
    %186 = vector.load %arg9[%c0_60, %c0_61, %c0_62] : memref<3x1x64xf32, #tpu.memory_space<vmem>>, vector<1x1x64xf32>
    %187 = vector.shape_cast %186 : vector<1x1x64xf32> to vector<1x64xf32>
    %188 = vector.broadcast %187 : vector<1x64xf32> to vector<16x64xf32>
    %189 = arith.addf %185, %188 : vector<16x64xf32>
    %cst_63 = arith.constant 0.000000e+00 : f32
    %190 = vector.broadcast %cst_63 : f32 to vector<16x64xf32>
    %191 = arith.maximumf %189, %190 : vector<16x64xf32>
    %c0_64 = arith.constant 0 : index
    %c0_65 = arith.constant 0 : index
    %c0_66 = arith.constant 0 : index
    %192 = vector.load %arg10[%c0_64, %c0_65, %c0_66] : memref<3x64x32xf32, #tpu.memory_space<vmem>>, vector<1x64x32xf32>
    %193 = vector.shape_cast %192 : vector<1x64x32xf32> to vector<64x32xf32>
    %cst_67 = arith.constant dense<0.000000e+00> : vector<16x32xf32>
    %194 = tpu.matmul %191, %193, %cst_67 {dimension_numbers = #tpu.dot_dimension_numbers<[1], [0], [0], [1], [0, 0, 1, 1], [], []>} : vector<16x64xf32>, vector<64x32xf32>, vector<16x32xf32> -> vector<16x32xf32>
    %195 = arith.addf %152, %194 : vector<16x32xf32>
    %c0_68 = arith.constant 0 : index
    %c0_69 = arith.constant 0 : index
    %c0_70 = arith.constant 0 : index
    %196 = vector.load %arg11[%c0_68, %c0_69, %c0_70] : memref<3x1x32xf32, #tpu.memory_space<vmem>>, vector<1x1x32xf32>
    %197 = vector.shape_cast %196 : vector<1x1x32xf32> to vector<1x32xf32>
    %198 = vector.broadcast %197 : vector<1x32xf32> to vector<16x32xf32>
    %199 = arith.addf %195, %198 : vector<16x32xf32>
    %c1 = arith.constant 1 : index
    %c0_71 = arith.constant 0 : index
    %c0_72 = arith.constant 0 : index
    %200 = vector.load %arg7[%c1, %c0_71, %c0_72] : memref<3x2x32xf32, #tpu.memory_space<vmem>>, vector<1x2x32xf32>
    %201 = vector.shape_cast %200 : vector<1x2x32xf32> to vector<2x32xf32>
    %c1_73 = arith.constant 1 : index
    %c0_74 = arith.constant 0 : index
    %c0_75 = arith.constant 0 : index
    %c0_76 = arith.constant 0 : index
    %202 = vector.load %arg5[%c1_73, %c0_74, %c0_75, %c0_76] : memref<3x4x32x32xf32, #tpu.memory_space<vmem>>, vector<1x4x32x32xf32>
    %203 = vector.shape_cast %202 : vector<1x4x32x32xf32> to vector<4x32x32xf32>
    %c1_77 = arith.constant 1 : index
    %c0_78 = arith.constant 0 : index
    %c0_79 = arith.constant 0 : index
    %204 = vector.load %arg6[%c1_77, %c0_78, %c0_79] : memref<3x4x32xf32, #tpu.memory_space<vmem>>, vector<1x4x32xf32>
    %205 = vector.shape_cast %204 : vector<1x4x32xf32> to vector<4x32xf32>
    %206 = vector.extract_strided_slice %201 {offsets = [0, 0], sizes = [1, 32], strides = [1, 1]} : vector<2x32xf32> to vector<1x32xf32>
    %207 = vector.shape_cast %206 : vector<1x32xf32> to vector<32xf32>
    %208 = vector.extract_strided_slice %201 {offsets = [1, 0], sizes = [1, 32], strides = [1, 1]} : vector<2x32xf32> to vector<1x32xf32>
    %209 = vector.shape_cast %208 : vector<1x32xf32> to vector<32xf32>
    %cst_80 = arith.constant dense<0.000000e+00> : vector<16xf32>
    %210 = vector.multi_reduction <add>, %199, %cst_80 [1] : vector<16x32xf32> to vector<16xf32>
    %211 = vector.shape_cast %210 : vector<16xf32> to vector<16x1xf32>
    %cst_81 = arith.constant 3.200000e+01 : f32
    %212 = vector.broadcast %cst_81 : f32 to vector<16x1xf32>
    %213 = arith.divf %211, %212 : vector<16x1xf32>
    %214 = vector.broadcast %213 : vector<16x1xf32> to vector<16x32xf32>
    %215 = arith.subf %199, %214 : vector<16x32xf32>
    %216 = arith.mulf %215, %215 : vector<16x32xf32>
    %cst_82 = arith.constant dense<0.000000e+00> : vector<16xf32>
    %217 = vector.multi_reduction <add>, %216, %cst_82 [1] : vector<16x32xf32> to vector<16xf32>
    %218 = vector.shape_cast %217 : vector<16xf32> to vector<16x1xf32>
    %cst_83 = arith.constant 3.200000e+01 : f32
    %219 = vector.broadcast %cst_83 : f32 to vector<16x1xf32>
    %220 = arith.divf %218, %219 : vector<16x1xf32>
    %221 = vector.broadcast %213 : vector<16x1xf32> to vector<16x32xf32>
    %222 = arith.subf %199, %221 : vector<16x32xf32>
    %cst_84 = arith.constant 9.99999974E-6 : f32
    %223 = vector.broadcast %cst_84 : f32 to vector<16x1xf32>
    %224 = arith.addf %220, %223 : vector<16x1xf32>
    %225 = math.rsqrt %224 : vector<16x1xf32>
    %226 = vector.broadcast %225 : vector<16x1xf32> to vector<16x32xf32>
    %227 = arith.mulf %222, %226 : vector<16x32xf32>
    %228 = vector.shape_cast %207 : vector<32xf32> to vector<1x32xf32>
    %229 = vector.broadcast %228 : vector<1x32xf32> to vector<16x32xf32>
    %230 = arith.mulf %227, %229 : vector<16x32xf32>
    %231 = vector.shape_cast %209 : vector<32xf32> to vector<1x32xf32>
    %232 = vector.broadcast %231 : vector<1x32xf32> to vector<16x32xf32>
    %233 = arith.addf %230, %232 : vector<16x32xf32>
    %234 = vector.extract_strided_slice %203 {offsets = [0, 0, 0], sizes = [1, 32, 32], strides = [1, 1, 1]} : vector<4x32x32xf32> to vector<1x32x32xf32>
    %235 = vector.shape_cast %234 : vector<1x32x32xf32> to vector<32x32xf32>
    %cst_85 = arith.constant dense<0.000000e+00> : vector<16x32xf32>
    %236 = tpu.matmul %233, %235, %cst_85 {dimension_numbers = #tpu.dot_dimension_numbers<[1], [0], [0], [1], [0, 0, 1, 1], [], []>} : vector<16x32xf32>, vector<32x32xf32>, vector<16x32xf32> -> vector<16x32xf32>
    %237 = vector.extract_strided_slice %205 {offsets = [0, 0], sizes = [1, 32], strides = [1, 1]} : vector<4x32xf32> to vector<1x32xf32>
    %238 = vector.shape_cast %237 : vector<1x32xf32> to vector<32xf32>
    %239 = vector.shape_cast %238 : vector<32xf32> to vector<1x32xf32>
    %240 = vector.broadcast %239 : vector<1x32xf32> to vector<16x32xf32>
    %241 = arith.addf %236, %240 : vector<16x32xf32>
    %242 = vector.extract_strided_slice %203 {offsets = [1, 0, 0], sizes = [1, 32, 32], strides = [1, 1, 1]} : vector<4x32x32xf32> to vector<1x32x32xf32>
    %243 = vector.shape_cast %242 : vector<1x32x32xf32> to vector<32x32xf32>
    %cst_86 = arith.constant dense<0.000000e+00> : vector<16x32xf32>
    %244 = tpu.matmul %233, %243, %cst_86 {dimension_numbers = #tpu.dot_dimension_numbers<[1], [0], [0], [1], [0, 0, 1, 1], [], []>} : vector<16x32xf32>, vector<32x32xf32>, vector<16x32xf32> -> vector<16x32xf32>
    %245 = vector.extract_strided_slice %205 {offsets = [1, 0], sizes = [1, 32], strides = [1, 1]} : vector<4x32xf32> to vector<1x32xf32>
    %246 = vector.shape_cast %245 : vector<1x32xf32> to vector<32xf32>
    %247 = vector.shape_cast %246 : vector<32xf32> to vector<1x32xf32>
    %248 = vector.broadcast %247 : vector<1x32xf32> to vector<16x32xf32>
    %249 = arith.addf %244, %248 : vector<16x32xf32>
    %250 = vector.extract_strided_slice %203 {offsets = [2, 0, 0], sizes = [1, 32, 32], strides = [1, 1, 1]} : vector<4x32x32xf32> to vector<1x32x32xf32>
    %251 = vector.shape_cast %250 : vector<1x32x32xf32> to vector<32x32xf32>
    %cst_87 = arith.constant dense<0.000000e+00> : vector<16x32xf32>
    %252 = tpu.matmul %233, %251, %cst_87 {dimension_numbers = #tpu.dot_dimension_numbers<[1], [0], [0], [1], [0, 0, 1, 1], [], []>} : vector<16x32xf32>, vector<32x32xf32>, vector<16x32xf32> -> vector<16x32xf32>
    %253 = vector.extract_strided_slice %205 {offsets = [2, 0], sizes = [1, 32], strides = [1, 1]} : vector<4x32xf32> to vector<1x32xf32>
    %254 = vector.shape_cast %253 : vector<1x32xf32> to vector<32xf32>
    %255 = vector.shape_cast %254 : vector<32xf32> to vector<1x32xf32>
    %256 = vector.broadcast %255 : vector<1x32xf32> to vector<16x32xf32>
    %257 = arith.addf %252, %256 : vector<16x32xf32>
    %258 = vector.extract_strided_slice %203 {offsets = [3, 0, 0], sizes = [1, 32, 32], strides = [1, 1, 1]} : vector<4x32x32xf32> to vector<1x32x32xf32>
    %259 = vector.shape_cast %258 : vector<1x32x32xf32> to vector<32x32xf32>
    %260 = vector.extract_strided_slice %205 {offsets = [3, 0], sizes = [1, 32], strides = [1, 1]} : vector<4x32xf32> to vector<1x32xf32>
    %261 = vector.shape_cast %260 : vector<1x32xf32> to vector<32xf32>
    %262 = vector.shape_cast %261 : vector<32xf32> to vector<1x32xf32>
    %263 = vector.broadcast %262 : vector<1x32xf32> to vector<16x32xf32>
    %264 = arith.addf %199, %263 : vector<16x32xf32>
    %265 = vector.extract_strided_slice %241 {offsets = [0, 0], sizes = [16, 8], strides = [1, 1]} : vector<16x32xf32> to vector<16x8xf32>
    %266 = vector.extract_strided_slice %249 {offsets = [0, 0], sizes = [16, 8], strides = [1, 1]} : vector<16x32xf32> to vector<16x8xf32>
    "tpu.trace_start"() <{level = 10 : i32, message = "qd,kd->qk"}> : () -> ()
    %cst_88 = arith.constant dense<0.000000e+00> : vector<16x16xf32>
    %267 = tpu.matmul %265, %266, %cst_88 {dimension_numbers = #tpu.dot_dimension_numbers<[1], [1], [0], [0], [0, 0, 1, 0], [], []>} : vector<16x8xf32>, vector<16x8xf32>, vector<16x16xf32> -> vector<16x16xf32>
    "tpu.trace_stop"() : () -> ()
    %cst_89 = arith.constant 0.353553385 : f32
    %268 = vector.broadcast %cst_89 : f32 to vector<16x16xf32>
    %269 = arith.mulf %267, %268 : vector<16x16xf32>
    %270 = arith.addf %269, %2 : vector<16x16xf32>
    %cst_90 = arith.constant dense<0xFF800000> : vector<16xf32>
    %271 = vector.multi_reduction <maximumf>, %270, %cst_90 [1] : vector<16x16xf32> to vector<16xf32>
    %272 = vector.shape_cast %271 : vector<16xf32> to vector<16x1xf32>
    %273 = vector.broadcast %272 : vector<16x1xf32> to vector<16x16xf32>
    %274 = arith.subf %270, %273 : vector<16x16xf32>
    %275 = math.exp %274 : vector<16x16xf32>
    %cst_91 = arith.constant dense<0.000000e+00> : vector<16xf32>
    %276 = vector.multi_reduction <add>, %275, %cst_91 [1] : vector<16x16xf32> to vector<16xf32>
    %277 = vector.shape_cast %276 : vector<16xf32> to vector<16x1xf32>
    %278 = tpu.reciprocal %277 {approx = true} : vector<16x1xf32> -> vector<16x1xf32>
    %279 = vector.broadcast %278 : vector<16x1xf32> to vector<16x16xf32>
    %280 = arith.mulf %275, %279 : vector<16x16xf32>
    %281 = vector.extract_strided_slice %257 {offsets = [0, 0], sizes = [16, 8], strides = [1, 1]} : vector<16x32xf32> to vector<16x8xf32>
    %cst_92 = arith.constant dense<0.000000e+00> : vector<16x8xf32>
    %282 = tpu.matmul %280, %281, %cst_92 {dimension_numbers = #tpu.dot_dimension_numbers<[1], [0], [0], [1], [0, 0, 1, 1], [], []>} : vector<16x16xf32>, vector<16x8xf32>, vector<16x8xf32> -> vector<16x8xf32>
    %283 = vector.extract_strided_slice %259 {offsets = [0, 0], sizes = [8, 32], strides = [1, 1]} : vector<32x32xf32> to vector<8x32xf32>
    %cst_93 = arith.constant dense<0.000000e+00> : vector<16x32xf32>
    %284 = tpu.matmul %282, %283, %cst_93 {dimension_numbers = #tpu.dot_dimension_numbers<[1], [0], [0], [1], [0, 0, 1, 1], [], []>} : vector<16x8xf32>, vector<8x32xf32>, vector<16x32xf32> -> vector<16x32xf32>
    %285 = arith.addf %264, %284 : vector<16x32xf32>
    %286 = vector.extract_strided_slice %241 {offsets = [0, 8], sizes = [16, 8], strides = [1, 1]} : vector<16x32xf32> to vector<16x8xf32>
    %287 = vector.extract_strided_slice %249 {offsets = [0, 8], sizes = [16, 8], strides = [1, 1]} : vector<16x32xf32> to vector<16x8xf32>
    "tpu.trace_start"() <{level = 10 : i32, message = "qd,kd->qk"}> : () -> ()
    %cst_94 = arith.constant dense<0.000000e+00> : vector<16x16xf32>
    %288 = tpu.matmul %286, %287, %cst_94 {dimension_numbers = #tpu.dot_dimension_numbers<[1], [1], [0], [0], [0, 0, 1, 0], [], []>} : vector<16x8xf32>, vector<16x8xf32>, vector<16x16xf32> -> vector<16x16xf32>
    "tpu.trace_stop"() : () -> ()
    %cst_95 = arith.constant 0.353553385 : f32
    %289 = vector.broadcast %cst_95 : f32 to vector<16x16xf32>
    %290 = arith.mulf %288, %289 : vector<16x16xf32>
    %291 = arith.addf %290, %2 : vector<16x16xf32>
    %cst_96 = arith.constant dense<0xFF800000> : vector<16xf32>
    %292 = vector.multi_reduction <maximumf>, %291, %cst_96 [1] : vector<16x16xf32> to vector<16xf32>
    %293 = vector.shape_cast %292 : vector<16xf32> to vector<16x1xf32>
    %294 = vector.broadcast %293 : vector<16x1xf32> to vector<16x16xf32>
    %295 = arith.subf %291, %294 : vector<16x16xf32>
    %296 = math.exp %295 : vector<16x16xf32>
    %cst_97 = arith.constant dense<0.000000e+00> : vector<16xf32>
    %297 = vector.multi_reduction <add>, %296, %cst_97 [1] : vector<16x16xf32> to vector<16xf32>
    %298 = vector.shape_cast %297 : vector<16xf32> to vector<16x1xf32>
    %299 = tpu.reciprocal %298 {approx = true} : vector<16x1xf32> -> vector<16x1xf32>
    %300 = vector.broadcast %299 : vector<16x1xf32> to vector<16x16xf32>
    %301 = arith.mulf %296, %300 : vector<16x16xf32>
    %302 = vector.extract_strided_slice %257 {offsets = [0, 8], sizes = [16, 8], strides = [1, 1]} : vector<16x32xf32> to vector<16x8xf32>
    %cst_98 = arith.constant dense<0.000000e+00> : vector<16x8xf32>
    %303 = tpu.matmul %301, %302, %cst_98 {dimension_numbers = #tpu.dot_dimension_numbers<[1], [0], [0], [1], [0, 0, 1, 1], [], []>} : vector<16x16xf32>, vector<16x8xf32>, vector<16x8xf32> -> vector<16x8xf32>
    %304 = vector.extract_strided_slice %259 {offsets = [8, 0], sizes = [8, 32], strides = [1, 1]} : vector<32x32xf32> to vector<8x32xf32>
    %cst_99 = arith.constant dense<0.000000e+00> : vector<16x32xf32>
    %305 = tpu.matmul %303, %304, %cst_99 {dimension_numbers = #tpu.dot_dimension_numbers<[1], [0], [0], [1], [0, 0, 1, 1], [], []>} : vector<16x8xf32>, vector<8x32xf32>, vector<16x32xf32> -> vector<16x32xf32>
    %306 = arith.addf %285, %305 : vector<16x32xf32>
    %307 = vector.extract_strided_slice %241 {offsets = [0, 16], sizes = [16, 8], strides = [1, 1]} : vector<16x32xf32> to vector<16x8xf32>
    %308 = vector.extract_strided_slice %249 {offsets = [0, 16], sizes = [16, 8], strides = [1, 1]} : vector<16x32xf32> to vector<16x8xf32>
    "tpu.trace_start"() <{level = 10 : i32, message = "qd,kd->qk"}> : () -> ()
    %cst_100 = arith.constant dense<0.000000e+00> : vector<16x16xf32>
    %309 = tpu.matmul %307, %308, %cst_100 {dimension_numbers = #tpu.dot_dimension_numbers<[1], [1], [0], [0], [0, 0, 1, 0], [], []>} : vector<16x8xf32>, vector<16x8xf32>, vector<16x16xf32> -> vector<16x16xf32>
    "tpu.trace_stop"() : () -> ()
    %cst_101 = arith.constant 0.353553385 : f32
    %310 = vector.broadcast %cst_101 : f32 to vector<16x16xf32>
    %311 = arith.mulf %309, %310 : vector<16x16xf32>
    %312 = arith.addf %311, %2 : vector<16x16xf32>
    %cst_102 = arith.constant dense<0xFF800000> : vector<16xf32>
    %313 = vector.multi_reduction <maximumf>, %312, %cst_102 [1] : vector<16x16xf32> to vector<16xf32>
    %314 = vector.shape_cast %313 : vector<16xf32> to vector<16x1xf32>
    %315 = vector.broadcast %314 : vector<16x1xf32> to vector<16x16xf32>
    %316 = arith.subf %312, %315 : vector<16x16xf32>
    %317 = math.exp %316 : vector<16x16xf32>
    %cst_103 = arith.constant dense<0.000000e+00> : vector<16xf32>
    %318 = vector.multi_reduction <add>, %317, %cst_103 [1] : vector<16x16xf32> to vector<16xf32>
    %319 = vector.shape_cast %318 : vector<16xf32> to vector<16x1xf32>
    %320 = tpu.reciprocal %319 {approx = true} : vector<16x1xf32> -> vector<16x1xf32>
    %321 = vector.broadcast %320 : vector<16x1xf32> to vector<16x16xf32>
    %322 = arith.mulf %317, %321 : vector<16x16xf32>
    %323 = vector.extract_strided_slice %257 {offsets = [0, 16], sizes = [16, 8], strides = [1, 1]} : vector<16x32xf32> to vector<16x8xf32>
    %cst_104 = arith.constant dense<0.000000e+00> : vector<16x8xf32>
    %324 = tpu.matmul %322, %323, %cst_104 {dimension_numbers = #tpu.dot_dimension_numbers<[1], [0], [0], [1], [0, 0, 1, 1], [], []>} : vector<16x16xf32>, vector<16x8xf32>, vector<16x8xf32> -> vector<16x8xf32>
    %325 = vector.extract_strided_slice %259 {offsets = [16, 0], sizes = [8, 32], strides = [1, 1]} : vector<32x32xf32> to vector<8x32xf32>
    %cst_105 = arith.constant dense<0.000000e+00> : vector<16x32xf32>
    %326 = tpu.matmul %324, %325, %cst_105 {dimension_numbers = #tpu.dot_dimension_numbers<[1], [0], [0], [1], [0, 0, 1, 1], [], []>} : vector<16x8xf32>, vector<8x32xf32>, vector<16x32xf32> -> vector<16x32xf32>
    %327 = arith.addf %306, %326 : vector<16x32xf32>
    %328 = vector.extract_strided_slice %241 {offsets = [0, 24], sizes = [16, 8], strides = [1, 1]} : vector<16x32xf32> to vector<16x8xf32>
    %329 = vector.extract_strided_slice %249 {offsets = [0, 24], sizes = [16, 8], strides = [1, 1]} : vector<16x32xf32> to vector<16x8xf32>
    "tpu.trace_start"() <{level = 10 : i32, message = "qd,kd->qk"}> : () -> ()
    %cst_106 = arith.constant dense<0.000000e+00> : vector<16x16xf32>
    %330 = tpu.matmul %328, %329, %cst_106 {dimension_numbers = #tpu.dot_dimension_numbers<[1], [1], [0], [0], [0, 0, 1, 0], [], []>} : vector<16x8xf32>, vector<16x8xf32>, vector<16x16xf32> -> vector<16x16xf32>
    "tpu.trace_stop"() : () -> ()
    %cst_107 = arith.constant 0.353553385 : f32
    %331 = vector.broadcast %cst_107 : f32 to vector<16x16xf32>
    %332 = arith.mulf %330, %331 : vector<16x16xf32>
    %333 = arith.addf %332, %2 : vector<16x16xf32>
    %cst_108 = arith.constant dense<0xFF800000> : vector<16xf32>
    %334 = vector.multi_reduction <maximumf>, %333, %cst_108 [1] : vector<16x16xf32> to vector<16xf32>
    %335 = vector.shape_cast %334 : vector<16xf32> to vector<16x1xf32>
    %336 = vector.broadcast %335 : vector<16x1xf32> to vector<16x16xf32>
    %337 = arith.subf %333, %336 : vector<16x16xf32>
    %338 = math.exp %337 : vector<16x16xf32>
    %cst_109 = arith.constant dense<0.000000e+00> : vector<16xf32>
    %339 = vector.multi_reduction <add>, %338, %cst_109 [1] : vector<16x16xf32> to vector<16xf32>
    %340 = vector.shape_cast %339 : vector<16xf32> to vector<16x1xf32>
    %341 = tpu.reciprocal %340 {approx = true} : vector<16x1xf32> -> vector<16x1xf32>
    %342 = vector.broadcast %341 : vector<16x1xf32> to vector<16x16xf32>
    %343 = arith.mulf %338, %342 : vector<16x16xf32>
    %344 = vector.extract_strided_slice %257 {offsets = [0, 24], sizes = [16, 8], strides = [1, 1]} : vector<16x32xf32> to vector<16x8xf32>
    %cst_110 = arith.constant dense<0.000000e+00> : vector<16x8xf32>
    %345 = tpu.matmul %343, %344, %cst_110 {dimension_numbers = #tpu.dot_dimension_numbers<[1], [0], [0], [1], [0, 0, 1, 1], [], []>} : vector<16x16xf32>, vector<16x8xf32>, vector<16x8xf32> -> vector<16x8xf32>
    %346 = vector.extract_strided_slice %259 {offsets = [24, 0], sizes = [8, 32], strides = [1, 1]} : vector<32x32xf32> to vector<8x32xf32>
    %cst_111 = arith.constant dense<0.000000e+00> : vector<16x32xf32>
    %347 = tpu.matmul %345, %346, %cst_111 {dimension_numbers = #tpu.dot_dimension_numbers<[1], [0], [0], [1], [0, 0, 1, 1], [], []>} : vector<16x8xf32>, vector<8x32xf32>, vector<16x32xf32> -> vector<16x32xf32>
    %348 = arith.addf %327, %347 : vector<16x32xf32>
    %c1_112 = arith.constant 1 : index
    %c0_113 = arith.constant 0 : index
    %c0_114 = arith.constant 0 : index
    %349 = vector.load %arg12[%c1_112, %c0_113, %c0_114] : memref<3x2x32xf32, #tpu.memory_space<vmem>>, vector<1x2x32xf32>
    %350 = vector.shape_cast %349 : vector<1x2x32xf32> to vector<2x32xf32>
    %351 = vector.extract_strided_slice %350 {offsets = [0, 0], sizes = [1, 32], strides = [1, 1]} : vector<2x32xf32> to vector<1x32xf32>
    %352 = vector.shape_cast %351 : vector<1x32xf32> to vector<32xf32>
    %353 = vector.extract_strided_slice %350 {offsets = [1, 0], sizes = [1, 32], strides = [1, 1]} : vector<2x32xf32> to vector<1x32xf32>
    %354 = vector.shape_cast %353 : vector<1x32xf32> to vector<32xf32>
    %cst_115 = arith.constant dense<0.000000e+00> : vector<16xf32>
    %355 = vector.multi_reduction <add>, %348, %cst_115 [1] : vector<16x32xf32> to vector<16xf32>
    %356 = vector.shape_cast %355 : vector<16xf32> to vector<16x1xf32>
    %cst_116 = arith.constant 3.200000e+01 : f32
    %357 = vector.broadcast %cst_116 : f32 to vector<16x1xf32>
    %358 = arith.divf %356, %357 : vector<16x1xf32>
    %359 = vector.broadcast %358 : vector<16x1xf32> to vector<16x32xf32>
    %360 = arith.subf %348, %359 : vector<16x32xf32>
    %361 = arith.mulf %360, %360 : vector<16x32xf32>
    %cst_117 = arith.constant dense<0.000000e+00> : vector<16xf32>
    %362 = vector.multi_reduction <add>, %361, %cst_117 [1] : vector<16x32xf32> to vector<16xf32>
    %363 = vector.shape_cast %362 : vector<16xf32> to vector<16x1xf32>
    %cst_118 = arith.constant 3.200000e+01 : f32
    %364 = vector.broadcast %cst_118 : f32 to vector<16x1xf32>
    %365 = arith.divf %363, %364 : vector<16x1xf32>
    %366 = vector.broadcast %358 : vector<16x1xf32> to vector<16x32xf32>
    %367 = arith.subf %348, %366 : vector<16x32xf32>
    %cst_119 = arith.constant 9.99999974E-6 : f32
    %368 = vector.broadcast %cst_119 : f32 to vector<16x1xf32>
    %369 = arith.addf %365, %368 : vector<16x1xf32>
    %370 = math.rsqrt %369 : vector<16x1xf32>
    %371 = vector.broadcast %370 : vector<16x1xf32> to vector<16x32xf32>
    %372 = arith.mulf %367, %371 : vector<16x32xf32>
    %373 = vector.shape_cast %352 : vector<32xf32> to vector<1x32xf32>
    %374 = vector.broadcast %373 : vector<1x32xf32> to vector<16x32xf32>
    %375 = arith.mulf %372, %374 : vector<16x32xf32>
    %376 = vector.shape_cast %354 : vector<32xf32> to vector<1x32xf32>
    %377 = vector.broadcast %376 : vector<1x32xf32> to vector<16x32xf32>
    %378 = arith.addf %375, %377 : vector<16x32xf32>
    %c1_120 = arith.constant 1 : index
    %c0_121 = arith.constant 0 : index
    %c0_122 = arith.constant 0 : index
    %379 = vector.load %arg8[%c1_120, %c0_121, %c0_122] : memref<3x32x64xf32, #tpu.memory_space<vmem>>, vector<1x32x64xf32>
    %380 = vector.shape_cast %379 : vector<1x32x64xf32> to vector<32x64xf32>
    %cst_123 = arith.constant dense<0.000000e+00> : vector<16x64xf32>
    %381 = tpu.matmul %378, %380, %cst_123 {dimension_numbers = #tpu.dot_dimension_numbers<[1], [0], [0], [1], [0, 0, 1, 1], [], []>} : vector<16x32xf32>, vector<32x64xf32>, vector<16x64xf32> -> vector<16x64xf32>
    %c1_124 = arith.constant 1 : index
    %c0_125 = arith.constant 0 : index
    %c0_126 = arith.constant 0 : index
    %382 = vector.load %arg9[%c1_124, %c0_125, %c0_126] : memref<3x1x64xf32, #tpu.memory_space<vmem>>, vector<1x1x64xf32>
    %383 = vector.shape_cast %382 : vector<1x1x64xf32> to vector<1x64xf32>
    %384 = vector.broadcast %383 : vector<1x64xf32> to vector<16x64xf32>
    %385 = arith.addf %381, %384 : vector<16x64xf32>
    %cst_127 = arith.constant 0.000000e+00 : f32
    %386 = vector.broadcast %cst_127 : f32 to vector<16x64xf32>
    %387 = arith.maximumf %385, %386 : vector<16x64xf32>
    %c1_128 = arith.constant 1 : index
    %c0_129 = arith.constant 0 : index
    %c0_130 = arith.constant 0 : index
    %388 = vector.load %arg10[%c1_128, %c0_129, %c0_130] : memref<3x64x32xf32, #tpu.memory_space<vmem>>, vector<1x64x32xf32>
    %389 = vector.shape_cast %388 : vector<1x64x32xf32> to vector<64x32xf32>
    %cst_131 = arith.constant dense<0.000000e+00> : vector<16x32xf32>
    %390 = tpu.matmul %387, %389, %cst_131 {dimension_numbers = #tpu.dot_dimension_numbers<[1], [0], [0], [1], [0, 0, 1, 1], [], []>} : vector<16x64xf32>, vector<64x32xf32>, vector<16x32xf32> -> vector<16x32xf32>
    %391 = arith.addf %348, %390 : vector<16x32xf32>
    %c1_132 = arith.constant 1 : index
    %c0_133 = arith.constant 0 : index
    %c0_134 = arith.constant 0 : index
    %392 = vector.load %arg11[%c1_132, %c0_133, %c0_134] : memref<3x1x32xf32, #tpu.memory_space<vmem>>, vector<1x1x32xf32>
    %393 = vector.shape_cast %392 : vector<1x1x32xf32> to vector<1x32xf32>
    %394 = vector.broadcast %393 : vector<1x32xf32> to vector<16x32xf32>
    %395 = arith.addf %391, %394 : vector<16x32xf32>
    %c2 = arith.constant 2 : index
    %c0_135 = arith.constant 0 : index
    %c0_136 = arith.constant 0 : index
    %396 = vector.load %arg7[%c2, %c0_135, %c0_136] : memref<3x2x32xf32, #tpu.memory_space<vmem>>, vector<1x2x32xf32>
    %397 = vector.shape_cast %396 : vector<1x2x32xf32> to vector<2x32xf32>
    %c2_137 = arith.constant 2 : index
    %c0_138 = arith.constant 0 : index
    %c0_139 = arith.constant 0 : index
    %c0_140 = arith.constant 0 : index
    %398 = vector.load %arg5[%c2_137, %c0_138, %c0_139, %c0_140] : memref<3x4x32x32xf32, #tpu.memory_space<vmem>>, vector<1x4x32x32xf32>
    %399 = vector.shape_cast %398 : vector<1x4x32x32xf32> to vector<4x32x32xf32>
    %c2_141 = arith.constant 2 : index
    %c0_142 = arith.constant 0 : index
    %c0_143 = arith.constant 0 : index
    %400 = vector.load %arg6[%c2_141, %c0_142, %c0_143] : memref<3x4x32xf32, #tpu.memory_space<vmem>>, vector<1x4x32xf32>
    %401 = vector.shape_cast %400 : vector<1x4x32xf32> to vector<4x32xf32>
    %402 = vector.extract_strided_slice %397 {offsets = [0, 0], sizes = [1, 32], strides = [1, 1]} : vector<2x32xf32> to vector<1x32xf32>
    %403 = vector.shape_cast %402 : vector<1x32xf32> to vector<32xf32>
    %404 = vector.extract_strided_slice %397 {offsets = [1, 0], sizes = [1, 32], strides = [1, 1]} : vector<2x32xf32> to vector<1x32xf32>
    %405 = vector.shape_cast %404 : vector<1x32xf32> to vector<32xf32>
    %cst_144 = arith.constant dense<0.000000e+00> : vector<16xf32>
    %406 = vector.multi_reduction <add>, %395, %cst_144 [1] : vector<16x32xf32> to vector<16xf32>
    %407 = vector.shape_cast %406 : vector<16xf32> to vector<16x1xf32>
    %cst_145 = arith.constant 3.200000e+01 : f32
    %408 = vector.broadcast %cst_145 : f32 to vector<16x1xf32>
    %409 = arith.divf %407, %408 : vector<16x1xf32>
    %410 = vector.broadcast %409 : vector<16x1xf32> to vector<16x32xf32>
    %411 = arith.subf %395, %410 : vector<16x32xf32>
    %412 = arith.mulf %411, %411 : vector<16x32xf32>
    %cst_146 = arith.constant dense<0.000000e+00> : vector<16xf32>
    %413 = vector.multi_reduction <add>, %412, %cst_146 [1] : vector<16x32xf32> to vector<16xf32>
    %414 = vector.shape_cast %413 : vector<16xf32> to vector<16x1xf32>
    %cst_147 = arith.constant 3.200000e+01 : f32
    %415 = vector.broadcast %cst_147 : f32 to vector<16x1xf32>
    %416 = arith.divf %414, %415 : vector<16x1xf32>
    %417 = vector.broadcast %409 : vector<16x1xf32> to vector<16x32xf32>
    %418 = arith.subf %395, %417 : vector<16x32xf32>
    %cst_148 = arith.constant 9.99999974E-6 : f32
    %419 = vector.broadcast %cst_148 : f32 to vector<16x1xf32>
    %420 = arith.addf %416, %419 : vector<16x1xf32>
    %421 = math.rsqrt %420 : vector<16x1xf32>
    %422 = vector.broadcast %421 : vector<16x1xf32> to vector<16x32xf32>
    %423 = arith.mulf %418, %422 : vector<16x32xf32>
    %424 = vector.shape_cast %403 : vector<32xf32> to vector<1x32xf32>
    %425 = vector.broadcast %424 : vector<1x32xf32> to vector<16x32xf32>
    %426 = arith.mulf %423, %425 : vector<16x32xf32>
    %427 = vector.shape_cast %405 : vector<32xf32> to vector<1x32xf32>
    %428 = vector.broadcast %427 : vector<1x32xf32> to vector<16x32xf32>
    %429 = arith.addf %426, %428 : vector<16x32xf32>
    %430 = vector.extract_strided_slice %399 {offsets = [0, 0, 0], sizes = [1, 32, 32], strides = [1, 1, 1]} : vector<4x32x32xf32> to vector<1x32x32xf32>
    %431 = vector.shape_cast %430 : vector<1x32x32xf32> to vector<32x32xf32>
    %cst_149 = arith.constant dense<0.000000e+00> : vector<16x32xf32>
    %432 = tpu.matmul %429, %431, %cst_149 {dimension_numbers = #tpu.dot_dimension_numbers<[1], [0], [0], [1], [0, 0, 1, 1], [], []>} : vector<16x32xf32>, vector<32x32xf32>, vector<16x32xf32> -> vector<16x32xf32>
    %433 = vector.extract_strided_slice %401 {offsets = [0, 0], sizes = [1, 32], strides = [1, 1]} : vector<4x32xf32> to vector<1x32xf32>
    %434 = vector.shape_cast %433 : vector<1x32xf32> to vector<32xf32>
    %435 = vector.shape_cast %434 : vector<32xf32> to vector<1x32xf32>
    %436 = vector.broadcast %435 : vector<1x32xf32> to vector<16x32xf32>
    %437 = arith.addf %432, %436 : vector<16x32xf32>
    %438 = vector.extract_strided_slice %399 {offsets = [1, 0, 0], sizes = [1, 32, 32], strides = [1, 1, 1]} : vector<4x32x32xf32> to vector<1x32x32xf32>
    %439 = vector.shape_cast %438 : vector<1x32x32xf32> to vector<32x32xf32>
    %cst_150 = arith.constant dense<0.000000e+00> : vector<16x32xf32>
    %440 = tpu.matmul %429, %439, %cst_150 {dimension_numbers = #tpu.dot_dimension_numbers<[1], [0], [0], [1], [0, 0, 1, 1], [], []>} : vector<16x32xf32>, vector<32x32xf32>, vector<16x32xf32> -> vector<16x32xf32>
    %441 = vector.extract_strided_slice %401 {offsets = [1, 0], sizes = [1, 32], strides = [1, 1]} : vector<4x32xf32> to vector<1x32xf32>
    %442 = vector.shape_cast %441 : vector<1x32xf32> to vector<32xf32>
    %443 = vector.shape_cast %442 : vector<32xf32> to vector<1x32xf32>
    %444 = vector.broadcast %443 : vector<1x32xf32> to vector<16x32xf32>
    %445 = arith.addf %440, %444 : vector<16x32xf32>
    %446 = vector.extract_strided_slice %399 {offsets = [2, 0, 0], sizes = [1, 32, 32], strides = [1, 1, 1]} : vector<4x32x32xf32> to vector<1x32x32xf32>
    %447 = vector.shape_cast %446 : vector<1x32x32xf32> to vector<32x32xf32>
    %cst_151 = arith.constant dense<0.000000e+00> : vector<16x32xf32>
    %448 = tpu.matmul %429, %447, %cst_151 {dimension_numbers = #tpu.dot_dimension_numbers<[1], [0], [0], [1], [0, 0, 1, 1], [], []>} : vector<16x32xf32>, vector<32x32xf32>, vector<16x32xf32> -> vector<16x32xf32>
    %449 = vector.extract_strided_slice %401 {offsets = [2, 0], sizes = [1, 32], strides = [1, 1]} : vector<4x32xf32> to vector<1x32xf32>
    %450 = vector.shape_cast %449 : vector<1x32xf32> to vector<32xf32>
    %451 = vector.shape_cast %450 : vector<32xf32> to vector<1x32xf32>
    %452 = vector.broadcast %451 : vector<1x32xf32> to vector<16x32xf32>
    %453 = arith.addf %448, %452 : vector<16x32xf32>
    %454 = vector.extract_strided_slice %399 {offsets = [3, 0, 0], sizes = [1, 32, 32], strides = [1, 1, 1]} : vector<4x32x32xf32> to vector<1x32x32xf32>
    %455 = vector.shape_cast %454 : vector<1x32x32xf32> to vector<32x32xf32>
    %456 = vector.extract_strided_slice %401 {offsets = [3, 0], sizes = [1, 32], strides = [1, 1]} : vector<4x32xf32> to vector<1x32xf32>
    %457 = vector.shape_cast %456 : vector<1x32xf32> to vector<32xf32>
    %458 = vector.shape_cast %457 : vector<32xf32> to vector<1x32xf32>
    %459 = vector.broadcast %458 : vector<1x32xf32> to vector<16x32xf32>
    %460 = arith.addf %395, %459 : vector<16x32xf32>
    %461 = vector.extract_strided_slice %437 {offsets = [0, 0], sizes = [16, 8], strides = [1, 1]} : vector<16x32xf32> to vector<16x8xf32>
    %462 = vector.extract_strided_slice %445 {offsets = [0, 0], sizes = [16, 8], strides = [1, 1]} : vector<16x32xf32> to vector<16x8xf32>
    "tpu.trace_start"() <{level = 10 : i32, message = "qd,kd->qk"}> : () -> ()
    %cst_152 = arith.constant dense<0.000000e+00> : vector<16x16xf32>
    %463 = tpu.matmul %461, %462, %cst_152 {dimension_numbers = #tpu.dot_dimension_numbers<[1], [1], [0], [0], [0, 0, 1, 0], [], []>} : vector<16x8xf32>, vector<16x8xf32>, vector<16x16xf32> -> vector<16x16xf32>
    "tpu.trace_stop"() : () -> ()
    %cst_153 = arith.constant 0.353553385 : f32
    %464 = vector.broadcast %cst_153 : f32 to vector<16x16xf32>
    %465 = arith.mulf %463, %464 : vector<16x16xf32>
    %466 = arith.addf %465, %2 : vector<16x16xf32>
    %cst_154 = arith.constant dense<0xFF800000> : vector<16xf32>
    %467 = vector.multi_reduction <maximumf>, %466, %cst_154 [1] : vector<16x16xf32> to vector<16xf32>
    %468 = vector.shape_cast %467 : vector<16xf32> to vector<16x1xf32>
    %469 = vector.broadcast %468 : vector<16x1xf32> to vector<16x16xf32>
    %470 = arith.subf %466, %469 : vector<16x16xf32>
    %471 = math.exp %470 : vector<16x16xf32>
    %cst_155 = arith.constant dense<0.000000e+00> : vector<16xf32>
    %472 = vector.multi_reduction <add>, %471, %cst_155 [1] : vector<16x16xf32> to vector<16xf32>
    %473 = vector.shape_cast %472 : vector<16xf32> to vector<16x1xf32>
    %474 = tpu.reciprocal %473 {approx = true} : vector<16x1xf32> -> vector<16x1xf32>
    %475 = vector.broadcast %474 : vector<16x1xf32> to vector<16x16xf32>
    %476 = arith.mulf %471, %475 : vector<16x16xf32>
    %477 = vector.extract_strided_slice %453 {offsets = [0, 0], sizes = [16, 8], strides = [1, 1]} : vector<16x32xf32> to vector<16x8xf32>
    %cst_156 = arith.constant dense<0.000000e+00> : vector<16x8xf32>
    %478 = tpu.matmul %476, %477, %cst_156 {dimension_numbers = #tpu.dot_dimension_numbers<[1], [0], [0], [1], [0, 0, 1, 1], [], []>} : vector<16x16xf32>, vector<16x8xf32>, vector<16x8xf32> -> vector<16x8xf32>
    %479 = vector.extract_strided_slice %455 {offsets = [0, 0], sizes = [8, 32], strides = [1, 1]} : vector<32x32xf32> to vector<8x32xf32>
    %cst_157 = arith.constant dense<0.000000e+00> : vector<16x32xf32>
    %480 = tpu.matmul %478, %479, %cst_157 {dimension_numbers = #tpu.dot_dimension_numbers<[1], [0], [0], [1], [0, 0, 1, 1], [], []>} : vector<16x8xf32>, vector<8x32xf32>, vector<16x32xf32> -> vector<16x32xf32>
    %481 = arith.addf %460, %480 : vector<16x32xf32>
    %482 = vector.extract_strided_slice %437 {offsets = [0, 8], sizes = [16, 8], strides = [1, 1]} : vector<16x32xf32> to vector<16x8xf32>
    %483 = vector.extract_strided_slice %445 {offsets = [0, 8], sizes = [16, 8], strides = [1, 1]} : vector<16x32xf32> to vector<16x8xf32>
    "tpu.trace_start"() <{level = 10 : i32, message = "qd,kd->qk"}> : () -> ()
    %cst_158 = arith.constant dense<0.000000e+00> : vector<16x16xf32>
    %484 = tpu.matmul %482, %483, %cst_158 {dimension_numbers = #tpu.dot_dimension_numbers<[1], [1], [0], [0], [0, 0, 1, 0], [], []>} : vector<16x8xf32>, vector<16x8xf32>, vector<16x16xf32> -> vector<16x16xf32>
    "tpu.trace_stop"() : () -> ()
    %cst_159 = arith.constant 0.353553385 : f32
    %485 = vector.broadcast %cst_159 : f32 to vector<16x16xf32>
    %486 = arith.mulf %484, %485 : vector<16x16xf32>
    %487 = arith.addf %486, %2 : vector<16x16xf32>
    %cst_160 = arith.constant dense<0xFF800000> : vector<16xf32>
    %488 = vector.multi_reduction <maximumf>, %487, %cst_160 [1] : vector<16x16xf32> to vector<16xf32>
    %489 = vector.shape_cast %488 : vector<16xf32> to vector<16x1xf32>
    %490 = vector.broadcast %489 : vector<16x1xf32> to vector<16x16xf32>
    %491 = arith.subf %487, %490 : vector<16x16xf32>
    %492 = math.exp %491 : vector<16x16xf32>
    %cst_161 = arith.constant dense<0.000000e+00> : vector<16xf32>
    %493 = vector.multi_reduction <add>, %492, %cst_161 [1] : vector<16x16xf32> to vector<16xf32>
    %494 = vector.shape_cast %493 : vector<16xf32> to vector<16x1xf32>
    %495 = tpu.reciprocal %494 {approx = true} : vector<16x1xf32> -> vector<16x1xf32>
    %496 = vector.broadcast %495 : vector<16x1xf32> to vector<16x16xf32>
    %497 = arith.mulf %492, %496 : vector<16x16xf32>
    %498 = vector.extract_strided_slice %453 {offsets = [0, 8], sizes = [16, 8], strides = [1, 1]} : vector<16x32xf32> to vector<16x8xf32>
    %cst_162 = arith.constant dense<0.000000e+00> : vector<16x8xf32>
    %499 = tpu.matmul %497, %498, %cst_162 {dimension_numbers = #tpu.dot_dimension_numbers<[1], [0], [0], [1], [0, 0, 1, 1], [], []>} : vector<16x16xf32>, vector<16x8xf32>, vector<16x8xf32> -> vector<16x8xf32>
    %500 = vector.extract_strided_slice %455 {offsets = [8, 0], sizes = [8, 32], strides = [1, 1]} : vector<32x32xf32> to vector<8x32xf32>
    %cst_163 = arith.constant dense<0.000000e+00> : vector<16x32xf32>
    %501 = tpu.matmul %499, %500, %cst_163 {dimension_numbers = #tpu.dot_dimension_numbers<[1], [0], [0], [1], [0, 0, 1, 1], [], []>} : vector<16x8xf32>, vector<8x32xf32>, vector<16x32xf32> -> vector<16x32xf32>
    %502 = arith.addf %481, %501 : vector<16x32xf32>
    %503 = vector.extract_strided_slice %437 {offsets = [0, 16], sizes = [16, 8], strides = [1, 1]} : vector<16x32xf32> to vector<16x8xf32>
    %504 = vector.extract_strided_slice %445 {offsets = [0, 16], sizes = [16, 8], strides = [1, 1]} : vector<16x32xf32> to vector<16x8xf32>
    "tpu.trace_start"() <{level = 10 : i32, message = "qd,kd->qk"}> : () -> ()
    %cst_164 = arith.constant dense<0.000000e+00> : vector<16x16xf32>
    %505 = tpu.matmul %503, %504, %cst_164 {dimension_numbers = #tpu.dot_dimension_numbers<[1], [1], [0], [0], [0, 0, 1, 0], [], []>} : vector<16x8xf32>, vector<16x8xf32>, vector<16x16xf32> -> vector<16x16xf32>
    "tpu.trace_stop"() : () -> ()
    %cst_165 = arith.constant 0.353553385 : f32
    %506 = vector.broadcast %cst_165 : f32 to vector<16x16xf32>
    %507 = arith.mulf %505, %506 : vector<16x16xf32>
    %508 = arith.addf %507, %2 : vector<16x16xf32>
    %cst_166 = arith.constant dense<0xFF800000> : vector<16xf32>
    %509 = vector.multi_reduction <maximumf>, %508, %cst_166 [1] : vector<16x16xf32> to vector<16xf32>
    %510 = vector.shape_cast %509 : vector<16xf32> to vector<16x1xf32>
    %511 = vector.broadcast %510 : vector<16x1xf32> to vector<16x16xf32>
    %512 = arith.subf %508, %511 : vector<16x16xf32>
    %513 = math.exp %512 : vector<16x16xf32>
    %cst_167 = arith.constant dense<0.000000e+00> : vector<16xf32>
    %514 = vector.multi_reduction <add>, %513, %cst_167 [1] : vector<16x16xf32> to vector<16xf32>
    %515 = vector.shape_cast %514 : vector<16xf32> to vector<16x1xf32>
    %516 = tpu.reciprocal %515 {approx = true} : vector<16x1xf32> -> vector<16x1xf32>
    %517 = vector.broadcast %516 : vector<16x1xf32> to vector<16x16xf32>
    %518 = arith.mulf %513, %517 : vector<16x16xf32>
    %519 = vector.extract_strided_slice %453 {offsets = [0, 16], sizes = [16, 8], strides = [1, 1]} : vector<16x32xf32> to vector<16x8xf32>
    %cst_168 = arith.constant dense<0.000000e+00> : vector<16x8xf32>
    %520 = tpu.matmul %518, %519, %cst_168 {dimension_numbers = #tpu.dot_dimension_numbers<[1], [0], [0], [1], [0, 0, 1, 1], [], []>} : vector<16x16xf32>, vector<16x8xf32>, vector<16x8xf32> -> vector<16x8xf32>
    %521 = vector.extract_strided_slice %455 {offsets = [16, 0], sizes = [8, 32], strides = [1, 1]} : vector<32x32xf32> to vector<8x32xf32>
    %cst_169 = arith.constant dense<0.000000e+00> : vector<16x32xf32>
    %522 = tpu.matmul %520, %521, %cst_169 {dimension_numbers = #tpu.dot_dimension_numbers<[1], [0], [0], [1], [0, 0, 1, 1], [], []>} : vector<16x8xf32>, vector<8x32xf32>, vector<16x32xf32> -> vector<16x32xf32>
    %523 = arith.addf %502, %522 : vector<16x32xf32>
    %524 = vector.extract_strided_slice %437 {offsets = [0, 24], sizes = [16, 8], strides = [1, 1]} : vector<16x32xf32> to vector<16x8xf32>
    %525 = vector.extract_strided_slice %445 {offsets = [0, 24], sizes = [16, 8], strides = [1, 1]} : vector<16x32xf32> to vector<16x8xf32>
    "tpu.trace_start"() <{level = 10 : i32, message = "qd,kd->qk"}> : () -> ()
    %cst_170 = arith.constant dense<0.000000e+00> : vector<16x16xf32>
    %526 = tpu.matmul %524, %525, %cst_170 {dimension_numbers = #tpu.dot_dimension_numbers<[1], [1], [0], [0], [0, 0, 1, 0], [], []>} : vector<16x8xf32>, vector<16x8xf32>, vector<16x16xf32> -> vector<16x16xf32>
    "tpu.trace_stop"() : () -> ()
    %cst_171 = arith.constant 0.353553385 : f32
    %527 = vector.broadcast %cst_171 : f32 to vector<16x16xf32>
    %528 = arith.mulf %526, %527 : vector<16x16xf32>
    %529 = arith.addf %528, %2 : vector<16x16xf32>
    %cst_172 = arith.constant dense<0xFF800000> : vector<16xf32>
    %530 = vector.multi_reduction <maximumf>, %529, %cst_172 [1] : vector<16x16xf32> to vector<16xf32>
    %531 = vector.shape_cast %530 : vector<16xf32> to vector<16x1xf32>
    %532 = vector.broadcast %531 : vector<16x1xf32> to vector<16x16xf32>
    %533 = arith.subf %529, %532 : vector<16x16xf32>
    %534 = math.exp %533 : vector<16x16xf32>
    %cst_173 = arith.constant dense<0.000000e+00> : vector<16xf32>
    %535 = vector.multi_reduction <add>, %534, %cst_173 [1] : vector<16x16xf32> to vector<16xf32>
    %536 = vector.shape_cast %535 : vector<16xf32> to vector<16x1xf32>
    %537 = tpu.reciprocal %536 {approx = true} : vector<16x1xf32> -> vector<16x1xf32>
    %538 = vector.broadcast %537 : vector<16x1xf32> to vector<16x16xf32>
    %539 = arith.mulf %534, %538 : vector<16x16xf32>
    %540 = vector.extract_strided_slice %453 {offsets = [0, 24], sizes = [16, 8], strides = [1, 1]} : vector<16x32xf32> to vector<16x8xf32>
    %cst_174 = arith.constant dense<0.000000e+00> : vector<16x8xf32>
    %541 = tpu.matmul %539, %540, %cst_174 {dimension_numbers = #tpu.dot_dimension_numbers<[1], [0], [0], [1], [0, 0, 1, 1], [], []>} : vector<16x16xf32>, vector<16x8xf32>, vector<16x8xf32> -> vector<16x8xf32>
    %542 = vector.extract_strided_slice %455 {offsets = [24, 0], sizes = [8, 32], strides = [1, 1]} : vector<32x32xf32> to vector<8x32xf32>
    %cst_175 = arith.constant dense<0.000000e+00> : vector<16x32xf32>
    %543 = tpu.matmul %541, %542, %cst_175 {dimension_numbers = #tpu.dot_dimension_numbers<[1], [0], [0], [1], [0, 0, 1, 1], [], []>} : vector<16x8xf32>, vector<8x32xf32>, vector<16x32xf32> -> vector<16x32xf32>
    %544 = arith.addf %523, %543 : vector<16x32xf32>
    %c2_176 = arith.constant 2 : index
    %c0_177 = arith.constant 0 : index
    %c0_178 = arith.constant 0 : index
    %545 = vector.load %arg12[%c2_176, %c0_177, %c0_178] : memref<3x2x32xf32, #tpu.memory_space<vmem>>, vector<1x2x32xf32>
    %546 = vector.shape_cast %545 : vector<1x2x32xf32> to vector<2x32xf32>
    %547 = vector.extract_strided_slice %546 {offsets = [0, 0], sizes = [1, 32], strides = [1, 1]} : vector<2x32xf32> to vector<1x32xf32>
    %548 = vector.shape_cast %547 : vector<1x32xf32> to vector<32xf32>
    %549 = vector.extract_strided_slice %546 {offsets = [1, 0], sizes = [1, 32], strides = [1, 1]} : vector<2x32xf32> to vector<1x32xf32>
    %550 = vector.shape_cast %549 : vector<1x32xf32> to vector<32xf32>
    %cst_179 = arith.constant dense<0.000000e+00> : vector<16xf32>
    %551 = vector.multi_reduction <add>, %544, %cst_179 [1] : vector<16x32xf32> to vector<16xf32>
    %552 = vector.shape_cast %551 : vector<16xf32> to vector<16x1xf32>
    %cst_180 = arith.constant 3.200000e+01 : f32
    %553 = vector.broadcast %cst_180 : f32 to vector<16x1xf32>
    %554 = arith.divf %552, %553 : vector<16x1xf32>
    %555 = vector.broadcast %554 : vector<16x1xf32> to vector<16x32xf32>
    %556 = arith.subf %544, %555 : vector<16x32xf32>
    %557 = arith.mulf %556, %556 : vector<16x32xf32>
    %cst_181 = arith.constant dense<0.000000e+00> : vector<16xf32>
    %558 = vector.multi_reduction <add>, %557, %cst_181 [1] : vector<16x32xf32> to vector<16xf32>
    %559 = vector.shape_cast %558 : vector<16xf32> to vector<16x1xf32>
    %cst_182 = arith.constant 3.200000e+01 : f32
    %560 = vector.broadcast %cst_182 : f32 to vector<16x1xf32>
    %561 = arith.divf %559, %560 : vector<16x1xf32>
    %562 = vector.broadcast %554 : vector<16x1xf32> to vector<16x32xf32>
    %563 = arith.subf %544, %562 : vector<16x32xf32>
    %cst_183 = arith.constant 9.99999974E-6 : f32
    %564 = vector.broadcast %cst_183 : f32 to vector<16x1xf32>
    %565 = arith.addf %561, %564 : vector<16x1xf32>
    %566 = math.rsqrt %565 : vector<16x1xf32>
    %567 = vector.broadcast %566 : vector<16x1xf32> to vector<16x32xf32>
    %568 = arith.mulf %563, %567 : vector<16x32xf32>
    %569 = vector.shape_cast %548 : vector<32xf32> to vector<1x32xf32>
    %570 = vector.broadcast %569 : vector<1x32xf32> to vector<16x32xf32>
    %571 = arith.mulf %568, %570 : vector<16x32xf32>
    %572 = vector.shape_cast %550 : vector<32xf32> to vector<1x32xf32>
    %573 = vector.broadcast %572 : vector<1x32xf32> to vector<16x32xf32>
    %574 = arith.addf %571, %573 : vector<16x32xf32>
    %c2_184 = arith.constant 2 : index
    %c0_185 = arith.constant 0 : index
    %c0_186 = arith.constant 0 : index
    %575 = vector.load %arg8[%c2_184, %c0_185, %c0_186] : memref<3x32x64xf32, #tpu.memory_space<vmem>>, vector<1x32x64xf32>
    %576 = vector.shape_cast %575 : vector<1x32x64xf32> to vector<32x64xf32>
    %cst_187 = arith.constant dense<0.000000e+00> : vector<16x64xf32>
    %577 = tpu.matmul %574, %576, %cst_187 {dimension_numbers = #tpu.dot_dimension_numbers<[1], [0], [0], [1], [0, 0, 1, 1], [], []>} : vector<16x32xf32>, vector<32x64xf32>, vector<16x64xf32> -> vector<16x64xf32>
    %c2_188 = arith.constant 2 : index
    %c0_189 = arith.constant 0 : index
    %c0_190 = arith.constant 0 : index
    %578 = vector.load %arg9[%c2_188, %c0_189, %c0_190] : memref<3x1x64xf32, #tpu.memory_space<vmem>>, vector<1x1x64xf32>
    %579 = vector.shape_cast %578 : vector<1x1x64xf32> to vector<1x64xf32>
    %580 = vector.broadcast %579 : vector<1x64xf32> to vector<16x64xf32>
    %581 = arith.addf %577, %580 : vector<16x64xf32>
    %cst_191 = arith.constant 0.000000e+00 : f32
    %582 = vector.broadcast %cst_191 : f32 to vector<16x64xf32>
    %583 = arith.maximumf %581, %582 : vector<16x64xf32>
    %c2_192 = arith.constant 2 : index
    %c0_193 = arith.constant 0 : index
    %c0_194 = arith.constant 0 : index
    %584 = vector.load %arg10[%c2_192, %c0_193, %c0_194] : memref<3x64x32xf32, #tpu.memory_space<vmem>>, vector<1x64x32xf32>
    %585 = vector.shape_cast %584 : vector<1x64x32xf32> to vector<64x32xf32>
    %cst_195 = arith.constant dense<0.000000e+00> : vector<16x32xf32>
    %586 = tpu.matmul %583, %585, %cst_195 {dimension_numbers = #tpu.dot_dimension_numbers<[1], [0], [0], [1], [0, 0, 1, 1], [], []>} : vector<16x64xf32>, vector<64x32xf32>, vector<16x32xf32> -> vector<16x32xf32>
    %587 = arith.addf %544, %586 : vector<16x32xf32>
    %c2_196 = arith.constant 2 : index
    %c0_197 = arith.constant 0 : index
    %c0_198 = arith.constant 0 : index
    %588 = vector.load %arg11[%c2_196, %c0_197, %c0_198] : memref<3x1x32xf32, #tpu.memory_space<vmem>>, vector<1x1x32xf32>
    %589 = vector.shape_cast %588 : vector<1x1x32xf32> to vector<1x32xf32>
    %590 = vector.broadcast %589 : vector<1x32xf32> to vector<16x32xf32>
    %591 = arith.addf %587, %590 : vector<16x32xf32>
    %c1_199 = arith.constant 1 : index
    %c0_200 = arith.constant 0 : index
    %c0_201 = arith.constant 0 : index
    %592 = vector.load %arg15[%c1_199, %c0_200, %c0_201] : memref<2x2x32xf32, #tpu.memory_space<vmem>>, vector<1x2x32xf32>
    %593 = vector.shape_cast %592 : vector<1x2x32xf32> to vector<2x32xf32>
    %c1_202 = arith.constant 1 : index
    %c0_203 = arith.constant 0 : index
    %c0_204 = arith.constant 0 : index
    %c0_205 = arith.constant 0 : index
    %594 = vector.load %arg13[%c1_202, %c0_203, %c0_204, %c0_205] : memref<2x4x32x32xf32, #tpu.memory_space<vmem>>, vector<1x4x32x32xf32>
    %595 = vector.shape_cast %594 : vector<1x4x32x32xf32> to vector<4x32x32xf32>
    %c1_206 = arith.constant 1 : index
    %c0_207 = arith.constant 0 : index
    %c0_208 = arith.constant 0 : index
    %596 = vector.load %arg14[%c1_206, %c0_207, %c0_208] : memref<2x4x32xf32, #tpu.memory_space<vmem>>, vector<1x4x32xf32>
    %597 = vector.shape_cast %596 : vector<1x4x32xf32> to vector<4x32xf32>
    %598 = vector.extract_strided_slice %593 {offsets = [0, 0], sizes = [1, 32], strides = [1, 1]} : vector<2x32xf32> to vector<1x32xf32>
    %599 = vector.shape_cast %598 : vector<1x32xf32> to vector<32xf32>
    %600 = vector.extract_strided_slice %593 {offsets = [1, 0], sizes = [1, 32], strides = [1, 1]} : vector<2x32xf32> to vector<1x32xf32>
    %601 = vector.shape_cast %600 : vector<1x32xf32> to vector<32xf32>
    %cst_209 = arith.constant dense<0.000000e+00> : vector<16xf32>
    %602 = vector.multi_reduction <add>, %591, %cst_209 [1] : vector<16x32xf32> to vector<16xf32>
    %603 = vector.shape_cast %602 : vector<16xf32> to vector<16x1xf32>
    %cst_210 = arith.constant 3.200000e+01 : f32
    %604 = vector.broadcast %cst_210 : f32 to vector<16x1xf32>
    %605 = arith.divf %603, %604 : vector<16x1xf32>
    %606 = vector.broadcast %605 : vector<16x1xf32> to vector<16x32xf32>
    %607 = arith.subf %591, %606 : vector<16x32xf32>
    %608 = arith.mulf %607, %607 : vector<16x32xf32>
    %cst_211 = arith.constant dense<0.000000e+00> : vector<16xf32>
    %609 = vector.multi_reduction <add>, %608, %cst_211 [1] : vector<16x32xf32> to vector<16xf32>
    %610 = vector.shape_cast %609 : vector<16xf32> to vector<16x1xf32>
    %cst_212 = arith.constant 3.200000e+01 : f32
    %611 = vector.broadcast %cst_212 : f32 to vector<16x1xf32>
    %612 = arith.divf %610, %611 : vector<16x1xf32>
    %613 = vector.broadcast %605 : vector<16x1xf32> to vector<16x32xf32>
    %614 = arith.subf %591, %613 : vector<16x32xf32>
    %cst_213 = arith.constant 9.99999974E-6 : f32
    %615 = vector.broadcast %cst_213 : f32 to vector<16x1xf32>
    %616 = arith.addf %612, %615 : vector<16x1xf32>
    %617 = math.rsqrt %616 : vector<16x1xf32>
    %618 = vector.broadcast %617 : vector<16x1xf32> to vector<16x32xf32>
    %619 = arith.mulf %614, %618 : vector<16x32xf32>
    %620 = vector.shape_cast %599 : vector<32xf32> to vector<1x32xf32>
    %621 = vector.broadcast %620 : vector<1x32xf32> to vector<16x32xf32>
    %622 = arith.mulf %619, %621 : vector<16x32xf32>
    %623 = vector.shape_cast %601 : vector<32xf32> to vector<1x32xf32>
    %624 = vector.broadcast %623 : vector<1x32xf32> to vector<16x32xf32>
    %625 = arith.addf %622, %624 : vector<16x32xf32>
    %626 = vector.extract_strided_slice %595 {offsets = [1, 0, 0], sizes = [1, 32, 32], strides = [1, 1, 1]} : vector<4x32x32xf32> to vector<1x32x32xf32>
    %627 = vector.shape_cast %626 : vector<1x32x32xf32> to vector<32x32xf32>
    %cst_214 = arith.constant dense<0.000000e+00> : vector<16x32xf32>
    %628 = tpu.matmul %625, %627, %cst_214 {dimension_numbers = #tpu.dot_dimension_numbers<[1], [0], [0], [1], [0, 0, 1, 1], [], []>} : vector<16x32xf32>, vector<32x32xf32>, vector<16x32xf32> -> vector<16x32xf32>
    %629 = vector.extract_strided_slice %597 {offsets = [1, 0], sizes = [1, 32], strides = [1, 1]} : vector<4x32xf32> to vector<1x32xf32>
    %630 = vector.shape_cast %629 : vector<1x32xf32> to vector<32xf32>
    %631 = vector.shape_cast %630 : vector<32xf32> to vector<1x32xf32>
    %632 = vector.broadcast %631 : vector<1x32xf32> to vector<16x32xf32>
    %633 = arith.addf %628, %632 : vector<16x32xf32>
    %634 = vector.extract_strided_slice %595 {offsets = [2, 0, 0], sizes = [1, 32, 32], strides = [1, 1, 1]} : vector<4x32x32xf32> to vector<1x32x32xf32>
    %635 = vector.shape_cast %634 : vector<1x32x32xf32> to vector<32x32xf32>
    %cst_215 = arith.constant dense<0.000000e+00> : vector<16x32xf32>
    %636 = tpu.matmul %625, %635, %cst_215 {dimension_numbers = #tpu.dot_dimension_numbers<[1], [0], [0], [1], [0, 0, 1, 1], [], []>} : vector<16x32xf32>, vector<32x32xf32>, vector<16x32xf32> -> vector<16x32xf32>
    %637 = vector.extract_strided_slice %597 {offsets = [2, 0], sizes = [1, 32], strides = [1, 1]} : vector<4x32xf32> to vector<1x32xf32>
    %638 = vector.shape_cast %637 : vector<1x32xf32> to vector<32xf32>
    %639 = vector.shape_cast %638 : vector<32xf32> to vector<1x32xf32>
    %640 = vector.broadcast %639 : vector<1x32xf32> to vector<16x32xf32>
    %641 = arith.addf %636, %640 : vector<16x32xf32>
    %c0_216 = arith.constant 0 : index
    %c0_217 = arith.constant 0 : index
    %c0_218 = arith.constant 0 : index
    %642 = vector.load %arg15[%c0_216, %c0_217, %c0_218] : memref<2x2x32xf32, #tpu.memory_space<vmem>>, vector<1x2x32xf32>
    %643 = vector.shape_cast %642 : vector<1x2x32xf32> to vector<2x32xf32>
    %c0_219 = arith.constant 0 : index
    %c0_220 = arith.constant 0 : index
    %c0_221 = arith.constant 0 : index
    %c0_222 = arith.constant 0 : index
    %644 = vector.load %arg13[%c0_219, %c0_220, %c0_221, %c0_222] : memref<2x4x32x32xf32, #tpu.memory_space<vmem>>, vector<1x4x32x32xf32>
    %645 = vector.shape_cast %644 : vector<1x4x32x32xf32> to vector<4x32x32xf32>
    %c0_223 = arith.constant 0 : index
    %c0_224 = arith.constant 0 : index
    %c0_225 = arith.constant 0 : index
    %646 = vector.load %arg14[%c0_223, %c0_224, %c0_225] : memref<2x4x32xf32, #tpu.memory_space<vmem>>, vector<1x4x32xf32>
    %647 = vector.shape_cast %646 : vector<1x4x32xf32> to vector<4x32xf32>
    %648 = vector.extract_strided_slice %643 {offsets = [0, 0], sizes = [1, 32], strides = [1, 1]} : vector<2x32xf32> to vector<1x32xf32>
    %649 = vector.shape_cast %648 : vector<1x32xf32> to vector<32xf32>
    %650 = vector.extract_strided_slice %643 {offsets = [1, 0], sizes = [1, 32], strides = [1, 1]} : vector<2x32xf32> to vector<1x32xf32>
    %651 = vector.shape_cast %650 : vector<1x32xf32> to vector<32xf32>
    %cst_226 = arith.constant dense<0.000000e+00> : vector<16xf32>
    %652 = vector.multi_reduction <add>, %1, %cst_226 [1] : vector<16x32xf32> to vector<16xf32>
    %653 = vector.shape_cast %652 : vector<16xf32> to vector<16x1xf32>
    %cst_227 = arith.constant 3.200000e+01 : f32
    %654 = vector.broadcast %cst_227 : f32 to vector<16x1xf32>
    %655 = arith.divf %653, %654 : vector<16x1xf32>
    %656 = vector.broadcast %655 : vector<16x1xf32> to vector<16x32xf32>
    %657 = arith.subf %1, %656 : vector<16x32xf32>
    %658 = arith.mulf %657, %657 : vector<16x32xf32>
    %cst_228 = arith.constant dense<0.000000e+00> : vector<16xf32>
    %659 = vector.multi_reduction <add>, %658, %cst_228 [1] : vector<16x32xf32> to vector<16xf32>
    %660 = vector.shape_cast %659 : vector<16xf32> to vector<16x1xf32>
    %cst_229 = arith.constant 3.200000e+01 : f32
    %661 = vector.broadcast %cst_229 : f32 to vector<16x1xf32>
    %662 = arith.divf %660, %661 : vector<16x1xf32>
    %663 = vector.broadcast %655 : vector<16x1xf32> to vector<16x32xf32>
    %664 = arith.subf %1, %663 : vector<16x32xf32>
    %cst_230 = arith.constant 9.99999974E-6 : f32
    %665 = vector.broadcast %cst_230 : f32 to vector<16x1xf32>
    %666 = arith.addf %662, %665 : vector<16x1xf32>
    %667 = math.rsqrt %666 : vector<16x1xf32>
    %668 = vector.broadcast %667 : vector<16x1xf32> to vector<16x32xf32>
    %669 = arith.mulf %664, %668 : vector<16x32xf32>
    %670 = vector.shape_cast %649 : vector<32xf32> to vector<1x32xf32>
    %671 = vector.broadcast %670 : vector<1x32xf32> to vector<16x32xf32>
    %672 = arith.mulf %669, %671 : vector<16x32xf32>
    %673 = vector.shape_cast %651 : vector<32xf32> to vector<1x32xf32>
    %674 = vector.broadcast %673 : vector<1x32xf32> to vector<16x32xf32>
    %675 = arith.addf %672, %674 : vector<16x32xf32>
    %676 = vector.extract_strided_slice %645 {offsets = [0, 0, 0], sizes = [1, 32, 32], strides = [1, 1, 1]} : vector<4x32x32xf32> to vector<1x32x32xf32>
    %677 = vector.shape_cast %676 : vector<1x32x32xf32> to vector<32x32xf32>
    %cst_231 = arith.constant dense<0.000000e+00> : vector<16x32xf32>
    %678 = tpu.matmul %675, %677, %cst_231 {dimension_numbers = #tpu.dot_dimension_numbers<[1], [0], [0], [1], [0, 0, 1, 1], [], []>} : vector<16x32xf32>, vector<32x32xf32>, vector<16x32xf32> -> vector<16x32xf32>
    %679 = vector.extract_strided_slice %647 {offsets = [0, 0], sizes = [1, 32], strides = [1, 1]} : vector<4x32xf32> to vector<1x32xf32>
    %680 = vector.shape_cast %679 : vector<1x32xf32> to vector<32xf32>
    %681 = vector.shape_cast %680 : vector<32xf32> to vector<1x32xf32>
    %682 = vector.broadcast %681 : vector<1x32xf32> to vector<16x32xf32>
    %683 = arith.addf %678, %682 : vector<16x32xf32>
    %684 = vector.extract_strided_slice %645 {offsets = [1, 0, 0], sizes = [1, 32, 32], strides = [1, 1, 1]} : vector<4x32x32xf32> to vector<1x32x32xf32>
    %685 = vector.shape_cast %684 : vector<1x32x32xf32> to vector<32x32xf32>
    %cst_232 = arith.constant dense<0.000000e+00> : vector<16x32xf32>
    %686 = tpu.matmul %675, %685, %cst_232 {dimension_numbers = #tpu.dot_dimension_numbers<[1], [0], [0], [1], [0, 0, 1, 1], [], []>} : vector<16x32xf32>, vector<32x32xf32>, vector<16x32xf32> -> vector<16x32xf32>
    %687 = vector.extract_strided_slice %647 {offsets = [1, 0], sizes = [1, 32], strides = [1, 1]} : vector<4x32xf32> to vector<1x32xf32>
    %688 = vector.shape_cast %687 : vector<1x32xf32> to vector<32xf32>
    %689 = vector.shape_cast %688 : vector<32xf32> to vector<1x32xf32>
    %690 = vector.broadcast %689 : vector<1x32xf32> to vector<16x32xf32>
    %691 = arith.addf %686, %690 : vector<16x32xf32>
    %692 = vector.extract_strided_slice %645 {offsets = [2, 0, 0], sizes = [1, 32, 32], strides = [1, 1, 1]} : vector<4x32x32xf32> to vector<1x32x32xf32>
    %693 = vector.shape_cast %692 : vector<1x32x32xf32> to vector<32x32xf32>
    %cst_233 = arith.constant dense<0.000000e+00> : vector<16x32xf32>
    %694 = tpu.matmul %675, %693, %cst_233 {dimension_numbers = #tpu.dot_dimension_numbers<[1], [0], [0], [1], [0, 0, 1, 1], [], []>} : vector<16x32xf32>, vector<32x32xf32>, vector<16x32xf32> -> vector<16x32xf32>
    %695 = vector.extract_strided_slice %647 {offsets = [2, 0], sizes = [1, 32], strides = [1, 1]} : vector<4x32xf32> to vector<1x32xf32>
    %696 = vector.shape_cast %695 : vector<1x32xf32> to vector<32xf32>
    %697 = vector.shape_cast %696 : vector<32xf32> to vector<1x32xf32>
    %698 = vector.broadcast %697 : vector<1x32xf32> to vector<16x32xf32>
    %699 = arith.addf %694, %698 : vector<16x32xf32>
    %700 = vector.extract_strided_slice %645 {offsets = [3, 0, 0], sizes = [1, 32, 32], strides = [1, 1, 1]} : vector<4x32x32xf32> to vector<1x32x32xf32>
    %701 = vector.shape_cast %700 : vector<1x32x32xf32> to vector<32x32xf32>
    %702 = vector.extract_strided_slice %647 {offsets = [3, 0], sizes = [1, 32], strides = [1, 1]} : vector<4x32xf32> to vector<1x32xf32>
    %703 = vector.shape_cast %702 : vector<1x32xf32> to vector<32xf32>
    %704 = vector.shape_cast %703 : vector<32xf32> to vector<1x32xf32>
    %705 = vector.broadcast %704 : vector<1x32xf32> to vector<16x32xf32>
    %706 = arith.addf %1, %705 : vector<16x32xf32>
    %707 = vector.extract_strided_slice %683 {offsets = [0, 0], sizes = [16, 8], strides = [1, 1]} : vector<16x32xf32> to vector<16x8xf32>
    %708 = vector.extract_strided_slice %691 {offsets = [0, 0], sizes = [16, 8], strides = [1, 1]} : vector<16x32xf32> to vector<16x8xf32>
    "tpu.trace_start"() <{level = 10 : i32, message = "qd,kd->qk"}> : () -> ()
    %cst_234 = arith.constant dense<0.000000e+00> : vector<16x16xf32>
    %709 = tpu.matmul %707, %708, %cst_234 {dimension_numbers = #tpu.dot_dimension_numbers<[1], [1], [0], [0], [0, 0, 1, 0], [], []>} : vector<16x8xf32>, vector<16x8xf32>, vector<16x16xf32> -> vector<16x16xf32>
    "tpu.trace_stop"() : () -> ()
    %cst_235 = arith.constant 0.353553385 : f32
    %710 = vector.broadcast %cst_235 : f32 to vector<16x16xf32>
    %711 = arith.mulf %709, %710 : vector<16x16xf32>
    %712 = arith.addf %711, %3 : vector<16x16xf32>
    %cst_236 = arith.constant dense<0xFF800000> : vector<16xf32>
    %713 = vector.multi_reduction <maximumf>, %712, %cst_236 [1] : vector<16x16xf32> to vector<16xf32>
    %714 = vector.shape_cast %713 : vector<16xf32> to vector<16x1xf32>
    %715 = vector.broadcast %714 : vector<16x1xf32> to vector<16x16xf32>
    %716 = arith.subf %712, %715 : vector<16x16xf32>
    %717 = math.exp %716 : vector<16x16xf32>
    %cst_237 = arith.constant dense<0.000000e+00> : vector<16xf32>
    %718 = vector.multi_reduction <add>, %717, %cst_237 [1] : vector<16x16xf32> to vector<16xf32>
    %719 = vector.shape_cast %718 : vector<16xf32> to vector<16x1xf32>
    %720 = tpu.reciprocal %719 {approx = true} : vector<16x1xf32> -> vector<16x1xf32>
    %721 = vector.broadcast %720 : vector<16x1xf32> to vector<16x16xf32>
    %722 = arith.mulf %717, %721 : vector<16x16xf32>
    %723 = vector.extract_strided_slice %699 {offsets = [0, 0], sizes = [16, 8], strides = [1, 1]} : vector<16x32xf32> to vector<16x8xf32>
    %cst_238 = arith.constant dense<0.000000e+00> : vector<16x8xf32>
    %724 = tpu.matmul %722, %723, %cst_238 {dimension_numbers = #tpu.dot_dimension_numbers<[1], [0], [0], [1], [0, 0, 1, 1], [], []>} : vector<16x16xf32>, vector<16x8xf32>, vector<16x8xf32> -> vector<16x8xf32>
    %725 = vector.extract_strided_slice %701 {offsets = [0, 0], sizes = [8, 32], strides = [1, 1]} : vector<32x32xf32> to vector<8x32xf32>
    %cst_239 = arith.constant dense<0.000000e+00> : vector<16x32xf32>
    %726 = tpu.matmul %724, %725, %cst_239 {dimension_numbers = #tpu.dot_dimension_numbers<[1], [0], [0], [1], [0, 0, 1, 1], [], []>} : vector<16x8xf32>, vector<8x32xf32>, vector<16x32xf32> -> vector<16x32xf32>
    %727 = arith.addf %706, %726 : vector<16x32xf32>
    %728 = vector.extract_strided_slice %683 {offsets = [0, 8], sizes = [16, 8], strides = [1, 1]} : vector<16x32xf32> to vector<16x8xf32>
    %729 = vector.extract_strided_slice %691 {offsets = [0, 8], sizes = [16, 8], strides = [1, 1]} : vector<16x32xf32> to vector<16x8xf32>
    "tpu.trace_start"() <{level = 10 : i32, message = "qd,kd->qk"}> : () -> ()
    %cst_240 = arith.constant dense<0.000000e+00> : vector<16x16xf32>
    %730 = tpu.matmul %728, %729, %cst_240 {dimension_numbers = #tpu.dot_dimension_numbers<[1], [1], [0], [0], [0, 0, 1, 0], [], []>} : vector<16x8xf32>, vector<16x8xf32>, vector<16x16xf32> -> vector<16x16xf32>
    "tpu.trace_stop"() : () -> ()
    %cst_241 = arith.constant 0.353553385 : f32
    %731 = vector.broadcast %cst_241 : f32 to vector<16x16xf32>
    %732 = arith.mulf %730, %731 : vector<16x16xf32>
    %733 = arith.addf %732, %3 : vector<16x16xf32>
    %cst_242 = arith.constant dense<0xFF800000> : vector<16xf32>
    %734 = vector.multi_reduction <maximumf>, %733, %cst_242 [1] : vector<16x16xf32> to vector<16xf32>
    %735 = vector.shape_cast %734 : vector<16xf32> to vector<16x1xf32>
    %736 = vector.broadcast %735 : vector<16x1xf32> to vector<16x16xf32>
    %737 = arith.subf %733, %736 : vector<16x16xf32>
    %738 = math.exp %737 : vector<16x16xf32>
    %cst_243 = arith.constant dense<0.000000e+00> : vector<16xf32>
    %739 = vector.multi_reduction <add>, %738, %cst_243 [1] : vector<16x16xf32> to vector<16xf32>
    %740 = vector.shape_cast %739 : vector<16xf32> to vector<16x1xf32>
    %741 = tpu.reciprocal %740 {approx = true} : vector<16x1xf32> -> vector<16x1xf32>
    %742 = vector.broadcast %741 : vector<16x1xf32> to vector<16x16xf32>
    %743 = arith.mulf %738, %742 : vector<16x16xf32>
    %744 = vector.extract_strided_slice %699 {offsets = [0, 8], sizes = [16, 8], strides = [1, 1]} : vector<16x32xf32> to vector<16x8xf32>
    %cst_244 = arith.constant dense<0.000000e+00> : vector<16x8xf32>
    %745 = tpu.matmul %743, %744, %cst_244 {dimension_numbers = #tpu.dot_dimension_numbers<[1], [0], [0], [1], [0, 0, 1, 1], [], []>} : vector<16x16xf32>, vector<16x8xf32>, vector<16x8xf32> -> vector<16x8xf32>
    %746 = vector.extract_strided_slice %701 {offsets = [8, 0], sizes = [8, 32], strides = [1, 1]} : vector<32x32xf32> to vector<8x32xf32>
    %cst_245 = arith.constant dense<0.000000e+00> : vector<16x32xf32>
    %747 = tpu.matmul %745, %746, %cst_245 {dimension_numbers = #tpu.dot_dimension_numbers<[1], [0], [0], [1], [0, 0, 1, 1], [], []>} : vector<16x8xf32>, vector<8x32xf32>, vector<16x32xf32> -> vector<16x32xf32>
    %748 = arith.addf %727, %747 : vector<16x32xf32>
    %749 = vector.extract_strided_slice %683 {offsets = [0, 16], sizes = [16, 8], strides = [1, 1]} : vector<16x32xf32> to vector<16x8xf32>
    %750 = vector.extract_strided_slice %691 {offsets = [0, 16], sizes = [16, 8], strides = [1, 1]} : vector<16x32xf32> to vector<16x8xf32>
    "tpu.trace_start"() <{level = 10 : i32, message = "qd,kd->qk"}> : () -> ()
    %cst_246 = arith.constant dense<0.000000e+00> : vector<16x16xf32>
    %751 = tpu.matmul %749, %750, %cst_246 {dimension_numbers = #tpu.dot_dimension_numbers<[1], [1], [0], [0], [0, 0, 1, 0], [], []>} : vector<16x8xf32>, vector<16x8xf32>, vector<16x16xf32> -> vector<16x16xf32>
    "tpu.trace_stop"() : () -> ()
    %cst_247 = arith.constant 0.353553385 : f32
    %752 = vector.broadcast %cst_247 : f32 to vector<16x16xf32>
    %753 = arith.mulf %751, %752 : vector<16x16xf32>
    %754 = arith.addf %753, %3 : vector<16x16xf32>
    %cst_248 = arith.constant dense<0xFF800000> : vector<16xf32>
    %755 = vector.multi_reduction <maximumf>, %754, %cst_248 [1] : vector<16x16xf32> to vector<16xf32>
    %756 = vector.shape_cast %755 : vector<16xf32> to vector<16x1xf32>
    %757 = vector.broadcast %756 : vector<16x1xf32> to vector<16x16xf32>
    %758 = arith.subf %754, %757 : vector<16x16xf32>
    %759 = math.exp %758 : vector<16x16xf32>
    %cst_249 = arith.constant dense<0.000000e+00> : vector<16xf32>
    %760 = vector.multi_reduction <add>, %759, %cst_249 [1] : vector<16x16xf32> to vector<16xf32>
    %761 = vector.shape_cast %760 : vector<16xf32> to vector<16x1xf32>
    %762 = tpu.reciprocal %761 {approx = true} : vector<16x1xf32> -> vector<16x1xf32>
    %763 = vector.broadcast %762 : vector<16x1xf32> to vector<16x16xf32>
    %764 = arith.mulf %759, %763 : vector<16x16xf32>
    %765 = vector.extract_strided_slice %699 {offsets = [0, 16], sizes = [16, 8], strides = [1, 1]} : vector<16x32xf32> to vector<16x8xf32>
    %cst_250 = arith.constant dense<0.000000e+00> : vector<16x8xf32>
    %766 = tpu.matmul %764, %765, %cst_250 {dimension_numbers = #tpu.dot_dimension_numbers<[1], [0], [0], [1], [0, 0, 1, 1], [], []>} : vector<16x16xf32>, vector<16x8xf32>, vector<16x8xf32> -> vector<16x8xf32>
    %767 = vector.extract_strided_slice %701 {offsets = [16, 0], sizes = [8, 32], strides = [1, 1]} : vector<32x32xf32> to vector<8x32xf32>
    %cst_251 = arith.constant dense<0.000000e+00> : vector<16x32xf32>
    %768 = tpu.matmul %766, %767, %cst_251 {dimension_numbers = #tpu.dot_dimension_numbers<[1], [0], [0], [1], [0, 0, 1, 1], [], []>} : vector<16x8xf32>, vector<8x32xf32>, vector<16x32xf32> -> vector<16x32xf32>
    %769 = arith.addf %748, %768 : vector<16x32xf32>
    %770 = vector.extract_strided_slice %683 {offsets = [0, 24], sizes = [16, 8], strides = [1, 1]} : vector<16x32xf32> to vector<16x8xf32>
    %771 = vector.extract_strided_slice %691 {offsets = [0, 24], sizes = [16, 8], strides = [1, 1]} : vector<16x32xf32> to vector<16x8xf32>
    "tpu.trace_start"() <{level = 10 : i32, message = "qd,kd->qk"}> : () -> ()
    %cst_252 = arith.constant dense<0.000000e+00> : vector<16x16xf32>
    %772 = tpu.matmul %770, %771, %cst_252 {dimension_numbers = #tpu.dot_dimension_numbers<[1], [1], [0], [0], [0, 0, 1, 0], [], []>} : vector<16x8xf32>, vector<16x8xf32>, vector<16x16xf32> -> vector<16x16xf32>
    "tpu.trace_stop"() : () -> ()
    %cst_253 = arith.constant 0.353553385 : f32
    %773 = vector.broadcast %cst_253 : f32 to vector<16x16xf32>
    %774 = arith.mulf %772, %773 : vector<16x16xf32>
    %775 = arith.addf %774, %3 : vector<16x16xf32>
    %cst_254 = arith.constant dense<0xFF800000> : vector<16xf32>
    %776 = vector.multi_reduction <maximumf>, %775, %cst_254 [1] : vector<16x16xf32> to vector<16xf32>
    %777 = vector.shape_cast %776 : vector<16xf32> to vector<16x1xf32>
    %778 = vector.broadcast %777 : vector<16x1xf32> to vector<16x16xf32>
    %779 = arith.subf %775, %778 : vector<16x16xf32>
    %780 = math.exp %779 : vector<16x16xf32>
    %cst_255 = arith.constant dense<0.000000e+00> : vector<16xf32>
    %781 = vector.multi_reduction <add>, %780, %cst_255 [1] : vector<16x16xf32> to vector<16xf32>
    %782 = vector.shape_cast %781 : vector<16xf32> to vector<16x1xf32>
    %783 = tpu.reciprocal %782 {approx = true} : vector<16x1xf32> -> vector<16x1xf32>
    %784 = vector.broadcast %783 : vector<16x1xf32> to vector<16x16xf32>
    %785 = arith.mulf %780, %784 : vector<16x16xf32>
    %786 = vector.extract_strided_slice %699 {offsets = [0, 24], sizes = [16, 8], strides = [1, 1]} : vector<16x32xf32> to vector<16x8xf32>
    %cst_256 = arith.constant dense<0.000000e+00> : vector<16x8xf32>
    %787 = tpu.matmul %785, %786, %cst_256 {dimension_numbers = #tpu.dot_dimension_numbers<[1], [0], [0], [1], [0, 0, 1, 1], [], []>} : vector<16x16xf32>, vector<16x8xf32>, vector<16x8xf32> -> vector<16x8xf32>
    %788 = vector.extract_strided_slice %701 {offsets = [24, 0], sizes = [8, 32], strides = [1, 1]} : vector<32x32xf32> to vector<8x32xf32>
    %cst_257 = arith.constant dense<0.000000e+00> : vector<16x32xf32>
    %789 = tpu.matmul %787, %788, %cst_257 {dimension_numbers = #tpu.dot_dimension_numbers<[1], [0], [0], [1], [0, 0, 1, 1], [], []>} : vector<16x8xf32>, vector<8x32xf32>, vector<16x32xf32> -> vector<16x32xf32>
    %790 = arith.addf %769, %789 : vector<16x32xf32>
    %791 = vector.extract_strided_slice %593 {offsets = [0, 0], sizes = [1, 32], strides = [1, 1]} : vector<2x32xf32> to vector<1x32xf32>
    %792 = vector.shape_cast %791 : vector<1x32xf32> to vector<32xf32>
    %793 = vector.extract_strided_slice %593 {offsets = [1, 0], sizes = [1, 32], strides = [1, 1]} : vector<2x32xf32> to vector<1x32xf32>
    %794 = vector.shape_cast %793 : vector<1x32xf32> to vector<32xf32>
    %cst_258 = arith.constant dense<0.000000e+00> : vector<16xf32>
    %795 = vector.multi_reduction <add>, %790, %cst_258 [1] : vector<16x32xf32> to vector<16xf32>
    %796 = vector.shape_cast %795 : vector<16xf32> to vector<16x1xf32>
    %cst_259 = arith.constant 3.200000e+01 : f32
    %797 = vector.broadcast %cst_259 : f32 to vector<16x1xf32>
    %798 = arith.divf %796, %797 : vector<16x1xf32>
    %799 = vector.broadcast %798 : vector<16x1xf32> to vector<16x32xf32>
    %800 = arith.subf %790, %799 : vector<16x32xf32>
    %801 = arith.mulf %800, %800 : vector<16x32xf32>
    %cst_260 = arith.constant dense<0.000000e+00> : vector<16xf32>
    %802 = vector.multi_reduction <add>, %801, %cst_260 [1] : vector<16x32xf32> to vector<16xf32>
    %803 = vector.shape_cast %802 : vector<16xf32> to vector<16x1xf32>
    %cst_261 = arith.constant 3.200000e+01 : f32
    %804 = vector.broadcast %cst_261 : f32 to vector<16x1xf32>
    %805 = arith.divf %803, %804 : vector<16x1xf32>
    %806 = vector.broadcast %798 : vector<16x1xf32> to vector<16x32xf32>
    %807 = arith.subf %790, %806 : vector<16x32xf32>
    %cst_262 = arith.constant 9.99999974E-6 : f32
    %808 = vector.broadcast %cst_262 : f32 to vector<16x1xf32>
    %809 = arith.addf %805, %808 : vector<16x1xf32>
    %810 = math.rsqrt %809 : vector<16x1xf32>
    %811 = vector.broadcast %810 : vector<16x1xf32> to vector<16x32xf32>
    %812 = arith.mulf %807, %811 : vector<16x32xf32>
    %813 = vector.shape_cast %792 : vector<32xf32> to vector<1x32xf32>
    %814 = vector.broadcast %813 : vector<1x32xf32> to vector<16x32xf32>
    %815 = arith.mulf %812, %814 : vector<16x32xf32>
    %816 = vector.shape_cast %794 : vector<32xf32> to vector<1x32xf32>
    %817 = vector.broadcast %816 : vector<1x32xf32> to vector<16x32xf32>
    %818 = arith.addf %815, %817 : vector<16x32xf32>
    %819 = vector.extract_strided_slice %595 {offsets = [0, 0, 0], sizes = [1, 32, 32], strides = [1, 1, 1]} : vector<4x32x32xf32> to vector<1x32x32xf32>
    %820 = vector.shape_cast %819 : vector<1x32x32xf32> to vector<32x32xf32>
    %cst_263 = arith.constant dense<0.000000e+00> : vector<16x32xf32>
    %821 = tpu.matmul %818, %820, %cst_263 {dimension_numbers = #tpu.dot_dimension_numbers<[1], [0], [0], [1], [0, 0, 1, 1], [], []>} : vector<16x32xf32>, vector<32x32xf32>, vector<16x32xf32> -> vector<16x32xf32>
    %822 = vector.extract_strided_slice %597 {offsets = [0, 0], sizes = [1, 32], strides = [1, 1]} : vector<4x32xf32> to vector<1x32xf32>
    %823 = vector.shape_cast %822 : vector<1x32xf32> to vector<32xf32>
    %824 = vector.shape_cast %823 : vector<32xf32> to vector<1x32xf32>
    %825 = vector.broadcast %824 : vector<1x32xf32> to vector<16x32xf32>
    %826 = arith.addf %821, %825 : vector<16x32xf32>
    %827 = vector.extract_strided_slice %595 {offsets = [3, 0, 0], sizes = [1, 32, 32], strides = [1, 1, 1]} : vector<4x32x32xf32> to vector<1x32x32xf32>
    %828 = vector.shape_cast %827 : vector<1x32x32xf32> to vector<32x32xf32>
    %829 = vector.extract_strided_slice %597 {offsets = [3, 0], sizes = [1, 32], strides = [1, 1]} : vector<4x32xf32> to vector<1x32xf32>
    %830 = vector.shape_cast %829 : vector<1x32xf32> to vector<32xf32>
    %831 = vector.shape_cast %830 : vector<32xf32> to vector<1x32xf32>
    %832 = vector.broadcast %831 : vector<1x32xf32> to vector<16x32xf32>
    %833 = arith.addf %790, %832 : vector<16x32xf32>
    %834 = vector.extract_strided_slice %826 {offsets = [0, 0], sizes = [16, 8], strides = [1, 1]} : vector<16x32xf32> to vector<16x8xf32>
    %835 = vector.extract_strided_slice %633 {offsets = [0, 0], sizes = [16, 8], strides = [1, 1]} : vector<16x32xf32> to vector<16x8xf32>
    "tpu.trace_start"() <{level = 10 : i32, message = "qd,kd->qk"}> : () -> ()
    %cst_264 = arith.constant dense<0.000000e+00> : vector<16x16xf32>
    %836 = tpu.matmul %834, %835, %cst_264 {dimension_numbers = #tpu.dot_dimension_numbers<[1], [1], [0], [0], [0, 0, 1, 0], [], []>} : vector<16x8xf32>, vector<16x8xf32>, vector<16x16xf32> -> vector<16x16xf32>
    "tpu.trace_stop"() : () -> ()
    %cst_265 = arith.constant 0.353553385 : f32
    %837 = vector.broadcast %cst_265 : f32 to vector<16x16xf32>
    %838 = arith.mulf %836, %837 : vector<16x16xf32>
    %839 = arith.addf %838, %2 : vector<16x16xf32>
    %cst_266 = arith.constant dense<0xFF800000> : vector<16xf32>
    %840 = vector.multi_reduction <maximumf>, %839, %cst_266 [1] : vector<16x16xf32> to vector<16xf32>
    %841 = vector.shape_cast %840 : vector<16xf32> to vector<16x1xf32>
    %842 = vector.broadcast %841 : vector<16x1xf32> to vector<16x16xf32>
    %843 = arith.subf %839, %842 : vector<16x16xf32>
    %844 = math.exp %843 : vector<16x16xf32>
    %cst_267 = arith.constant dense<0.000000e+00> : vector<16xf32>
    %845 = vector.multi_reduction <add>, %844, %cst_267 [1] : vector<16x16xf32> to vector<16xf32>
    %846 = vector.shape_cast %845 : vector<16xf32> to vector<16x1xf32>
    %847 = tpu.reciprocal %846 {approx = true} : vector<16x1xf32> -> vector<16x1xf32>
    %848 = vector.broadcast %847 : vector<16x1xf32> to vector<16x16xf32>
    %849 = arith.mulf %844, %848 : vector<16x16xf32>
    %850 = vector.extract_strided_slice %641 {offsets = [0, 0], sizes = [16, 8], strides = [1, 1]} : vector<16x32xf32> to vector<16x8xf32>
    %cst_268 = arith.constant dense<0.000000e+00> : vector<16x8xf32>
    %851 = tpu.matmul %849, %850, %cst_268 {dimension_numbers = #tpu.dot_dimension_numbers<[1], [0], [0], [1], [0, 0, 1, 1], [], []>} : vector<16x16xf32>, vector<16x8xf32>, vector<16x8xf32> -> vector<16x8xf32>
    %852 = vector.extract_strided_slice %828 {offsets = [0, 0], sizes = [8, 32], strides = [1, 1]} : vector<32x32xf32> to vector<8x32xf32>
    %cst_269 = arith.constant dense<0.000000e+00> : vector<16x32xf32>
    %853 = tpu.matmul %851, %852, %cst_269 {dimension_numbers = #tpu.dot_dimension_numbers<[1], [0], [0], [1], [0, 0, 1, 1], [], []>} : vector<16x8xf32>, vector<8x32xf32>, vector<16x32xf32> -> vector<16x32xf32>
    %854 = arith.addf %833, %853 : vector<16x32xf32>
    %855 = vector.extract_strided_slice %826 {offsets = [0, 8], sizes = [16, 8], strides = [1, 1]} : vector<16x32xf32> to vector<16x8xf32>
    %856 = vector.extract_strided_slice %633 {offsets = [0, 8], sizes = [16, 8], strides = [1, 1]} : vector<16x32xf32> to vector<16x8xf32>
    "tpu.trace_start"() <{level = 10 : i32, message = "qd,kd->qk"}> : () -> ()
    %cst_270 = arith.constant dense<0.000000e+00> : vector<16x16xf32>
    %857 = tpu.matmul %855, %856, %cst_270 {dimension_numbers = #tpu.dot_dimension_numbers<[1], [1], [0], [0], [0, 0, 1, 0], [], []>} : vector<16x8xf32>, vector<16x8xf32>, vector<16x16xf32> -> vector<16x16xf32>
    "tpu.trace_stop"() : () -> ()
    %cst_271 = arith.constant 0.353553385 : f32
    %858 = vector.broadcast %cst_271 : f32 to vector<16x16xf32>
    %859 = arith.mulf %857, %858 : vector<16x16xf32>
    %860 = arith.addf %859, %2 : vector<16x16xf32>
    %cst_272 = arith.constant dense<0xFF800000> : vector<16xf32>
    %861 = vector.multi_reduction <maximumf>, %860, %cst_272 [1] : vector<16x16xf32> to vector<16xf32>
    %862 = vector.shape_cast %861 : vector<16xf32> to vector<16x1xf32>
    %863 = vector.broadcast %862 : vector<16x1xf32> to vector<16x16xf32>
    %864 = arith.subf %860, %863 : vector<16x16xf32>
    %865 = math.exp %864 : vector<16x16xf32>
    %cst_273 = arith.constant dense<0.000000e+00> : vector<16xf32>
    %866 = vector.multi_reduction <add>, %865, %cst_273 [1] : vector<16x16xf32> to vector<16xf32>
    %867 = vector.shape_cast %866 : vector<16xf32> to vector<16x1xf32>
    %868 = tpu.reciprocal %867 {approx = true} : vector<16x1xf32> -> vector<16x1xf32>
    %869 = vector.broadcast %868 : vector<16x1xf32> to vector<16x16xf32>
    %870 = arith.mulf %865, %869 : vector<16x16xf32>
    %871 = vector.extract_strided_slice %641 {offsets = [0, 8], sizes = [16, 8], strides = [1, 1]} : vector<16x32xf32> to vector<16x8xf32>
    %cst_274 = arith.constant dense<0.000000e+00> : vector<16x8xf32>
    %872 = tpu.matmul %870, %871, %cst_274 {dimension_numbers = #tpu.dot_dimension_numbers<[1], [0], [0], [1], [0, 0, 1, 1], [], []>} : vector<16x16xf32>, vector<16x8xf32>, vector<16x8xf32> -> vector<16x8xf32>
    %873 = vector.extract_strided_slice %828 {offsets = [8, 0], sizes = [8, 32], strides = [1, 1]} : vector<32x32xf32> to vector<8x32xf32>
    %cst_275 = arith.constant dense<0.000000e+00> : vector<16x32xf32>
    %874 = tpu.matmul %872, %873, %cst_275 {dimension_numbers = #tpu.dot_dimension_numbers<[1], [0], [0], [1], [0, 0, 1, 1], [], []>} : vector<16x8xf32>, vector<8x32xf32>, vector<16x32xf32> -> vector<16x32xf32>
    %875 = arith.addf %854, %874 : vector<16x32xf32>
    %876 = vector.extract_strided_slice %826 {offsets = [0, 16], sizes = [16, 8], strides = [1, 1]} : vector<16x32xf32> to vector<16x8xf32>
    %877 = vector.extract_strided_slice %633 {offsets = [0, 16], sizes = [16, 8], strides = [1, 1]} : vector<16x32xf32> to vector<16x8xf32>
    "tpu.trace_start"() <{level = 10 : i32, message = "qd,kd->qk"}> : () -> ()
    %cst_276 = arith.constant dense<0.000000e+00> : vector<16x16xf32>
    %878 = tpu.matmul %876, %877, %cst_276 {dimension_numbers = #tpu.dot_dimension_numbers<[1], [1], [0], [0], [0, 0, 1, 0], [], []>} : vector<16x8xf32>, vector<16x8xf32>, vector<16x16xf32> -> vector<16x16xf32>
    "tpu.trace_stop"() : () -> ()
    %cst_277 = arith.constant 0.353553385 : f32
    %879 = vector.broadcast %cst_277 : f32 to vector<16x16xf32>
    %880 = arith.mulf %878, %879 : vector<16x16xf32>
    %881 = arith.addf %880, %2 : vector<16x16xf32>
    %cst_278 = arith.constant dense<0xFF800000> : vector<16xf32>
    %882 = vector.multi_reduction <maximumf>, %881, %cst_278 [1] : vector<16x16xf32> to vector<16xf32>
    %883 = vector.shape_cast %882 : vector<16xf32> to vector<16x1xf32>
    %884 = vector.broadcast %883 : vector<16x1xf32> to vector<16x16xf32>
    %885 = arith.subf %881, %884 : vector<16x16xf32>
    %886 = math.exp %885 : vector<16x16xf32>
    %cst_279 = arith.constant dense<0.000000e+00> : vector<16xf32>
    %887 = vector.multi_reduction <add>, %886, %cst_279 [1] : vector<16x16xf32> to vector<16xf32>
    %888 = vector.shape_cast %887 : vector<16xf32> to vector<16x1xf32>
    %889 = tpu.reciprocal %888 {approx = true} : vector<16x1xf32> -> vector<16x1xf32>
    %890 = vector.broadcast %889 : vector<16x1xf32> to vector<16x16xf32>
    %891 = arith.mulf %886, %890 : vector<16x16xf32>
    %892 = vector.extract_strided_slice %641 {offsets = [0, 16], sizes = [16, 8], strides = [1, 1]} : vector<16x32xf32> to vector<16x8xf32>
    %cst_280 = arith.constant dense<0.000000e+00> : vector<16x8xf32>
    %893 = tpu.matmul %891, %892, %cst_280 {dimension_numbers = #tpu.dot_dimension_numbers<[1], [0], [0], [1], [0, 0, 1, 1], [], []>} : vector<16x16xf32>, vector<16x8xf32>, vector<16x8xf32> -> vector<16x8xf32>
    %894 = vector.extract_strided_slice %828 {offsets = [16, 0], sizes = [8, 32], strides = [1, 1]} : vector<32x32xf32> to vector<8x32xf32>
    %cst_281 = arith.constant dense<0.000000e+00> : vector<16x32xf32>
    %895 = tpu.matmul %893, %894, %cst_281 {dimension_numbers = #tpu.dot_dimension_numbers<[1], [0], [0], [1], [0, 0, 1, 1], [], []>} : vector<16x8xf32>, vector<8x32xf32>, vector<16x32xf32> -> vector<16x32xf32>
    %896 = arith.addf %875, %895 : vector<16x32xf32>
    %897 = vector.extract_strided_slice %826 {offsets = [0, 24], sizes = [16, 8], strides = [1, 1]} : vector<16x32xf32> to vector<16x8xf32>
    %898 = vector.extract_strided_slice %633 {offsets = [0, 24], sizes = [16, 8], strides = [1, 1]} : vector<16x32xf32> to vector<16x8xf32>
    "tpu.trace_start"() <{level = 10 : i32, message = "qd,kd->qk"}> : () -> ()
    %cst_282 = arith.constant dense<0.000000e+00> : vector<16x16xf32>
    %899 = tpu.matmul %897, %898, %cst_282 {dimension_numbers = #tpu.dot_dimension_numbers<[1], [1], [0], [0], [0, 0, 1, 0], [], []>} : vector<16x8xf32>, vector<16x8xf32>, vector<16x16xf32> -> vector<16x16xf32>
    "tpu.trace_stop"() : () -> ()
    %cst_283 = arith.constant 0.353553385 : f32
    %900 = vector.broadcast %cst_283 : f32 to vector<16x16xf32>
    %901 = arith.mulf %899, %900 : vector<16x16xf32>
    %902 = arith.addf %901, %2 : vector<16x16xf32>
    %cst_284 = arith.constant dense<0xFF800000> : vector<16xf32>
    %903 = vector.multi_reduction <maximumf>, %902, %cst_284 [1] : vector<16x16xf32> to vector<16xf32>
    %904 = vector.shape_cast %903 : vector<16xf32> to vector<16x1xf32>
    %905 = vector.broadcast %904 : vector<16x1xf32> to vector<16x16xf32>
    %906 = arith.subf %902, %905 : vector<16x16xf32>
    %907 = math.exp %906 : vector<16x16xf32>
    %cst_285 = arith.constant dense<0.000000e+00> : vector<16xf32>
    %908 = vector.multi_reduction <add>, %907, %cst_285 [1] : vector<16x16xf32> to vector<16xf32>
    %909 = vector.shape_cast %908 : vector<16xf32> to vector<16x1xf32>
    %910 = tpu.reciprocal %909 {approx = true} : vector<16x1xf32> -> vector<16x1xf32>
    %911 = vector.broadcast %910 : vector<16x1xf32> to vector<16x16xf32>
    %912 = arith.mulf %907, %911 : vector<16x16xf32>
    %913 = vector.extract_strided_slice %641 {offsets = [0, 24], sizes = [16, 8], strides = [1, 1]} : vector<16x32xf32> to vector<16x8xf32>
    %cst_286 = arith.constant dense<0.000000e+00> : vector<16x8xf32>
    %914 = tpu.matmul %912, %913, %cst_286 {dimension_numbers = #tpu.dot_dimension_numbers<[1], [0], [0], [1], [0, 0, 1, 1], [], []>} : vector<16x16xf32>, vector<16x8xf32>, vector<16x8xf32> -> vector<16x8xf32>
    %915 = vector.extract_strided_slice %828 {offsets = [24, 0], sizes = [8, 32], strides = [1, 1]} : vector<32x32xf32> to vector<8x32xf32>
    %cst_287 = arith.constant dense<0.000000e+00> : vector<16x32xf32>
    %916 = tpu.matmul %914, %915, %cst_287 {dimension_numbers = #tpu.dot_dimension_numbers<[1], [0], [0], [1], [0, 0, 1, 1], [], []>} : vector<16x8xf32>, vector<8x32xf32>, vector<16x32xf32> -> vector<16x32xf32>
    %917 = arith.addf %896, %916 : vector<16x32xf32>
    %c0_288 = arith.constant 0 : index
    %c0_289 = arith.constant 0 : index
    %918 = vector.load %arg20[%c0_288, %c0_289] : memref<2x32xf32, #tpu.memory_space<vmem>>, vector<2x32xf32>
    %919 = vector.extract_strided_slice %918 {offsets = [0, 0], sizes = [1, 32], strides = [1, 1]} : vector<2x32xf32> to vector<1x32xf32>
    %920 = vector.shape_cast %919 : vector<1x32xf32> to vector<32xf32>
    %921 = vector.extract_strided_slice %918 {offsets = [1, 0], sizes = [1, 32], strides = [1, 1]} : vector<2x32xf32> to vector<1x32xf32>
    %922 = vector.shape_cast %921 : vector<1x32xf32> to vector<32xf32>
    %cst_290 = arith.constant dense<0.000000e+00> : vector<16xf32>
    %923 = vector.multi_reduction <add>, %917, %cst_290 [1] : vector<16x32xf32> to vector<16xf32>
    %924 = vector.shape_cast %923 : vector<16xf32> to vector<16x1xf32>
    %cst_291 = arith.constant 3.200000e+01 : f32
    %925 = vector.broadcast %cst_291 : f32 to vector<16x1xf32>
    %926 = arith.divf %924, %925 : vector<16x1xf32>
    %927 = vector.broadcast %926 : vector<16x1xf32> to vector<16x32xf32>
    %928 = arith.subf %917, %927 : vector<16x32xf32>
    %929 = arith.mulf %928, %928 : vector<16x32xf32>
    %cst_292 = arith.constant dense<0.000000e+00> : vector<16xf32>
    %930 = vector.multi_reduction <add>, %929, %cst_292 [1] : vector<16x32xf32> to vector<16xf32>
    %931 = vector.shape_cast %930 : vector<16xf32> to vector<16x1xf32>
    %cst_293 = arith.constant 3.200000e+01 : f32
    %932 = vector.broadcast %cst_293 : f32 to vector<16x1xf32>
    %933 = arith.divf %931, %932 : vector<16x1xf32>
    %934 = vector.broadcast %926 : vector<16x1xf32> to vector<16x32xf32>
    %935 = arith.subf %917, %934 : vector<16x32xf32>
    %cst_294 = arith.constant 9.99999974E-6 : f32
    %936 = vector.broadcast %cst_294 : f32 to vector<16x1xf32>
    %937 = arith.addf %933, %936 : vector<16x1xf32>
    %938 = math.rsqrt %937 : vector<16x1xf32>
    %939 = vector.broadcast %938 : vector<16x1xf32> to vector<16x32xf32>
    %940 = arith.mulf %935, %939 : vector<16x32xf32>
    %941 = vector.shape_cast %920 : vector<32xf32> to vector<1x32xf32>
    %942 = vector.broadcast %941 : vector<1x32xf32> to vector<16x32xf32>
    %943 = arith.mulf %940, %942 : vector<16x32xf32>
    %944 = vector.shape_cast %922 : vector<32xf32> to vector<1x32xf32>
    %945 = vector.broadcast %944 : vector<1x32xf32> to vector<16x32xf32>
    %946 = arith.addf %943, %945 : vector<16x32xf32>
    %c0_295 = arith.constant 0 : index
    %c0_296 = arith.constant 0 : index
    %947 = vector.load %arg16[%c0_295, %c0_296] : memref<32x64xf32, #tpu.memory_space<vmem>>, vector<32x64xf32>
    %cst_297 = arith.constant dense<0.000000e+00> : vector<16x64xf32>
    %948 = tpu.matmul %946, %947, %cst_297 {dimension_numbers = #tpu.dot_dimension_numbers<[1], [0], [0], [1], [0, 0, 1, 1], [], []>} : vector<16x32xf32>, vector<32x64xf32>, vector<16x64xf32> -> vector<16x64xf32>
    %c0_298 = arith.constant 0 : index
    %c0_299 = arith.constant 0 : index
    %949 = vector.load %arg17[%c0_298, %c0_299] : memref<1x64xf32, #tpu.memory_space<vmem>>, vector<1x64xf32>
    %950 = vector.broadcast %949 : vector<1x64xf32> to vector<16x64xf32>
    %951 = arith.addf %948, %950 : vector<16x64xf32>
    %cst_300 = arith.constant 0.000000e+00 : f32
    %952 = vector.broadcast %cst_300 : f32 to vector<16x64xf32>
    %953 = arith.maximumf %951, %952 : vector<16x64xf32>
    %c0_301 = arith.constant 0 : index
    %c0_302 = arith.constant 0 : index
    %954 = vector.load %arg18[%c0_301, %c0_302] : memref<64x32xf32, #tpu.memory_space<vmem>>, vector<64x32xf32>
    %cst_303 = arith.constant dense<0.000000e+00> : vector<16x32xf32>
    %955 = tpu.matmul %953, %954, %cst_303 {dimension_numbers = #tpu.dot_dimension_numbers<[1], [0], [0], [1], [0, 0, 1, 1], [], []>} : vector<16x64xf32>, vector<64x32xf32>, vector<16x32xf32> -> vector<16x32xf32>
    %956 = arith.addf %917, %955 : vector<16x32xf32>
    %c0_304 = arith.constant 0 : index
    %c0_305 = arith.constant 0 : index
    %957 = vector.load %arg19[%c0_304, %c0_305] : memref<1x32xf32, #tpu.memory_space<vmem>>, vector<1x32xf32>
    %958 = vector.broadcast %957 : vector<1x32xf32> to vector<16x32xf32>
    %959 = arith.addf %956, %958 : vector<16x32xf32>
    %c0_306 = arith.constant 0 : index
    %c0_307 = arith.constant 0 : index
    %c0_308 = arith.constant 0 : index
    %960 = vector.load %arg15[%c0_306, %c0_307, %c0_308] : memref<2x2x32xf32, #tpu.memory_space<vmem>>, vector<1x2x32xf32>
    %961 = vector.shape_cast %960 : vector<1x2x32xf32> to vector<2x32xf32>
    %c0_309 = arith.constant 0 : index
    %c0_310 = arith.constant 0 : index
    %c0_311 = arith.constant 0 : index
    %c0_312 = arith.constant 0 : index
    %962 = vector.load %arg13[%c0_309, %c0_310, %c0_311, %c0_312] : memref<2x4x32x32xf32, #tpu.memory_space<vmem>>, vector<1x4x32x32xf32>
    %963 = vector.shape_cast %962 : vector<1x4x32x32xf32> to vector<4x32x32xf32>
    %c0_313 = arith.constant 0 : index
    %c0_314 = arith.constant 0 : index
    %c0_315 = arith.constant 0 : index
    %964 = vector.load %arg14[%c0_313, %c0_314, %c0_315] : memref<2x4x32xf32, #tpu.memory_space<vmem>>, vector<1x4x32xf32>
    %965 = vector.shape_cast %964 : vector<1x4x32xf32> to vector<4x32xf32>
    %966 = vector.extract_strided_slice %961 {offsets = [0, 0], sizes = [1, 32], strides = [1, 1]} : vector<2x32xf32> to vector<1x32xf32>
    %967 = vector.shape_cast %966 : vector<1x32xf32> to vector<32xf32>
    %968 = vector.extract_strided_slice %961 {offsets = [1, 0], sizes = [1, 32], strides = [1, 1]} : vector<2x32xf32> to vector<1x32xf32>
    %969 = vector.shape_cast %968 : vector<1x32xf32> to vector<32xf32>
    %cst_316 = arith.constant dense<0.000000e+00> : vector<16xf32>
    %970 = vector.multi_reduction <add>, %959, %cst_316 [1] : vector<16x32xf32> to vector<16xf32>
    %971 = vector.shape_cast %970 : vector<16xf32> to vector<16x1xf32>
    %cst_317 = arith.constant 3.200000e+01 : f32
    %972 = vector.broadcast %cst_317 : f32 to vector<16x1xf32>
    %973 = arith.divf %971, %972 : vector<16x1xf32>
    %974 = vector.broadcast %973 : vector<16x1xf32> to vector<16x32xf32>
    %975 = arith.subf %959, %974 : vector<16x32xf32>
    %976 = arith.mulf %975, %975 : vector<16x32xf32>
    %cst_318 = arith.constant dense<0.000000e+00> : vector<16xf32>
    %977 = vector.multi_reduction <add>, %976, %cst_318 [1] : vector<16x32xf32> to vector<16xf32>
    %978 = vector.shape_cast %977 : vector<16xf32> to vector<16x1xf32>
    %cst_319 = arith.constant 3.200000e+01 : f32
    %979 = vector.broadcast %cst_319 : f32 to vector<16x1xf32>
    %980 = arith.divf %978, %979 : vector<16x1xf32>
    %981 = vector.broadcast %973 : vector<16x1xf32> to vector<16x32xf32>
    %982 = arith.subf %959, %981 : vector<16x32xf32>
    %cst_320 = arith.constant 9.99999974E-6 : f32
    %983 = vector.broadcast %cst_320 : f32 to vector<16x1xf32>
    %984 = arith.addf %980, %983 : vector<16x1xf32>
    %985 = math.rsqrt %984 : vector<16x1xf32>
    %986 = vector.broadcast %985 : vector<16x1xf32> to vector<16x32xf32>
    %987 = arith.mulf %982, %986 : vector<16x32xf32>
    %988 = vector.shape_cast %967 : vector<32xf32> to vector<1x32xf32>
    %989 = vector.broadcast %988 : vector<1x32xf32> to vector<16x32xf32>
    %990 = arith.mulf %987, %989 : vector<16x32xf32>
    %991 = vector.shape_cast %969 : vector<32xf32> to vector<1x32xf32>
    %992 = vector.broadcast %991 : vector<1x32xf32> to vector<16x32xf32>
    %993 = arith.addf %990, %992 : vector<16x32xf32>
    %994 = vector.extract_strided_slice %963 {offsets = [0, 0, 0], sizes = [1, 32, 32], strides = [1, 1, 1]} : vector<4x32x32xf32> to vector<1x32x32xf32>
    %995 = vector.shape_cast %994 : vector<1x32x32xf32> to vector<32x32xf32>
    %cst_321 = arith.constant dense<0.000000e+00> : vector<16x32xf32>
    %996 = tpu.matmul %993, %995, %cst_321 {dimension_numbers = #tpu.dot_dimension_numbers<[1], [0], [0], [1], [0, 0, 1, 1], [], []>} : vector<16x32xf32>, vector<32x32xf32>, vector<16x32xf32> -> vector<16x32xf32>
    %997 = vector.extract_strided_slice %965 {offsets = [0, 0], sizes = [1, 32], strides = [1, 1]} : vector<4x32xf32> to vector<1x32xf32>
    %998 = vector.shape_cast %997 : vector<1x32xf32> to vector<32xf32>
    %999 = vector.shape_cast %998 : vector<32xf32> to vector<1x32xf32>
    %1000 = vector.broadcast %999 : vector<1x32xf32> to vector<16x32xf32>
    %1001 = arith.addf %996, %1000 : vector<16x32xf32>
    %1002 = vector.extract_strided_slice %963 {offsets = [1, 0, 0], sizes = [1, 32, 32], strides = [1, 1, 1]} : vector<4x32x32xf32> to vector<1x32x32xf32>
    %1003 = vector.shape_cast %1002 : vector<1x32x32xf32> to vector<32x32xf32>
    %cst_322 = arith.constant dense<0.000000e+00> : vector<16x32xf32>
    %1004 = tpu.matmul %993, %1003, %cst_322 {dimension_numbers = #tpu.dot_dimension_numbers<[1], [0], [0], [1], [0, 0, 1, 1], [], []>} : vector<16x32xf32>, vector<32x32xf32>, vector<16x32xf32> -> vector<16x32xf32>
    %1005 = vector.extract_strided_slice %965 {offsets = [1, 0], sizes = [1, 32], strides = [1, 1]} : vector<4x32xf32> to vector<1x32xf32>
    %1006 = vector.shape_cast %1005 : vector<1x32xf32> to vector<32xf32>
    %1007 = vector.shape_cast %1006 : vector<32xf32> to vector<1x32xf32>
    %1008 = vector.broadcast %1007 : vector<1x32xf32> to vector<16x32xf32>
    %1009 = arith.addf %1004, %1008 : vector<16x32xf32>
    %1010 = vector.extract_strided_slice %963 {offsets = [2, 0, 0], sizes = [1, 32, 32], strides = [1, 1, 1]} : vector<4x32x32xf32> to vector<1x32x32xf32>
    %1011 = vector.shape_cast %1010 : vector<1x32x32xf32> to vector<32x32xf32>
    %cst_323 = arith.constant dense<0.000000e+00> : vector<16x32xf32>
    %1012 = tpu.matmul %993, %1011, %cst_323 {dimension_numbers = #tpu.dot_dimension_numbers<[1], [0], [0], [1], [0, 0, 1, 1], [], []>} : vector<16x32xf32>, vector<32x32xf32>, vector<16x32xf32> -> vector<16x32xf32>
    %1013 = vector.extract_strided_slice %965 {offsets = [2, 0], sizes = [1, 32], strides = [1, 1]} : vector<4x32xf32> to vector<1x32xf32>
    %1014 = vector.shape_cast %1013 : vector<1x32xf32> to vector<32xf32>
    %1015 = vector.shape_cast %1014 : vector<32xf32> to vector<1x32xf32>
    %1016 = vector.broadcast %1015 : vector<1x32xf32> to vector<16x32xf32>
    %1017 = arith.addf %1012, %1016 : vector<16x32xf32>
    %1018 = vector.extract_strided_slice %963 {offsets = [3, 0, 0], sizes = [1, 32, 32], strides = [1, 1, 1]} : vector<4x32x32xf32> to vector<1x32x32xf32>
    %1019 = vector.shape_cast %1018 : vector<1x32x32xf32> to vector<32x32xf32>
    %1020 = vector.extract_strided_slice %965 {offsets = [3, 0], sizes = [1, 32], strides = [1, 1]} : vector<4x32xf32> to vector<1x32xf32>
    %1021 = vector.shape_cast %1020 : vector<1x32xf32> to vector<32xf32>
    %1022 = vector.shape_cast %1021 : vector<32xf32> to vector<1x32xf32>
    %1023 = vector.broadcast %1022 : vector<1x32xf32> to vector<16x32xf32>
    %1024 = arith.addf %959, %1023 : vector<16x32xf32>
    %1025 = vector.extract_strided_slice %1001 {offsets = [0, 0], sizes = [16, 8], strides = [1, 1]} : vector<16x32xf32> to vector<16x8xf32>
    %1026 = vector.extract_strided_slice %1009 {offsets = [0, 0], sizes = [16, 8], strides = [1, 1]} : vector<16x32xf32> to vector<16x8xf32>
    "tpu.trace_start"() <{level = 10 : i32, message = "qd,kd->qk"}> : () -> ()
    %cst_324 = arith.constant dense<0.000000e+00> : vector<16x16xf32>
    %1027 = tpu.matmul %1025, %1026, %cst_324 {dimension_numbers = #tpu.dot_dimension_numbers<[1], [1], [0], [0], [0, 0, 1, 0], [], []>} : vector<16x8xf32>, vector<16x8xf32>, vector<16x16xf32> -> vector<16x16xf32>
    "tpu.trace_stop"() : () -> ()
    %cst_325 = arith.constant 0.353553385 : f32
    %1028 = vector.broadcast %cst_325 : f32 to vector<16x16xf32>
    %1029 = arith.mulf %1027, %1028 : vector<16x16xf32>
    %1030 = arith.addf %1029, %3 : vector<16x16xf32>
    %cst_326 = arith.constant dense<0xFF800000> : vector<16xf32>
    %1031 = vector.multi_reduction <maximumf>, %1030, %cst_326 [1] : vector<16x16xf32> to vector<16xf32>
    %1032 = vector.shape_cast %1031 : vector<16xf32> to vector<16x1xf32>
    %1033 = vector.broadcast %1032 : vector<16x1xf32> to vector<16x16xf32>
    %1034 = arith.subf %1030, %1033 : vector<16x16xf32>
    %1035 = math.exp %1034 : vector<16x16xf32>
    %cst_327 = arith.constant dense<0.000000e+00> : vector<16xf32>
    %1036 = vector.multi_reduction <add>, %1035, %cst_327 [1] : vector<16x16xf32> to vector<16xf32>
    %1037 = vector.shape_cast %1036 : vector<16xf32> to vector<16x1xf32>
    %1038 = tpu.reciprocal %1037 {approx = true} : vector<16x1xf32> -> vector<16x1xf32>
    %1039 = vector.broadcast %1038 : vector<16x1xf32> to vector<16x16xf32>
    %1040 = arith.mulf %1035, %1039 : vector<16x16xf32>
    %1041 = vector.extract_strided_slice %1017 {offsets = [0, 0], sizes = [16, 8], strides = [1, 1]} : vector<16x32xf32> to vector<16x8xf32>
    %cst_328 = arith.constant dense<0.000000e+00> : vector<16x8xf32>
    %1042 = tpu.matmul %1040, %1041, %cst_328 {dimension_numbers = #tpu.dot_dimension_numbers<[1], [0], [0], [1], [0, 0, 1, 1], [], []>} : vector<16x16xf32>, vector<16x8xf32>, vector<16x8xf32> -> vector<16x8xf32>
    %1043 = vector.extract_strided_slice %1019 {offsets = [0, 0], sizes = [8, 32], strides = [1, 1]} : vector<32x32xf32> to vector<8x32xf32>
    %cst_329 = arith.constant dense<0.000000e+00> : vector<16x32xf32>
    %1044 = tpu.matmul %1042, %1043, %cst_329 {dimension_numbers = #tpu.dot_dimension_numbers<[1], [0], [0], [1], [0, 0, 1, 1], [], []>} : vector<16x8xf32>, vector<8x32xf32>, vector<16x32xf32> -> vector<16x32xf32>
    %1045 = arith.addf %1024, %1044 : vector<16x32xf32>
    %1046 = vector.extract_strided_slice %1001 {offsets = [0, 8], sizes = [16, 8], strides = [1, 1]} : vector<16x32xf32> to vector<16x8xf32>
    %1047 = vector.extract_strided_slice %1009 {offsets = [0, 8], sizes = [16, 8], strides = [1, 1]} : vector<16x32xf32> to vector<16x8xf32>
    "tpu.trace_start"() <{level = 10 : i32, message = "qd,kd->qk"}> : () -> ()
    %cst_330 = arith.constant dense<0.000000e+00> : vector<16x16xf32>
    %1048 = tpu.matmul %1046, %1047, %cst_330 {dimension_numbers = #tpu.dot_dimension_numbers<[1], [1], [0], [0], [0, 0, 1, 0], [], []>} : vector<16x8xf32>, vector<16x8xf32>, vector<16x16xf32> -> vector<16x16xf32>
    "tpu.trace_stop"() : () -> ()
    %cst_331 = arith.constant 0.353553385 : f32
    %1049 = vector.broadcast %cst_331 : f32 to vector<16x16xf32>
    %1050 = arith.mulf %1048, %1049 : vector<16x16xf32>
    %1051 = arith.addf %1050, %3 : vector<16x16xf32>
    %cst_332 = arith.constant dense<0xFF800000> : vector<16xf32>
    %1052 = vector.multi_reduction <maximumf>, %1051, %cst_332 [1] : vector<16x16xf32> to vector<16xf32>
    %1053 = vector.shape_cast %1052 : vector<16xf32> to vector<16x1xf32>
    %1054 = vector.broadcast %1053 : vector<16x1xf32> to vector<16x16xf32>
    %1055 = arith.subf %1051, %1054 : vector<16x16xf32>
    %1056 = math.exp %1055 : vector<16x16xf32>
    %cst_333 = arith.constant dense<0.000000e+00> : vector<16xf32>
    %1057 = vector.multi_reduction <add>, %1056, %cst_333 [1] : vector<16x16xf32> to vector<16xf32>
    %1058 = vector.shape_cast %1057 : vector<16xf32> to vector<16x1xf32>
    %1059 = tpu.reciprocal %1058 {approx = true} : vector<16x1xf32> -> vector<16x1xf32>
    %1060 = vector.broadcast %1059 : vector<16x1xf32> to vector<16x16xf32>
    %1061 = arith.mulf %1056, %1060 : vector<16x16xf32>
    %1062 = vector.extract_strided_slice %1017 {offsets = [0, 8], sizes = [16, 8], strides = [1, 1]} : vector<16x32xf32> to vector<16x8xf32>
    %cst_334 = arith.constant dense<0.000000e+00> : vector<16x8xf32>
    %1063 = tpu.matmul %1061, %1062, %cst_334 {dimension_numbers = #tpu.dot_dimension_numbers<[1], [0], [0], [1], [0, 0, 1, 1], [], []>} : vector<16x16xf32>, vector<16x8xf32>, vector<16x8xf32> -> vector<16x8xf32>
    %1064 = vector.extract_strided_slice %1019 {offsets = [8, 0], sizes = [8, 32], strides = [1, 1]} : vector<32x32xf32> to vector<8x32xf32>
    %cst_335 = arith.constant dense<0.000000e+00> : vector<16x32xf32>
    %1065 = tpu.matmul %1063, %1064, %cst_335 {dimension_numbers = #tpu.dot_dimension_numbers<[1], [0], [0], [1], [0, 0, 1, 1], [], []>} : vector<16x8xf32>, vector<8x32xf32>, vector<16x32xf32> -> vector<16x32xf32>
    %1066 = arith.addf %1045, %1065 : vector<16x32xf32>
    %1067 = vector.extract_strided_slice %1001 {offsets = [0, 16], sizes = [16, 8], strides = [1, 1]} : vector<16x32xf32> to vector<16x8xf32>
    %1068 = vector.extract_strided_slice %1009 {offsets = [0, 16], sizes = [16, 8], strides = [1, 1]} : vector<16x32xf32> to vector<16x8xf32>
    "tpu.trace_start"() <{level = 10 : i32, message = "qd,kd->qk"}> : () -> ()
    %cst_336 = arith.constant dense<0.000000e+00> : vector<16x16xf32>
    %1069 = tpu.matmul %1067, %1068, %cst_336 {dimension_numbers = #tpu.dot_dimension_numbers<[1], [1], [0], [0], [0, 0, 1, 0], [], []>} : vector<16x8xf32>, vector<16x8xf32>, vector<16x16xf32> -> vector<16x16xf32>
    "tpu.trace_stop"() : () -> ()
    %cst_337 = arith.constant 0.353553385 : f32
    %1070 = vector.broadcast %cst_337 : f32 to vector<16x16xf32>
    %1071 = arith.mulf %1069, %1070 : vector<16x16xf32>
    %1072 = arith.addf %1071, %3 : vector<16x16xf32>
    %cst_338 = arith.constant dense<0xFF800000> : vector<16xf32>
    %1073 = vector.multi_reduction <maximumf>, %1072, %cst_338 [1] : vector<16x16xf32> to vector<16xf32>
    %1074 = vector.shape_cast %1073 : vector<16xf32> to vector<16x1xf32>
    %1075 = vector.broadcast %1074 : vector<16x1xf32> to vector<16x16xf32>
    %1076 = arith.subf %1072, %1075 : vector<16x16xf32>
    %1077 = math.exp %1076 : vector<16x16xf32>
    %cst_339 = arith.constant dense<0.000000e+00> : vector<16xf32>
    %1078 = vector.multi_reduction <add>, %1077, %cst_339 [1] : vector<16x16xf32> to vector<16xf32>
    %1079 = vector.shape_cast %1078 : vector<16xf32> to vector<16x1xf32>
    %1080 = tpu.reciprocal %1079 {approx = true} : vector<16x1xf32> -> vector<16x1xf32>
    %1081 = vector.broadcast %1080 : vector<16x1xf32> to vector<16x16xf32>
    %1082 = arith.mulf %1077, %1081 : vector<16x16xf32>
    %1083 = vector.extract_strided_slice %1017 {offsets = [0, 16], sizes = [16, 8], strides = [1, 1]} : vector<16x32xf32> to vector<16x8xf32>
    %cst_340 = arith.constant dense<0.000000e+00> : vector<16x8xf32>
    %1084 = tpu.matmul %1082, %1083, %cst_340 {dimension_numbers = #tpu.dot_dimension_numbers<[1], [0], [0], [1], [0, 0, 1, 1], [], []>} : vector<16x16xf32>, vector<16x8xf32>, vector<16x8xf32> -> vector<16x8xf32>
    %1085 = vector.extract_strided_slice %1019 {offsets = [16, 0], sizes = [8, 32], strides = [1, 1]} : vector<32x32xf32> to vector<8x32xf32>
    %cst_341 = arith.constant dense<0.000000e+00> : vector<16x32xf32>
    %1086 = tpu.matmul %1084, %1085, %cst_341 {dimension_numbers = #tpu.dot_dimension_numbers<[1], [0], [0], [1], [0, 0, 1, 1], [], []>} : vector<16x8xf32>, vector<8x32xf32>, vector<16x32xf32> -> vector<16x32xf32>
    %1087 = arith.addf %1066, %1086 : vector<16x32xf32>
    %1088 = vector.extract_strided_slice %1001 {offsets = [0, 24], sizes = [16, 8], strides = [1, 1]} : vector<16x32xf32> to vector<16x8xf32>
    %1089 = vector.extract_strided_slice %1009 {offsets = [0, 24], sizes = [16, 8], strides = [1, 1]} : vector<16x32xf32> to vector<16x8xf32>
    "tpu.trace_start"() <{level = 10 : i32, message = "qd,kd->qk"}> : () -> ()
    %cst_342 = arith.constant dense<0.000000e+00> : vector<16x16xf32>
    %1090 = tpu.matmul %1088, %1089, %cst_342 {dimension_numbers = #tpu.dot_dimension_numbers<[1], [1], [0], [0], [0, 0, 1, 0], [], []>} : vector<16x8xf32>, vector<16x8xf32>, vector<16x16xf32> -> vector<16x16xf32>
    "tpu.trace_stop"() : () -> ()
    %cst_343 = arith.constant 0.353553385 : f32
    %1091 = vector.broadcast %cst_343 : f32 to vector<16x16xf32>
    %1092 = arith.mulf %1090, %1091 : vector<16x16xf32>
    %1093 = arith.addf %1092, %3 : vector<16x16xf32>
    %cst_344 = arith.constant dense<0xFF800000> : vector<16xf32>
    %1094 = vector.multi_reduction <maximumf>, %1093, %cst_344 [1] : vector<16x16xf32> to vector<16xf32>
    %1095 = vector.shape_cast %1094 : vector<16xf32> to vector<16x1xf32>
    %1096 = vector.broadcast %1095 : vector<16x1xf32> to vector<16x16xf32>
    %1097 = arith.subf %1093, %1096 : vector<16x16xf32>
    %1098 = math.exp %1097 : vector<16x16xf32>
    %cst_345 = arith.constant dense<0.000000e+00> : vector<16xf32>
    %1099 = vector.multi_reduction <add>, %1098, %cst_345 [1] : vector<16x16xf32> to vector<16xf32>
    %1100 = vector.shape_cast %1099 : vector<16xf32> to vector<16x1xf32>
    %1101 = tpu.reciprocal %1100 {approx = true} : vector<16x1xf32> -> vector<16x1xf32>
    %1102 = vector.broadcast %1101 : vector<16x1xf32> to vector<16x16xf32>
    %1103 = arith.mulf %1098, %1102 : vector<16x16xf32>
    %1104 = vector.extract_strided_slice %1017 {offsets = [0, 24], sizes = [16, 8], strides = [1, 1]} : vector<16x32xf32> to vector<16x8xf32>
    %cst_346 = arith.constant dense<0.000000e+00> : vector<16x8xf32>
    %1105 = tpu.matmul %1103, %1104, %cst_346 {dimension_numbers = #tpu.dot_dimension_numbers<[1], [0], [0], [1], [0, 0, 1, 1], [], []>} : vector<16x16xf32>, vector<16x8xf32>, vector<16x8xf32> -> vector<16x8xf32>
    %1106 = vector.extract_strided_slice %1019 {offsets = [24, 0], sizes = [8, 32], strides = [1, 1]} : vector<32x32xf32> to vector<8x32xf32>
    %cst_347 = arith.constant dense<0.000000e+00> : vector<16x32xf32>
    %1107 = tpu.matmul %1105, %1106, %cst_347 {dimension_numbers = #tpu.dot_dimension_numbers<[1], [0], [0], [1], [0, 0, 1, 1], [], []>} : vector<16x8xf32>, vector<8x32xf32>, vector<16x32xf32> -> vector<16x32xf32>
    %1108 = arith.addf %1087, %1107 : vector<16x32xf32>
    %1109 = vector.extract_strided_slice %593 {offsets = [0, 0], sizes = [1, 32], strides = [1, 1]} : vector<2x32xf32> to vector<1x32xf32>
    %1110 = vector.shape_cast %1109 : vector<1x32xf32> to vector<32xf32>
    %1111 = vector.extract_strided_slice %593 {offsets = [1, 0], sizes = [1, 32], strides = [1, 1]} : vector<2x32xf32> to vector<1x32xf32>
    %1112 = vector.shape_cast %1111 : vector<1x32xf32> to vector<32xf32>
    %cst_348 = arith.constant dense<0.000000e+00> : vector<16xf32>
    %1113 = vector.multi_reduction <add>, %1108, %cst_348 [1] : vector<16x32xf32> to vector<16xf32>
    %1114 = vector.shape_cast %1113 : vector<16xf32> to vector<16x1xf32>
    %cst_349 = arith.constant 3.200000e+01 : f32
    %1115 = vector.broadcast %cst_349 : f32 to vector<16x1xf32>
    %1116 = arith.divf %1114, %1115 : vector<16x1xf32>
    %1117 = vector.broadcast %1116 : vector<16x1xf32> to vector<16x32xf32>
    %1118 = arith.subf %1108, %1117 : vector<16x32xf32>
    %1119 = arith.mulf %1118, %1118 : vector<16x32xf32>
    %cst_350 = arith.constant dense<0.000000e+00> : vector<16xf32>
    %1120 = vector.multi_reduction <add>, %1119, %cst_350 [1] : vector<16x32xf32> to vector<16xf32>
    %1121 = vector.shape_cast %1120 : vector<16xf32> to vector<16x1xf32>
    %cst_351 = arith.constant 3.200000e+01 : f32
    %1122 = vector.broadcast %cst_351 : f32 to vector<16x1xf32>
    %1123 = arith.divf %1121, %1122 : vector<16x1xf32>
    %1124 = vector.broadcast %1116 : vector<16x1xf32> to vector<16x32xf32>
    %1125 = arith.subf %1108, %1124 : vector<16x32xf32>
    %cst_352 = arith.constant 9.99999974E-6 : f32
    %1126 = vector.broadcast %cst_352 : f32 to vector<16x1xf32>
    %1127 = arith.addf %1123, %1126 : vector<16x1xf32>
    %1128 = math.rsqrt %1127 : vector<16x1xf32>
    %1129 = vector.broadcast %1128 : vector<16x1xf32> to vector<16x32xf32>
    %1130 = arith.mulf %1125, %1129 : vector<16x32xf32>
    %1131 = vector.shape_cast %1110 : vector<32xf32> to vector<1x32xf32>
    %1132 = vector.broadcast %1131 : vector<1x32xf32> to vector<16x32xf32>
    %1133 = arith.mulf %1130, %1132 : vector<16x32xf32>
    %1134 = vector.shape_cast %1112 : vector<32xf32> to vector<1x32xf32>
    %1135 = vector.broadcast %1134 : vector<1x32xf32> to vector<16x32xf32>
    %1136 = arith.addf %1133, %1135 : vector<16x32xf32>
    %1137 = vector.extract_strided_slice %595 {offsets = [0, 0, 0], sizes = [1, 32, 32], strides = [1, 1, 1]} : vector<4x32x32xf32> to vector<1x32x32xf32>
    %1138 = vector.shape_cast %1137 : vector<1x32x32xf32> to vector<32x32xf32>
    %cst_353 = arith.constant dense<0.000000e+00> : vector<16x32xf32>
    %1139 = tpu.matmul %1136, %1138, %cst_353 {dimension_numbers = #tpu.dot_dimension_numbers<[1], [0], [0], [1], [0, 0, 1, 1], [], []>} : vector<16x32xf32>, vector<32x32xf32>, vector<16x32xf32> -> vector<16x32xf32>
    %1140 = vector.extract_strided_slice %597 {offsets = [0, 0], sizes = [1, 32], strides = [1, 1]} : vector<4x32xf32> to vector<1x32xf32>
    %1141 = vector.shape_cast %1140 : vector<1x32xf32> to vector<32xf32>
    %1142 = vector.shape_cast %1141 : vector<32xf32> to vector<1x32xf32>
    %1143 = vector.broadcast %1142 : vector<1x32xf32> to vector<16x32xf32>
    %1144 = arith.addf %1139, %1143 : vector<16x32xf32>
    %1145 = vector.extract_strided_slice %595 {offsets = [3, 0, 0], sizes = [1, 32, 32], strides = [1, 1, 1]} : vector<4x32x32xf32> to vector<1x32x32xf32>
    %1146 = vector.shape_cast %1145 : vector<1x32x32xf32> to vector<32x32xf32>
    %1147 = vector.extract_strided_slice %597 {offsets = [3, 0], sizes = [1, 32], strides = [1, 1]} : vector<4x32xf32> to vector<1x32xf32>
    %1148 = vector.shape_cast %1147 : vector<1x32xf32> to vector<32xf32>
    %1149 = vector.shape_cast %1148 : vector<32xf32> to vector<1x32xf32>
    %1150 = vector.broadcast %1149 : vector<1x32xf32> to vector<16x32xf32>
    %1151 = arith.addf %1108, %1150 : vector<16x32xf32>
    %1152 = vector.extract_strided_slice %1144 {offsets = [0, 0], sizes = [16, 8], strides = [1, 1]} : vector<16x32xf32> to vector<16x8xf32>
    %1153 = vector.extract_strided_slice %633 {offsets = [0, 0], sizes = [16, 8], strides = [1, 1]} : vector<16x32xf32> to vector<16x8xf32>
    "tpu.trace_start"() <{level = 10 : i32, message = "qd,kd->qk"}> : () -> ()
    %cst_354 = arith.constant dense<0.000000e+00> : vector<16x16xf32>
    %1154 = tpu.matmul %1152, %1153, %cst_354 {dimension_numbers = #tpu.dot_dimension_numbers<[1], [1], [0], [0], [0, 0, 1, 0], [], []>} : vector<16x8xf32>, vector<16x8xf32>, vector<16x16xf32> -> vector<16x16xf32>
    "tpu.trace_stop"() : () -> ()
    %cst_355 = arith.constant 0.353553385 : f32
    %1155 = vector.broadcast %cst_355 : f32 to vector<16x16xf32>
    %1156 = arith.mulf %1154, %1155 : vector<16x16xf32>
    %1157 = arith.addf %1156, %2 : vector<16x16xf32>
    %cst_356 = arith.constant dense<0xFF800000> : vector<16xf32>
    %1158 = vector.multi_reduction <maximumf>, %1157, %cst_356 [1] : vector<16x16xf32> to vector<16xf32>
    %1159 = vector.shape_cast %1158 : vector<16xf32> to vector<16x1xf32>
    %1160 = vector.broadcast %1159 : vector<16x1xf32> to vector<16x16xf32>
    %1161 = arith.subf %1157, %1160 : vector<16x16xf32>
    %1162 = math.exp %1161 : vector<16x16xf32>
    %cst_357 = arith.constant dense<0.000000e+00> : vector<16xf32>
    %1163 = vector.multi_reduction <add>, %1162, %cst_357 [1] : vector<16x16xf32> to vector<16xf32>
    %1164 = vector.shape_cast %1163 : vector<16xf32> to vector<16x1xf32>
    %1165 = tpu.reciprocal %1164 {approx = true} : vector<16x1xf32> -> vector<16x1xf32>
    %1166 = vector.broadcast %1165 : vector<16x1xf32> to vector<16x16xf32>
    %1167 = arith.mulf %1162, %1166 : vector<16x16xf32>
    %1168 = vector.extract_strided_slice %641 {offsets = [0, 0], sizes = [16, 8], strides = [1, 1]} : vector<16x32xf32> to vector<16x8xf32>
    %cst_358 = arith.constant dense<0.000000e+00> : vector<16x8xf32>
    %1169 = tpu.matmul %1167, %1168, %cst_358 {dimension_numbers = #tpu.dot_dimension_numbers<[1], [0], [0], [1], [0, 0, 1, 1], [], []>} : vector<16x16xf32>, vector<16x8xf32>, vector<16x8xf32> -> vector<16x8xf32>
    %1170 = vector.extract_strided_slice %1146 {offsets = [0, 0], sizes = [8, 32], strides = [1, 1]} : vector<32x32xf32> to vector<8x32xf32>
    %cst_359 = arith.constant dense<0.000000e+00> : vector<16x32xf32>
    %1171 = tpu.matmul %1169, %1170, %cst_359 {dimension_numbers = #tpu.dot_dimension_numbers<[1], [0], [0], [1], [0, 0, 1, 1], [], []>} : vector<16x8xf32>, vector<8x32xf32>, vector<16x32xf32> -> vector<16x32xf32>
    %1172 = arith.addf %1151, %1171 : vector<16x32xf32>
    %1173 = vector.extract_strided_slice %1144 {offsets = [0, 8], sizes = [16, 8], strides = [1, 1]} : vector<16x32xf32> to vector<16x8xf32>
    %1174 = vector.extract_strided_slice %633 {offsets = [0, 8], sizes = [16, 8], strides = [1, 1]} : vector<16x32xf32> to vector<16x8xf32>
    "tpu.trace_start"() <{level = 10 : i32, message = "qd,kd->qk"}> : () -> ()
    %cst_360 = arith.constant dense<0.000000e+00> : vector<16x16xf32>
    %1175 = tpu.matmul %1173, %1174, %cst_360 {dimension_numbers = #tpu.dot_dimension_numbers<[1], [1], [0], [0], [0, 0, 1, 0], [], []>} : vector<16x8xf32>, vector<16x8xf32>, vector<16x16xf32> -> vector<16x16xf32>
    "tpu.trace_stop"() : () -> ()
    %cst_361 = arith.constant 0.353553385 : f32
    %1176 = vector.broadcast %cst_361 : f32 to vector<16x16xf32>
    %1177 = arith.mulf %1175, %1176 : vector<16x16xf32>
    %1178 = arith.addf %1177, %2 : vector<16x16xf32>
    %cst_362 = arith.constant dense<0xFF800000> : vector<16xf32>
    %1179 = vector.multi_reduction <maximumf>, %1178, %cst_362 [1] : vector<16x16xf32> to vector<16xf32>
    %1180 = vector.shape_cast %1179 : vector<16xf32> to vector<16x1xf32>
    %1181 = vector.broadcast %1180 : vector<16x1xf32> to vector<16x16xf32>
    %1182 = arith.subf %1178, %1181 : vector<16x16xf32>
    %1183 = math.exp %1182 : vector<16x16xf32>
    %cst_363 = arith.constant dense<0.000000e+00> : vector<16xf32>
    %1184 = vector.multi_reduction <add>, %1183, %cst_363 [1] : vector<16x16xf32> to vector<16xf32>
    %1185 = vector.shape_cast %1184 : vector<16xf32> to vector<16x1xf32>
    %1186 = tpu.reciprocal %1185 {approx = true} : vector<16x1xf32> -> vector<16x1xf32>
    %1187 = vector.broadcast %1186 : vector<16x1xf32> to vector<16x16xf32>
    %1188 = arith.mulf %1183, %1187 : vector<16x16xf32>
    %1189 = vector.extract_strided_slice %641 {offsets = [0, 8], sizes = [16, 8], strides = [1, 1]} : vector<16x32xf32> to vector<16x8xf32>
    %cst_364 = arith.constant dense<0.000000e+00> : vector<16x8xf32>
    %1190 = tpu.matmul %1188, %1189, %cst_364 {dimension_numbers = #tpu.dot_dimension_numbers<[1], [0], [0], [1], [0, 0, 1, 1], [], []>} : vector<16x16xf32>, vector<16x8xf32>, vector<16x8xf32> -> vector<16x8xf32>
    %1191 = vector.extract_strided_slice %1146 {offsets = [8, 0], sizes = [8, 32], strides = [1, 1]} : vector<32x32xf32> to vector<8x32xf32>
    %cst_365 = arith.constant dense<0.000000e+00> : vector<16x32xf32>
    %1192 = tpu.matmul %1190, %1191, %cst_365 {dimension_numbers = #tpu.dot_dimension_numbers<[1], [0], [0], [1], [0, 0, 1, 1], [], []>} : vector<16x8xf32>, vector<8x32xf32>, vector<16x32xf32> -> vector<16x32xf32>
    %1193 = arith.addf %1172, %1192 : vector<16x32xf32>
    %1194 = vector.extract_strided_slice %1144 {offsets = [0, 16], sizes = [16, 8], strides = [1, 1]} : vector<16x32xf32> to vector<16x8xf32>
    %1195 = vector.extract_strided_slice %633 {offsets = [0, 16], sizes = [16, 8], strides = [1, 1]} : vector<16x32xf32> to vector<16x8xf32>
    "tpu.trace_start"() <{level = 10 : i32, message = "qd,kd->qk"}> : () -> ()
    %cst_366 = arith.constant dense<0.000000e+00> : vector<16x16xf32>
    %1196 = tpu.matmul %1194, %1195, %cst_366 {dimension_numbers = #tpu.dot_dimension_numbers<[1], [1], [0], [0], [0, 0, 1, 0], [], []>} : vector<16x8xf32>, vector<16x8xf32>, vector<16x16xf32> -> vector<16x16xf32>
    "tpu.trace_stop"() : () -> ()
    %cst_367 = arith.constant 0.353553385 : f32
    %1197 = vector.broadcast %cst_367 : f32 to vector<16x16xf32>
    %1198 = arith.mulf %1196, %1197 : vector<16x16xf32>
    %1199 = arith.addf %1198, %2 : vector<16x16xf32>
    %cst_368 = arith.constant dense<0xFF800000> : vector<16xf32>
    %1200 = vector.multi_reduction <maximumf>, %1199, %cst_368 [1] : vector<16x16xf32> to vector<16xf32>
    %1201 = vector.shape_cast %1200 : vector<16xf32> to vector<16x1xf32>
    %1202 = vector.broadcast %1201 : vector<16x1xf32> to vector<16x16xf32>
    %1203 = arith.subf %1199, %1202 : vector<16x16xf32>
    %1204 = math.exp %1203 : vector<16x16xf32>
    %cst_369 = arith.constant dense<0.000000e+00> : vector<16xf32>
    %1205 = vector.multi_reduction <add>, %1204, %cst_369 [1] : vector<16x16xf32> to vector<16xf32>
    %1206 = vector.shape_cast %1205 : vector<16xf32> to vector<16x1xf32>
    %1207 = tpu.reciprocal %1206 {approx = true} : vector<16x1xf32> -> vector<16x1xf32>
    %1208 = vector.broadcast %1207 : vector<16x1xf32> to vector<16x16xf32>
    %1209 = arith.mulf %1204, %1208 : vector<16x16xf32>
    %1210 = vector.extract_strided_slice %641 {offsets = [0, 16], sizes = [16, 8], strides = [1, 1]} : vector<16x32xf32> to vector<16x8xf32>
    %cst_370 = arith.constant dense<0.000000e+00> : vector<16x8xf32>
    %1211 = tpu.matmul %1209, %1210, %cst_370 {dimension_numbers = #tpu.dot_dimension_numbers<[1], [0], [0], [1], [0, 0, 1, 1], [], []>} : vector<16x16xf32>, vector<16x8xf32>, vector<16x8xf32> -> vector<16x8xf32>
    %1212 = vector.extract_strided_slice %1146 {offsets = [16, 0], sizes = [8, 32], strides = [1, 1]} : vector<32x32xf32> to vector<8x32xf32>
    %cst_371 = arith.constant dense<0.000000e+00> : vector<16x32xf32>
    %1213 = tpu.matmul %1211, %1212, %cst_371 {dimension_numbers = #tpu.dot_dimension_numbers<[1], [0], [0], [1], [0, 0, 1, 1], [], []>} : vector<16x8xf32>, vector<8x32xf32>, vector<16x32xf32> -> vector<16x32xf32>
    %1214 = arith.addf %1193, %1213 : vector<16x32xf32>
    %1215 = vector.extract_strided_slice %1144 {offsets = [0, 24], sizes = [16, 8], strides = [1, 1]} : vector<16x32xf32> to vector<16x8xf32>
    %1216 = vector.extract_strided_slice %633 {offsets = [0, 24], sizes = [16, 8], strides = [1, 1]} : vector<16x32xf32> to vector<16x8xf32>
    "tpu.trace_start"() <{level = 10 : i32, message = "qd,kd->qk"}> : () -> ()
    %cst_372 = arith.constant dense<0.000000e+00> : vector<16x16xf32>
    %1217 = tpu.matmul %1215, %1216, %cst_372 {dimension_numbers = #tpu.dot_dimension_numbers<[1], [1], [0], [0], [0, 0, 1, 0], [], []>} : vector<16x8xf32>, vector<16x8xf32>, vector<16x16xf32> -> vector<16x16xf32>
    "tpu.trace_stop"() : () -> ()
    %cst_373 = arith.constant 0.353553385 : f32
    %1218 = vector.broadcast %cst_373 : f32 to vector<16x16xf32>
    %1219 = arith.mulf %1217, %1218 : vector<16x16xf32>
    %1220 = arith.addf %1219, %2 : vector<16x16xf32>
    %cst_374 = arith.constant dense<0xFF800000> : vector<16xf32>
    %1221 = vector.multi_reduction <maximumf>, %1220, %cst_374 [1] : vector<16x16xf32> to vector<16xf32>
    %1222 = vector.shape_cast %1221 : vector<16xf32> to vector<16x1xf32>
    %1223 = vector.broadcast %1222 : vector<16x1xf32> to vector<16x16xf32>
    %1224 = arith.subf %1220, %1223 : vector<16x16xf32>
    %1225 = math.exp %1224 : vector<16x16xf32>
    %cst_375 = arith.constant dense<0.000000e+00> : vector<16xf32>
    %1226 = vector.multi_reduction <add>, %1225, %cst_375 [1] : vector<16x16xf32> to vector<16xf32>
    %1227 = vector.shape_cast %1226 : vector<16xf32> to vector<16x1xf32>
    %1228 = tpu.reciprocal %1227 {approx = true} : vector<16x1xf32> -> vector<16x1xf32>
    %1229 = vector.broadcast %1228 : vector<16x1xf32> to vector<16x16xf32>
    %1230 = arith.mulf %1225, %1229 : vector<16x16xf32>
    %1231 = vector.extract_strided_slice %641 {offsets = [0, 24], sizes = [16, 8], strides = [1, 1]} : vector<16x32xf32> to vector<16x8xf32>
    %cst_376 = arith.constant dense<0.000000e+00> : vector<16x8xf32>
    %1232 = tpu.matmul %1230, %1231, %cst_376 {dimension_numbers = #tpu.dot_dimension_numbers<[1], [0], [0], [1], [0, 0, 1, 1], [], []>} : vector<16x16xf32>, vector<16x8xf32>, vector<16x8xf32> -> vector<16x8xf32>
    %1233 = vector.extract_strided_slice %1146 {offsets = [24, 0], sizes = [8, 32], strides = [1, 1]} : vector<32x32xf32> to vector<8x32xf32>
    %cst_377 = arith.constant dense<0.000000e+00> : vector<16x32xf32>
    %1234 = tpu.matmul %1232, %1233, %cst_377 {dimension_numbers = #tpu.dot_dimension_numbers<[1], [0], [0], [1], [0, 0, 1, 1], [], []>} : vector<16x8xf32>, vector<8x32xf32>, vector<16x32xf32> -> vector<16x32xf32>
    %1235 = arith.addf %1214, %1234 : vector<16x32xf32>
    %c0_378 = arith.constant 0 : index
    %c0_379 = arith.constant 0 : index
    %1236 = vector.load %arg20[%c0_378, %c0_379] : memref<2x32xf32, #tpu.memory_space<vmem>>, vector<2x32xf32>
    %1237 = vector.extract_strided_slice %1236 {offsets = [0, 0], sizes = [1, 32], strides = [1, 1]} : vector<2x32xf32> to vector<1x32xf32>
    %1238 = vector.shape_cast %1237 : vector<1x32xf32> to vector<32xf32>
    %1239 = vector.extract_strided_slice %1236 {offsets = [1, 0], sizes = [1, 32], strides = [1, 1]} : vector<2x32xf32> to vector<1x32xf32>
    %1240 = vector.shape_cast %1239 : vector<1x32xf32> to vector<32xf32>
    %cst_380 = arith.constant dense<0.000000e+00> : vector<16xf32>
    %1241 = vector.multi_reduction <add>, %1235, %cst_380 [1] : vector<16x32xf32> to vector<16xf32>
    %1242 = vector.shape_cast %1241 : vector<16xf32> to vector<16x1xf32>
    %cst_381 = arith.constant 3.200000e+01 : f32
    %1243 = vector.broadcast %cst_381 : f32 to vector<16x1xf32>
    %1244 = arith.divf %1242, %1243 : vector<16x1xf32>
    %1245 = vector.broadcast %1244 : vector<16x1xf32> to vector<16x32xf32>
    %1246 = arith.subf %1235, %1245 : vector<16x32xf32>
    %1247 = arith.mulf %1246, %1246 : vector<16x32xf32>
    %cst_382 = arith.constant dense<0.000000e+00> : vector<16xf32>
    %1248 = vector.multi_reduction <add>, %1247, %cst_382 [1] : vector<16x32xf32> to vector<16xf32>
    %1249 = vector.shape_cast %1248 : vector<16xf32> to vector<16x1xf32>
    %cst_383 = arith.constant 3.200000e+01 : f32
    %1250 = vector.broadcast %cst_383 : f32 to vector<16x1xf32>
    %1251 = arith.divf %1249, %1250 : vector<16x1xf32>
    %1252 = vector.broadcast %1244 : vector<16x1xf32> to vector<16x32xf32>
    %1253 = arith.subf %1235, %1252 : vector<16x32xf32>
    %cst_384 = arith.constant 9.99999974E-6 : f32
    %1254 = vector.broadcast %cst_384 : f32 to vector<16x1xf32>
    %1255 = arith.addf %1251, %1254 : vector<16x1xf32>
    %1256 = math.rsqrt %1255 : vector<16x1xf32>
    %1257 = vector.broadcast %1256 : vector<16x1xf32> to vector<16x32xf32>
    %1258 = arith.mulf %1253, %1257 : vector<16x32xf32>
    %1259 = vector.shape_cast %1238 : vector<32xf32> to vector<1x32xf32>
    %1260 = vector.broadcast %1259 : vector<1x32xf32> to vector<16x32xf32>
    %1261 = arith.mulf %1258, %1260 : vector<16x32xf32>
    %1262 = vector.shape_cast %1240 : vector<32xf32> to vector<1x32xf32>
    %1263 = vector.broadcast %1262 : vector<1x32xf32> to vector<16x32xf32>
    %1264 = arith.addf %1261, %1263 : vector<16x32xf32>
    %c0_385 = arith.constant 0 : index
    %c0_386 = arith.constant 0 : index
    %1265 = vector.load %arg16[%c0_385, %c0_386] : memref<32x64xf32, #tpu.memory_space<vmem>>, vector<32x64xf32>
    %cst_387 = arith.constant dense<0.000000e+00> : vector<16x64xf32>
    %1266 = tpu.matmul %1264, %1265, %cst_387 {dimension_numbers = #tpu.dot_dimension_numbers<[1], [0], [0], [1], [0, 0, 1, 1], [], []>} : vector<16x32xf32>, vector<32x64xf32>, vector<16x64xf32> -> vector<16x64xf32>
    %c0_388 = arith.constant 0 : index
    %c0_389 = arith.constant 0 : index
    %1267 = vector.load %arg17[%c0_388, %c0_389] : memref<1x64xf32, #tpu.memory_space<vmem>>, vector<1x64xf32>
    %1268 = vector.broadcast %1267 : vector<1x64xf32> to vector<16x64xf32>
    %1269 = arith.addf %1266, %1268 : vector<16x64xf32>
    %cst_390 = arith.constant 0.000000e+00 : f32
    %1270 = vector.broadcast %cst_390 : f32 to vector<16x64xf32>
    %1271 = arith.maximumf %1269, %1270 : vector<16x64xf32>
    %c0_391 = arith.constant 0 : index
    %c0_392 = arith.constant 0 : index
    %1272 = vector.load %arg18[%c0_391, %c0_392] : memref<64x32xf32, #tpu.memory_space<vmem>>, vector<64x32xf32>
    %cst_393 = arith.constant dense<0.000000e+00> : vector<16x32xf32>
    %1273 = tpu.matmul %1271, %1272, %cst_393 {dimension_numbers = #tpu.dot_dimension_numbers<[1], [0], [0], [1], [0, 0, 1, 1], [], []>} : vector<16x64xf32>, vector<64x32xf32>, vector<16x32xf32> -> vector<16x32xf32>
    %1274 = arith.addf %1235, %1273 : vector<16x32xf32>
    %c0_394 = arith.constant 0 : index
    %c0_395 = arith.constant 0 : index
    %1275 = vector.load %arg19[%c0_394, %c0_395] : memref<1x32xf32, #tpu.memory_space<vmem>>, vector<1x32xf32>
    %1276 = vector.broadcast %1275 : vector<1x32xf32> to vector<16x32xf32>
    %1277 = arith.addf %1274, %1276 : vector<16x32xf32>
    %c0_396 = arith.constant 0 : index
    %c0_397 = arith.constant 0 : index
    %c0_398 = arith.constant 0 : index
    %1278 = vector.load %arg15[%c0_396, %c0_397, %c0_398] : memref<2x2x32xf32, #tpu.memory_space<vmem>>, vector<1x2x32xf32>
    %1279 = vector.shape_cast %1278 : vector<1x2x32xf32> to vector<2x32xf32>
    %c0_399 = arith.constant 0 : index
    %c0_400 = arith.constant 0 : index
    %c0_401 = arith.constant 0 : index
    %c0_402 = arith.constant 0 : index
    %1280 = vector.load %arg13[%c0_399, %c0_400, %c0_401, %c0_402] : memref<2x4x32x32xf32, #tpu.memory_space<vmem>>, vector<1x4x32x32xf32>
    %1281 = vector.shape_cast %1280 : vector<1x4x32x32xf32> to vector<4x32x32xf32>
    %c0_403 = arith.constant 0 : index
    %c0_404 = arith.constant 0 : index
    %c0_405 = arith.constant 0 : index
    %1282 = vector.load %arg14[%c0_403, %c0_404, %c0_405] : memref<2x4x32xf32, #tpu.memory_space<vmem>>, vector<1x4x32xf32>
    %1283 = vector.shape_cast %1282 : vector<1x4x32xf32> to vector<4x32xf32>
    %1284 = vector.extract_strided_slice %1279 {offsets = [0, 0], sizes = [1, 32], strides = [1, 1]} : vector<2x32xf32> to vector<1x32xf32>
    %1285 = vector.shape_cast %1284 : vector<1x32xf32> to vector<32xf32>
    %1286 = vector.extract_strided_slice %1279 {offsets = [1, 0], sizes = [1, 32], strides = [1, 1]} : vector<2x32xf32> to vector<1x32xf32>
    %1287 = vector.shape_cast %1286 : vector<1x32xf32> to vector<32xf32>
    %cst_406 = arith.constant dense<0.000000e+00> : vector<16xf32>
    %1288 = vector.multi_reduction <add>, %1277, %cst_406 [1] : vector<16x32xf32> to vector<16xf32>
    %1289 = vector.shape_cast %1288 : vector<16xf32> to vector<16x1xf32>
    %cst_407 = arith.constant 3.200000e+01 : f32
    %1290 = vector.broadcast %cst_407 : f32 to vector<16x1xf32>
    %1291 = arith.divf %1289, %1290 : vector<16x1xf32>
    %1292 = vector.broadcast %1291 : vector<16x1xf32> to vector<16x32xf32>
    %1293 = arith.subf %1277, %1292 : vector<16x32xf32>
    %1294 = arith.mulf %1293, %1293 : vector<16x32xf32>
    %cst_408 = arith.constant dense<0.000000e+00> : vector<16xf32>
    %1295 = vector.multi_reduction <add>, %1294, %cst_408 [1] : vector<16x32xf32> to vector<16xf32>
    %1296 = vector.shape_cast %1295 : vector<16xf32> to vector<16x1xf32>
    %cst_409 = arith.constant 3.200000e+01 : f32
    %1297 = vector.broadcast %cst_409 : f32 to vector<16x1xf32>
    %1298 = arith.divf %1296, %1297 : vector<16x1xf32>
    %1299 = vector.broadcast %1291 : vector<16x1xf32> to vector<16x32xf32>
    %1300 = arith.subf %1277, %1299 : vector<16x32xf32>
    %cst_410 = arith.constant 9.99999974E-6 : f32
    %1301 = vector.broadcast %cst_410 : f32 to vector<16x1xf32>
    %1302 = arith.addf %1298, %1301 : vector<16x1xf32>
    %1303 = math.rsqrt %1302 : vector<16x1xf32>
    %1304 = vector.broadcast %1303 : vector<16x1xf32> to vector<16x32xf32>
    %1305 = arith.mulf %1300, %1304 : vector<16x32xf32>
    %1306 = vector.shape_cast %1285 : vector<32xf32> to vector<1x32xf32>
    %1307 = vector.broadcast %1306 : vector<1x32xf32> to vector<16x32xf32>
    %1308 = arith.mulf %1305, %1307 : vector<16x32xf32>
    %1309 = vector.shape_cast %1287 : vector<32xf32> to vector<1x32xf32>
    %1310 = vector.broadcast %1309 : vector<1x32xf32> to vector<16x32xf32>
    %1311 = arith.addf %1308, %1310 : vector<16x32xf32>
    %1312 = vector.extract_strided_slice %1281 {offsets = [0, 0, 0], sizes = [1, 32, 32], strides = [1, 1, 1]} : vector<4x32x32xf32> to vector<1x32x32xf32>
    %1313 = vector.shape_cast %1312 : vector<1x32x32xf32> to vector<32x32xf32>
    %cst_411 = arith.constant dense<0.000000e+00> : vector<16x32xf32>
    %1314 = tpu.matmul %1311, %1313, %cst_411 {dimension_numbers = #tpu.dot_dimension_numbers<[1], [0], [0], [1], [0, 0, 1, 1], [], []>} : vector<16x32xf32>, vector<32x32xf32>, vector<16x32xf32> -> vector<16x32xf32>
    %1315 = vector.extract_strided_slice %1283 {offsets = [0, 0], sizes = [1, 32], strides = [1, 1]} : vector<4x32xf32> to vector<1x32xf32>
    %1316 = vector.shape_cast %1315 : vector<1x32xf32> to vector<32xf32>
    %1317 = vector.shape_cast %1316 : vector<32xf32> to vector<1x32xf32>
    %1318 = vector.broadcast %1317 : vector<1x32xf32> to vector<16x32xf32>
    %1319 = arith.addf %1314, %1318 : vector<16x32xf32>
    %1320 = vector.extract_strided_slice %1281 {offsets = [1, 0, 0], sizes = [1, 32, 32], strides = [1, 1, 1]} : vector<4x32x32xf32> to vector<1x32x32xf32>
    %1321 = vector.shape_cast %1320 : vector<1x32x32xf32> to vector<32x32xf32>
    %cst_412 = arith.constant dense<0.000000e+00> : vector<16x32xf32>
    %1322 = tpu.matmul %1311, %1321, %cst_412 {dimension_numbers = #tpu.dot_dimension_numbers<[1], [0], [0], [1], [0, 0, 1, 1], [], []>} : vector<16x32xf32>, vector<32x32xf32>, vector<16x32xf32> -> vector<16x32xf32>
    %1323 = vector.extract_strided_slice %1283 {offsets = [1, 0], sizes = [1, 32], strides = [1, 1]} : vector<4x32xf32> to vector<1x32xf32>
    %1324 = vector.shape_cast %1323 : vector<1x32xf32> to vector<32xf32>
    %1325 = vector.shape_cast %1324 : vector<32xf32> to vector<1x32xf32>
    %1326 = vector.broadcast %1325 : vector<1x32xf32> to vector<16x32xf32>
    %1327 = arith.addf %1322, %1326 : vector<16x32xf32>
    %1328 = vector.extract_strided_slice %1281 {offsets = [2, 0, 0], sizes = [1, 32, 32], strides = [1, 1, 1]} : vector<4x32x32xf32> to vector<1x32x32xf32>
    %1329 = vector.shape_cast %1328 : vector<1x32x32xf32> to vector<32x32xf32>
    %cst_413 = arith.constant dense<0.000000e+00> : vector<16x32xf32>
    %1330 = tpu.matmul %1311, %1329, %cst_413 {dimension_numbers = #tpu.dot_dimension_numbers<[1], [0], [0], [1], [0, 0, 1, 1], [], []>} : vector<16x32xf32>, vector<32x32xf32>, vector<16x32xf32> -> vector<16x32xf32>
    %1331 = vector.extract_strided_slice %1283 {offsets = [2, 0], sizes = [1, 32], strides = [1, 1]} : vector<4x32xf32> to vector<1x32xf32>
    %1332 = vector.shape_cast %1331 : vector<1x32xf32> to vector<32xf32>
    %1333 = vector.shape_cast %1332 : vector<32xf32> to vector<1x32xf32>
    %1334 = vector.broadcast %1333 : vector<1x32xf32> to vector<16x32xf32>
    %1335 = arith.addf %1330, %1334 : vector<16x32xf32>
    %1336 = vector.extract_strided_slice %1281 {offsets = [3, 0, 0], sizes = [1, 32, 32], strides = [1, 1, 1]} : vector<4x32x32xf32> to vector<1x32x32xf32>
    %1337 = vector.shape_cast %1336 : vector<1x32x32xf32> to vector<32x32xf32>
    %1338 = vector.extract_strided_slice %1283 {offsets = [3, 0], sizes = [1, 32], strides = [1, 1]} : vector<4x32xf32> to vector<1x32xf32>
    %1339 = vector.shape_cast %1338 : vector<1x32xf32> to vector<32xf32>
    %1340 = vector.shape_cast %1339 : vector<32xf32> to vector<1x32xf32>
    %1341 = vector.broadcast %1340 : vector<1x32xf32> to vector<16x32xf32>
    %1342 = arith.addf %1277, %1341 : vector<16x32xf32>
    %1343 = vector.extract_strided_slice %1319 {offsets = [0, 0], sizes = [16, 8], strides = [1, 1]} : vector<16x32xf32> to vector<16x8xf32>
    %1344 = vector.extract_strided_slice %1327 {offsets = [0, 0], sizes = [16, 8], strides = [1, 1]} : vector<16x32xf32> to vector<16x8xf32>
    "tpu.trace_start"() <{level = 10 : i32, message = "qd,kd->qk"}> : () -> ()
    %cst_414 = arith.constant dense<0.000000e+00> : vector<16x16xf32>
    %1345 = tpu.matmul %1343, %1344, %cst_414 {dimension_numbers = #tpu.dot_dimension_numbers<[1], [1], [0], [0], [0, 0, 1, 0], [], []>} : vector<16x8xf32>, vector<16x8xf32>, vector<16x16xf32> -> vector<16x16xf32>
    "tpu.trace_stop"() : () -> ()
    %cst_415 = arith.constant 0.353553385 : f32
    %1346 = vector.broadcast %cst_415 : f32 to vector<16x16xf32>
    %1347 = arith.mulf %1345, %1346 : vector<16x16xf32>
    %1348 = arith.addf %1347, %3 : vector<16x16xf32>
    %cst_416 = arith.constant dense<0xFF800000> : vector<16xf32>
    %1349 = vector.multi_reduction <maximumf>, %1348, %cst_416 [1] : vector<16x16xf32> to vector<16xf32>
    %1350 = vector.shape_cast %1349 : vector<16xf32> to vector<16x1xf32>
    %1351 = vector.broadcast %1350 : vector<16x1xf32> to vector<16x16xf32>
    %1352 = arith.subf %1348, %1351 : vector<16x16xf32>
    %1353 = math.exp %1352 : vector<16x16xf32>
    %cst_417 = arith.constant dense<0.000000e+00> : vector<16xf32>
    %1354 = vector.multi_reduction <add>, %1353, %cst_417 [1] : vector<16x16xf32> to vector<16xf32>
    %1355 = vector.shape_cast %1354 : vector<16xf32> to vector<16x1xf32>
    %1356 = tpu.reciprocal %1355 {approx = true} : vector<16x1xf32> -> vector<16x1xf32>
    %1357 = vector.broadcast %1356 : vector<16x1xf32> to vector<16x16xf32>
    %1358 = arith.mulf %1353, %1357 : vector<16x16xf32>
    %1359 = vector.extract_strided_slice %1335 {offsets = [0, 0], sizes = [16, 8], strides = [1, 1]} : vector<16x32xf32> to vector<16x8xf32>
    %cst_418 = arith.constant dense<0.000000e+00> : vector<16x8xf32>
    %1360 = tpu.matmul %1358, %1359, %cst_418 {dimension_numbers = #tpu.dot_dimension_numbers<[1], [0], [0], [1], [0, 0, 1, 1], [], []>} : vector<16x16xf32>, vector<16x8xf32>, vector<16x8xf32> -> vector<16x8xf32>
    %1361 = vector.extract_strided_slice %1337 {offsets = [0, 0], sizes = [8, 32], strides = [1, 1]} : vector<32x32xf32> to vector<8x32xf32>
    %cst_419 = arith.constant dense<0.000000e+00> : vector<16x32xf32>
    %1362 = tpu.matmul %1360, %1361, %cst_419 {dimension_numbers = #tpu.dot_dimension_numbers<[1], [0], [0], [1], [0, 0, 1, 1], [], []>} : vector<16x8xf32>, vector<8x32xf32>, vector<16x32xf32> -> vector<16x32xf32>
    %1363 = arith.addf %1342, %1362 : vector<16x32xf32>
    %1364 = vector.extract_strided_slice %1319 {offsets = [0, 8], sizes = [16, 8], strides = [1, 1]} : vector<16x32xf32> to vector<16x8xf32>
    %1365 = vector.extract_strided_slice %1327 {offsets = [0, 8], sizes = [16, 8], strides = [1, 1]} : vector<16x32xf32> to vector<16x8xf32>
    "tpu.trace_start"() <{level = 10 : i32, message = "qd,kd->qk"}> : () -> ()
    %cst_420 = arith.constant dense<0.000000e+00> : vector<16x16xf32>
    %1366 = tpu.matmul %1364, %1365, %cst_420 {dimension_numbers = #tpu.dot_dimension_numbers<[1], [1], [0], [0], [0, 0, 1, 0], [], []>} : vector<16x8xf32>, vector<16x8xf32>, vector<16x16xf32> -> vector<16x16xf32>
    "tpu.trace_stop"() : () -> ()
    %cst_421 = arith.constant 0.353553385 : f32
    %1367 = vector.broadcast %cst_421 : f32 to vector<16x16xf32>
    %1368 = arith.mulf %1366, %1367 : vector<16x16xf32>
    %1369 = arith.addf %1368, %3 : vector<16x16xf32>
    %cst_422 = arith.constant dense<0xFF800000> : vector<16xf32>
    %1370 = vector.multi_reduction <maximumf>, %1369, %cst_422 [1] : vector<16x16xf32> to vector<16xf32>
    %1371 = vector.shape_cast %1370 : vector<16xf32> to vector<16x1xf32>
    %1372 = vector.broadcast %1371 : vector<16x1xf32> to vector<16x16xf32>
    %1373 = arith.subf %1369, %1372 : vector<16x16xf32>
    %1374 = math.exp %1373 : vector<16x16xf32>
    %cst_423 = arith.constant dense<0.000000e+00> : vector<16xf32>
    %1375 = vector.multi_reduction <add>, %1374, %cst_423 [1] : vector<16x16xf32> to vector<16xf32>
    %1376 = vector.shape_cast %1375 : vector<16xf32> to vector<16x1xf32>
    %1377 = tpu.reciprocal %1376 {approx = true} : vector<16x1xf32> -> vector<16x1xf32>
    %1378 = vector.broadcast %1377 : vector<16x1xf32> to vector<16x16xf32>
    %1379 = arith.mulf %1374, %1378 : vector<16x16xf32>
    %1380 = vector.extract_strided_slice %1335 {offsets = [0, 8], sizes = [16, 8], strides = [1, 1]} : vector<16x32xf32> to vector<16x8xf32>
    %cst_424 = arith.constant dense<0.000000e+00> : vector<16x8xf32>
    %1381 = tpu.matmul %1379, %1380, %cst_424 {dimension_numbers = #tpu.dot_dimension_numbers<[1], [0], [0], [1], [0, 0, 1, 1], [], []>} : vector<16x16xf32>, vector<16x8xf32>, vector<16x8xf32> -> vector<16x8xf32>
    %1382 = vector.extract_strided_slice %1337 {offsets = [8, 0], sizes = [8, 32], strides = [1, 1]} : vector<32x32xf32> to vector<8x32xf32>
    %cst_425 = arith.constant dense<0.000000e+00> : vector<16x32xf32>
    %1383 = tpu.matmul %1381, %1382, %cst_425 {dimension_numbers = #tpu.dot_dimension_numbers<[1], [0], [0], [1], [0, 0, 1, 1], [], []>} : vector<16x8xf32>, vector<8x32xf32>, vector<16x32xf32> -> vector<16x32xf32>
    %1384 = arith.addf %1363, %1383 : vector<16x32xf32>
    %1385 = vector.extract_strided_slice %1319 {offsets = [0, 16], sizes = [16, 8], strides = [1, 1]} : vector<16x32xf32> to vector<16x8xf32>
    %1386 = vector.extract_strided_slice %1327 {offsets = [0, 16], sizes = [16, 8], strides = [1, 1]} : vector<16x32xf32> to vector<16x8xf32>
    "tpu.trace_start"() <{level = 10 : i32, message = "qd,kd->qk"}> : () -> ()
    %cst_426 = arith.constant dense<0.000000e+00> : vector<16x16xf32>
    %1387 = tpu.matmul %1385, %1386, %cst_426 {dimension_numbers = #tpu.dot_dimension_numbers<[1], [1], [0], [0], [0, 0, 1, 0], [], []>} : vector<16x8xf32>, vector<16x8xf32>, vector<16x16xf32> -> vector<16x16xf32>
    "tpu.trace_stop"() : () -> ()
    %cst_427 = arith.constant 0.353553385 : f32
    %1388 = vector.broadcast %cst_427 : f32 to vector<16x16xf32>
    %1389 = arith.mulf %1387, %1388 : vector<16x16xf32>
    %1390 = arith.addf %1389, %3 : vector<16x16xf32>
    %cst_428 = arith.constant dense<0xFF800000> : vector<16xf32>
    %1391 = vector.multi_reduction <maximumf>, %1390, %cst_428 [1] : vector<16x16xf32> to vector<16xf32>
    %1392 = vector.shape_cast %1391 : vector<16xf32> to vector<16x1xf32>
    %1393 = vector.broadcast %1392 : vector<16x1xf32> to vector<16x16xf32>
    %1394 = arith.subf %1390, %1393 : vector<16x16xf32>
    %1395 = math.exp %1394 : vector<16x16xf32>
    %cst_429 = arith.constant dense<0.000000e+00> : vector<16xf32>
    %1396 = vector.multi_reduction <add>, %1395, %cst_429 [1] : vector<16x16xf32> to vector<16xf32>
    %1397 = vector.shape_cast %1396 : vector<16xf32> to vector<16x1xf32>
    %1398 = tpu.reciprocal %1397 {approx = true} : vector<16x1xf32> -> vector<16x1xf32>
    %1399 = vector.broadcast %1398 : vector<16x1xf32> to vector<16x16xf32>
    %1400 = arith.mulf %1395, %1399 : vector<16x16xf32>
    %1401 = vector.extract_strided_slice %1335 {offsets = [0, 16], sizes = [16, 8], strides = [1, 1]} : vector<16x32xf32> to vector<16x8xf32>
    %cst_430 = arith.constant dense<0.000000e+00> : vector<16x8xf32>
    %1402 = tpu.matmul %1400, %1401, %cst_430 {dimension_numbers = #tpu.dot_dimension_numbers<[1], [0], [0], [1], [0, 0, 1, 1], [], []>} : vector<16x16xf32>, vector<16x8xf32>, vector<16x8xf32> -> vector<16x8xf32>
    %1403 = vector.extract_strided_slice %1337 {offsets = [16, 0], sizes = [8, 32], strides = [1, 1]} : vector<32x32xf32> to vector<8x32xf32>
    %cst_431 = arith.constant dense<0.000000e+00> : vector<16x32xf32>
    %1404 = tpu.matmul %1402, %1403, %cst_431 {dimension_numbers = #tpu.dot_dimension_numbers<[1], [0], [0], [1], [0, 0, 1, 1], [], []>} : vector<16x8xf32>, vector<8x32xf32>, vector<16x32xf32> -> vector<16x32xf32>
    %1405 = arith.addf %1384, %1404 : vector<16x32xf32>
    %1406 = vector.extract_strided_slice %1319 {offsets = [0, 24], sizes = [16, 8], strides = [1, 1]} : vector<16x32xf32> to vector<16x8xf32>
    %1407 = vector.extract_strided_slice %1327 {offsets = [0, 24], sizes = [16, 8], strides = [1, 1]} : vector<16x32xf32> to vector<16x8xf32>
    "tpu.trace_start"() <{level = 10 : i32, message = "qd,kd->qk"}> : () -> ()
    %cst_432 = arith.constant dense<0.000000e+00> : vector<16x16xf32>
    %1408 = tpu.matmul %1406, %1407, %cst_432 {dimension_numbers = #tpu.dot_dimension_numbers<[1], [1], [0], [0], [0, 0, 1, 0], [], []>} : vector<16x8xf32>, vector<16x8xf32>, vector<16x16xf32> -> vector<16x16xf32>
    "tpu.trace_stop"() : () -> ()
    %cst_433 = arith.constant 0.353553385 : f32
    %1409 = vector.broadcast %cst_433 : f32 to vector<16x16xf32>
    %1410 = arith.mulf %1408, %1409 : vector<16x16xf32>
    %1411 = arith.addf %1410, %3 : vector<16x16xf32>
    %cst_434 = arith.constant dense<0xFF800000> : vector<16xf32>
    %1412 = vector.multi_reduction <maximumf>, %1411, %cst_434 [1] : vector<16x16xf32> to vector<16xf32>
    %1413 = vector.shape_cast %1412 : vector<16xf32> to vector<16x1xf32>
    %1414 = vector.broadcast %1413 : vector<16x1xf32> to vector<16x16xf32>
    %1415 = arith.subf %1411, %1414 : vector<16x16xf32>
    %1416 = math.exp %1415 : vector<16x16xf32>
    %cst_435 = arith.constant dense<0.000000e+00> : vector<16xf32>
    %1417 = vector.multi_reduction <add>, %1416, %cst_435 [1] : vector<16x16xf32> to vector<16xf32>
    %1418 = vector.shape_cast %1417 : vector<16xf32> to vector<16x1xf32>
    %1419 = tpu.reciprocal %1418 {approx = true} : vector<16x1xf32> -> vector<16x1xf32>
    %1420 = vector.broadcast %1419 : vector<16x1xf32> to vector<16x16xf32>
    %1421 = arith.mulf %1416, %1420 : vector<16x16xf32>
    %1422 = vector.extract_strided_slice %1335 {offsets = [0, 24], sizes = [16, 8], strides = [1, 1]} : vector<16x32xf32> to vector<16x8xf32>
    %cst_436 = arith.constant dense<0.000000e+00> : vector<16x8xf32>
    %1423 = tpu.matmul %1421, %1422, %cst_436 {dimension_numbers = #tpu.dot_dimension_numbers<[1], [0], [0], [1], [0, 0, 1, 1], [], []>} : vector<16x16xf32>, vector<16x8xf32>, vector<16x8xf32> -> vector<16x8xf32>
    %1424 = vector.extract_strided_slice %1337 {offsets = [24, 0], sizes = [8, 32], strides = [1, 1]} : vector<32x32xf32> to vector<8x32xf32>
    %cst_437 = arith.constant dense<0.000000e+00> : vector<16x32xf32>
    %1425 = tpu.matmul %1423, %1424, %cst_437 {dimension_numbers = #tpu.dot_dimension_numbers<[1], [0], [0], [1], [0, 0, 1, 1], [], []>} : vector<16x8xf32>, vector<8x32xf32>, vector<16x32xf32> -> vector<16x32xf32>
    %1426 = arith.addf %1405, %1425 : vector<16x32xf32>
    %1427 = vector.extract_strided_slice %593 {offsets = [0, 0], sizes = [1, 32], strides = [1, 1]} : vector<2x32xf32> to vector<1x32xf32>
    %1428 = vector.shape_cast %1427 : vector<1x32xf32> to vector<32xf32>
    %1429 = vector.extract_strided_slice %593 {offsets = [1, 0], sizes = [1, 32], strides = [1, 1]} : vector<2x32xf32> to vector<1x32xf32>
    %1430 = vector.shape_cast %1429 : vector<1x32xf32> to vector<32xf32>
    %cst_438 = arith.constant dense<0.000000e+00> : vector<16xf32>
    %1431 = vector.multi_reduction <add>, %1426, %cst_438 [1] : vector<16x32xf32> to vector<16xf32>
    %1432 = vector.shape_cast %1431 : vector<16xf32> to vector<16x1xf32>
    %cst_439 = arith.constant 3.200000e+01 : f32
    %1433 = vector.broadcast %cst_439 : f32 to vector<16x1xf32>
    %1434 = arith.divf %1432, %1433 : vector<16x1xf32>
    %1435 = vector.broadcast %1434 : vector<16x1xf32> to vector<16x32xf32>
    %1436 = arith.subf %1426, %1435 : vector<16x32xf32>
    %1437 = arith.mulf %1436, %1436 : vector<16x32xf32>
    %cst_440 = arith.constant dense<0.000000e+00> : vector<16xf32>
    %1438 = vector.multi_reduction <add>, %1437, %cst_440 [1] : vector<16x32xf32> to vector<16xf32>
    %1439 = vector.shape_cast %1438 : vector<16xf32> to vector<16x1xf32>
    %cst_441 = arith.constant 3.200000e+01 : f32
    %1440 = vector.broadcast %cst_441 : f32 to vector<16x1xf32>
    %1441 = arith.divf %1439, %1440 : vector<16x1xf32>
    %1442 = vector.broadcast %1434 : vector<16x1xf32> to vector<16x32xf32>
    %1443 = arith.subf %1426, %1442 : vector<16x32xf32>
    %cst_442 = arith.constant 9.99999974E-6 : f32
    %1444 = vector.broadcast %cst_442 : f32 to vector<16x1xf32>
    %1445 = arith.addf %1441, %1444 : vector<16x1xf32>
    %1446 = math.rsqrt %1445 : vector<16x1xf32>
    %1447 = vector.broadcast %1446 : vector<16x1xf32> to vector<16x32xf32>
    %1448 = arith.mulf %1443, %1447 : vector<16x32xf32>
    %1449 = vector.shape_cast %1428 : vector<32xf32> to vector<1x32xf32>
    %1450 = vector.broadcast %1449 : vector<1x32xf32> to vector<16x32xf32>
    %1451 = arith.mulf %1448, %1450 : vector<16x32xf32>
    %1452 = vector.shape_cast %1430 : vector<32xf32> to vector<1x32xf32>
    %1453 = vector.broadcast %1452 : vector<1x32xf32> to vector<16x32xf32>
    %1454 = arith.addf %1451, %1453 : vector<16x32xf32>
    %1455 = vector.extract_strided_slice %595 {offsets = [0, 0, 0], sizes = [1, 32, 32], strides = [1, 1, 1]} : vector<4x32x32xf32> to vector<1x32x32xf32>
    %1456 = vector.shape_cast %1455 : vector<1x32x32xf32> to vector<32x32xf32>
    %cst_443 = arith.constant dense<0.000000e+00> : vector<16x32xf32>
    %1457 = tpu.matmul %1454, %1456, %cst_443 {dimension_numbers = #tpu.dot_dimension_numbers<[1], [0], [0], [1], [0, 0, 1, 1], [], []>} : vector<16x32xf32>, vector<32x32xf32>, vector<16x32xf32> -> vector<16x32xf32>
    %1458 = vector.extract_strided_slice %597 {offsets = [0, 0], sizes = [1, 32], strides = [1, 1]} : vector<4x32xf32> to vector<1x32xf32>
    %1459 = vector.shape_cast %1458 : vector<1x32xf32> to vector<32xf32>
    %1460 = vector.shape_cast %1459 : vector<32xf32> to vector<1x32xf32>
    %1461 = vector.broadcast %1460 : vector<1x32xf32> to vector<16x32xf32>
    %1462 = arith.addf %1457, %1461 : vector<16x32xf32>
    %1463 = vector.extract_strided_slice %595 {offsets = [3, 0, 0], sizes = [1, 32, 32], strides = [1, 1, 1]} : vector<4x32x32xf32> to vector<1x32x32xf32>
    %1464 = vector.shape_cast %1463 : vector<1x32x32xf32> to vector<32x32xf32>
    %1465 = vector.extract_strided_slice %597 {offsets = [3, 0], sizes = [1, 32], strides = [1, 1]} : vector<4x32xf32> to vector<1x32xf32>
    %1466 = vector.shape_cast %1465 : vector<1x32xf32> to vector<32xf32>
    %1467 = vector.shape_cast %1466 : vector<32xf32> to vector<1x32xf32>
    %1468 = vector.broadcast %1467 : vector<1x32xf32> to vector<16x32xf32>
    %1469 = arith.addf %1426, %1468 : vector<16x32xf32>
    %1470 = vector.extract_strided_slice %1462 {offsets = [0, 0], sizes = [16, 8], strides = [1, 1]} : vector<16x32xf32> to vector<16x8xf32>
    %1471 = vector.extract_strided_slice %633 {offsets = [0, 0], sizes = [16, 8], strides = [1, 1]} : vector<16x32xf32> to vector<16x8xf32>
    "tpu.trace_start"() <{level = 10 : i32, message = "qd,kd->qk"}> : () -> ()
    %cst_444 = arith.constant dense<0.000000e+00> : vector<16x16xf32>
    %1472 = tpu.matmul %1470, %1471, %cst_444 {dimension_numbers = #tpu.dot_dimension_numbers<[1], [1], [0], [0], [0, 0, 1, 0], [], []>} : vector<16x8xf32>, vector<16x8xf32>, vector<16x16xf32> -> vector<16x16xf32>
    "tpu.trace_stop"() : () -> ()
    %cst_445 = arith.constant 0.353553385 : f32
    %1473 = vector.broadcast %cst_445 : f32 to vector<16x16xf32>
    %1474 = arith.mulf %1472, %1473 : vector<16x16xf32>
    %1475 = arith.addf %1474, %2 : vector<16x16xf32>
    %cst_446 = arith.constant dense<0xFF800000> : vector<16xf32>
    %1476 = vector.multi_reduction <maximumf>, %1475, %cst_446 [1] : vector<16x16xf32> to vector<16xf32>
    %1477 = vector.shape_cast %1476 : vector<16xf32> to vector<16x1xf32>
    %1478 = vector.broadcast %1477 : vector<16x1xf32> to vector<16x16xf32>
    %1479 = arith.subf %1475, %1478 : vector<16x16xf32>
    %1480 = math.exp %1479 : vector<16x16xf32>
    %cst_447 = arith.constant dense<0.000000e+00> : vector<16xf32>
    %1481 = vector.multi_reduction <add>, %1480, %cst_447 [1] : vector<16x16xf32> to vector<16xf32>
    %1482 = vector.shape_cast %1481 : vector<16xf32> to vector<16x1xf32>
    %1483 = tpu.reciprocal %1482 {approx = true} : vector<16x1xf32> -> vector<16x1xf32>
    %1484 = vector.broadcast %1483 : vector<16x1xf32> to vector<16x16xf32>
    %1485 = arith.mulf %1480, %1484 : vector<16x16xf32>
    %1486 = vector.extract_strided_slice %641 {offsets = [0, 0], sizes = [16, 8], strides = [1, 1]} : vector<16x32xf32> to vector<16x8xf32>
    %cst_448 = arith.constant dense<0.000000e+00> : vector<16x8xf32>
    %1487 = tpu.matmul %1485, %1486, %cst_448 {dimension_numbers = #tpu.dot_dimension_numbers<[1], [0], [0], [1], [0, 0, 1, 1], [], []>} : vector<16x16xf32>, vector<16x8xf32>, vector<16x8xf32> -> vector<16x8xf32>
    %1488 = vector.extract_strided_slice %1464 {offsets = [0, 0], sizes = [8, 32], strides = [1, 1]} : vector<32x32xf32> to vector<8x32xf32>
    %cst_449 = arith.constant dense<0.000000e+00> : vector<16x32xf32>
    %1489 = tpu.matmul %1487, %1488, %cst_449 {dimension_numbers = #tpu.dot_dimension_numbers<[1], [0], [0], [1], [0, 0, 1, 1], [], []>} : vector<16x8xf32>, vector<8x32xf32>, vector<16x32xf32> -> vector<16x32xf32>
    %1490 = arith.addf %1469, %1489 : vector<16x32xf32>
    %1491 = vector.extract_strided_slice %1462 {offsets = [0, 8], sizes = [16, 8], strides = [1, 1]} : vector<16x32xf32> to vector<16x8xf32>
    %1492 = vector.extract_strided_slice %633 {offsets = [0, 8], sizes = [16, 8], strides = [1, 1]} : vector<16x32xf32> to vector<16x8xf32>
    "tpu.trace_start"() <{level = 10 : i32, message = "qd,kd->qk"}> : () -> ()
    %cst_450 = arith.constant dense<0.000000e+00> : vector<16x16xf32>
    %1493 = tpu.matmul %1491, %1492, %cst_450 {dimension_numbers = #tpu.dot_dimension_numbers<[1], [1], [0], [0], [0, 0, 1, 0], [], []>} : vector<16x8xf32>, vector<16x8xf32>, vector<16x16xf32> -> vector<16x16xf32>
    "tpu.trace_stop"() : () -> ()
    %cst_451 = arith.constant 0.353553385 : f32
    %1494 = vector.broadcast %cst_451 : f32 to vector<16x16xf32>
    %1495 = arith.mulf %1493, %1494 : vector<16x16xf32>
    %1496 = arith.addf %1495, %2 : vector<16x16xf32>
    %cst_452 = arith.constant dense<0xFF800000> : vector<16xf32>
    %1497 = vector.multi_reduction <maximumf>, %1496, %cst_452 [1] : vector<16x16xf32> to vector<16xf32>
    %1498 = vector.shape_cast %1497 : vector<16xf32> to vector<16x1xf32>
    %1499 = vector.broadcast %1498 : vector<16x1xf32> to vector<16x16xf32>
    %1500 = arith.subf %1496, %1499 : vector<16x16xf32>
    %1501 = math.exp %1500 : vector<16x16xf32>
    %cst_453 = arith.constant dense<0.000000e+00> : vector<16xf32>
    %1502 = vector.multi_reduction <add>, %1501, %cst_453 [1] : vector<16x16xf32> to vector<16xf32>
    %1503 = vector.shape_cast %1502 : vector<16xf32> to vector<16x1xf32>
    %1504 = tpu.reciprocal %1503 {approx = true} : vector<16x1xf32> -> vector<16x1xf32>
    %1505 = vector.broadcast %1504 : vector<16x1xf32> to vector<16x16xf32>
    %1506 = arith.mulf %1501, %1505 : vector<16x16xf32>
    %1507 = vector.extract_strided_slice %641 {offsets = [0, 8], sizes = [16, 8], strides = [1, 1]} : vector<16x32xf32> to vector<16x8xf32>
    %cst_454 = arith.constant dense<0.000000e+00> : vector<16x8xf32>
    %1508 = tpu.matmul %1506, %1507, %cst_454 {dimension_numbers = #tpu.dot_dimension_numbers<[1], [0], [0], [1], [0, 0, 1, 1], [], []>} : vector<16x16xf32>, vector<16x8xf32>, vector<16x8xf32> -> vector<16x8xf32>
    %1509 = vector.extract_strided_slice %1464 {offsets = [8, 0], sizes = [8, 32], strides = [1, 1]} : vector<32x32xf32> to vector<8x32xf32>
    %cst_455 = arith.constant dense<0.000000e+00> : vector<16x32xf32>
    %1510 = tpu.matmul %1508, %1509, %cst_455 {dimension_numbers = #tpu.dot_dimension_numbers<[1], [0], [0], [1], [0, 0, 1, 1], [], []>} : vector<16x8xf32>, vector<8x32xf32>, vector<16x32xf32> -> vector<16x32xf32>
    %1511 = arith.addf %1490, %1510 : vector<16x32xf32>
    %1512 = vector.extract_strided_slice %1462 {offsets = [0, 16], sizes = [16, 8], strides = [1, 1]} : vector<16x32xf32> to vector<16x8xf32>
    %1513 = vector.extract_strided_slice %633 {offsets = [0, 16], sizes = [16, 8], strides = [1, 1]} : vector<16x32xf32> to vector<16x8xf32>
    "tpu.trace_start"() <{level = 10 : i32, message = "qd,kd->qk"}> : () -> ()
    %cst_456 = arith.constant dense<0.000000e+00> : vector<16x16xf32>
    %1514 = tpu.matmul %1512, %1513, %cst_456 {dimension_numbers = #tpu.dot_dimension_numbers<[1], [1], [0], [0], [0, 0, 1, 0], [], []>} : vector<16x8xf32>, vector<16x8xf32>, vector<16x16xf32> -> vector<16x16xf32>
    "tpu.trace_stop"() : () -> ()
    %cst_457 = arith.constant 0.353553385 : f32
    %1515 = vector.broadcast %cst_457 : f32 to vector<16x16xf32>
    %1516 = arith.mulf %1514, %1515 : vector<16x16xf32>
    %1517 = arith.addf %1516, %2 : vector<16x16xf32>
    %cst_458 = arith.constant dense<0xFF800000> : vector<16xf32>
    %1518 = vector.multi_reduction <maximumf>, %1517, %cst_458 [1] : vector<16x16xf32> to vector<16xf32>
    %1519 = vector.shape_cast %1518 : vector<16xf32> to vector<16x1xf32>
    %1520 = vector.broadcast %1519 : vector<16x1xf32> to vector<16x16xf32>
    %1521 = arith.subf %1517, %1520 : vector<16x16xf32>
    %1522 = math.exp %1521 : vector<16x16xf32>
    %cst_459 = arith.constant dense<0.000000e+00> : vector<16xf32>
    %1523 = vector.multi_reduction <add>, %1522, %cst_459 [1] : vector<16x16xf32> to vector<16xf32>
    %1524 = vector.shape_cast %1523 : vector<16xf32> to vector<16x1xf32>
    %1525 = tpu.reciprocal %1524 {approx = true} : vector<16x1xf32> -> vector<16x1xf32>
    %1526 = vector.broadcast %1525 : vector<16x1xf32> to vector<16x16xf32>
    %1527 = arith.mulf %1522, %1526 : vector<16x16xf32>
    %1528 = vector.extract_strided_slice %641 {offsets = [0, 16], sizes = [16, 8], strides = [1, 1]} : vector<16x32xf32> to vector<16x8xf32>
    %cst_460 = arith.constant dense<0.000000e+00> : vector<16x8xf32>
    %1529 = tpu.matmul %1527, %1528, %cst_460 {dimension_numbers = #tpu.dot_dimension_numbers<[1], [0], [0], [1], [0, 0, 1, 1], [], []>} : vector<16x16xf32>, vector<16x8xf32>, vector<16x8xf32> -> vector<16x8xf32>
    %1530 = vector.extract_strided_slice %1464 {offsets = [16, 0], sizes = [8, 32], strides = [1, 1]} : vector<32x32xf32> to vector<8x32xf32>
    %cst_461 = arith.constant dense<0.000000e+00> : vector<16x32xf32>
    %1531 = tpu.matmul %1529, %1530, %cst_461 {dimension_numbers = #tpu.dot_dimension_numbers<[1], [0], [0], [1], [0, 0, 1, 1], [], []>} : vector<16x8xf32>, vector<8x32xf32>, vector<16x32xf32> -> vector<16x32xf32>
    %1532 = arith.addf %1511, %1531 : vector<16x32xf32>
    %1533 = vector.extract_strided_slice %1462 {offsets = [0, 24], sizes = [16, 8], strides = [1, 1]} : vector<16x32xf32> to vector<16x8xf32>
    %1534 = vector.extract_strided_slice %633 {offsets = [0, 24], sizes = [16, 8], strides = [1, 1]} : vector<16x32xf32> to vector<16x8xf32>
    "tpu.trace_start"() <{level = 10 : i32, message = "qd,kd->qk"}> : () -> ()
    %cst_462 = arith.constant dense<0.000000e+00> : vector<16x16xf32>
    %1535 = tpu.matmul %1533, %1534, %cst_462 {dimension_numbers = #tpu.dot_dimension_numbers<[1], [1], [0], [0], [0, 0, 1, 0], [], []>} : vector<16x8xf32>, vector<16x8xf32>, vector<16x16xf32> -> vector<16x16xf32>
    "tpu.trace_stop"() : () -> ()
    %cst_463 = arith.constant 0.353553385 : f32
    %1536 = vector.broadcast %cst_463 : f32 to vector<16x16xf32>
    %1537 = arith.mulf %1535, %1536 : vector<16x16xf32>
    %1538 = arith.addf %1537, %2 : vector<16x16xf32>
    %cst_464 = arith.constant dense<0xFF800000> : vector<16xf32>
    %1539 = vector.multi_reduction <maximumf>, %1538, %cst_464 [1] : vector<16x16xf32> to vector<16xf32>
    %1540 = vector.shape_cast %1539 : vector<16xf32> to vector<16x1xf32>
    %1541 = vector.broadcast %1540 : vector<16x1xf32> to vector<16x16xf32>
    %1542 = arith.subf %1538, %1541 : vector<16x16xf32>
    %1543 = math.exp %1542 : vector<16x16xf32>
    %cst_465 = arith.constant dense<0.000000e+00> : vector<16xf32>
    %1544 = vector.multi_reduction <add>, %1543, %cst_465 [1] : vector<16x16xf32> to vector<16xf32>
    %1545 = vector.shape_cast %1544 : vector<16xf32> to vector<16x1xf32>
    %1546 = tpu.reciprocal %1545 {approx = true} : vector<16x1xf32> -> vector<16x1xf32>
    %1547 = vector.broadcast %1546 : vector<16x1xf32> to vector<16x16xf32>
    %1548 = arith.mulf %1543, %1547 : vector<16x16xf32>
    %1549 = vector.extract_strided_slice %641 {offsets = [0, 24], sizes = [16, 8], strides = [1, 1]} : vector<16x32xf32> to vector<16x8xf32>
    %cst_466 = arith.constant dense<0.000000e+00> : vector<16x8xf32>
    %1550 = tpu.matmul %1548, %1549, %cst_466 {dimension_numbers = #tpu.dot_dimension_numbers<[1], [0], [0], [1], [0, 0, 1, 1], [], []>} : vector<16x16xf32>, vector<16x8xf32>, vector<16x8xf32> -> vector<16x8xf32>
    %1551 = vector.extract_strided_slice %1464 {offsets = [24, 0], sizes = [8, 32], strides = [1, 1]} : vector<32x32xf32> to vector<8x32xf32>
    %cst_467 = arith.constant dense<0.000000e+00> : vector<16x32xf32>
    %1552 = tpu.matmul %1550, %1551, %cst_467 {dimension_numbers = #tpu.dot_dimension_numbers<[1], [0], [0], [1], [0, 0, 1, 1], [], []>} : vector<16x8xf32>, vector<8x32xf32>, vector<16x32xf32> -> vector<16x32xf32>
    %1553 = arith.addf %1532, %1552 : vector<16x32xf32>
    %c0_468 = arith.constant 0 : index
    %c0_469 = arith.constant 0 : index
    %1554 = vector.load %arg20[%c0_468, %c0_469] : memref<2x32xf32, #tpu.memory_space<vmem>>, vector<2x32xf32>
    %1555 = vector.extract_strided_slice %1554 {offsets = [0, 0], sizes = [1, 32], strides = [1, 1]} : vector<2x32xf32> to vector<1x32xf32>
    %1556 = vector.shape_cast %1555 : vector<1x32xf32> to vector<32xf32>
    %1557 = vector.extract_strided_slice %1554 {offsets = [1, 0], sizes = [1, 32], strides = [1, 1]} : vector<2x32xf32> to vector<1x32xf32>
    %1558 = vector.shape_cast %1557 : vector<1x32xf32> to vector<32xf32>
    %cst_470 = arith.constant dense<0.000000e+00> : vector<16xf32>
    %1559 = vector.multi_reduction <add>, %1553, %cst_470 [1] : vector<16x32xf32> to vector<16xf32>
    %1560 = vector.shape_cast %1559 : vector<16xf32> to vector<16x1xf32>
    %cst_471 = arith.constant 3.200000e+01 : f32
    %1561 = vector.broadcast %cst_471 : f32 to vector<16x1xf32>
    %1562 = arith.divf %1560, %1561 : vector<16x1xf32>
    %1563 = vector.broadcast %1562 : vector<16x1xf32> to vector<16x32xf32>
    %1564 = arith.subf %1553, %1563 : vector<16x32xf32>
    %1565 = arith.mulf %1564, %1564 : vector<16x32xf32>
    %cst_472 = arith.constant dense<0.000000e+00> : vector<16xf32>
    %1566 = vector.multi_reduction <add>, %1565, %cst_472 [1] : vector<16x32xf32> to vector<16xf32>
    %1567 = vector.shape_cast %1566 : vector<16xf32> to vector<16x1xf32>
    %cst_473 = arith.constant 3.200000e+01 : f32
    %1568 = vector.broadcast %cst_473 : f32 to vector<16x1xf32>
    %1569 = arith.divf %1567, %1568 : vector<16x1xf32>
    %1570 = vector.broadcast %1562 : vector<16x1xf32> to vector<16x32xf32>
    %1571 = arith.subf %1553, %1570 : vector<16x32xf32>
    %cst_474 = arith.constant 9.99999974E-6 : f32
    %1572 = vector.broadcast %cst_474 : f32 to vector<16x1xf32>
    %1573 = arith.addf %1569, %1572 : vector<16x1xf32>
    %1574 = math.rsqrt %1573 : vector<16x1xf32>
    %1575 = vector.broadcast %1574 : vector<16x1xf32> to vector<16x32xf32>
    %1576 = arith.mulf %1571, %1575 : vector<16x32xf32>
    %1577 = vector.shape_cast %1556 : vector<32xf32> to vector<1x32xf32>
    %1578 = vector.broadcast %1577 : vector<1x32xf32> to vector<16x32xf32>
    %1579 = arith.mulf %1576, %1578 : vector<16x32xf32>
    %1580 = vector.shape_cast %1558 : vector<32xf32> to vector<1x32xf32>
    %1581 = vector.broadcast %1580 : vector<1x32xf32> to vector<16x32xf32>
    %1582 = arith.addf %1579, %1581 : vector<16x32xf32>
    %c0_475 = arith.constant 0 : index
    %c0_476 = arith.constant 0 : index
    %1583 = vector.load %arg16[%c0_475, %c0_476] : memref<32x64xf32, #tpu.memory_space<vmem>>, vector<32x64xf32>
    %cst_477 = arith.constant dense<0.000000e+00> : vector<16x64xf32>
    %1584 = tpu.matmul %1582, %1583, %cst_477 {dimension_numbers = #tpu.dot_dimension_numbers<[1], [0], [0], [1], [0, 0, 1, 1], [], []>} : vector<16x32xf32>, vector<32x64xf32>, vector<16x64xf32> -> vector<16x64xf32>
    %c0_478 = arith.constant 0 : index
    %c0_479 = arith.constant 0 : index
    %1585 = vector.load %arg17[%c0_478, %c0_479] : memref<1x64xf32, #tpu.memory_space<vmem>>, vector<1x64xf32>
    %1586 = vector.broadcast %1585 : vector<1x64xf32> to vector<16x64xf32>
    %1587 = arith.addf %1584, %1586 : vector<16x64xf32>
    %cst_480 = arith.constant 0.000000e+00 : f32
    %1588 = vector.broadcast %cst_480 : f32 to vector<16x64xf32>
    %1589 = arith.maximumf %1587, %1588 : vector<16x64xf32>
    %c0_481 = arith.constant 0 : index
    %c0_482 = arith.constant 0 : index
    %1590 = vector.load %arg18[%c0_481, %c0_482] : memref<64x32xf32, #tpu.memory_space<vmem>>, vector<64x32xf32>
    %cst_483 = arith.constant dense<0.000000e+00> : vector<16x32xf32>
    %1591 = tpu.matmul %1589, %1590, %cst_483 {dimension_numbers = #tpu.dot_dimension_numbers<[1], [0], [0], [1], [0, 0, 1, 1], [], []>} : vector<16x64xf32>, vector<64x32xf32>, vector<16x32xf32> -> vector<16x32xf32>
    %1592 = arith.addf %1553, %1591 : vector<16x32xf32>
    %c0_484 = arith.constant 0 : index
    %c0_485 = arith.constant 0 : index
    %1593 = vector.load %arg19[%c0_484, %c0_485] : memref<1x32xf32, #tpu.memory_space<vmem>>, vector<1x32xf32>
    %1594 = vector.broadcast %1593 : vector<1x32xf32> to vector<16x32xf32>
    %1595 = arith.addf %1592, %1594 : vector<16x32xf32>
    %c0_486 = arith.constant 0 : index
    %c0_487 = arith.constant 0 : index
    %1596 = vector.load %arg21[%c0_486, %c0_487] : memref<32x128xf32, #tpu.memory_space<vmem>>, vector<32x128xf32>
    %cst_488 = arith.constant dense<0.000000e+00> : vector<16x128xf32>
    %1597 = tpu.matmul %1595, %1596, %cst_488 {dimension_numbers = #tpu.dot_dimension_numbers<[1], [0], [0], [1], [0, 0, 1, 1], [], []>} : vector<16x32xf32>, vector<32x128xf32>, vector<16x128xf32> -> vector<16x128xf32>
    %c0_489 = arith.constant 0 : index
    %c0_490 = arith.constant 0 : index
    %1598 = vector.load %arg22[%c0_489, %c0_490] : memref<1x128xf32, #tpu.memory_space<vmem>>, vector<1x128xf32>
    %1599 = vector.broadcast %1598 : vector<1x128xf32> to vector<16x128xf32>
    %1600 = arith.addf %1597, %1599 : vector<16x128xf32>
    %c0_491 = arith.constant 0 : index
    %c0_492 = arith.constant 0 : index
    %1601 = vector.load %arg23[%c0_491, %c0_492] : memref<16x128xf32, #tpu.memory_space<vmem>>, vector<16x128xf32>
    tpu.vector_store %arg23[%c0_491, %c0_492], %1600 {strides = array<i32>} : memref<16x128xf32, #tpu.memory_space<vmem>>, vector<16x128xf32>,
    return
  }
  func.func @transform_0(%arg0: i32) -> (i32, i32) {
    %c0_i32 = arith.constant 0 : i32
    %c0_i32_0 = arith.constant 0 : i32
    %c0_i32_1 = arith.constant 0 : i32
    return %c0_i32, %c0_i32_0 : i32, i32
  }
  func.func @transform_1(%arg0: i32) -> (i32, i32) {
    %c0_i32 = arith.constant 0 : i32
    %c0_i32_0 = arith.constant 0 : i32
    %c0_i32_1 = arith.constant 0 : i32
    return %c0_i32, %c0_i32_0 : i32, i32
  }
  func.func @transform_2(%arg0: i32) -> (i32, i32) {
    %c0_i32 = arith.constant 0 : i32
    %c0_i32_0 = arith.constant 0 : i32
    %c0_i32_1 = arith.constant 0 : i32
    return %c0_i32, %c0_i32_0 : i32, i32
  }
  func.func @transform_3(%arg0: i32) -> (i32, i32) {
    %c0_i32 = arith.constant 0 : i32
    %c0_i32_0 = arith.constant 0 : i32
    %c0_i32_1 = arith.constant 0 : i32
    return %c0_i32, %c0_i32_0 : i32, i32
  }
  func.func @transform_4(%arg0: i32) -> (i32, i32, i32, i32) {
    %c0_i32 = arith.constant 0 : i32
    %c0_i32_0 = arith.constant 0 : i32
    %c0_i32_1 = arith.constant 0 : i32
    %c0_i32_2 = arith.constant 0 : i32
    %c0_i32_3 = arith.constant 0 : i32
    return %c0_i32, %c0_i32_0, %c0_i32_1, %c0_i32_2 : i32, i32, i32, i32
  }
  func.func @transform_5(%arg0: i32) -> (i32, i32, i32) {
    %c0_i32 = arith.constant 0 : i32
    %c0_i32_0 = arith.constant 0 : i32
    %c0_i32_1 = arith.constant 0 : i32
    %c0_i32_2 = arith.constant 0 : i32
    return %c0_i32, %c0_i32_0, %c0_i32_1 : i32, i32, i32
  }
  func.func @transform_6(%arg0: i32) -> (i32, i32, i32) {
    %c0_i32 = arith.constant 0 : i32
    %c0_i32_0 = arith.constant 0 : i32
    %c0_i32_1 = arith.constant 0 : i32
    %c0_i32_2 = arith.constant 0 : i32
    return %c0_i32, %c0_i32_0, %c0_i32_1 : i32, i32, i32
  }
  func.func @transform_7(%arg0: i32) -> (i32, i32, i32) {
    %c0_i32 = arith.constant 0 : i32
    %c0_i32_0 = arith.constant 0 : i32
    %c0_i32_1 = arith.constant 0 : i32
    %c0_i32_2 = arith.constant 0 : i32
    return %c0_i32, %c0_i32_0, %c0_i32_1 : i32, i32, i32
  }
  func.func @transform_8(%arg0: i32) -> (i32, i32, i32) {
    %c0_i32 = arith.constant 0 : i32
    %c0_i32_0 = arith.constant 0 : i32
    %c0_i32_1 = arith.constant 0 : i32
    %c0_i32_2 = arith.constant 0 : i32
    return %c0_i32, %c0_i32_0, %c0_i32_1 : i32, i32, i32
  }
  func.func @transform_9(%arg0: i32) -> (i32, i32, i32) {
    %c0_i32 = arith.constant 0 : i32
    %c0_i32_0 = arith.constant 0 : i32
    %c0_i32_1 = arith.constant 0 : i32
    %c0_i32_2 = arith.constant 0 : i32
    return %c0_i32, %c0_i32_0, %c0_i32_1 : i32, i32, i32
  }
  func.func @transform_10(%arg0: i32) -> (i32, i32, i32) {
    %c0_i32 = arith.constant 0 : i32
    %c0_i32_0 = arith.constant 0 : i32
    %c0_i32_1 = arith.constant 0 : i32
    %c0_i32_2 = arith.constant 0 : i32
    return %c0_i32, %c0_i32_0, %c0_i32_1 : i32, i32, i32
  }
  func.func @transform_11(%arg0: i32) -> (i32, i32, i32) {
    %c0_i32 = arith.constant 0 : i32
    %c0_i32_0 = arith.constant 0 : i32
    %c0_i32_1 = arith.constant 0 : i32
    %c0_i32_2 = arith.constant 0 : i32
    return %c0_i32, %c0_i32_0, %c0_i32_1 : i32, i32, i32
  }
  func.func @transform_12(%arg0: i32) -> (i32, i32, i32, i32) {
    %c0_i32 = arith.constant 0 : i32
    %c0_i32_0 = arith.constant 0 : i32
    %c0_i32_1 = arith.constant 0 : i32
    %c0_i32_2 = arith.constant 0 : i32
    %c0_i32_3 = arith.constant 0 : i32
    return %c0_i32, %c0_i32_0, %c0_i32_1, %c0_i32_2 : i32, i32, i32, i32
  }
  func.func @transform_13(%arg0: i32) -> (i32, i32, i32) {
    %c0_i32 = arith.constant 0 : i32
    %c0_i32_0 = arith.constant 0 : i32
    %c0_i32_1 = arith.constant 0 : i32
    %c0_i32_2 = arith.constant 0 : i32
    return %c0_i32, %c0_i32_0, %c0_i32_1 : i32, i32, i32
  }
  func.func @transform_14(%arg0: i32) -> (i32, i32, i32) {
    %c0_i32 = arith.constant 0 : i32
    %c0_i32_0 = arith.constant 0 : i32
    %c0_i32_1 = arith.constant 0 : i32
    %c0_i32_2 = arith.constant 0 : i32
    return %c0_i32, %c0_i32_0, %c0_i32_1 : i32, i32, i32
  }
  func.func @transform_15(%arg0: i32) -> (i32, i32) {
    %c0_i32 = arith.constant 0 : i32
    %c0_i32_0 = arith.constant 0 : i32
    %c0_i32_1 = arith.constant 0 : i32
    return %c0_i32, %c0_i32_0 : i32, i32
  }
  func.func @transform_16(%arg0: i32) -> (i32, i32) {
    %c0_i32 = arith.constant 0 : i32
    %c0_i32_0 = arith.constant 0 : i32
    %c0_i32_1 = arith.constant 0 : i32
    return %c0_i32, %c0_i32_0 : i32, i32
  }
  func.func @transform_17(%arg0: i32) -> (i32, i32) {
    %c0_i32 = arith.constant 0 : i32
    %c0_i32_0 = arith.constant 0 : i32
    %c0_i32_1 = arith.constant 0 : i32
    return %c0_i32, %c0_i32_0 : i32, i32
  }
  func.func @transform_18(%arg0: i32) -> (i32, i32) {
    %c0_i32 = arith.constant 0 : i32
    %c0_i32_0 = arith.constant 0 : i32
    %c0_i32_1 = arith.constant 0 : i32
    return %c0_i32, %c0_i32_0 : i32, i32
  }
  func.func @transform_19(%arg0: i32) -> (i32, i32) {
    %c0_i32 = arith.constant 0 : i32
    %c0_i32_0 = arith.constant 0 : i32
    %c0_i32_1 = arith.constant 0 : i32
    return %c0_i32, %c0_i32_0 : i32, i32
  }
  func.func @transform_20(%arg0: i32) -> (i32, i32) {
    %c0_i32 = arith.constant 0 : i32
    %c0_i32_0 = arith.constant 0 : i32
    %c0_i32_1 = arith.constant 0 : i32
    return %c0_i32, %c0_i32_0 : i32, i32
  }
  func.func @transform_21(%arg0: i32) -> (i32, i32) {
    %c0_i32 = arith.constant 0 : i32
    %c0_i32_0 = arith.constant 0 : i32
    %c0_i32_1 = arith.constant 0 : i32
    return %c0_i32, %c0_i32_0 : i32, i32
  }
  func.func @transform_22(%arg0: i32) -> (i32, i32) {
    %c0_i32 = arith.constant 0 : i32
    %c0_i32_0 = arith.constant 0 : i32
    %c0_i32_1 = arith.constant 0 : i32
    return %c0_i32, %c0_i32_0 : i32, i32
  }
}

</mosaic_0001>

<bundles_post_ra>
// kernel: transformer_forward.1
= control target key start
LH: loop header
LB: loop body
LE: loop exit
PB: predicated region body
PF: predicated region fallthrough
CT: control target
= control target key end

     0   :  { %s20101_s0 = inlined_call_operand.vmem [shape: f32[16,32], index: 0, kind: input, shape index: {}]   ;;  %s20102_s1 = inlined_call_operand.vmem [shape: f32[16,32], index: 1, kind: input, shape index: {}]   ;;  %s20103_s2 = inlined_call_operand.vmem [shape: f32[16,16], index: 2, kind: input, shape index: {}]   ;;  %s20104_s3 = inlined_call_operand.vmem [shape: f32[16,16], index: 3, kind: input, shape index: {}]   ;;  %s20105_s4 = inlined_call_operand.vmem [shape: f32[3,4,32,32], index: 4, kind: input, shape index: {}]   ;;  %s20106_s5 = inlined_call_operand.vmem [shape: f32[3,4,32], index: 5, kind: input, shape index: {}]   ;;  %s20107_s6 = inlined_call_operand.vmem [shape: f32[3,2,32], index: 6, kind: input, shape index: {}]   ;;  %s20108_s7 = inlined_call_operand.vmem [shape: f32[3,32,64], index: 7, kind: input, shape index: {}]   ;;  %s20109_s8 = inlined_call_operand.vmem [shape: f32[3,1,64], index: 8, kind: input, shape index: {}]   ;;  %s20110_s9 = inlined_call_operand.vmem [shape: f32[3,64,32], index: 9, kind: input, shape index: {}]   ;;  %s20111_s10 = inlined_call_operand.vmem [shape: f32[3,1,32], index: 10, kind: input, shape index: {}]   ;;  %s20112_s11 = inlined_call_operand.vmem [shape: f32[3,2,32], index: 11, kind: input, shape index: {}]   ;;  %s20113_s12 = inlined_call_operand.vmem [shape: f32[2,4,32,32], index: 12, kind: input, shape index: {}]   ;;  %s20114_s13 = inlined_call_operand.vmem [shape: f32[2,4,32], index: 13, kind: input, shape index: {}]   ;;  %s20115_s14 = inlined_call_operand.vmem [shape: f32[2,2,32], index: 14, kind: input, shape index: {}]   ;;  %s20116_s15 = inlined_call_operand.vmem [shape: f32[32,64], index: 15, kind: input, shape index: {}]   ;;  %s20117_s16 = inlined_call_operand.vmem [shape: f32[1,64], index: 16, kind: input, shape index: {}]   ;;  %s20118_s17 = inlined_call_operand.vmem [shape: f32[64,32], index: 17, kind: input, shape index: {}]   ;;  %s20119_s18 = inlined_call_operand.vmem [shape: f32[1,32], index: 18, kind: input, shape index: {}]   ;;  %s20120_s19 = inlined_call_operand.vmem [shape: f32[2,32], index: 19, kind: input, shape index: {}]   ;;  %s20121_s20 = inlined_call_operand.vmem [shape: f32[32,128], index: 20, kind: input, shape index: {}]   ;;  %s20122_s21 = inlined_call_operand.vmem [shape: f32[1,128], index: 21, kind: input, shape index: {}]   ;;  %s20123_s22 = inlined_call_operand.hbm [shape: f32[16,128], index: 22, kind: output, shape index: {}]  }
   0x1   :  { %20138 = sst [smem:[#allocation5_spill]] %s20101_s0 }
   0x2   :  { %20139 = sst [smem:[#allocation6_spill]] %s20102_s1 }
   0x3   :  { %20140 = sst [smem:[#allocation7_spill]] %s20103_s2 }
   0x4   :  { %20141 = sst [smem:[#allocation8_spill]] %s20104_s3 }
   0x5   :  { %20142 = sst [smem:[#allocation9_spill]] %s20105_s4 }
   0x6   :  { %20143 = sst [smem:[#allocation10_spill]] %s20106_s5 }
   0x7   :  { %20144 = sst [smem:[#allocation11_spill]] %s20107_s6 }
   0x8   :  { %20145 = sst [smem:[#allocation12_spill]] %s20123_s22 }
   0x9   :  { %s20146_s29 = sld [smem:[#allocation5_spill]]  ;;  %vm98_vm0 = vcmask 261120  }
   0xf   :  { %v17895_v0 = vld [vmem:[%s20146_s29] sm:$0xff]  ;;  %v17900_v1 = vld [vmem:[%s20146_s29 + $0x8] sm:$0xff] }
  0x10   :  { %27 = vsyncpa [#allocation3], 0  ;;  %v99_v2 = vsel %vm98_vm0, %v17895_v0, 0.0  ;;  %v102_v3 = vsel %vm98_vm0, %v17900_v1, 0.0  ;;  %s20147_s1 = sld [smem:[#allocation9_spill]]  ;;  %v126_v31 = vlaneseq  ;;  %s20148_s27 = sld [smem:[#allocation11_spill]] }
  0x11   :  { %100 = vadd.xlane.f32.xlu0 %v99_v2  ;;  %s20149_s23 = sld [smem:[#allocation10_spill]]  ;;  %vm387_vm1 = vcmask 64512   ;;  %s20152_s6 = sld [smem:[#allocation7_spill]]  ;;  %vm479_vm3 = vcmask 130048   ;;  %vm1670_vm4 = vcmask 523264  }
  0x12   :  { %v17940_v35 = vshrl.u32 %v126_v31, 7  ;;  %vm17981_vm2 = vmpackc.low %vm387_vm1, %vm387_vm1  ;;  %s20135_s2 = smov 120   ;;  %s20133_s3 = smov 112  }
  0x13   :  { %s20131_s30 = smov 104   ;;  %s20153_s28 = smov 112  }
  0x14   :  { %v17943_v37 = vsub.s32 0, %v17940_v35  ;;  %v17949_v39 = vsub.s32 1, %v17940_v35  ;;  %v17975_v61 = vsub.s32 2, %v17940_v35  ;;  %s20155_s0 = smov 120   ;;  %s20157_s5 = sld [smem:[#allocation8_spill]] }
  0x15   :  { %103 = vadd.xlane.f32.xlu0 %v102_v3  ;;  %s17774_s25 = smov [#allocation2]  }
  0x16   :  { %v81_v14 = vld [vmem:[%s20147_s1] sm:$0xff]  ;;  %v82_v15 = vld [vmem:[%s20147_s1 + $0x8] sm:$0xff]  ;;  %v83_v19 = vld [vmem:[%s20147_s1 + $0x10] sm:$0xff]  ;;  %s14158_s26 = sshll.u32 %s17774_s25, 4  ;;  %s14159_s26 = int_to_ptr.vmem [resolvable:$true] %s14158_s26 }
  0x17   :  { %v85_v16 = vld [vmem:[%s20147_s1 + $0x20] sm:$0xff]  ;;  %v16390_v17 = vpack.c.bf16 %v82_v15, %v81_v14  ;;  %v86_v18 = vld [vmem:[%s20147_s1 + $0x28] sm:$0xff]  ;;  %v84_v20 = vld [vmem:[%s20147_s1 + $0x18] sm:$0xff]  ;;  %p17752_p1 = scmp.lt.s32.totalorder %s14159_s26, %s14159_s26 }
  0x18   :  { %v16398_v21 = vpack.c.bf16 %v86_v18, %v85_v16  ;;  %v16394_v22 = vpack.c.bf16 %v84_v20, %v83_v19  ;;  %v87_v23 = vld [vmem:[%s20147_s1 + $0x30] sm:$0xff]  ;;  %v88_v24 = vld [vmem:[%s20147_s1 + $0x38] sm:$0xff]  ;;  %v89_v26 = vld [vmem:[%s20147_s1 + $0x40] sm:$0xff] }
  0x19   :  { %16391 = vmatprep.subr.bf16.mxu0 %v16390_v17  ;;  %v16402_v25 = vpack.c.bf16 %v88_v24, %v87_v23  ;;  %v90_v27 = vld [vmem:[%s20147_s1 + $0x48] sm:$0xff]  ;;  %v80_v38 = vld [vmem:[%s20148_s27] sm:$0x3]  ;;  %v91_v48 = vld [vmem:[%s20147_s1 + $0x50] sm:$0xff] }
  0x1a   :  { %16393 = vmatpush3.bf16.msra.mxu0 %v16390_v17  ;;  %16399 = vmatprep.subr.bf16.mxu1 %v16398_v21  ;;  %v16406_v28 = vpack.c.bf16 %v90_v27, %v89_v26  ;;  %v129_v40 = vrot.slane %v80_v38, %v17943_v37  ;;  %v135_v43 = vrot.slane %v80_v38, %v17949_v39  ;;  %v92_v49 = vld [vmem:[%s20147_s1 + $0x58] sm:$0xff]  ;;  %v17968_v53 = vld [vmem:[%s20149_s23] sm:$0xf]  ;;  %v18004_v14 = vld [vmem:[%s20152_s6 + $0x8] sm:$0xff] }
  0x1b   :  { %16401 = vmatpush3.bf16.msra.mxu1 %v16398_v21  ;;  %16395 = vmatprep.subr.bf16.mxu0 %v16394_v22  ;;  %v16410_v52 = vpack.c.bf16 %v92_v49, %v91_v48  ;;  %v226_v54 = vrot.slane %v17968_v53, %v17949_v39  ;;  %v141_v55 = vrot.slane %v17968_v53, %v17943_v37  ;;  %v18009_v17 = vld [vmem:[%s20152_s6] sm:$0xff] }
  0x1c   :  { %16403 = vmatprep.subr.bf16.mxu1 %v16402_v25 }
  0x1e   :  { %16397 = vmatpush3.bf16.msra.mxu0 %v16394_v22 }
  0x1f   :  { %16405 = vmatpush3.bf16.msra.mxu1 %v16402_v25  ;;  %16407 = vmatprep.subr.bf16.mxu0 %v16406_v28 }
  0x9e   :  { %v101_v4 = vpop.xlane.xlu0 %100 }
  0x9f   :  { %v106_v5 = vmul.f32 0.03125, %v101_v4 }
  0xa1   :  { %v108_v6 = vsub.f32 %v17895_v0, %v106_v5  ;;  %v305_v5 = vrot.slane %v17968_v53, %v17975_v61 }
  0xa2   :  { %v104_v7 = vpop.xlane.xlu0 %103 }
  0xa3   :  { %v107_v8 = vmul.f32 0.03125, %v104_v7  ;;  %v110_v9 = vmul.f32 %v108_v6, %v108_v6 }
  0xa5   :  { %v109_v10 = vsub.f32 %v17900_v1, %v107_v8  ;;  %v112_v11 = vsel %vm98_vm0, %v110_v9, 0.0 }
  0xa6   :  { %113 = vadd.xlane.f32.xlu1 %v112_v11 }
  0xa7   :  { %v111_v12 = vmul.f32 %v109_v10, %v109_v10 }
  0xa9   :  { %v115_v13 = vsel %vm98_vm0, %v111_v12, 0.0 }
  0xaa   :  { %116 = vadd.xlane.f32.xlu1 %v115_v13 }
 0x133   :  { %v114_v29 = vpop.xlane.xlu1 %113 }
 0x134   :  { %v118_v30 = vmul.f32 0.03125, %v114_v29 }
 0x136   :  { %v120_v32 = vadd.f32 1e-05, %v118_v30 }
 0x137   :  { %v117_v33 = vpop.xlane.xlu1 %116 }
 0x138   :  { %17374 = vrsqrt.f32 %v120_v32  ;;  %v119_v34 = vmul.f32 0.03125, %v117_v33 }
 0x13a   :  { %v121_v36 = vadd.f32 1e-05, %v119_v34 }
 0x13c   :  { %17376 = vrsqrt.f32 %v121_v36 }
 0x142   :  { %v17375_v41 = vpop.eup %17374 }
 0x143   :  { %v124_v42 = vmul.f32 %v17375_v41, %v108_v6 }
 0x145   :  { %v130_v44 = vmul.f32 %v129_v40, %v124_v42 }
 0x146   :  { %v17377_v45 = vpop.eup %17376 }
 0x147   :  { %v136_v46 = vadd.f32 %v135_v43, %v130_v44  ;;  %v125_v47 = vmul.f32 %v17377_v45, %v109_v10 }
 0x149   :  { %15270 = vmatprep.mubr.msk.f32.mxu0 %vm98_vm0, %v136_v46  ;;  %15281 = vmatprep.mubr.msk.f32.mxu1 %vm98_vm0, %v136_v46  ;;  %v131_v50 = vmul.f32 %v129_v40, %v125_v47 }
 0x14b   :  { %v137_v51 = vadd.f32 %v135_v43, %v131_v50 }
 0x14d   :  { %15271 = vmatmul.mubr.msk.f32.vlgmr.msra.gmra.mrb[0].mxu0 %vm98_vm0, %v137_v51  ;;  %15282 = vmatmul.mubr.msk.f32.vlgmr.msra.gmra.mrb[0].mxu1 %vm98_vm0, %v137_v51 }
 0x14e   :  { %16409 = vmatpush3.bf16.msra.mxu0 %v16406_v28  ;;  %15292 = vmatprep.mubr.msk.f32.mxu0 %vm98_vm0, %v136_v46 }
 0x14f   :  { %16411 = vmatprep.subr.bf16.mxu0 %v16410_v52 }
 0x152   :  { %16413 = vmatpush3.bf16.msra.mxu0 %v16410_v52 }
 0x155   :  { %15293 = vmatmul.mubr.msk.f32.vlgmr.msra.gmra.mrb[2].mxu0 %vm98_vm0, %v137_v51 }
 0x220   :  { %v15272_v56 = vpop.f32.mrb[0].mxu0  ;;  %v15283_v57 = vpop.f32.mrb[0].mxu1 }
 0x221   :  { %v299_v58 = vadd.f32 %v15283_v57, %v226_v54  ;;  %v214_v59 = vpop.f32.mrb[1].mxu0  ;;  %v293_v60 = vpop.f32.mrb[1].mxu1  ;;  %v17995_v10 = vadd.f32 %v15272_v56, %v141_v55 }
 0x222   :  { %v17977_v62 = vadd.f32 %v214_v59, %v141_v55  ;;  %v294_v63 = vadd.f32 %v293_v60, %v226_v54  ;;  %v93_v55 = vld [vmem:[%s20147_s1 + $0x60] sm:$0xff] }
 0x224   :  { %15299 = vmatprep.mubr.msk.f32.mxu1 %vm387_vm1, %v17977_v62  ;;  %v16414_v3 = vpack.c.bf16 %v299_v58, %v294_v63  ;;  %v17987_v4 = vpack.i.bf16 %v299_v58, %v294_v63 }
 0x226   :  { %16416 = vmatprep.subr.msk.bf16.mxu1 %vm17981_vm2, %v16414_v3 }
 0x227   :  { %16419 = vmatpush3.bf16.xpose.msk.msra.mxu1 %vm17981_vm2, %v16414_v3 }
 0x228   :  { %v15294_v6 = vpop.f32.mrb[2].mxu0  ;;  %15309 = vmatprep.subr.mxu1 %v93_v55 }
 0x229   :  { %v378_v7 = vadd.f32 %v15294_v6, %v305_v5  ;;  %v372_v8 = vpop.f32.mrb[3].mxu0 }
 0x22a   :  { %v373_v9 = vadd.f32 %v372_v8, %v305_v5 }
 0x22c   :  { %v16420_v11 = vpack.c.bf16 %v378_v7, %v373_v9  ;;  %v17997_v12 = vpack.i.bf16 %v378_v7, %v373_v9 }
 0x22e   :  { %16421 = vmatprep.subr.bf16.mxu0 %v16420_v11  ;;  %15300 = vmatmul.mubr.msk.f32.vlgmr.msra.gmra.mrb[2].mxu1 %vm387_vm1, %v17995_v10 }
 0x22f   :  { %16423 = vmatpush3.bf16.msra.mxu0 %v16420_v11  ;;  %15310 = vmatpush3.msra.mxu1 %v93_v55 }
 0x301   :  { %v15301_v13 = vpop.f32.mrb[2].mxu1 }
 0x302   :  { %v476_v15 = vmul.f32 0.35355338, %v15301_v13  ;;  %v466_v16 = vpop.f32.mrb[3].mxu1 }
 0x303   :  { %v475_v18 = vmul.f32 0.35355338, %v466_v16 }
 0x304   :  { %v478_v19 = vadd.f32 %v476_v15, %v18004_v14 }
 0x305   :  { %v477_v20 = vadd.f32 %v475_v18, %v18009_v17 }
 0x306   :  { %v483_v21 = vsel %vm479_vm3, %v478_v19, -inf }
 0x307   :  { %484 = vmax.xlane.f32.xlu1 %v483_v21  ;;  %v480_v22 = vsel %vm479_vm3, %v477_v20, -inf }
 0x308   :  { %481 = vmax.xlane.f32.xlu0 %v480_v22 }
 0x394   :  { %v485_v23 = vpop.xlane.xlu1 %484 }
 0x395   :  { %v487_v24 = vsub.f32 %v478_v19, %v485_v23  ;;  %v482_v25 = vpop.xlane.xlu0 %481 }
 0x396   :  { %v486_v26 = vsub.f32 %v477_v20, %v482_v25 }
 0x397   :  { %v490_v27 = vmul.f32 1.442695, %v487_v24 }
 0x398   :  { %v488_v28 = vmul.f32 1.442695, %v486_v26 }
 0x399   :  { %17378 = vpow2.f32 %v490_v27 }
 0x39a   :  { %17380 = vpow2.f32 %v488_v28 }
 0x3a3   :  { %v17379_v29 = vpop.eup %17378 }
 0x3a4   :  { %v17381_v30 = vpop.eup %17380  ;;  %v495_v31 = vsel %vm479_vm3, %v17379_v29, 0.0 }
 0x3a5   :  { %496 = vadd.xlane.f32.xlu1 %v495_v31  ;;  %v492_v32 = vsel %vm479_vm3, %v17381_v30, 0.0 }
 0x3a6   :  { %493 = vadd.xlane.f32.xlu0 %v492_v32 }
 0x3b6   :  { %666 = vrot.lane.b32.xlu1 %v17977_v62, %s20135_s2 }
 0x3ba   :  { %668 = vrot.lane.b32.xlu1 %v17995_v10, %s20135_s2 }
 0x3bc   :  { %17165 = vrot.lane.b32.xlu0 %v17987_v4, %s20135_s2 }
 0x3be   :  { %17170 = vrot.lane.b32.xlu1 %v17987_v4, %s20133_s3 }
 0x3c0   :  { %955 = vrot.lane.b32.xlu0 %v17977_v62, %s20133_s3 }
 0x3c2   :  { %957 = vrot.lane.b32.xlu1 %v17995_v10, %s20133_s3 }
 0x432   :  { %v497_v33 = vpop.xlane.xlu1 %496 }
 0x433   :  { %17382 = vrcp.f32 %v497_v33  ;;  %v494_v34 = vpop.xlane.xlu0 %493 }
 0x434   :  { %17384 = vrcp.f32 %v494_v34 }
 0x436   :  { %v667_v36 = vpop.permute.xlu1 %666 }
 0x437   :  { %v17166_v38 = vpop.permute.xlu0 %17165 }
 0x438   :  { %v17168_v40 = vunpack.i.h.bf16 %v17166_v38  ;;  %v17167_v41 = vunpack.i.l.bf16 %v17166_v38 }
 0x43a   :  { %v16424_v42 = vpack.c.bf16 %v17168_v40, %v17167_v41  ;;  %v669_v43 = vpop.permute.xlu1 %668 }
 0x43b   :  { %v956_v52 = vpop.permute.xlu0 %955 }
 0x43c   :  { %16426 = vmatprep.subr.msk.bf16.mxu0 %vm17981_vm2, %v16424_v42 }
 0x43d   :  { %v17383_v44 = vpop.eup %17382 }
 0x43e   :  { %v17385_v45 = vpop.eup %17384  ;;  %v17171_v46 = vpop.permute.xlu1 %17170  ;;  %v501_v50 = vmul.f32 %v17383_v44, %v17379_v29 }
 0x43f   :  { %v17173_v47 = vunpack.i.h.bf16 %v17171_v46  ;;  %v17172_v48 = vunpack.i.l.bf16 %v17171_v46  ;;  %v500_v49 = vmul.f32 %v17385_v45, %v17381_v30 }
 0x441   :  { %v16434_v51 = vpack.c.bf16 %v17173_v47, %v17172_v48  ;;  %15306 = vmatprep.mubr.msk.f32.mxu0 %vm479_vm3, %v500_v49 }
 0x442   :  { %15307 = vmatmul.mubr.msk.f32.vlgmr.msra.gmra.mrb[4].mxu0 %vm479_vm3, %v501_v50  ;;  %v958_v54 = vpop.permute.xlu1 %957 }
 0x443   :  { %16429 = vmatpush3.bf16.xpose.msk.msra.mxu0 %vm17981_vm2, %v16424_v42  ;;  %15318 = vmatprep.mubr.msk.f32.mxu0 %vm387_vm1, %v667_v36 }
 0x444   :  { %16436 = vmatprep.subr.msk.bf16.mxu0 %vm17981_vm2, %v16434_v51 }
 0x44a   :  { %15319 = vmatmul.mubr.msk.f32.vlgmr.msra.gmra.mrb[6].mxu0 %vm387_vm1, %v669_v43 }
 0x44b   :  { %16439 = vmatpush3.bf16.xpose.msk.msra.mxu0 %vm17981_vm2, %v16434_v51  ;;  %15337 = vmatprep.mubr.msk.f32.mxu0 %vm387_vm1, %v956_v52 }
 0x452   :  { %15338 = vmatmul.mubr.msk.f32.vlgmr.msra.gmra.mrb[8].mxu0 %vm387_vm1, %v958_v54 }
 0x515   :  { %v15308_v56 = vpop.f32.mrb[4].mxu0 }
 0x516   :  { %v574_v57 = vpop.f32.mrb[5].mxu0 }
 0x517   :  { %15311 = vmatprep.mubr.msk.f32.mxu1 %vm387_vm1, %v574_v57 }
 0x518   :  { %15312 = vmatmul.mubr.msk.f32.vlgmr.msra.gmra.mrb[4].mxu1 %vm387_vm1, %v15308_v56 }
 0x51d   :  { %v15320_v58 = vpop.f32.mrb[6].mxu0 }
 0x51e   :  { %v758_v59 = vmul.f32 0.35355338, %v15320_v58  ;;  %v748_v60 = vpop.f32.mrb[7].mxu0 }
 0x51f   :  { %v757_v63 = vmul.f32 0.35355338, %v748_v60 }
 0x520   :  { %v760_v3 = vadd.f32 %v758_v59, %v18004_v14 }
 0x521   :  { %v759_v5 = vadd.f32 %v757_v63, %v18009_v17 }
 0x522   :  { %v764_v6 = vsel %vm479_vm3, %v760_v3, -inf }
 0x523   :  { %765 = vmax.xlane.f32.xlu1 %v764_v6  ;;  %v761_v7 = vsel %vm479_vm3, %v759_v5, -inf }
 0x524   :  { %762 = vmax.xlane.f32.xlu0 %v761_v7  ;;  %v94_v7 = vld [vmem:[%s20147_s1 + $0x68] sm:$0xff] }
 0x525   :  { %v15339_v8 = vpop.f32.mrb[8].mxu0 }
 0x526   :  { %v1037_v9 = vpop.f32.mrb[9].mxu0  ;;  %v1047_v11 = vmul.f32 0.35355338, %v15339_v8 }
 0x527   :  { %v1046_v33 = vmul.f32 0.35355338, %v1037_v9 }
 0x528   :  { %v1049_v13 = vadd.f32 %v1047_v11, %v18004_v14 }
 0x529   :  { %v1048_v34 = vadd.f32 %v1046_v33, %v18009_v17 }
 0x52a   :  { %v1053_v15 = vsel %vm479_vm3, %v1049_v13, -inf }
 0x52b   :  { %v1050_v36 = vsel %vm479_vm3, %v1048_v34, -inf }
 0x534   :  { %17180 = vrot.lane.b32.xlu1 %v17987_v4, %s20131_s30 }
 0x538   :  { %1242 = vrot.lane.b32.xlu1 %v17977_v62, %s20131_s30 }
 0x53c   :  { %1244 = vrot.lane.b32.xlu1 %v17995_v10, %s20131_s30 }
 0x560   :  { %1054 = vmax.xlane.f32.xlu1 %v1053_v15 }
 0x5b0   :  { %v766_v16 = vpop.xlane.xlu1 %765 }
 0x5b1   :  { %v768_v18 = vsub.f32 %v760_v3, %v766_v16  ;;  %v763_v19 = vpop.xlane.xlu0 %762 }
 0x5b2   :  { %v767_v20 = vsub.f32 %v759_v5, %v763_v19 }
 0x5b3   :  { %v771_v21 = vmul.f32 1.442695, %v768_v18 }
 0x5b4   :  { %v769_v22 = vmul.f32 1.442695, %v767_v20  ;;  %v17181_v23 = vpop.permute.xlu1 %17180 }
 0x5b5   :  { %17386 = vpow2.f32 %v771_v21  ;;  %v17183_v4 = vunpack.i.h.bf16 %v17181_v23  ;;  %v17182_v24 = vunpack.i.l.bf16 %v17181_v23 }
 0x5b6   :  { %17388 = vpow2.f32 %v769_v22 }
 0x5b7   :  { %v16444_v62 = vpack.c.bf16 %v17183_v4, %v17182_v24 }
 0x5b8   :  { %v1243_v25 = vpop.permute.xlu1 %1242 }
 0x5b9   :  { %16446 = vmatprep.subr.msk.bf16.mxu0 %vm17981_vm2, %v16444_v62  ;;  %15356 = vmatprep.mubr.msk.f32.mxu0 %vm387_vm1, %v1243_v25 }
 0x5ba   :  { %16449 = vmatpush3.bf16.xpose.msk.msra.mxu0 %vm17981_vm2, %v16444_v62 }
 0x5bc   :  { %v1245_v26 = vpop.permute.xlu1 %1244 }
 0x5bf   :  { %v17387_v10 = vpop.eup %17386 }
 0x5c0   :  { %v776_v27 = vsel %vm479_vm3, %v17387_v10, 0.0  ;;  %v17389_v28 = vpop.eup %17388 }
 0x5c1   :  { %15357 = vmatmul.mubr.msk.f32.vlgmr.msra.gmra.mrb[10].mxu0 %vm387_vm1, %v1245_v26  ;;  %777 = vadd.xlane.f32.xlu0 %v776_v27  ;;  %v773_v29 = vsel %vm479_vm3, %v17389_v28, 0.0 }
 0x5c5   :  { %774 = vadd.xlane.f32.xlu0 %v773_v29 }
 0x5db   :  { %17175 = vrot.lane.b32.xlu0 %v17997_v12, %s20135_s2 }
 0x5ed   :  { %v1055_v30 = vpop.xlane.xlu1 %1054 }
 0x5ee   :  { %v1057_v31 = vsub.f32 %v1049_v13, %v1055_v30 }
 0x5f0   :  { %v1060_v32 = vmul.f32 1.442695, %v1057_v31  ;;  %v95_v31 = vld [vmem:[%s20147_s1 + $0x70] sm:$0xff] }
 0x5f2   :  { %17390 = vpow2.f32 %v1060_v32 }
 0x5fa   :  { %1051 = vmax.xlane.f32.xlu0 %v1050_v36 }
 0x5fc   :  { %v18072_v38 = vpop.eup %17390 }
 0x5fd   :  { %v1065_v40 = vsel %vm479_vm3, %v18072_v38, 0.0 }
 0x5fe   :  { %1066 = vadd.xlane.f32.xlu0 %v1065_v40 }
 0x64e   :  { %v778_v41 = vpop.xlane.xlu0 %777 }
 0x64f   :  { %17392 = vrcp.f32 %v778_v41 }
 0x652   :  { %v775_v42 = vpop.xlane.xlu0 %774 }
 0x653   :  { %17394 = vrcp.f32 %v775_v42 }
 0x656   :  { %v17176_v43 = vpop.permute.xlu0 %17175 }
 0x657   :  { %v17178_v44 = vunpack.i.h.bf16 %v17176_v43  ;;  %v17177_v45 = vunpack.i.l.bf16 %v17176_v43 }
 0x659   :  { %v16430_v46 = vpack.c.bf16 %v17178_v44, %v17177_v45  ;;  %v17393_v47 = vpop.eup %17392  ;;  %v96_v45 = vld [vmem:[%s20147_s1 + $0x78] sm:$0xff] }
 0x65a   :  { %v782_v50 = vmul.f32 %v17393_v47, %v17387_v10 }
 0x65b   :  { %16431 = vmatprep.subr.bf16.mxu1 %v16430_v46 }
 0x65c   :  { %16433 = vmatpush3.bf16.msra.mxu1 %v16430_v46 }
 0x65d   :  { %v17395_v48 = vpop.eup %17394  ;;  %15328 = vmatprep.subr.mxu1 %v94_v7 }
 0x65e   :  { %v781_v49 = vmul.f32 %v17395_v48, %v17389_v28 }
 0x660   :  { %15325 = vmatprep.mubr.msk.f32.mxu1 %vm479_vm3, %v781_v49  ;;  %v18110_v49 = vsub.s32 3, %v17940_v35 }
 0x661   :  { %15326 = vmatmul.mubr.msk.f32.vlgmr.msra.gmra.mrb[6].mxu1 %vm479_vm3, %v782_v50 }
 0x662   :  { %15329 = vmatpush3.msra.mxu1 %v94_v7  ;;  %v384_v50 = vrot.slane %v17968_v53, %v18110_v49 }
 0x687   :  { %v1052_v51 = vpop.xlane.xlu0 %1051 }
 0x688   :  { %v1056_v52 = vsub.f32 %v1048_v34, %v1052_v51  ;;  %v386_v51 = vadd.f32 %v384_v50, %v17900_v1 }
 0x68a   :  { %v1058_v54 = vmul.f32 1.442695, %v1056_v52  ;;  %v385_v52 = vadd.f32 %v384_v50, %v17895_v0 }
 0x68b   :  { %v1067_v8 = vpop.xlane.xlu0 %1066 }
 0x68c   :  { %17396 = vpow2.f32 %v1058_v54 }
 0x694   :  { %v15358_v55 = vpop.f32.mrb[10].mxu0 }
 0x695   :  { %v1324_v56 = vpop.f32.mrb[11].mxu0  ;;  %v1334_v58 = vmul.f32 0.35355338, %v15358_v55 }
 0x696   :  { %v17397_v57 = vpop.eup %17396  ;;  %v1333_v59 = vmul.f32 0.35355338, %v1324_v56 }
 0x697   :  { %v1062_v60 = vsel %vm479_vm3, %v17397_v57, 0.0  ;;  %v1336_v5 = vadd.f32 %v1334_v58, %v18004_v14 }
 0x698   :  { %1063 = vadd.xlane.f32.xlu0 %v1062_v60  ;;  %v1335_v63 = vadd.f32 %v1333_v59, %v18009_v17 }
 0x699   :  { %v1340_v6 = vsel %vm479_vm3, %v1336_v5, -inf }
 0x69a   :  { %v1337_v3 = vsel %vm479_vm3, %v1335_v63, -inf }
 0x69b   :  { %1338 = vmax.xlane.f32.xlu1 %v1337_v3 }
 0x69f   :  { %1341 = vmax.xlane.f32.xlu1 %v1340_v6 }
 0x6ae   :  { %17185 = vrot.lane.b32.xlu0 %v17997_v12, %s20133_s3 }
 0x725   :  { %v1064_v9 = vpop.xlane.xlu0 %1063 }
 0x726   :  { %17398 = vrcp.f32 %v1064_v9  ;;  %v1569_v9 = vld [vmem:[%s20108_s7 + $0x8] sm:$0xff] }
 0x727   :  { %17400 = vrcp.f32 %v1067_v8  ;;  %v1568_v8 = vld [vmem:[%s20108_s7] sm:$0xff] }
 0x728   :  { %v1339_v11 = vpop.xlane.xlu1 %1338 }
 0x729   :  { %v17186_v13 = vpop.permute.xlu0 %17185  ;;  %v1343_v18 = vsub.f32 %v1335_v63, %v1339_v11  ;;  %v16454_v11 = vpack.c.bf16 %v1569_v9, %v1568_v8 }
 0x72a   :  { %v17188_v15 = vunpack.i.h.bf16 %v17186_v13  ;;  %v17187_v16 = vunpack.i.l.bf16 %v17186_v13  ;;  %v1570_v13 = vld [vmem:[%s20108_s7 + $0x10] sm:$0xff] }
 0x72b   :  { %v1345_v22 = vmul.f32 1.442695, %v1343_v18  ;;  %16455 = vmatprep.subr.bf16.mxu0 %v16454_v11  ;;  %v1662_v18 = vld [vmem:[%s20110_s9] sm:$0xff] }
 0x72c   :  { %v1342_v19 = vpop.xlane.xlu1 %1341  ;;  %v16440_v20 = vpack.c.bf16 %v17188_v15, %v17187_v16  ;;  %16457 = vmatpush3.bf16.msra.mxu0 %v16454_v11  ;;  %v1571_v15 = vld [vmem:[%s20108_s7 + $0x18] sm:$0xff] }
 0x72d   :  { %v1344_v21 = vsub.f32 %v1336_v5, %v1342_v19  ;;  %v16458_v16 = vpack.c.bf16 %v1571_v15, %v1570_v13  ;;  %v1663_v19 = vld [vmem:[%s20110_s9 + $0x8] sm:$0xff]  ;;  %v14214_v15 = vld [vmem:[%s20147_s1 + $0x80] sm:$0xff] }
 0x72e   :  { %16441 = vmatprep.subr.bf16.mxu1 %v16440_v20 }
 0x72f   :  { %v1347_v23 = vmul.f32 1.442695, %v1344_v21  ;;  %16459 = vmatprep.subr.bf16.mxu0 %v16458_v16  ;;  %v16462_v21 = vpack.c.bf16 %v1663_v19, %v1662_v18  ;;  %v14222_v19 = vld [vmem:[%s20147_s1 + $0xc0] sm:$0xff] }
 0x730   :  { %v17399_v4 = vpop.eup %17398  ;;  %16461 = vmatpush3.bf16.msra.mxu0 %v16458_v16  ;;  %v14215_v16 = vld [vmem:[%s20147_s1 + $0x88] sm:$0xff] }
 0x731   :  { %17402 = vpow2.f32 %v1347_v23  ;;  %v17401_v25 = vpop.eup %17400  ;;  %v1070_v10 = vmul.f32 %v17399_v4, %v17397_v57  ;;  %v1666_v4 = vld [vmem:[%s20110_s9 + $0x20] sm:$0xff]  ;;  %v16478_v18 = vpack.c.bf16 %v14215_v16, %v14214_v15 }
 0x732   :  { %17404 = vpow2.f32 %v1345_v22  ;;  %v1071_v26 = vmul.f32 %v17401_v25, %v18072_v38  ;;  %v1665_v22 = vld [vmem:[%s20110_s9 + $0x18] sm:$0xff] }
 0x733   :  { %16479 = vmatprep.subr.bf16.mxu0 %v16478_v18 }
 0x734   :  { %v15327_v24 = vpop.f32.mrb[6].mxu1 }
 0x735   :  { %v863_v62 = vpop.f32.mrb[7].mxu1 }
 0x736   :  { %15330 = vmatprep.mubr.msk.f32.mxu1 %vm387_vm1, %v863_v62 }
 0x737   :  { %15331 = vmatmul.mubr.msk.f32.vlgmr.msra.gmra.mrb[4].mxu1 %vm387_vm1, %v15327_v24  ;;  %v1667_v24 = vld [vmem:[%s20110_s9 + $0x28] sm:$0xff] }
 0x738   :  { %16443 = vmatpush3.bf16.msra.mxu1 %v16440_v20  ;;  %15344 = vmatprep.mubr.msk.f32.mxu1 %vm479_vm3, %v1070_v10  ;;  %v1664_v20 = vld [vmem:[%s20110_s9 + $0x10] sm:$0xff]  ;;  %v16470_v62 = vpack.c.bf16 %v1667_v24, %v1666_v4 }
 0x739   :  { %15347 = vmatprep.subr.mxu1 %v95_v31  ;;  %v16466_v23 = vpack.c.bf16 %v1665_v22, %v1664_v20  ;;  %v14223_v20 = vld [vmem:[%s20147_s1 + $0xc8] sm:$0xff]  ;;  %v14216_v22 = vld [vmem:[%s20147_s1 + $0x90] sm:$0xff] }
 0x73a   :  { %v14224_v24 = vld [vmem:[%s20147_s1 + $0xd0] sm:$0xff] }
 0x73b   :  { %v17403_v27 = vpop.eup %17402  ;;  %15345 = vmatmul.mubr.msk.f32.vlgmr.msra.gmra.mrb[8].mxu1 %vm479_vm3, %v1071_v26 }
 0x73c   :  { %v1352_v28 = vsel %vm479_vm3, %v17403_v27, 0.0  ;;  %v17405_v29 = vpop.eup %17404  ;;  %15348 = vmatpush3.msra.mxu1 %v95_v31 }
 0x73d   :  { %1353 = vadd.xlane.f32.xlu1 %v1352_v28  ;;  %v1349_v30 = vsel %vm479_vm3, %v17405_v29, 0.0 }
 0x741   :  { %1350 = vadd.xlane.f32.xlu1 %v1349_v30  ;;  %v1529_v30 = vld [vmem:[%s20112_s11] sm:$0x3] }
 0x742   :  { %v1559_v31 = vrot.slane %v1529_v30, %v17943_v37 }
 0x752   :  { %17190 = vrot.lane.b32.xlu1 %v17997_v12, %s20131_s30  ;;  %s20154_s30 = smov 104  }
 0x7ca   :  { %v1354_v32 = vpop.xlane.xlu1 %1353 }
 0x7ce   :  { %v1351_v33 = vpop.xlane.xlu1 %1350 }
 0x7cf   :  { %17406 = vrcp.f32 %v1351_v33 }
 0x7d0   :  { %17408 = vrcp.f32 %v1354_v32 }
 0x7d2   :  { %v17191_v34 = vpop.permute.xlu1 %17190 }
 0x7d3   :  { %v17193_v36 = vunpack.i.h.bf16 %v17191_v34  ;;  %v17192_v38 = vunpack.i.l.bf16 %v17191_v34  ;;  %v1565_v34 = vrot.slane %v1529_v30, %v17949_v39 }
 0x7d5   :  { %v16450_v40 = vpack.c.bf16 %v17193_v36, %v17192_v38 }
 0x7d7   :  { %16451 = vmatprep.subr.bf16.mxu1 %v16450_v40 }
 0x7d9   :  { %v17407_v41 = vpop.eup %17406 }
 0x7da   :  { %v17409_v44 = vpop.eup %17408  ;;  %v1357_v12 = vmul.f32 %v17407_v41, %v17405_v29 }
 0x7db   :  { %v1358_v46 = vmul.f32 %v17409_v44, %v17403_v27  ;;  %v1668_v44 = vld [vmem:[%s20110_s9 + $0x30] sm:$0xff] }
 0x80e   :  { %v15346_v42 = vpop.f32.mrb[8].mxu1 }
 0x80f   :  { %v1150_v43 = vpop.f32.mrb[9].mxu1 }
 0x810   :  { %15349 = vmatprep.mubr.msk.f32.mxu1 %vm387_vm1, %v1150_v43 }
 0x811   :  { %15350 = vmatmul.mubr.msk.f32.vlgmr.msra.gmra.mrb[4].mxu1 %vm387_vm1, %v15346_v42 }
 0x812   :  { %16453 = vmatpush3.bf16.msra.mxu1 %v16450_v40  ;;  %15363 = vmatprep.mubr.msk.f32.mxu1 %vm479_vm3, %v1357_v12  ;;  %v1669_v12 = vld [vmem:[%s20110_s9 + $0x38] sm:$0xff] }
 0x813   :  { %15366 = vmatprep.subr.mxu1 %v96_v45 }
 0x815   :  { %15364 = vmatmul.mubr.msk.f32.vlgmr.msra.gmra.mrb[10].mxu1 %vm479_vm3, %v1358_v46  ;;  %v14207_v46 = vld [vmem:[%s20109_s8] ss:$0 sm:$0xff] }
 0x816   :  { %15367 = vmatpush3.msra.mxu1 %v96_v45  ;;  %v16474_v45 = vpack.c.bf16 %v1669_v12, %v1668_v44 }
 0x817   :  { %16463 = vmatprep.subr.bf16.mxu1 %v16462_v21 }
 0x8e8   :  { %v15365_v47 = vpop.f32.mrb[10].mxu1 }
 0x8e9   :  { %v1437_v48 = vpop.f32.mrb[11].mxu1 }
 0x8ea   :  { %15368 = vmatprep.mubr.msk.f32.mxu1 %vm387_vm1, %v1437_v48 }
 0x8eb   :  { %15369 = vmatmul.mubr.msk.f32.vlgmr.msra.gmra.mrb[4].mxu1 %vm387_vm1, %v15365_v47 }
 0x8ec   :  { %16465 = vmatpush3.bf16.msra.mxu1 %v16462_v21  ;;  %v16494_v21 = vpack.c.bf16 %v14223_v20, %v14222_v19 }
 0x8ed   :  { %16467 = vmatprep.subr.bf16.mxu1 %v16466_v23 }
 0x8f0   :  { %16469 = vmatpush3.bf16.msra.mxu1 %v16466_v23  ;;  %v14217_v23 = vld [vmem:[%s20147_s1 + $0x98] sm:$0xff] }
 0x8f1   :  { %16471 = vmatprep.subr.bf16.mxu1 %v16470_v62  ;;  %v16482_v4 = vpack.c.bf16 %v14217_v23, %v14216_v22 }
 0x8f4   :  { %16473 = vmatpush3.bf16.msra.mxu1 %v16470_v62  ;;  %v14225_v62 = vld [vmem:[%s20147_s1 + $0xd8] sm:$0xff] }
 0x8f5   :  { %16475 = vmatprep.subr.bf16.mxu1 %v16474_v45 }
 0x8f8   :  { %16477 = vmatpush3.bf16.msra.mxu1 %v16474_v45  ;;  %v14220_v45 = vld [vmem:[%s20147_s1 + $0xb0] sm:$0xff] }
 0x8f9   :  { %16495 = vmatprep.subr.bf16.mxu1 %v16494_v21 }
 0x9be   :  { %v15370_v54 = vpop.f32.mrb[4].mxu1 }
 0x9bf   :  { %v18116_v55 = vadd.f32 %v15370_v54, %v386_v51  ;;  %v1518_v56 = vpop.f32.mrb[5].mxu1 }
 0x9c0   :  { %v18118_v57 = vadd.f32 %v1518_v56, %v385_v52 }
 0x9c1   :  { %v1533_v58 = vsel %vm98_vm0, %v18116_v55, 0.0 }
 0x9c2   :  { %1534 = vadd.xlane.f32.xlu1 %v1533_v58  ;;  %v1530_v35 = vsel %vm98_vm0, %v18118_v57, 0.0  ;;  %v14212_v58 = vld [vmem:[%s20111_s10] ss:$0 sm:$0xff] }
 0x9c3   :  { %1531 = vadd.xlane.f32.xlu0 %v1530_v35 }
 0xa4f   :  { %v1535_v59 = vpop.xlane.xlu1 %1534 }
 0xa50   :  { %v1537_v53 = vmul.f32 0.03125, %v1535_v59  ;;  %v1532_v60 = vpop.xlane.xlu0 %1531 }
 0xa51   :  { %v1536_v1 = vmul.f32 0.03125, %v1532_v60 }
 0xa52   :  { %v1539_v0 = vsub.f32 %v18116_v55, %v1537_v53 }
 0xa53   :  { %v1538_v63 = vsub.f32 %v18118_v57, %v1536_v1 }
 0xa54   :  { %v1541_v6 = vmul.f32 %v1539_v0, %v1539_v0 }
 0xa55   :  { %v1540_v3 = vmul.f32 %v1538_v63, %v1538_v63 }
 0xa56   :  { %v1545_v7 = vsel %vm98_vm0, %v1541_v6, 0.0 }
 0xa57   :  { %v1542_v5 = vsel %vm98_vm0, %v1540_v3, 0.0 }
 0xa58   :  { %1543 = vadd.xlane.f32.xlu0 %v1542_v5 }
 0xa5c   :  { %1546 = vadd.xlane.f32.xlu0 %v1545_v7 }
 0xae5   :  { %v1544_v25 = vpop.xlane.xlu0 %1543 }
 0xae6   :  { %v1548_v10 = vmul.f32 0.03125, %v1544_v25  ;;  %v16498_v25 = vpack.c.bf16 %v14225_v62, %v14224_v24 }
 0xae8   :  { %v1550_v26 = vadd.f32 1e-05, %v1548_v10  ;;  %v14218_v10 = vld [vmem:[%s20147_s1 + $0xa0] sm:$0xff] }
 0xae9   :  { %v1547_v27 = vpop.xlane.xlu0 %1546 }
 0xaea   :  { %17410 = vrsqrt.f32 %v1550_v26  ;;  %v1549_v28 = vmul.f32 0.03125, %v1547_v27  ;;  %v14219_v26 = vld [vmem:[%s20147_s1 + $0xa8] sm:$0xff] }
 0xaeb   :  { %v16486_v27 = vpack.c.bf16 %v14219_v26, %v14218_v10 }
 0xaec   :  { %v1551_v29 = vadd.f32 1e-05, %v1549_v28 }
 0xaee   :  { %17412 = vrsqrt.f32 %v1551_v29 }
 0xaf4   :  { %v17411_v32 = vpop.eup %17410 }
 0xaf5   :  { %v1554_v33 = vmul.f32 %v17411_v32, %v1538_v63 }
 0xaf7   :  { %v1560_v36 = vmul.f32 %v1559_v31, %v1554_v33 }
 0xaf8   :  { %v17413_v38 = vpop.eup %17412 }
 0xaf9   :  { %v1555_v40 = vmul.f32 %v17413_v38, %v1539_v0  ;;  %v1566_v41 = vadd.f32 %v1565_v34, %v1560_v36 }
 0xafb   :  { %v1561_v42 = vmul.f32 %v1559_v31, %v1555_v40  ;;  %15379 = vmatprep.mubr.msk.f32.mxu0 %vm98_vm0, %v1566_v41 }
 0xafd   :  { %v1567_v43 = vadd.f32 %v1565_v34, %v1561_v42  ;;  %v14213_v34 = vld [vmem:[%s20148_s27 + $0x2] sm:$0x3] }
 0xafe   :  { %v1813_v36 = vrot.slane %v14213_v34, %v17943_v37  ;;  %v1819_v41 = vrot.slane %v14213_v34, %v17949_v39 }
 0xaff   :  { %15380 = vmatmul.mubr.msk.f32.vlgmr.msra.gmra.mrb[12].mxu0 %vm98_vm0, %v1567_v43 }
 0xb00   :  { %16481 = vmatpush3.bf16.msra.mxu0 %v16478_v18 }
 0xb01   :  { %16483 = vmatprep.subr.bf16.mxu0 %v16482_v4 }
 0xb04   :  { %16485 = vmatpush3.bf16.msra.mxu0 %v16482_v4 }
 0xb05   :  { %16487 = vmatprep.subr.bf16.mxu0 %v16486_v27 }
 0xbd2   :  { %v15381_v47 = vpop.f32.mrb[12].mxu0 }
 0xbd3   :  { %v1657_v48 = vadd.f32 %v15381_v47, %v14207_v46  ;;  %v1651_v50 = vpop.f32.mrb[13].mxu0 }
 0xbd4   :  { %v1652_v51 = vadd.f32 %v14207_v46, %v1651_v50  ;;  %v14221_v46 = vld [vmem:[%s20147_s1 + $0xb8] sm:$0xff] }
 0xbd5   :  { %v1661_v54 = vmax.f32 %v1657_v48, 0.0  ;;  %v16490_v50 = vpack.c.bf16 %v14221_v46, %v14220_v45 }
 0xbd6   :  { %v1660_v52 = vmax.f32 %v1652_v51, 0.0  ;;  %v18243_v51 = vld [vmem:[%s20149_s23 + $0x4] sm:$0xf] }
 0xbd8   :  { %15398 = vmatprep.mubr.msk.f32.mxu1 %vm1670_vm4, %v1660_v52  ;;  %v1989_v52 = vrot.slane %v18243_v51, %v17975_v61 }
 0xbd9   :  { %15399 = vmatmul.mubr.msk.f32.vlgmr.msra.gmra.mrb[12].mxu1 %vm1670_vm4, %v1661_v54  ;;  %v1825_v54 = vrot.slane %v18243_v51, %v17943_v37 }
 0xbda   :  { %16497 = vmatpush3.bf16.msra.mxu1 %v16494_v21 }
 0xbdb   :  { %16499 = vmatprep.subr.bf16.mxu1 %v16498_v25 }
 0xbde   :  { %16501 = vmatpush3.bf16.msra.mxu1 %v16498_v25 }
 0xcac   :  { %v15400_v56 = vpop.f32.mrb[12].mxu1 }
 0xcad   :  { %v1743_v35 = vpop.f32.mrb[13].mxu1  ;;  %v1753_v59 = vadd.f32 %v18116_v55, %v15400_v56 }
 0xcae   :  { %v1752_v53 = vadd.f32 %v18118_v57, %v1743_v35 }
 0xcaf   :  { %v18183_v1 = vadd.f32 %v14212_v58, %v1753_v59 }
 0xcb0   :  { %v18181_v60 = vadd.f32 %v14212_v58, %v1752_v53 }
 0xcb1   :  { %v1787_v63 = vsel %vm98_vm0, %v18183_v1, 0.0 }
 0xcb2   :  { %v1784_v0 = vsel %vm98_vm0, %v18181_v60, 0.0 }
 0xcb3   :  { %1785 = vadd.xlane.f32.xlu0 %v1784_v0 }
 0xcb7   :  { %1788 = vadd.xlane.f32.xlu0 %v1787_v63 }
 0xd40   :  { %v1786_v3 = vpop.xlane.xlu0 %1785 }
 0xd41   :  { %v1790_v5 = vmul.f32 0.03125, %v1786_v3 }
 0xd43   :  { %v1792_v6 = vsub.f32 %v18181_v60, %v1790_v5 }
 0xd44   :  { %v1789_v7 = vpop.xlane.xlu0 %1788 }
 0xd45   :  { %v1791_v55 = vmul.f32 0.03125, %v1789_v7  ;;  %v1794_v8 = vmul.f32 %v1792_v6, %v1792_v6 }
 0xd47   :  { %v1793_v57 = vsub.f32 %v18183_v1, %v1791_v55  ;;  %v1796_v9 = vsel %vm98_vm0, %v1794_v8, 0.0 }
 0xd48   :  { %1797 = vadd.xlane.f32.xlu0 %v1796_v9 }
 0xd49   :  { %v1795_v11 = vmul.f32 %v1793_v57, %v1793_v57 }
 0xd4b   :  { %v1799_v13 = vsel %vm98_vm0, %v1795_v11, 0.0 }
 0xd4c   :  { %1800 = vadd.xlane.f32.xlu1 %v1799_v13 }
 0xdd5   :  { %v1798_v28 = vpop.xlane.xlu0 %1797 }
 0xdd6   :  { %v1802_v29 = vmul.f32 0.03125, %v1798_v28 }
 0xdd8   :  { %v1804_v30 = vadd.f32 1e-05, %v1802_v29 }
 0xdd9   :  { %v1801_v31 = vpop.xlane.xlu1 %1800 }
 0xdda   :  { %17414 = vrsqrt.f32 %v1804_v30  ;;  %v1803_v32 = vmul.f32 0.03125, %v1801_v31 }
 0xddc   :  { %v1805_v33 = vadd.f32 1e-05, %v1803_v32 }
 0xdde   :  { %17416 = vrsqrt.f32 %v1805_v33 }
 0xde4   :  { %v17415_v38 = vpop.eup %17414 }
 0xde5   :  { %v1808_v40 = vmul.f32 %v17415_v38, %v1792_v6  ;;  %v1910_v6 = vrot.slane %v18243_v51, %v17949_v39 }
 0xde7   :  { %v1814_v42 = vmul.f32 %v1813_v36, %v1808_v40 }
 0xde8   :  { %v17417_v43 = vpop.eup %17416 }
 0xde9   :  { %v1809_v44 = vmul.f32 %v17417_v43, %v1793_v57  ;;  %v1820_v12 = vadd.f32 %v1819_v41, %v1814_v42 }
 0xdeb   :  { %v1815_v47 = vmul.f32 %v1813_v36, %v1809_v44  ;;  %15409 = vmatprep.mubr.msk.f32.mxu0 %vm98_vm0, %v1820_v12  ;;  %15431 = vmatprep.mubr.msk.f32.mxu1 %vm98_vm0, %v1820_v12 }
 0xded   :  { %v1821_v48 = vadd.f32 %v1819_v41, %v1815_v47 }
 0xdef   :  { %15410 = vmatmul.mubr.msk.f32.vlgmr.msra.gmra.mrb[14].mxu0 %vm98_vm0, %v1821_v48  ;;  %15432 = vmatmul.mubr.msk.f32.vlgmr.msra.gmra.mrb[14].mxu1 %vm98_vm0, %v1821_v48 }
 0xdf0   :  { %16489 = vmatpush3.bf16.msra.mxu0 %v16486_v27  ;;  %15420 = vmatprep.mubr.msk.f32.mxu0 %vm98_vm0, %v1820_v12 }
 0xdf1   :  { %16491 = vmatprep.subr.bf16.mxu0 %v16490_v50 }
 0xdf4   :  { %16493 = vmatpush3.bf16.msra.mxu0 %v16490_v50 }
 0xdf7   :  { %15421 = vmatmul.mubr.msk.f32.vlgmr.msra.gmra.mrb[16].mxu0 %vm98_vm0, %v1821_v48 }
 0xec2   :  { %v15411_v56 = vpop.f32.mrb[14].mxu0  ;;  %v15433_v58 = vpop.f32.mrb[14].mxu1 }
 0xec3   :  { %v2062_v35 = vadd.f32 %v15433_v58, %v1989_v52  ;;  %v1898_v59 = vpop.f32.mrb[15].mxu0  ;;  %v2056_v53 = vpop.f32.mrb[15].mxu1  ;;  %v18259_v7 = vadd.f32 %v15411_v56, %v1825_v54 }
 0xec4   :  { %v18249_v0 = vadd.f32 %v1898_v59, %v1825_v54  ;;  %v2057_v63 = vadd.f32 %v2056_v53, %v1989_v52  ;;  %v14226_v53 = vld [vmem:[%s20147_s1 + $0xe0] sm:$0xff] }
 0xec6   :  { %2348 = vrot.lane.b32.xlu1 %v18249_v0, %s20135_s2  ;;  %15438 = vmatprep.mubr.msk.f32.mxu0 %vm387_vm1, %v18249_v0  ;;  %v16508_v3 = vpack.c.bf16 %v2062_v35, %v2057_v63  ;;  %v18255_v5 = vpack.i.bf16 %v2062_v35, %v2057_v63 }
 0xec8   :  { %16509 = vmatprep.subr.bf16.mxu1 %v16508_v3 }
 0xec9   :  { %16511 = vmatpush3.bf16.msra.mxu1 %v16508_v3 }
 0xeca   :  { %v15422_v55 = vpop.f32.mrb[16].mxu0  ;;  %2350 = vrot.lane.b32.xlu1 %v18259_v7, %s20135_s2  ;;  %15448 = vmatprep.subr.mxu1 %v14226_v53 }
 0xecb   :  { %v1983_v8 = vadd.f32 %v15422_v55, %v1910_v6  ;;  %v1977_v57 = vpop.f32.mrb[17].mxu0 }
 0xecc   :  { %v1978_v9 = vadd.f32 %v1977_v57, %v1910_v6 }
 0xece   :  { %v18263_v11 = vpack.i.bf16 %v1983_v8, %v1978_v9  ;;  %v16502_v13 = vpack.c.bf16 %v1983_v8, %v1978_v9 }
 0xed0   :  { %17195 = vrot.lane.b32.xlu0 %v18263_v11, %s20135_s2  ;;  %16504 = vmatprep.subr.msk.bf16.mxu0 %vm17981_vm2, %v16502_v13 }
 0xed1   :  { %16507 = vmatpush3.bf16.xpose.msk.msra.mxu0 %vm17981_vm2, %v16502_v13 }
 0xed8   :  { %15439 = vmatmul.mubr.msk.f32.vlgmr.msra.gmra.mrb[18].mxu0 %vm387_vm1, %v18259_v7 }
 0xf38   :  { %v2349_v15 = vpop.permute.xlu1 %2348 }
 0xf39   :  { %15457 = vmatprep.mubr.msk.f32.mxu0 %vm387_vm1, %v2349_v15 }
 0xf3c   :  { %v2351_v21 = vpop.permute.xlu1 %2350 }
 0xf42   :  { %v17196_v16 = vpop.permute.xlu0 %17195 }
 0xf43   :  { %v17198_v18 = vunpack.i.h.bf16 %v17196_v16  ;;  %v17197_v19 = vunpack.i.l.bf16 %v17196_v16 }
 0xf45   :  { %v16512_v20 = vpack.c.bf16 %v17198_v18, %v17197_v19 }
 0xf47   :  { %16514 = vmatprep.subr.msk.bf16.mxu0 %vm17981_vm2, %v16512_v20 }
 0xf48   :  { %16517 = vmatpush3.bf16.xpose.msk.msra.mxu0 %vm17981_vm2, %v16512_v20 }
 0xf4f   :  { %15458 = vmatmul.mubr.msk.f32.vlgmr.msra.gmra.mrb[20].mxu0 %vm387_vm1, %v2351_v21 }
 0xfab   :  { %v15440_v22 = vpop.f32.mrb[18].mxu0 }
 0xfac   :  { %v2159_v23 = vmul.f32 0.35355338, %v15440_v22  ;;  %v2149_v4 = vpop.f32.mrb[19].mxu0 }
 0xfad   :  { %v2158_v24 = vmul.f32 0.35355338, %v2149_v4 }
 0xfae   :  { %v2161_v62 = vadd.f32 %v2159_v23, %v18004_v14 }
 0xfaf   :  { %v2160_v25 = vadd.f32 %v2158_v24, %v18009_v17 }
 0xfb0   :  { %v2165_v10 = vsel %vm479_vm3, %v2161_v62, -inf }
 0xfb1   :  { %2166 = vmax.xlane.f32.xlu0 %v2165_v10  ;;  %v2162_v26 = vsel %vm479_vm3, %v2160_v25, -inf }
 0xfb2   :  { %2163 = vmax.xlane.f32.xlu1 %v2162_v26 }
 0xfc3   :  { %17200 = vrot.lane.b32.xlu1 %v18263_v11, %s20153_s28 }
 0xfc7   :  { %2639 = vrot.lane.b32.xlu1 %v18259_v7, %s20153_s28 }
0x1022   :  { %v15459_v27 = vpop.f32.mrb[20].mxu0 }
0x1023   :  { %v2430_v28 = vpop.f32.mrb[21].mxu0  ;;  %v2440_v47 = vmul.f32 0.35355338, %v15459_v27 }
0x1024   :  { %v2439_v29 = vmul.f32 0.35355338, %v2430_v28 }
0x1025   :  { %v2442_v48 = vadd.f32 %v2440_v47, %v18004_v14 }
0x1026   :  { %v2441_v30 = vadd.f32 %v2439_v29, %v18009_v17 }
0x1027   :  { %v2446_v50 = vsel %vm479_vm3, %v2442_v48, -inf }
0x1028   :  { %v2443_v31 = vsel %vm479_vm3, %v2441_v30, -inf }
0x1029   :  { %2444 = vmax.xlane.f32.xlu1 %v2443_v31 }
0x103e   :  { %v2167_v32 = vpop.xlane.xlu0 %2166 }
0x103f   :  { %v2169_v33 = vsub.f32 %v2161_v62, %v2167_v32  ;;  %v2164_v34 = vpop.xlane.xlu1 %2163 }
0x1040   :  { %v2168_v36 = vsub.f32 %v2160_v25, %v2164_v34 }
0x1041   :  { %v2172_v38 = vmul.f32 1.442695, %v2169_v33 }
0x1042   :  { %v2170_v40 = vmul.f32 1.442695, %v2168_v36 }
0x1043   :  { %v17201_v41 = vpop.permute.xlu1 %17200 }
0x1044   :  { %17418 = vpow2.f32 %v2170_v40  ;;  %v17203_v42 = vunpack.i.h.bf16 %v17201_v41  ;;  %v17202_v43 = vunpack.i.l.bf16 %v17201_v41 }
0x1045   :  { %17420 = vpow2.f32 %v2172_v38 }
0x1046   :  { %v16522_v44 = vpack.c.bf16 %v17203_v42, %v17202_v43 }
0x1047   :  { %v2640_v52 = vpop.permute.xlu1 %2639 }
0x1048   :  { %16524 = vmatprep.subr.msk.bf16.mxu0 %vm17981_vm2, %v16522_v44 }
0x1049   :  { %16527 = vmatpush3.bf16.xpose.msk.msra.mxu0 %vm17981_vm2, %v16522_v44  ;;  %v14227_v44 = vld [vmem:[%s20147_s1 + $0xe8] sm:$0xff] }
0x104e   :  { %v17419_v17 = vpop.eup %17418 }
0x104f   :  { %v2174_v12 = vsel %vm479_vm3, %v17419_v17, 0.0  ;;  %v17421_v45 = vpop.eup %17420 }
0x1050   :  { %2175 = vadd.xlane.f32.xlu0 %v2174_v12  ;;  %v2177_v46 = vsel %vm479_vm3, %v17421_v45, 0.0 }
0x1054   :  { %2178 = vadd.xlane.f32.xlu0 %v2177_v46 }
0x106a   :  { %2637 = vrot.lane.b32.xlu0 %v18249_v0, %s20153_s28 }
0x1089   :  { %2447 = vmax.xlane.f32.xlu0 %v2446_v50 }
0x10b6   :  { %v2445_v54 = vpop.xlane.xlu1 %2444 }
0x10b7   :  { %v2449_v56 = vsub.f32 %v2441_v30, %v2445_v54  ;;  %v18333_v30 = vld [vmem:[%s20152_s6] sm:$0xff] }
0x10b9   :  { %v2451_v58 = vmul.f32 1.442695, %v2449_v56 }
0x10bb   :  { %17422 = vpow2.f32 %v2451_v58 }
0x10c5   :  { %v18299_v35 = vpop.eup %17422 }
0x10c6   :  { %v2455_v59 = vsel %vm479_vm3, %v18299_v35, 0.0 }
0x10c7   :  { %2456 = vadd.xlane.f32.xlu0 %v2455_v59 }
0x10dd   :  { %v2176_v14 = vpop.xlane.xlu0 %2175  ;;  %17205 = vrot.lane.b32.xlu0 %v18255_v5, %s20135_s2 }
0x10de   :  { %17424 = vrcp.f32 %v2176_v14 }
0x10e1   :  { %v2179_v63 = vpop.xlane.xlu0 %2178 }
0x10e2   :  { %17426 = vrcp.f32 %v2179_v63 }
0x10e5   :  { %v2638_v3 = vpop.permute.xlu0 %2637 }
0x10e6   :  { %15476 = vmatprep.mubr.msk.f32.mxu0 %vm387_vm1, %v2638_v3 }
0x10e7   :  { %15477 = vmatmul.mubr.msk.f32.vlgmr.msra.gmra.mrb[22].mxu0 %vm387_vm1, %v2640_v52 }
0x10e8   :  { %v17425_v6 = vpop.eup %17424 }
0x10e9   :  { %v2182_v55 = vmul.f32 %v17425_v6, %v17419_v17 }
0x10eb   :  { %15445 = vmatprep.mubr.msk.f32.mxu1 %vm479_vm3, %v2182_v55 }
0x10ec   :  { %v17427_v8 = vpop.eup %17426 }
0x10ed   :  { %v2183_v57 = vmul.f32 %v17427_v8, %v17421_v45 }
0x10ef   :  { %15446 = vmatmul.mubr.msk.f32.vlgmr.msra.gmra.mrb[16].mxu1 %vm479_vm3, %v2183_v57 }
0x10f0   :  { %15449 = vmatpush3.msra.mxu1 %v14226_v53 }
0x1116   :  { %v2448_v9 = vpop.xlane.xlu0 %2447 }
0x1117   :  { %v2450_v13 = vsub.f32 %v2442_v48, %v2448_v9 }
0x1119   :  { %v2453_v15 = vmul.f32 1.442695, %v2450_v13 }
0x111b   :  { %17428 = vpow2.f32 %v2453_v15 }
0x1125   :  { %v17429_v16 = vpop.eup %17428 }
0x1126   :  { %v2458_v18 = vsel %vm479_vm3, %v17429_v16, 0.0 }
0x1127   :  { %2459 = vadd.xlane.f32.xlu1 %v2458_v18 }
0x1138   :  { %17210 = vrot.lane.b32.xlu1 %v18263_v11, %s20154_s30 }
0x113c   :  { %2924 = vrot.lane.b32.xlu1 %v18249_v0, %s20154_s30 }
0x1140   :  { %2926 = vrot.lane.b32.xlu1 %v18259_v7, %s20154_s30  ;;  %v18325_v7 = vld [vmem:[%s20152_s6 + $0x8] sm:$0xff] }
0x1154   :  { %v2457_v19 = vpop.xlane.xlu0 %2456 }
0x1155   :  { %17430 = vrcp.f32 %v2457_v19 }
0x1158   :  { %v17206_v20 = vpop.permute.xlu0 %17205 }
0x1159   :  { %v17208_v21 = vunpack.i.h.bf16 %v17206_v20  ;;  %v17207_v22 = vunpack.i.l.bf16 %v17206_v20 }
0x115b   :  { %v16518_v23 = vpack.c.bf16 %v17208_v21, %v17207_v22 }
0x115d   :  { %16519 = vmatprep.subr.bf16.mxu1 %v16518_v23 }
0x115f   :  { %v17431_v34 = vpop.eup %17430 }
0x1160   :  { %v2463_v42 = vmul.f32 %v17431_v34, %v18299_v35 }
0x11b4   :  { %v2460_v4 = vpop.xlane.xlu1 %2459 }
0x11b5   :  { %17432 = vrcp.f32 %v2460_v4 }
0x11b8   :  { %v17211_v24 = vpop.permute.xlu1 %17210 }
0x11b9   :  { %v17213_v62 = vunpack.i.h.bf16 %v17211_v24  ;;  %v17212_v25 = vunpack.i.l.bf16 %v17211_v24 }
0x11ba   :  { %v15478_v10 = vpop.f32.mrb[22].mxu0 }
0x11bb   :  { %v16532_v11 = vpack.c.bf16 %v17213_v62, %v17212_v25  ;;  %v2729_v26 = vmul.f32 0.35355338, %v15478_v10  ;;  %v2719_v27 = vpop.f32.mrb[23].mxu0 }
0x11bc   :  { %v2728_v0 = vmul.f32 0.35355338, %v2719_v27  ;;  %v2925_v28 = vpop.permute.xlu1 %2924 }
0x11bd   :  { %16534 = vmatprep.subr.msk.bf16.mxu0 %vm17981_vm2, %v16532_v11  ;;  %15495 = vmatprep.mubr.msk.f32.mxu0 %vm387_vm1, %v2925_v28  ;;  %v2731_v29 = vadd.f32 %v18325_v7, %v2729_v26  ;;  %v14228_v28 = vld [vmem:[%s20147_s1 + $0xf0] sm:$0xff] }
0x11be   :  { %16537 = vmatpush3.bf16.xpose.msk.msra.mxu0 %vm17981_vm2, %v16532_v11  ;;  %v2730_v31 = vadd.f32 %v18333_v30, %v2728_v0 }
0x11bf   :  { %v2735_v32 = vsel %vm479_vm3, %v2731_v29, -inf  ;;  %v17433_v40 = vpop.eup %17432 }
0x11c0   :  { %2736 = vmax.xlane.f32.xlu1 %v2735_v32  ;;  %v2732_v33 = vsel %vm479_vm3, %v2730_v31, -inf  ;;  %v2927_v41 = vpop.permute.xlu1 %2926  ;;  %v2464_v43 = vmul.f32 %v17433_v40, %v17429_v16 }
0x11c1   :  { %2733 = vmax.xlane.f32.xlu0 %v2732_v33 }
0x11c2   :  { %v15447_v36 = vpop.f32.mrb[16].mxu1 }
0x11c3   :  { %v2256_v38 = vpop.f32.mrb[17].mxu1 }
0x11c4   :  { %15450 = vmatprep.mubr.msk.f32.mxu1 %vm387_vm1, %v2256_v38 }
0x11c5   :  { %15451 = vmatmul.mubr.msk.f32.vlgmr.msra.gmra.mrb[18].mxu1 %vm387_vm1, %v15447_v36  ;;  %15496 = vmatmul.mubr.msk.f32.vlgmr.msra.gmra.mrb[24].mxu0 %vm387_vm1, %v2927_v41  ;;  %v14229_v41 = vld [vmem:[%s20147_s1 + $0xf8] sm:$0xff] }
0x11c6   :  { %16521 = vmatpush3.bf16.msra.mxu1 %v16518_v23  ;;  %15464 = vmatprep.mubr.msk.f32.mxu1 %vm479_vm3, %v2463_v42 }
0x11c7   :  { %15467 = vmatprep.subr.mxu1 %v14227_v44 }
0x11c9   :  { %15465 = vmatmul.mubr.msk.f32.vlgmr.msra.gmra.mrb[20].mxu1 %vm479_vm3, %v2464_v43 }
0x11ca   :  { %15468 = vmatpush3.msra.mxu1 %v14227_v44 }
0x124d   :  { %v2737_v17 = vpop.xlane.xlu1 %2736 }
0x124e   :  { %v2739_v12 = vsub.f32 %v2731_v29, %v2737_v17  ;;  %v2734_v45 = vpop.xlane.xlu0 %2733 }
0x124f   :  { %v2738_v46 = vsub.f32 %v2730_v31, %v2734_v45  ;;  %v2068_v45 = vrot.slane %v18243_v51, %v18110_v49 }
0x1250   :  { %v2742_v47 = vmul.f32 1.442695, %v2739_v12 }
0x1251   :  { %v2740_v48 = vmul.f32 1.442695, %v2738_v46  ;;  %v2070_v46 = vadd.f32 %v2068_v45, %v18183_v1 }
0x1252   :  { %17434 = vpow2.f32 %v2742_v47 }
0x1253   :  { %17436 = vpow2.f32 %v2740_v48  ;;  %v2069_v48 = vadd.f32 %v2068_v45, %v18181_v60 }
0x125c   :  { %v17435_v50 = vpop.eup %17434 }
0x125d   :  { %v2747_v52 = vsel %vm479_vm3, %v17435_v50, 0.0  ;;  %v17437_v54 = vpop.eup %17436 }
0x125e   :  { %2748 = vadd.xlane.f32.xlu0 %v2747_v52  ;;  %v2744_v56 = vsel %vm479_vm3, %v17437_v54, 0.0 }
0x1262   :  { %2745 = vadd.xlane.f32.xlu0 %v2744_v56 }
0x1278   :  { %17215 = vrot.lane.b32.xlu0 %v18255_v5, %s20153_s28 }
0x1298   :  { %v15497_v58 = vpop.f32.mrb[24].mxu0 }
0x1299   :  { %v3006_v35 = vpop.f32.mrb[25].mxu0  ;;  %v3016_v59 = vmul.f32 0.35355338, %v15497_v58 }
0x129a   :  { %v3015_v53 = vmul.f32 0.35355338, %v3006_v35 }
0x129b   :  { %v3018_v55 = vadd.f32 %v18325_v7, %v3016_v59 }
0x129c   :  { %v15466_v14 = vpop.f32.mrb[20].mxu1  ;;  %v3017_v63 = vadd.f32 %v18333_v30, %v3015_v53 }
0x129d   :  { %v2545_v3 = vpop.f32.mrb[21].mxu1  ;;  %v3022_v8 = vsel %vm479_vm3, %v3018_v55, -inf }
0x129e   :  { %15469 = vmatprep.mubr.msk.f32.mxu1 %vm387_vm1, %v2545_v3  ;;  %v3019_v6 = vsel %vm479_vm3, %v3017_v63, -inf }
0x129f   :  { %15470 = vmatmul.mubr.msk.f32.vlgmr.msra.gmra.mrb[18].mxu1 %vm387_vm1, %v15466_v14  ;;  %3020 = vmax.xlane.f32.xlu1 %v3019_v6 }
0x12a3   :  { %3023 = vmax.xlane.f32.xlu1 %v3022_v8  ;;  %v14271_v8 = vld [vmem:[%s20108_s7 + $0x28] sm:$0xff] }
0x12eb   :  { %v2749_v57 = vpop.xlane.xlu0 %2748 }
0x12ec   :  { %17438 = vrcp.f32 %v2749_v57 }
0x12ef   :  { %v2746_v9 = vpop.xlane.xlu0 %2745 }
0x12f0   :  { %17440 = vrcp.f32 %v2746_v9  ;;  %v14272_v9 = vld [vmem:[%s20108_s7 + $0x30] sm:$0xff] }
0x12f3   :  { %v17216_v13 = vpop.permute.xlu0 %17215 }
0x12f4   :  { %v17218_v15 = vunpack.i.h.bf16 %v17216_v13  ;;  %v17217_v16 = vunpack.i.l.bf16 %v17216_v13  ;;  %v14273_v13 = vld [vmem:[%s20108_s7 + $0x38] sm:$0xff] }
0x12f6   :  { %v16528_v18 = vpack.c.bf16 %v17218_v15, %v17217_v16  ;;  %v17439_v19 = vpop.eup %17438  ;;  %v16546_v15 = vpack.c.bf16 %v14273_v13, %v14272_v9  ;;  %v14278_v16 = vld [vmem:[%s20110_s9 + $0x40] sm:$0xff] }
0x12f7   :  { %v2753_v22 = vmul.f32 %v17439_v19, %v17435_v50  ;;  %v14280_v19 = vld [vmem:[%s20110_s9 + $0x50] sm:$0xff]  ;;  %v14291_v13 = vld [vmem:[%s20147_s1 + $0x100] sm:$0xff] }
0x12f8   :  { %16529 = vmatprep.subr.bf16.mxu1 %v16528_v18 }
0x12f9   :  { %16531 = vmatpush3.bf16.msra.mxu1 %v16528_v18  ;;  %v14279_v18 = vld [vmem:[%s20110_s9 + $0x48] sm:$0xff] }
0x12fa   :  { %v17441_v20 = vpop.eup %17440  ;;  %15486 = vmatprep.subr.mxu1 %v14228_v28 }
0x12fb   :  { %v2752_v21 = vmul.f32 %v17441_v20, %v17437_v54  ;;  %v16550_v20 = vpack.c.bf16 %v14279_v18, %v14278_v16  ;;  %v14299_v18 = vld [vmem:[%s20147_s1 + $0x140] sm:$0xff] }
0x12fd   :  { %15483 = vmatprep.mubr.msk.f32.mxu1 %vm479_vm3, %v2752_v21  ;;  %v14281_v21 = vld [vmem:[%s20110_s9 + $0x58] sm:$0xff] }
0x12fe   :  { %15484 = vmatmul.mubr.msk.f32.vlgmr.msra.gmra.mrb[22].mxu1 %vm479_vm3, %v2753_v22  ;;  %v16554_v22 = vpack.c.bf16 %v14281_v21, %v14280_v19  ;;  %v14300_v19 = vld [vmem:[%s20147_s1 + $0x148] sm:$0xff]  ;;  %v14293_v21 = vld [vmem:[%s20147_s1 + $0x110] sm:$0xff] }
0x12ff   :  { %15487 = vmatpush3.msra.mxu1 %v14228_v28 }
0x132c   :  { %v3021_v23 = vpop.xlane.xlu1 %3020 }
0x132d   :  { %v3025_v4 = vsub.f32 %v3017_v63, %v3021_v23  ;;  %v14282_v23 = vld [vmem:[%s20110_s9 + $0x60] sm:$0xff] }
0x132f   :  { %v3027_v25 = vmul.f32 1.442695, %v3025_v4  ;;  %v14283_v4 = vld [vmem:[%s20110_s9 + $0x68] sm:$0xff] }
0x1330   :  { %v3024_v24 = vpop.xlane.xlu1 %3023 }
0x1331   :  { %v3026_v62 = vsub.f32 %v3018_v55, %v3024_v24  ;;  %v14270_v55 = vld [vmem:[%s20108_s7 + $0x20] sm:$0xff]  ;;  %v16558_v24 = vpack.c.bf16 %v14283_v4, %v14282_v23  ;;  %v14301_v4 = vld [vmem:[%s20147_s1 + $0x150] sm:$0xff] }
0x1332   :  { %v16542_v57 = vpack.c.bf16 %v14271_v8, %v14270_v55 }
0x1333   :  { %v3029_v10 = vmul.f32 1.442695, %v3026_v62 }
0x1334   :  { %16543 = vmatprep.subr.bf16.mxu0 %v16542_v57 }
0x1335   :  { %17442 = vpow2.f32 %v3029_v10  ;;  %16545 = vmatpush3.bf16.msra.mxu0 %v16542_v57 }
0x1336   :  { %17444 = vpow2.f32 %v3027_v25  ;;  %16547 = vmatprep.subr.bf16.mxu0 %v16546_v15 }
0x1339   :  { %16549 = vmatpush3.bf16.msra.mxu0 %v16546_v15  ;;  %v14292_v15 = vld [vmem:[%s20147_s1 + $0x108] sm:$0xff] }
0x133a   :  { %v16566_v16 = vpack.c.bf16 %v14292_v15, %v14291_v13 }
0x133c   :  { %16567 = vmatprep.subr.bf16.mxu0 %v16566_v16 }
0x133f   :  { %v17443_v11 = vpop.eup %17442 }
0x1340   :  { %v3034_v26 = vsel %vm479_vm3, %v17443_v11, 0.0  ;;  %v17445_v27 = vpop.eup %17444 }
0x1341   :  { %3035 = vadd.xlane.f32.xlu1 %v3034_v26  ;;  %v3031_v0 = vsel %vm479_vm3, %v17445_v27, 0.0 }
0x1345   :  { %3032 = vadd.xlane.f32.xlu1 %v3031_v0  ;;  %v14269_v0 = vld [vmem:[%s20112_s11 + $0x2] sm:$0x3] }
0x1346   :  { %v3242_v28 = vrot.slane %v14269_v0, %v17943_v37 }
0x1356   :  { %17220 = vrot.lane.b32.xlu1 %v18255_v5, %s20154_s30 }
0x13ce   :  { %v3036_v29 = vpop.xlane.xlu1 %3035 }
0x13cf   :  { %17446 = vrcp.f32 %v3036_v29 }
0x13d1   :  { %v15485_v31 = vpop.f32.mrb[22].mxu1 }
0x13d2   :  { %v3033_v32 = vpop.xlane.xlu1 %3032  ;;  %v2832_v33 = vpop.f32.mrb[23].mxu1 }
0x13d3   :  { %17448 = vrcp.f32 %v3033_v32  ;;  %15488 = vmatprep.mubr.msk.f32.mxu1 %vm387_vm1, %v2832_v33  ;;  %v3248_v32 = vrot.slane %v14269_v0, %v17949_v39 }
0x13d4   :  { %15489 = vmatmul.mubr.msk.f32.vlgmr.msra.gmra.mrb[18].mxu1 %vm387_vm1, %v15485_v31 }
0x13d6   :  { %v17221_v34 = vpop.permute.xlu1 %17220 }
0x13d7   :  { %v17223_v36 = vunpack.i.h.bf16 %v17221_v34  ;;  %v17222_v38 = vunpack.i.l.bf16 %v17221_v34 }
0x13d9   :  { %v16538_v40 = vpack.c.bf16 %v17223_v36, %v17222_v38  ;;  %v17447_v5 = vpop.eup %17446 }
0x13da   :  { %v3040_v44 = vmul.f32 %v17447_v5, %v17443_v11  ;;  %v14284_v5 = vld [vmem:[%s20110_s9 + $0x70] sm:$0xff] }
0x13db   :  { %16539 = vmatprep.subr.bf16.mxu1 %v16538_v40 }
0x13dc   :  { %16541 = vmatpush3.bf16.msra.mxu1 %v16538_v40 }
0x13dd   :  { %v17449_v42 = vpop.eup %17448  ;;  %15505 = vmatprep.subr.mxu1 %v14229_v41 }
0x13de   :  { %v3039_v43 = vmul.f32 %v17449_v42, %v17445_v27  ;;  %v14285_v42 = vld [vmem:[%s20110_s9 + $0x78] sm:$0xff] }
0x13e0   :  { %15502 = vmatprep.mubr.msk.f32.mxu1 %vm479_vm3, %v3039_v43  ;;  %v16562_v43 = vpack.c.bf16 %v14285_v42, %v14284_v5 }
0x13e1   :  { %15503 = vmatmul.mubr.msk.f32.vlgmr.msra.gmra.mrb[24].mxu1 %vm479_vm3, %v3040_v44  ;;  %v14275_v44 = vld [vmem:[%s20109_s8 + $0x1] ss:$0 sm:$0xff] }
0x13e2   :  { %15506 = vmatpush3.msra.mxu1 %v14229_v41 }
0x13e3   :  { %16551 = vmatprep.subr.bf16.mxu1 %v16550_v20 }
0x14b4   :  { %v15504_v17 = vpop.f32.mrb[24].mxu1 }
0x14b5   :  { %v3119_v12 = vpop.f32.mrb[25].mxu1 }
0x14b6   :  { %15507 = vmatprep.mubr.msk.f32.mxu1 %vm387_vm1, %v3119_v12 }
0x14b7   :  { %15508 = vmatmul.mubr.msk.f32.vlgmr.msra.gmra.mrb[18].mxu1 %vm387_vm1, %v15504_v17 }
0x14b8   :  { %16553 = vmatpush3.bf16.msra.mxu1 %v16550_v20  ;;  %v16582_v20 = vpack.c.bf16 %v14300_v19, %v14299_v18 }
0x14b9   :  { %16555 = vmatprep.subr.bf16.mxu1 %v16554_v22 }
0x14bc   :  { %16557 = vmatpush3.bf16.msra.mxu1 %v16554_v22  ;;  %v14294_v22 = vld [vmem:[%s20147_s1 + $0x118] sm:$0xff] }
0x14bd   :  { %16559 = vmatprep.subr.bf16.mxu1 %v16558_v24  ;;  %v16570_v23 = vpack.c.bf16 %v14294_v22, %v14293_v21 }
0x14c0   :  { %16561 = vmatpush3.bf16.msra.mxu1 %v16558_v24  ;;  %v14302_v24 = vld [vmem:[%s20147_s1 + $0x158] sm:$0xff] }
0x14c1   :  { %16563 = vmatprep.subr.bf16.mxu1 %v16562_v43 }
0x14c4   :  { %16565 = vmatpush3.bf16.msra.mxu1 %v16562_v43  ;;  %v14297_v43 = vld [vmem:[%s20147_s1 + $0x130] sm:$0xff] }
0x14c5   :  { %16583 = vmatprep.subr.bf16.mxu1 %v16582_v20 }
0x158a   :  { %v15509_v47 = vpop.f32.mrb[18].mxu1 }
0x158b   :  { %v18379_v50 = vadd.f32 %v15509_v47, %v2070_v46  ;;  %v3200_v52 = vpop.f32.mrb[19].mxu1 }
0x158c   :  { %v18381_v54 = vadd.f32 %v3200_v52, %v2069_v48 }
0x158d   :  { %v3216_v56 = vsel %vm98_vm0, %v18379_v50, 0.0 }
0x158e   :  { %3217 = vadd.xlane.f32.xlu1 %v3216_v56  ;;  %v3213_v58 = vsel %vm98_vm0, %v18381_v54, 0.0  ;;  %v14289_v56 = vld [vmem:[%s20111_s10 + $0x1] ss:$0 sm:$0xff] }
0x158f   :  { %3214 = vadd.xlane.f32.xlu0 %v3213_v58 }
0x161b   :  { %v3218_v35 = vpop.xlane.xlu1 %3217 }
0x161c   :  { %v3220_v51 = vmul.f32 0.03125, %v3218_v35  ;;  %v3215_v59 = vpop.xlane.xlu0 %3214 }
0x161d   :  { %v3219_v1 = vmul.f32 0.03125, %v3215_v59 }
0x161e   :  { %v3222_v53 = vsub.f32 %v18379_v50, %v3220_v51 }
0x161f   :  { %v3221_v60 = vsub.f32 %v18381_v54, %v3219_v1 }
0x1620   :  { %v3224_v3 = vmul.f32 %v3222_v53, %v3222_v53 }
0x1621   :  { %v3223_v14 = vmul.f32 %v3221_v60, %v3221_v60 }
0x1622   :  { %v3228_v6 = vsel %vm98_vm0, %v3224_v3, 0.0 }
0x1623   :  { %v3225_v63 = vsel %vm98_vm0, %v3223_v14, 0.0 }
0x1624   :  { %3226 = vadd.xlane.f32.xlu0 %v3225_v63 }
0x1628   :  { %3229 = vadd.xlane.f32.xlu0 %v3228_v6 }
0x16b1   :  { %v3227_v62 = vpop.xlane.xlu0 %3226 }
0x16b2   :  { %v3231_v25 = vmul.f32 0.03125, %v3227_v62  ;;  %v16586_v62 = vpack.c.bf16 %v14302_v24, %v14301_v4 }
0x16b4   :  { %v3233_v10 = vadd.f32 1e-05, %v3231_v25  ;;  %v14295_v25 = vld [vmem:[%s20147_s1 + $0x120] sm:$0xff] }
0x16b5   :  { %v3230_v11 = vpop.xlane.xlu0 %3229 }
0x16b6   :  { %17450 = vrsqrt.f32 %v3233_v10  ;;  %v3232_v26 = vmul.f32 0.03125, %v3230_v11  ;;  %v14296_v10 = vld [vmem:[%s20147_s1 + $0x128] sm:$0xff] }
0x16b7   :  { %v16574_v11 = vpack.c.bf16 %v14296_v10, %v14295_v25 }
0x16b8   :  { %v3234_v27 = vadd.f32 1e-05, %v3232_v26 }
0x16ba   :  { %17452 = vrsqrt.f32 %v3234_v27 }
0x16c0   :  { %v17451_v29 = vpop.eup %17450 }
0x16c1   :  { %v3237_v31 = vmul.f32 %v17451_v29, %v3221_v60 }
0x16c3   :  { %v3243_v33 = vmul.f32 %v3242_v28, %v3237_v31 }
0x16c4   :  { %v17453_v34 = vpop.eup %17452 }
0x16c5   :  { %v3238_v36 = vmul.f32 %v17453_v34, %v3222_v53  ;;  %v3249_v38 = vadd.f32 %v3248_v32, %v3243_v33 }
0x16c7   :  { %v3244_v40 = vmul.f32 %v3242_v28, %v3238_v36  ;;  %15518 = vmatprep.mubr.msk.f32.mxu0 %vm98_vm0, %v3249_v38 }
0x16c9   :  { %v3250_v41 = vadd.f32 %v3248_v32, %v3244_v40  ;;  %v14290_v32 = vld [vmem:[%s20148_s27 + $0x4] sm:$0x3] }
0x16ca   :  { %v3499_v33 = vrot.slane %v14290_v32, %v17943_v37  ;;  %v3505_v38 = vrot.slane %v14290_v32, %v17949_v39 }
0x16cb   :  { %15519 = vmatmul.mubr.msk.f32.vlgmr.msra.gmra.mrb[26].mxu0 %vm98_vm0, %v3250_v41 }
0x16cc   :  { %16569 = vmatpush3.bf16.msra.mxu0 %v16566_v16 }
0x16cd   :  { %16571 = vmatprep.subr.bf16.mxu0 %v16570_v23 }
0x16d0   :  { %16573 = vmatpush3.bf16.msra.mxu0 %v16570_v23 }
0x16d1   :  { %16575 = vmatprep.subr.bf16.mxu0 %v16574_v11 }
0x179e   :  { %v15520_v17 = vpop.f32.mrb[26].mxu0 }
0x179f   :  { %v3342_v12 = vadd.f32 %v15520_v17, %v14275_v44  ;;  %v3336_v45 = vpop.f32.mrb[27].mxu0 }
0x17a0   :  { %v3337_v46 = vadd.f32 %v14275_v44, %v3336_v45  ;;  %v14298_v44 = vld [vmem:[%s20147_s1 + $0x138] sm:$0xff] }
0x17a1   :  { %v3346_v48 = vmax.f32 %v3342_v12, 0.0  ;;  %v16578_v45 = vpack.c.bf16 %v14298_v44, %v14297_v43 }
0x17a2   :  { %v3345_v47 = vmax.f32 %v3337_v46, 0.0  ;;  %v18506_v46 = vld [vmem:[%s20149_s23 + $0x8] sm:$0xf] }
0x17a4   :  { %15537 = vmatprep.mubr.msk.f32.mxu1 %vm1670_vm4, %v3345_v47  ;;  %v3675_v47 = vrot.slane %v18506_v46, %v17975_v61 }
0x17a5   :  { %15538 = vmatmul.mubr.msk.f32.vlgmr.msra.gmra.mrb[26].mxu1 %vm1670_vm4, %v3346_v48  ;;  %v3511_v48 = vrot.slane %v18506_v46, %v17943_v37 }
0x17a6   :  { %16585 = vmatpush3.bf16.msra.mxu1 %v16582_v20 }
0x17a7   :  { %16587 = vmatprep.subr.bf16.mxu1 %v16586_v62 }
0x17aa   :  { %16589 = vmatpush3.bf16.msra.mxu1 %v16586_v62 }
0x1878   :  { %v15539_v52 = vpop.f32.mrb[26].mxu1 }
0x1879   :  { %v3428_v58 = vpop.f32.mrb[27].mxu1  ;;  %v3438_v35 = vadd.f32 %v18379_v50, %v15539_v52 }
0x187a   :  { %v3437_v51 = vadd.f32 %v18381_v54, %v3428_v58 }
0x187b   :  { %v18446_v1 = vadd.f32 %v14289_v56, %v3438_v35 }
0x187c   :  { %v18444_v59 = vadd.f32 %v14289_v56, %v3437_v51 }
0x187d   :  { %v3473_v60 = vsel %vm98_vm0, %v18446_v1, 0.0 }
0x187e   :  { %v3470_v53 = vsel %vm98_vm0, %v18444_v59, 0.0 }
0x187f   :  { %3471 = vadd.xlane.f32.xlu0 %v3470_v53 }
0x1883   :  { %3474 = vadd.xlane.f32.xlu0 %v3473_v60 }
0x190c   :  { %v3472_v14 = vpop.xlane.xlu0 %3471 }
0x190d   :  { %v3476_v63 = vmul.f32 0.03125, %v3472_v14 }
0x190f   :  { %v3478_v3 = vsub.f32 %v18444_v59, %v3476_v63 }
0x1910   :  { %v3475_v6 = vpop.xlane.xlu0 %3474 }
0x1911   :  { %v3477_v50 = vmul.f32 0.03125, %v3475_v6  ;;  %v3480_v55 = vmul.f32 %v3478_v3, %v3478_v3 }
0x1913   :  { %v3479_v54 = vsub.f32 %v18446_v1, %v3477_v50  ;;  %v3482_v8 = vsel %vm98_vm0, %v3480_v55, 0.0 }
0x1914   :  { %3483 = vadd.xlane.f32.xlu0 %v3482_v8 }
0x1915   :  { %v3481_v57 = vmul.f32 %v3479_v54, %v3479_v54 }
0x1917   :  { %v3485_v9 = vsel %vm98_vm0, %v3481_v57, 0.0 }
0x1918   :  { %3486 = vadd.xlane.f32.xlu1 %v3485_v9 }
0x19a1   :  { %v3484_v26 = vpop.xlane.xlu0 %3483 }
0x19a2   :  { %v3488_v27 = vmul.f32 0.03125, %v3484_v26 }
0x19a4   :  { %v3490_v0 = vadd.f32 1e-05, %v3488_v27 }
0x19a5   :  { %v3487_v28 = vpop.xlane.xlu1 %3486 }
0x19a6   :  { %17454 = vrsqrt.f32 %v3490_v0  ;;  %v3489_v29 = vmul.f32 0.03125, %v3487_v28 }
0x19a8   :  { %v3491_v31 = vadd.f32 1e-05, %v3489_v29 }
0x19aa   :  { %17456 = vrsqrt.f32 %v3491_v31 }
0x19b0   :  { %v17455_v34 = vpop.eup %17454 }
0x19b1   :  { %v3494_v36 = vmul.f32 %v17455_v34, %v3478_v3  ;;  %v3596_v3 = vrot.slane %v18506_v46, %v17949_v39 }
0x19b3   :  { %v3500_v40 = vmul.f32 %v3499_v33, %v3494_v36 }
0x19b4   :  { %v17457_v41 = vpop.eup %17456 }
0x19b5   :  { %v3495_v5 = vmul.f32 %v17457_v41, %v3479_v54  ;;  %v3506_v42 = vadd.f32 %v3505_v38, %v3500_v40 }
0x19b7   :  { %v3501_v17 = vmul.f32 %v3499_v33, %v3495_v5  ;;  %15548 = vmatprep.mubr.msk.f32.mxu0 %vm98_vm0, %v3506_v42  ;;  %15570 = vmatprep.mubr.msk.f32.mxu1 %vm98_vm0, %v3506_v42 }
0x19b9   :  { %v3507_v12 = vadd.f32 %v3505_v38, %v3501_v17 }
0x19bb   :  { %15549 = vmatmul.mubr.msk.f32.vlgmr.msra.gmra.mrb[28].mxu0 %vm98_vm0, %v3507_v12  ;;  %15571 = vmatmul.mubr.msk.f32.vlgmr.msra.gmra.mrb[28].mxu1 %vm98_vm0, %v3507_v12 }
0x19bc   :  { %16577 = vmatpush3.bf16.msra.mxu0 %v16574_v11  ;;  %15559 = vmatprep.mubr.msk.f32.mxu0 %vm98_vm0, %v3506_v42 }
0x19bd   :  { %16579 = vmatprep.subr.bf16.mxu0 %v16578_v45 }
0x19c0   :  { %16581 = vmatpush3.bf16.msra.mxu0 %v16578_v45 }
0x19c3   :  { %15560 = vmatmul.mubr.msk.f32.vlgmr.msra.gmra.mrb[30].mxu0 %vm98_vm0, %v3507_v12 }
0x1a8e   :  { %v15550_v52 = vpop.f32.mrb[28].mxu0  ;;  %v15572_v56 = vpop.f32.mrb[28].mxu1 }
0x1a8f   :  { %v3748_v58 = vadd.f32 %v15572_v56, %v3675_v47  ;;  %v3584_v35 = vpop.f32.mrb[29].mxu0  ;;  %v3742_v51 = vpop.f32.mrb[29].mxu1  ;;  %v18522_v6 = vadd.f32 %v15550_v52, %v3511_v48 }
0x1a90   :  { %v18512_v53 = vadd.f32 %v3584_v35, %v3511_v48  ;;  %v3743_v60 = vadd.f32 %v3742_v51, %v3675_v47 }
0x1a92   :  { %4034 = vrot.lane.b32.xlu1 %v18512_v53, %s20155_s0  ;;  %15577 = vmatprep.mubr.msk.f32.mxu0 %vm387_vm1, %v18512_v53  ;;  %v16596_v14 = vpack.c.bf16 %v3748_v58, %v3743_v60  ;;  %v18518_v63 = vpack.i.bf16 %v3748_v58, %v3743_v60  ;;  %v14303_v60 = vld [vmem:[%s20147_s1 + $0x160] sm:$0xff] }
0x1a94   :  { %16597 = vmatprep.subr.bf16.mxu1 %v16596_v14 }
0x1a95   :  { %16599 = vmatpush3.bf16.msra.mxu1 %v16596_v14 }
0x1a96   :  { %v15561_v50 = vpop.f32.mrb[30].mxu0  ;;  %4036 = vrot.lane.b32.xlu1 %v18522_v6, %s20155_s0  ;;  %15587 = vmatprep.subr.mxu1 %v14303_v60 }
0x1a97   :  { %v3669_v55 = vadd.f32 %v15561_v50, %v3596_v3  ;;  %v3663_v54 = vpop.f32.mrb[31].mxu0 }
0x1a98   :  { %v3664_v8 = vadd.f32 %v3663_v54, %v3596_v3 }
0x1a9a   :  { %v18526_v57 = vpack.i.bf16 %v3669_v55, %v3664_v8  ;;  %v16590_v9 = vpack.c.bf16 %v3669_v55, %v3664_v8 }
0x1a9c   :  { %17225 = vrot.lane.b32.xlu0 %v18526_v57, %s20155_s0  ;;  %16592 = vmatprep.subr.msk.bf16.mxu0 %vm17981_vm2, %v16590_v9 }
0x1a9d   :  { %16595 = vmatpush3.bf16.xpose.msk.msra.mxu0 %vm17981_vm2, %v16590_v9 }
0x1aa4   :  { %15578 = vmatmul.mubr.msk.f32.vlgmr.msra.gmra.mrb[32].mxu0 %vm387_vm1, %v18522_v6 }
0x1b04   :  { %v4035_v13 = vpop.permute.xlu1 %4034 }
0x1b05   :  { %15596 = vmatprep.mubr.msk.f32.mxu0 %vm387_vm1, %v4035_v13 }
0x1b08   :  { %v4037_v20 = vpop.permute.xlu1 %4036 }
0x1b0e   :  { %v17226_v15 = vpop.permute.xlu0 %17225 }
0x1b0f   :  { %v17228_v16 = vunpack.i.h.bf16 %v17226_v15  ;;  %v17227_v18 = vunpack.i.l.bf16 %v17226_v15 }
0x1b11   :  { %v16600_v19 = vpack.c.bf16 %v17228_v16, %v17227_v18 }
0x1b13   :  { %16602 = vmatprep.subr.msk.bf16.mxu0 %vm17981_vm2, %v16600_v19 }
0x1b14   :  { %16605 = vmatpush3.bf16.xpose.msk.msra.mxu0 %vm17981_vm2, %v16600_v19 }
0x1b1b   :  { %15597 = vmatmul.mubr.msk.f32.vlgmr.msra.gmra.mrb[34].mxu0 %vm387_vm1, %v4037_v20 }
0x1b77   :  { %v15579_v21 = vpop.f32.mrb[32].mxu0 }
0x1b78   :  { %v3845_v22 = vmul.f32 0.35355338, %v15579_v21  ;;  %v3835_v23 = vpop.f32.mrb[33].mxu0 }
0x1b79   :  { %v3844_v4 = vmul.f32 0.35355338, %v3835_v23 }
0x1b7a   :  { %v3847_v24 = vadd.f32 %v18325_v7, %v3845_v22 }
0x1b7b   :  { %v3846_v62 = vadd.f32 %v18333_v30, %v3844_v4 }
0x1b7c   :  { %v3851_v25 = vsel %vm479_vm3, %v3847_v24, -inf }
0x1b7d   :  { %3852 = vmax.xlane.f32.xlu0 %v3851_v25  ;;  %v3848_v10 = vsel %vm479_vm3, %v3846_v62, -inf }
0x1b7e   :  { %3849 = vmax.xlane.f32.xlu1 %v3848_v10 }
0x1b8f   :  { %17230 = vrot.lane.b32.xlu1 %v18526_v57, %s20153_s28 }
0x1b93   :  { %4325 = vrot.lane.b32.xlu1 %v18522_v6, %s20153_s28 }
0x1bee   :  { %v15598_v11 = vpop.f32.mrb[34].mxu0 }
0x1bef   :  { %v4116_v26 = vpop.f32.mrb[35].mxu0  ;;  %v4126_v12 = vmul.f32 0.35355338, %v15598_v11 }
0x1bf0   :  { %v4125_v27 = vmul.f32 0.35355338, %v4116_v26 }
0x1bf1   :  { %v4128_v45 = vadd.f32 %v18325_v7, %v4126_v12 }
0x1bf2   :  { %v4127_v0 = vadd.f32 %v18333_v30, %v4125_v27 }
0x1bf3   :  { %v4132_v47 = vsel %vm479_vm3, %v4128_v45, -inf }
0x1bf4   :  { %v4129_v28 = vsel %vm479_vm3, %v4127_v0, -inf }
0x1bf5   :  { %4130 = vmax.xlane.f32.xlu1 %v4129_v28 }
0x1c0a   :  { %v3853_v29 = vpop.xlane.xlu0 %3852 }
0x1c0b   :  { %v3855_v31 = vsub.f32 %v3847_v24, %v3853_v29  ;;  %v3850_v32 = vpop.xlane.xlu1 %3849 }
0x1c0c   :  { %v3854_v33 = vsub.f32 %v3846_v62, %v3850_v32 }
0x1c0d   :  { %v3858_v34 = vmul.f32 1.442695, %v3855_v31 }
0x1c0e   :  { %v3856_v36 = vmul.f32 1.442695, %v3854_v33 }
0x1c0f   :  { %v17231_v38 = vpop.permute.xlu1 %17230 }
0x1c10   :  { %17458 = vpow2.f32 %v3856_v36  ;;  %v17233_v40 = vunpack.i.h.bf16 %v17231_v38  ;;  %v17232_v41 = vunpack.i.l.bf16 %v17231_v38 }
0x1c11   :  { %17460 = vpow2.f32 %v3858_v34 }
0x1c12   :  { %v16610_v5 = vpack.c.bf16 %v17233_v40, %v17232_v41 }
0x1c13   :  { %v4326_v48 = vpop.permute.xlu1 %4325 }
0x1c14   :  { %16612 = vmatprep.subr.msk.bf16.mxu0 %vm17981_vm2, %v16610_v5 }
0x1c15   :  { %16615 = vmatpush3.bf16.xpose.msk.msra.mxu0 %vm17981_vm2, %v16610_v5  ;;  %v14304_v5 = vld [vmem:[%s20147_s1 + $0x168] sm:$0xff] }
0x1c1a   :  { %v17459_v42 = vpop.eup %17458 }
0x1c1b   :  { %v3860_v43 = vsel %vm479_vm3, %v17459_v42, 0.0  ;;  %v17461_v44 = vpop.eup %17460 }
0x1c1c   :  { %3861 = vadd.xlane.f32.xlu0 %v3860_v43  ;;  %v3863_v17 = vsel %vm479_vm3, %v17461_v44, 0.0 }
0x1c20   :  { %3864 = vadd.xlane.f32.xlu0 %v3863_v17 }
0x1c36   :  { %4323 = vrot.lane.b32.xlu0 %v18512_v53, %s20153_s28 }
0x1c55   :  { %4133 = vmax.xlane.f32.xlu0 %v4132_v47 }
0x1c82   :  { %v4131_v52 = vpop.xlane.xlu1 %4130 }
0x1c83   :  { %v4135_v56 = vsub.f32 %v4127_v0, %v4131_v52 }
0x1c85   :  { %v4137_v58 = vmul.f32 1.442695, %v4135_v56 }
0x1c87   :  { %17462 = vpow2.f32 %v4137_v58 }
0x1c91   :  { %v18562_v35 = vpop.eup %17462 }
0x1c92   :  { %v4141_v51 = vsel %vm479_vm3, %v18562_v35, 0.0 }
0x1c93   :  { %4142 = vadd.xlane.f32.xlu0 %v4141_v51 }
0x1ca9   :  { %v3862_v14 = vpop.xlane.xlu0 %3861  ;;  %17235 = vrot.lane.b32.xlu0 %v18518_v63, %s20155_s0 }
0x1caa   :  { %17464 = vrcp.f32 %v3862_v14 }
0x1cad   :  { %v3865_v3 = vpop.xlane.xlu0 %3864 }
0x1cae   :  { %17466 = vrcp.f32 %v3865_v3 }
0x1cb1   :  { %v4324_v50 = vpop.permute.xlu0 %4323 }
0x1cb2   :  { %15615 = vmatprep.mubr.msk.f32.mxu0 %vm387_vm1, %v4324_v50 }
0x1cb3   :  { %15616 = vmatmul.mubr.msk.f32.vlgmr.msra.gmra.mrb[36].mxu0 %vm387_vm1, %v4326_v48 }
0x1cb4   :  { %v17465_v55 = vpop.eup %17464 }
0x1cb5   :  { %v3868_v54 = vmul.f32 %v17465_v55, %v17459_v42 }
0x1cb7   :  { %15584 = vmatprep.mubr.msk.f32.mxu1 %vm479_vm3, %v3868_v54 }
0x1cb8   :  { %v17467_v8 = vpop.eup %17466 }
0x1cb9   :  { %v3869_v9 = vmul.f32 %v17467_v8, %v17461_v44 }
0x1cbb   :  { %15585 = vmatmul.mubr.msk.f32.vlgmr.msra.gmra.mrb[30].mxu1 %vm479_vm3, %v3869_v9 }
0x1cbc   :  { %15588 = vmatpush3.msra.mxu1 %v14303_v60 }
0x1ce2   :  { %v4134_v13 = vpop.xlane.xlu0 %4133 }
0x1ce3   :  { %v4136_v15 = vsub.f32 %v4128_v45, %v4134_v13 }
0x1ce5   :  { %v4139_v16 = vmul.f32 1.442695, %v4136_v15 }
0x1ce7   :  { %17468 = vpow2.f32 %v4139_v16 }
0x1cf1   :  { %v17469_v18 = vpop.eup %17468 }
0x1cf2   :  { %v4144_v19 = vsel %vm479_vm3, %v17469_v18, 0.0 }
0x1cf3   :  { %4145 = vadd.xlane.f32.xlu1 %v4144_v19 }
0x1d04   :  { %17240 = vrot.lane.b32.xlu1 %v18526_v57, %s20154_s30 }
0x1d08   :  { %4610 = vrot.lane.b32.xlu1 %v18512_v53, %s20154_s30 }
0x1d0c   :  { %4612 = vrot.lane.b32.xlu1 %v18522_v6, %s20154_s30 }
0x1d20   :  { %v4143_v20 = vpop.xlane.xlu0 %4142 }
0x1d21   :  { %17470 = vrcp.f32 %v4143_v20 }
0x1d24   :  { %v17236_v21 = vpop.permute.xlu0 %17235 }
0x1d25   :  { %v17238_v22 = vunpack.i.h.bf16 %v17236_v21  ;;  %v17237_v23 = vunpack.i.l.bf16 %v17236_v21 }
0x1d27   :  { %v16606_v4 = vpack.c.bf16 %v17238_v22, %v17237_v23 }
0x1d29   :  { %16607 = vmatprep.subr.bf16.mxu1 %v16606_v4 }
0x1d2b   :  { %v17471_v32 = vpop.eup %17470 }
0x1d2c   :  { %v4149_v40 = vmul.f32 %v17471_v32, %v18562_v35 }
0x1d80   :  { %v4146_v24 = vpop.xlane.xlu1 %4145 }
0x1d81   :  { %17472 = vrcp.f32 %v4146_v24 }
0x1d84   :  { %v17241_v62 = vpop.permute.xlu1 %17240 }
0x1d85   :  { %v17243_v25 = vunpack.i.h.bf16 %v17241_v62  ;;  %v17242_v10 = vunpack.i.l.bf16 %v17241_v62 }
0x1d86   :  { %v15617_v11 = vpop.f32.mrb[36].mxu0 }
0x1d87   :  { %v16620_v57 = vpack.c.bf16 %v17243_v25, %v17242_v10  ;;  %v4415_v26 = vmul.f32 0.35355338, %v15617_v11  ;;  %v4405_v27 = vpop.f32.mrb[37].mxu0 }
0x1d88   :  { %v4414_v53 = vmul.f32 0.35355338, %v4405_v27  ;;  %v4611_v0 = vpop.permute.xlu1 %4610  ;;  %v14305_v27 = vld [vmem:[%s20147_s1 + $0x170] sm:$0xff] }
0x1d89   :  { %16622 = vmatprep.subr.msk.bf16.mxu0 %vm17981_vm2, %v16620_v57  ;;  %15634 = vmatprep.mubr.msk.f32.mxu0 %vm387_vm1, %v4611_v0  ;;  %v4417_v6 = vadd.f32 %v18325_v7, %v4415_v26 }
0x1d8a   :  { %16625 = vmatpush3.bf16.xpose.msk.msra.mxu0 %vm17981_vm2, %v16620_v57  ;;  %v4416_v28 = vadd.f32 %v18333_v30, %v4414_v53 }
0x1d8b   :  { %v4421_v29 = vsel %vm479_vm3, %v4417_v6, -inf  ;;  %v17473_v36 = vpop.eup %17472 }
0x1d8c   :  { %4422 = vmax.xlane.f32.xlu1 %v4421_v29  ;;  %v4418_v31 = vsel %vm479_vm3, %v4416_v28, -inf  ;;  %v4613_v38 = vpop.permute.xlu1 %4612  ;;  %v4150_v41 = vmul.f32 %v17473_v36, %v17469_v18 }
0x1d8d   :  { %4419 = vmax.xlane.f32.xlu0 %v4418_v31 }
0x1d8e   :  { %v15586_v33 = vpop.f32.mrb[30].mxu1 }
0x1d8f   :  { %v3942_v34 = vpop.f32.mrb[31].mxu1 }
0x1d90   :  { %15589 = vmatprep.mubr.msk.f32.mxu1 %vm387_vm1, %v3942_v34  ;;  %v14306_v34 = vld [vmem:[%s20147_s1 + $0x178] sm:$0xff] }
0x1d91   :  { %15590 = vmatmul.mubr.msk.f32.vlgmr.msra.gmra.mrb[32].mxu1 %vm387_vm1, %v15586_v33  ;;  %15635 = vmatmul.mubr.msk.f32.vlgmr.msra.gmra.mrb[38].mxu0 %vm387_vm1, %v4613_v38 }
0x1d92   :  { %16609 = vmatpush3.bf16.msra.mxu1 %v16606_v4  ;;  %15603 = vmatprep.mubr.msk.f32.mxu1 %vm479_vm3, %v4149_v40 }
0x1d93   :  { %15606 = vmatprep.subr.mxu1 %v14304_v5 }
0x1d95   :  { %15604 = vmatmul.mubr.msk.f32.vlgmr.msra.gmra.mrb[34].mxu1 %vm479_vm3, %v4150_v41 }
0x1d96   :  { %15607 = vmatpush3.msra.mxu1 %v14304_v5 }
0x1e19   :  { %v4423_v42 = vpop.xlane.xlu1 %4422 }
0x1e1a   :  { %v4425_v43 = vsub.f32 %v4417_v6, %v4423_v42  ;;  %v4420_v44 = vpop.xlane.xlu0 %4419  ;;  %v3754_v42 = vrot.slane %v18506_v46, %v18110_v49 }
0x1e1b   :  { %v4424_v17 = vsub.f32 %v4416_v28, %v4420_v44 }
0x1e1c   :  { %v4428_v12 = vmul.f32 1.442695, %v4425_v43  ;;  %v3756_v43 = vadd.f32 %v3754_v42, %v18446_v1 }
0x1e1d   :  { %v4426_v45 = vmul.f32 1.442695, %v4424_v17  ;;  %v3755_v17 = vadd.f32 %v3754_v42, %v18444_v59 }
0x1e1e   :  { %17474 = vpow2.f32 %v4428_v12 }
0x1e1f   :  { %17476 = vpow2.f32 %v4426_v45 }
0x1e28   :  { %v17475_v47 = vpop.eup %17474 }
0x1e29   :  { %v4433_v48 = vsel %vm479_vm3, %v17475_v47, 0.0  ;;  %v17477_v52 = vpop.eup %17476 }
0x1e2a   :  { %4434 = vadd.xlane.f32.xlu0 %v4433_v48  ;;  %v4430_v56 = vsel %vm479_vm3, %v17477_v52, 0.0 }
0x1e2e   :  { %4431 = vadd.xlane.f32.xlu0 %v4430_v56 }
0x1e44   :  { %17245 = vrot.lane.b32.xlu0 %v18518_v63, %s20153_s28 }
0x1e64   :  { %v15636_v58 = vpop.f32.mrb[38].mxu0 }
0x1e65   :  { %v4692_v35 = vpop.f32.mrb[39].mxu0  ;;  %v4702_v51 = vmul.f32 0.35355338, %v15636_v58 }
0x1e66   :  { %v4701_v60 = vmul.f32 0.35355338, %v4692_v35 }
0x1e67   :  { %v4704_v55 = vadd.f32 %v18325_v7, %v4702_v51 }
0x1e68   :  { %v4703_v14 = vadd.f32 %v18333_v30, %v4701_v60  ;;  %v15605_v3 = vpop.f32.mrb[34].mxu1 }
0x1e69   :  { %v4231_v50 = vpop.f32.mrb[35].mxu1  ;;  %v4708_v8 = vsel %vm479_vm3, %v4704_v55, -inf }
0x1e6a   :  { %15608 = vmatprep.mubr.msk.f32.mxu1 %vm387_vm1, %v4231_v50  ;;  %v4705_v54 = vsel %vm479_vm3, %v4703_v14, -inf  ;;  %v14347_v50 = vld [vmem:[%s20108_s7 + $0x40] sm:$0xff] }
0x1e6b   :  { %15609 = vmatmul.mubr.msk.f32.vlgmr.msra.gmra.mrb[32].mxu1 %vm387_vm1, %v15605_v3  ;;  %4706 = vmax.xlane.f32.xlu1 %v4705_v54 }
0x1e6f   :  { %4709 = vmax.xlane.f32.xlu1 %v4708_v8  ;;  %v14349_v8 = vld [vmem:[%s20108_s7 + $0x50] sm:$0xff] }
0x1eb7   :  { %v4435_v9 = vpop.xlane.xlu0 %4434 }
0x1eb8   :  { %17478 = vrcp.f32 %v4435_v9  ;;  %v14350_v9 = vld [vmem:[%s20108_s7 + $0x58] sm:$0xff] }
0x1ebb   :  { %v4432_v13 = vpop.xlane.xlu0 %4431 }
0x1ebc   :  { %17480 = vrcp.f32 %v4432_v13  ;;  %v16634_v13 = vpack.c.bf16 %v14350_v9, %v14349_v8 }
0x1ebf   :  { %v17246_v15 = vpop.permute.xlu0 %17245 }
0x1ec0   :  { %v17248_v30 = vunpack.i.h.bf16 %v17246_v15  ;;  %v17247_v16 = vunpack.i.l.bf16 %v17246_v15  ;;  %v14355_v15 = vld [vmem:[%s20110_s9 + $0x80] sm:$0xff] }
0x1ec2   :  { %v16616_v18 = vpack.c.bf16 %v17248_v30, %v17247_v16  ;;  %v17479_v7 = vpop.eup %17478  ;;  %v14356_v30 = vld [vmem:[%s20110_s9 + $0x88] sm:$0xff]  ;;  %v14357_v16 = vld [vmem:[%s20110_s9 + $0x90] sm:$0xff] }
0x1ec3   :  { %v4439_v21 = vmul.f32 %v17479_v7, %v17475_v47  ;;  %v14358_v7 = vld [vmem:[%s20110_s9 + $0x98] sm:$0xff] }
0x1ec4   :  { %16617 = vmatprep.subr.bf16.mxu1 %v16616_v18 }
0x1ec5   :  { %16619 = vmatpush3.bf16.msra.mxu1 %v16616_v18  ;;  %v16638_v18 = vpack.c.bf16 %v14356_v30, %v14355_v15 }
0x1ec6   :  { %v17481_v19 = vpop.eup %17480  ;;  %15625 = vmatprep.subr.mxu1 %v14305_v27 }
0x1ec7   :  { %v4438_v20 = vmul.f32 %v17481_v19, %v17477_v52  ;;  %v16642_v19 = vpack.c.bf16 %v14358_v7, %v14357_v16 }
0x1ec9   :  { %15622 = vmatprep.mubr.msk.f32.mxu1 %vm479_vm3, %v4438_v20  ;;  %v14359_v20 = vld [vmem:[%s20110_s9 + $0xa0] sm:$0xff] }
0x1eca   :  { %15623 = vmatmul.mubr.msk.f32.vlgmr.msra.gmra.mrb[36].mxu1 %vm479_vm3, %v4439_v21  ;;  %v14360_v21 = vld [vmem:[%s20110_s9 + $0xa8] sm:$0xff] }
0x1ecb   :  { %15626 = vmatpush3.msra.mxu1 %v14305_v27 }
0x1ef8   :  { %v4707_v22 = vpop.xlane.xlu1 %4706 }
0x1ef9   :  { %v4711_v23 = vsub.f32 %v4703_v14, %v4707_v22  ;;  %v16646_v22 = vpack.c.bf16 %v14360_v21, %v14359_v20 }
0x1efb   :  { %v4713_v62 = vmul.f32 1.442695, %v4711_v23 }
0x1efc   :  { %v4710_v4 = vpop.xlane.xlu1 %4709 }
0x1efd   :  { %v4712_v24 = vsub.f32 %v4704_v55, %v4710_v4  ;;  %v14348_v55 = vld [vmem:[%s20108_s7 + $0x48] sm:$0xff] }
0x1efe   :  { %v16630_v54 = vpack.c.bf16 %v14348_v55, %v14347_v50 }
0x1eff   :  { %v4715_v25 = vmul.f32 1.442695, %v4712_v24 }
0x1f00   :  { %16631 = vmatprep.subr.bf16.mxu0 %v16630_v54 }
0x1f01   :  { %17482 = vpow2.f32 %v4715_v25  ;;  %16633 = vmatpush3.bf16.msra.mxu0 %v16630_v54 }
0x1f02   :  { %17484 = vpow2.f32 %v4713_v62  ;;  %16635 = vmatprep.subr.bf16.mxu0 %v16634_v13 }
0x1f05   :  { %16637 = vmatpush3.bf16.msra.mxu0 %v16634_v13 }
0x1f0b   :  { %v17483_v10 = vpop.eup %17482 }
0x1f0c   :  { %v4720_v11 = vsel %vm479_vm3, %v17483_v10, 0.0  ;;  %v17485_v57 = vpop.eup %17484 }
0x1f0d   :  { %4721 = vadd.xlane.f32.xlu1 %v4720_v11  ;;  %v4717_v26 = vsel %vm479_vm3, %v17485_v57, 0.0  ;;  %v14346_v11 = vld [vmem:[%s20112_s11 + $0x4] sm:$0x3] }
0x1f11   :  { %4718 = vadd.xlane.f32.xlu1 %v4717_v26 }
0x1f22   :  { %17250 = vrot.lane.b32.xlu1 %v18518_v63, %s20154_s30 }
0x1f9a   :  { %v4722_v53 = vpop.xlane.xlu1 %4721 }
0x1f9b   :  { %17486 = vrcp.f32 %v4722_v53  ;;  %v4934_v53 = vrot.slane %v14346_v11, %v17949_v39 }
0x1f9d   :  { %v15624_v0 = vpop.f32.mrb[36].mxu1 }
0x1f9e   :  { %v4719_v6 = vpop.xlane.xlu1 %4718  ;;  %v4518_v28 = vpop.f32.mrb[37].mxu1 }
0x1f9f   :  { %17488 = vrcp.f32 %v4719_v6  ;;  %15627 = vmatprep.mubr.msk.f32.mxu1 %vm387_vm1, %v4518_v28 }
0x1fa0   :  { %15628 = vmatmul.mubr.msk.f32.vlgmr.msra.gmra.mrb[32].mxu1 %vm387_vm1, %v15624_v0 }
0x1fa2   :  { %v17251_v29 = vpop.permute.xlu1 %17250 }
0x1fa3   :  { %v17253_v31 = vunpack.i.h.bf16 %v17251_v29  ;;  %v17252_v32 = vunpack.i.l.bf16 %v17251_v29 }
0x1fa5   :  { %v16626_v33 = vpack.c.bf16 %v17253_v31, %v17252_v32  ;;  %v17487_v63 = vpop.eup %17486 }
0x1fa6   :  { %v4726_v40 = vmul.f32 %v17487_v63, %v17483_v10 }
0x1fa7   :  { %16627 = vmatprep.subr.bf16.mxu1 %v16626_v33 }
0x1fa8   :  { %16629 = vmatpush3.bf16.msra.mxu1 %v16626_v33  ;;  %v14361_v33 = vld [vmem:[%s20110_s9 + $0xb0] sm:$0xff] }
0x1fa9   :  { %v17489_v36 = vpop.eup %17488  ;;  %15644 = vmatprep.subr.mxu1 %v14306_v34 }
0x1faa   :  { %v4725_v38 = vmul.f32 %v17489_v36, %v17485_v57  ;;  %v4928_v57 = vrot.slane %v14346_v11, %v17943_v37  ;;  %v14352_v36 = vld [vmem:[%s20109_s8 + $0x2] ss:$0 sm:$0xff] }
0x1fac   :  { %15641 = vmatprep.mubr.msk.f32.mxu1 %vm479_vm3, %v4725_v38 }
0x1fad   :  { %15642 = vmatmul.mubr.msk.f32.vlgmr.msra.gmra.mrb[38].mxu1 %vm479_vm3, %v4726_v40 }
0x1fae   :  { %15645 = vmatpush3.msra.mxu1 %v14306_v34  ;;  %v14362_v34 = vld [vmem:[%s20110_s9 + $0xb8] sm:$0xff]  ;;  %s20156_s9 = sld [smem:[#allocation6_spill]] }
0x1faf   :  { %16639 = vmatprep.subr.bf16.mxu1 %v16638_v18  ;;  %v16650_v63 = vpack.c.bf16 %v14362_v34, %v14361_v33  ;;  %v5368_v33 = vld [vmem:[%s20113_s12 + $0x48] sm:$0xff] }
0x2080   :  { %v15643_v41 = vpop.f32.mrb[38].mxu1 }
0x2081   :  { %v4805_v5 = vpop.f32.mrb[39].mxu1 }
0x2082   :  { %15646 = vmatprep.mubr.msk.f32.mxu1 %vm387_vm1, %v4805_v5 }
0x2083   :  { %15647 = vmatmul.mubr.msk.f32.vlgmr.msra.gmra.mrb[32].mxu1 %vm387_vm1, %v15643_v41 }
0x2084   :  { %16641 = vmatpush3.bf16.msra.mxu1 %v16638_v18 }
0x2085   :  { %16643 = vmatprep.subr.bf16.mxu1 %v16642_v19 }
0x2088   :  { %16645 = vmatpush3.bf16.msra.mxu1 %v16642_v19 }
0x2089   :  { %16647 = vmatprep.subr.bf16.mxu1 %v16646_v22 }
0x208c   :  { %16649 = vmatpush3.bf16.msra.mxu1 %v16646_v22 }
0x208d   :  { %16651 = vmatprep.subr.bf16.mxu1 %v16650_v63 }
0x2090   :  { %16653 = vmatpush3.bf16.msra.mxu1 %v16650_v63 }
0x2156   :  { %v15648_v44 = vpop.f32.mrb[32].mxu1 }
0x2157   :  { %v18632_v12 = vadd.f32 %v15648_v44, %v3756_v43  ;;  %v4886_v45 = vpop.f32.mrb[33].mxu1  ;;  %v18695_v44 = vld [vmem:[%s20156_s9 + $0x8] sm:$0xff] }
0x2158   :  { %v18634_v47 = vadd.f32 %v4886_v45, %v3755_v17  ;;  %v5379_v17 = vsel %vm98_vm0, %v18695_v44, 0.0 }
0x2159   :  { %v4902_v48 = vsel %vm98_vm0, %v18632_v12, 0.0 }
0x215a   :  { %4903 = vadd.xlane.f32.xlu1 %v4902_v48  ;;  %v4899_v52 = vsel %vm98_vm0, %v18634_v47, 0.0  ;;  %v14366_v48 = vld [vmem:[%s20111_s10 + $0x2] ss:$0 sm:$0xff] }
0x215b   :  { %4900 = vadd.xlane.f32.xlu0 %v4899_v52 }
0x215e   :  { %5380 = vadd.xlane.f32.xlu1 %v5379_v17 }
0x21e7   :  { %v4904_v56 = vpop.xlane.xlu1 %4903 }
0x21e8   :  { %v4906_v46 = vmul.f32 0.03125, %v4904_v56  ;;  %v4901_v58 = vpop.xlane.xlu0 %4900 }
0x21e9   :  { %v4905_v1 = vmul.f32 0.03125, %v4901_v58 }
0x21ea   :  { %v4908_v35 = vsub.f32 %v18632_v12, %v4906_v46 }
0x21eb   :  { %v4907_v59 = vsub.f32 %v18634_v47, %v4905_v1 }
0x21ec   :  { %v4910_v14 = vmul.f32 %v4908_v35, %v4908_v35 }
0x21ed   :  { %v4909_v51 = vmul.f32 %v4907_v59, %v4907_v59 }
0x21ee   :  { %v4914_v3 = vsel %vm98_vm0, %v4910_v14, 0.0 }
0x21ef   :  { %v4911_v60 = vsel %vm98_vm0, %v4909_v51, 0.0 }
0x21f0   :  { %4912 = vadd.xlane.f32.xlu0 %v4911_v60 }
0x21f4   :  { %4915 = vadd.xlane.f32.xlu0 %v4914_v3 }
0x227d   :  { %v4913_v23 = vpop.xlane.xlu0 %4912 }
0x227e   :  { %v4917_v4 = vmul.f32 0.03125, %v4913_v23 }
0x2280   :  { %v4919_v24 = vadd.f32 1e-05, %v4917_v4  ;;  %v14372_v4 = vld [vmem:[%s20113_s12 + $0xa0] sm:$0xff] }
0x2281   :  { %v4916_v62 = vpop.xlane.xlu0 %4915 }
0x2282   :  { %17490 = vrsqrt.f32 %v4919_v24  ;;  %v4918_v25 = vmul.f32 0.03125, %v4916_v62  ;;  %v14373_v24 = vld [vmem:[%s20113_s12 + $0xa8] sm:$0xff] }
0x2283   :  { %v16654_v62 = vpack.c.bf16 %v14373_v24, %v14372_v4 }
0x2284   :  { %v4920_v10 = vadd.f32 1e-05, %v4918_v25  ;;  %v14374_v25 = vld [vmem:[%s20113_s12 + $0xb0] sm:$0xff] }
0x2285   :  { %16655 = vmatprep.subr.bf16.mxu0 %v16654_v62 }
0x2286   :  { %17492 = vrsqrt.f32 %v4920_v10  ;;  %v14375_v10 = vld [vmem:[%s20113_s12 + $0xb8] sm:$0xff] }
0x2287   :  { %v16658_v11 = vpack.c.bf16 %v14375_v10, %v14374_v25  ;;  %v5365_v25 = vld [vmem:[%s20113_s12 + $0x30] sm:$0xff]  ;;  %v5366_v10 = vld [vmem:[%s20113_s12 + $0x38] sm:$0xff] }
0x228c   :  { %v17491_v26 = vpop.eup %17490 }
0x228d   :  { %v4923_v27 = vmul.f32 %v17491_v26, %v4907_v59  ;;  %v18708_v59 = vld [vmem:[%s20156_s9] sm:$0xff]  ;;  %v5360_v26 = vld [vmem:[%s20113_s12 + $0x8] sm:$0xff] }
0x228e   :  { %v5376_v60 = vsel %vm98_vm0, %v18708_v59, 0.0 }
0x228f   :  { %v4929_v0 = vmul.f32 %v4928_v57, %v4923_v27 }
0x2290   :  { %v17493_v6 = vpop.eup %17492 }
0x2291   :  { %v4924_v28 = vmul.f32 %v17493_v6, %v4908_v35  ;;  %v4935_v29 = vadd.f32 %v4934_v53, %v4929_v0  ;;  %v14377_v0 = vld [vmem:[%s20113_s12 + $0xc8] sm:$0xff] }
0x2293   :  { %v4930_v31 = vmul.f32 %v4928_v57, %v4924_v28  ;;  %15657 = vmatprep.mubr.msk.f32.mxu0 %vm98_vm0, %v4935_v29  ;;  %v5359_v57 = vld [vmem:[%s20113_s12] sm:$0xff]  ;;  %v5361_v28 = vld [vmem:[%s20113_s12 + $0x10] sm:$0xff]  ;;  %v5362_v29 = vld [vmem:[%s20113_s12 + $0x18] sm:$0xff] }
0x2294   :  { %v16670_v27 = vpack.c.bf16 %v5360_v26, %v5359_v57  ;;  %v16682_v57 = vpack.c.bf16 %v5366_v10, %v5365_v25  ;;  %v18830_v26 = vld [vmem:[%s20114_s13 + $0x4] sm:$0xf] }
0x2295   :  { %v4936_v32 = vadd.f32 %v4934_v53, %v4930_v31  ;;  %v14376_v53 = vld [vmem:[%s20113_s12 + $0xc0] sm:$0xff]  ;;  %v16674_v31 = vpack.c.bf16 %v5362_v29, %v5361_v28 }
0x2296   :  { %16671 = vmatprep.subr.bf16.mxu1 %v16670_v27  ;;  %v16662_v6 = vpack.c.bf16 %v14377_v0, %v14376_v53  ;;  %v18837_v0 = vld [vmem:[%s20114_s13] sm:$0xf] }
0x2297   :  { %15658 = vmatmul.mubr.msk.f32.vlgmr.msra.gmra.mrb[40].mxu0 %vm98_vm0, %v4936_v32  ;;  %v5367_v32 = vld [vmem:[%s20113_s12 + $0x40] sm:$0xff] }
0x2298   :  { %16657 = vmatpush3.bf16.msra.mxu0 %v16654_v62  ;;  %v16686_v34 = vpack.c.bf16 %v5368_v33, %v5367_v32 }
0x2299   :  { %16659 = vmatprep.subr.bf16.mxu0 %v16658_v11 }
0x229c   :  { %16661 = vmatpush3.bf16.msra.mxu0 %v16658_v11 }
0x229d   :  { %16663 = vmatprep.subr.bf16.mxu0 %v16662_v6 }
0x236a   :  { %v15659_v38 = vpop.f32.mrb[40].mxu0 }
0x236b   :  { %v5028_v40 = vadd.f32 %v15659_v38, %v14352_v36  ;;  %v5022_v41 = vpop.f32.mrb[41].mxu0 }
0x236c   :  { %v5023_v5 = vadd.f32 %v14352_v36, %v5022_v41 }
0x236d   :  { %v5032_v43 = vmax.f32 %v5028_v40, 0.0 }
0x236e   :  { %v5031_v42 = vmax.f32 %v5023_v5, 0.0 }
0x2370   :  { %15676 = vmatprep.mubr.msk.f32.mxu1 %vm1670_vm4, %v5031_v42 }
0x2371   :  { %15677 = vmatmul.mubr.msk.f32.vlgmr.msra.gmra.mrb[40].mxu1 %vm1670_vm4, %v5032_v43 }
0x2372   :  { %16673 = vmatpush3.bf16.msra.mxu1 %v16670_v27  ;;  %v5197_v27 = vrot.slane %v18830_v26, %v17949_v39 }
0x2373   :  { %16675 = vmatprep.subr.bf16.mxu1 %v16674_v31 }
0x2376   :  { %16677 = vmatpush3.bf16.msra.mxu1 %v16674_v31  ;;  %v5417_v31 = vrot.slane %v18837_v0, %v17943_v37 }
0x2377   :  { %16687 = vmatprep.subr.bf16.mxu1 %v16686_v34 }
0x2444   :  { %v15678_v45 = vpop.f32.mrb[40].mxu1 }
0x2445   :  { %v5114_v52 = vpop.f32.mrb[41].mxu1  ;;  %v5124_v56 = vadd.f32 %v18632_v12, %v15678_v45  ;;  %v5381_v12 = vpop.xlane.xlu1 %5380 }
0x2446   :  { %v5123_v46 = vadd.f32 %v18634_v47, %v5114_v52  ;;  %v5383_v3 = vmul.f32 0.03125, %v5381_v12  ;;  %v5358_v12 = vld [vmem:[%s20115_s14] sm:$0x3] }
0x2447   :  { %v5134_v1 = vadd.f32 %v14366_v48, %v5124_v56  ;;  %v14367_v56 = vld [vmem:[%s20115_s14 + $0x2] sm:$0x3] }
0x2448   :  { %v5133_v58 = vadd.f32 %v14366_v48, %v5123_v46  ;;  %v18716_v8 = vsub.f32 %v18695_v44, %v5383_v3  ;;  %v18775_v46 = vrot.slane %v14367_v56, %v17943_v37  ;;  %v14378_v3 = vld [vmem:[%s20113_s12 + $0xd0] sm:$0xff] }
0x2449   :  { %v5159_v51 = vsel %vm98_vm0, %v5134_v1, 0.0 }
0x244a   :  { %v5156_v35 = vsel %vm98_vm0, %v5133_v58, 0.0  ;;  %v5387_v7 = vmul.f32 %v18716_v8, %v18716_v8 }
0x244b   :  { %5157 = vadd.xlane.f32.xlu0 %v5156_v35  ;;  %v18779_v35 = vrot.slane %v14367_v56, %v17949_v39 }
0x244c   :  { %v5391_v21 = vsel %vm98_vm0, %v5387_v7, 0.0 }
0x244f   :  { %5160 = vadd.xlane.f32.xlu0 %v5159_v51 }
0x2453   :  { %5377 = vadd.xlane.f32.xlu0 %v5376_v60 }
0x24d8   :  { %v5158_v14 = vpop.xlane.xlu0 %5157 }
0x24d9   :  { %v5162_v47 = vmul.f32 0.03125, %v5158_v14 }
0x24db   :  { %v18713_v50 = vsub.f32 %v5133_v58, %v5162_v47 }
0x24dc   :  { %v5161_v55 = vpop.xlane.xlu0 %5160 }
0x24dd   :  { %v5163_v54 = vmul.f32 0.03125, %v5161_v55  ;;  %v5166_v9 = vmul.f32 %v18713_v50, %v18713_v50 }
0x24df   :  { %v18720_v13 = vsub.f32 %v5134_v1, %v5163_v54  ;;  %v5168_v15 = vsel %vm98_vm0, %v5166_v9, 0.0  ;;  %v5405_v54 = vrot.slane %v5358_v12, %v17943_v37 }
0x24e0   :  { %5169 = vadd.xlane.f32.xlu0 %v5168_v15  ;;  %v5378_v30 = vpop.xlane.xlu0 %5377 }
0x24e1   :  { %v5382_v16 = vmul.f32 0.03125, %v5378_v30  ;;  %v5167_v18 = vmul.f32 %v18720_v13, %v18720_v13 }
0x24e3   :  { %v18728_v19 = vsub.f32 %v18708_v59, %v5382_v16  ;;  %v5171_v20 = vsel %vm98_vm0, %v5167_v18, 0.0  ;;  %v5411_v18 = vrot.slane %v5358_v12, %v17949_v39 }
0x24e4   :  { %5172 = vadd.xlane.f32.xlu1 %v5171_v20  ;;  %v5363_v20 = vld [vmem:[%s20113_s12 + $0x20] sm:$0xff] }
0x24e5   :  { %v5386_v22 = vmul.f32 %v18728_v19, %v18728_v19 }
0x24e7   :  { %v5388_v23 = vsel %vm98_vm0, %v5386_v22, 0.0 }
0x24e8   :  { %5392 = vadd.xlane.f32.xlu1 %v5391_v21  ;;  %5389 = vadd.xlane.f32.xlu0 %v5388_v23  ;;  %v5364_v21 = vld [vmem:[%s20113_s12 + $0x28] sm:$0xff]  ;;  %v5369_v23 = vld [vmem:[%s20113_s12 + $0x50] sm:$0xff] }
0x24e9   :  { %v16678_v24 = vpack.c.bf16 %v5364_v21, %v5363_v20 }
0x256d   :  { %v5170_v63 = vpop.xlane.xlu0 %5169 }
0x256e   :  { %v5174_v36 = vmul.f32 0.03125, %v5170_v63 }
0x2570   :  { %v5176_v38 = vadd.f32 1e-05, %v5174_v36 }
0x2571   :  { %v5173_v40 = vpop.xlane.xlu1 %5172 }
0x2572   :  { %17494 = vrsqrt.f32 %v5176_v38  ;;  %v5175_v41 = vmul.f32 0.03125, %v5173_v40 }
0x2574   :  { %v5177_v5 = vadd.f32 1e-05, %v5175_v41 }
0x2575   :  { %v5393_v42 = vpop.xlane.xlu1 %5392  ;;  %v5390_v43 = vpop.xlane.xlu0 %5389 }
0x2576   :  { %17496 = vrsqrt.f32 %v5177_v5  ;;  %v5395_v17 = vmul.f32 0.03125, %v5393_v42  ;;  %v5394_v45 = vmul.f32 0.03125, %v5390_v43 }
0x2578   :  { %v5397_v48 = vadd.f32 1e-05, %v5395_v17  ;;  %v5396_v52 = vadd.f32 1e-05, %v5394_v45  ;;  %v5581_v17 = vrot.slane %v18837_v0, %v17975_v61 }
0x257a   :  { %17498 = vrsqrt.f32 %v5397_v48 }
0x257b   :  { %17500 = vrsqrt.f32 %v5396_v52  ;;  %v5502_v52 = vrot.slane %v18837_v0, %v17949_v39 }
0x257c   :  { %v17495_v58 = vpop.eup %17494 }
0x257d   :  { %v5180_v1 = vmul.f32 %v17495_v58, %v18713_v50  ;;  %v14379_v50 = vld [vmem:[%s20113_s12 + $0xd8] sm:$0xff] }
0x257e   :  { %v16666_v16 = vpack.c.bf16 %v14379_v50, %v14378_v3 }
0x257f   :  { %v5186_v51 = vmul.f32 %v18775_v46, %v5180_v1 }
0x2580   :  { %v17497_v60 = vpop.eup %17496 }
0x2581   :  { %v5181_v14 = vmul.f32 %v17497_v60, %v18720_v13  ;;  %v5192_v47 = vadd.f32 %v18779_v35, %v5186_v51 }
0x2583   :  { %15687 = vmatprep.mubr.msk.f32.mxu0 %vm98_vm0, %v5192_v47  ;;  %v5187_v55 = vmul.f32 %v18775_v46, %v5181_v14 }
0x2584   :  { %v17499_v9 = vpop.eup %17498 }
0x2585   :  { %v17501_v15 = vpop.eup %17500  ;;  %v5401_v13 = vmul.f32 %v17499_v9, %v18716_v8  ;;  %v5193_v30 = vadd.f32 %v18779_v35, %v5187_v55 }
0x2586   :  { %v5400_v7 = vmul.f32 %v17501_v15, %v18728_v19  ;;  %v5370_v19 = vld [vmem:[%s20113_s12 + $0x58] sm:$0xff] }
0x2587   :  { %15688 = vmatmul.mubr.msk.f32.vlgmr.msra.gmra.mrb[42].mxu0 %vm98_vm0, %v5193_v30  ;;  %v5407_v22 = vmul.f32 %v5405_v54, %v5401_v13  ;;  %v16690_v11 = vpack.c.bf16 %v5370_v19, %v5369_v23 }
0x2588   :  { %16665 = vmatpush3.bf16.msra.mxu0 %v16662_v6  ;;  %15698 = vmatprep.mubr.msk.f32.mxu0 %vm98_vm0, %v5192_v47  ;;  %v5406_v8 = vmul.f32 %v5405_v54, %v5400_v7  ;;  %v18886_v7 = vld [vmem:[%s20157_s5 + $0x8] sm:$0xff] }
0x2589   :  { %16667 = vmatprep.subr.bf16.mxu0 %v16666_v16  ;;  %v5413_v4 = vadd.f32 %v5411_v18, %v5407_v22  ;;  %v18891_v22 = vld [vmem:[%s20157_s5] sm:$0xff] }
0x258a   :  { %v5412_v62 = vadd.f32 %v5411_v18, %v5406_v8 }
0x258c   :  { %16669 = vmatpush3.bf16.msra.mxu0 %v16666_v16  ;;  %15709 = vmatprep.mubr.msk.f32.mxu1 %vm98_vm0, %v5412_v62 }
0x258d   :  { %15710 = vmatmul.mubr.msk.f32.vlgmr.msra.gmra.mrb[42].mxu1 %vm98_vm0, %v5413_v4  ;;  %16679 = vmatprep.subr.bf16.mxu0 %v16678_v24 }
0x258e   :  { %16689 = vmatpush3.bf16.msra.mxu1 %v16686_v34  ;;  %15731 = vmatprep.mubr.msk.f32.mxu1 %vm98_vm0, %v5412_v62  ;;  %v5282_v34 = vrot.slane %v18830_v26, %v17975_v61 }
0x258f   :  { %15699 = vmatmul.mubr.msk.f32.vlgmr.msra.gmra.mrb[44].mxu0 %vm98_vm0, %v5193_v30  ;;  %16691 = vmatprep.subr.bf16.mxu1 %v16690_v11 }
0x2590   :  { %16681 = vmatpush3.bf16.msra.mxu0 %v16678_v24  ;;  %15720 = vmatprep.mubr.msk.f32.mxu0 %vm98_vm0, %v5412_v62 }
0x2591   :  { %16683 = vmatprep.subr.bf16.mxu0 %v16682_v57 }
0x2592   :  { %16693 = vmatpush3.bf16.msra.mxu1 %v16690_v11 }
0x2594   :  { %16685 = vmatpush3.bf16.msra.mxu0 %v16682_v57 }
0x2595   :  { %15732 = vmatmul.mubr.msk.f32.vlgmr.msra.gmra.mrb[44].mxu1 %vm98_vm0, %v5413_v4 }
0x2597   :  { %15721 = vmatmul.mubr.msk.f32.vlgmr.msra.gmra.mrb[46].mxu0 %vm98_vm0, %v5413_v4 }
0x265a   :  { %v15689_v53 = vpop.f32.mrb[42].mxu0 }
0x265b   :  { %v5276_v6 = vadd.f32 %v15689_v53, %v5197_v27  ;;  %v5270_v28 = vpop.f32.mrb[43].mxu0 }
0x265c   :  { %v5271_v29 = vadd.f32 %v5270_v28, %v5197_v27 }
0x265e   :  { %v18841_v32 = vpack.c.bf16 %v5276_v6, %v5271_v29  ;;  %v18843_v33 = vpack.i.bf16 %v5276_v6, %v5271_v29 }
0x2660   :  { %v15711_v63 = vpop.f32.mrb[42].mxu1 }
0x2661   :  { %v5490_v36 = vpop.f32.mrb[43].mxu1  ;;  %v18853_v43 = vadd.f32 %v15711_v63, %v5417_v31 }
0x2662   :  { %v18847_v38 = vadd.f32 %v5490_v36, %v5417_v31  ;;  %v15700_v40 = vpop.f32.mrb[44].mxu0 }
0x2663   :  { %v5355_v41 = vadd.f32 %v15700_v40, %v5282_v34  ;;  %v5349_v5 = vpop.f32.mrb[45].mxu0 }
0x2664   :  { %v5350_v42 = vadd.f32 %v5349_v5, %v5282_v34  ;;  %5940 = vrot.lane.b32.xlu1 %v18847_v38, %s20155_s0  ;;  %15738 = vmatprep.mubr.msk.f32.mxu0 %vm387_vm1, %v18847_v38 }
0x2666   :  { %v18857_v45 = vpack.c.bf16 %v5355_v41, %v5350_v42  ;;  %v18859_v48 = vpack.i.bf16 %v5355_v41, %v5350_v42 }
0x2668   :  { %v15733_v56 = vpop.f32.mrb[44].mxu1  ;;  %5942 = vrot.lane.b32.xlu1 %v18853_v43, %s20155_s0 }
0x2669   :  { %v5654_v58 = vadd.f32 %v15733_v56, %v5581_v17  ;;  %v5648_v1 = vpop.f32.mrb[45].mxu1 }
0x266a   :  { %v5649_v51 = vadd.f32 %v5648_v1, %v5581_v17  ;;  %v15722_v60 = vpop.f32.mrb[46].mxu0 }
0x266b   :  { %v5575_v12 = vadd.f32 %v15722_v60, %v5502_v52  ;;  %v5569_v14 = vpop.f32.mrb[47].mxu0 }
0x266c   :  { %v5570_v47 = vadd.f32 %v5569_v14, %v5502_v52  ;;  %v16700_v3 = vpack.c.bf16 %v5654_v58, %v5649_v51  ;;  %v18865_v50 = vpack.i.bf16 %v5654_v58, %v5649_v51 }
0x266e   :  { %16701 = vmatprep.subr.bf16.mxu1 %v16700_v3  ;;  %v18867_v55 = vpack.i.bf16 %v5575_v12, %v5570_v47  ;;  %v16694_v54 = vpack.c.bf16 %v5575_v12, %v5570_v47 }
0x266f   :  { %16703 = vmatpush3.bf16.msra.mxu1 %v16700_v3 }
0x2670   :  { %17255 = vrot.lane.b32.xlu0 %v18867_v55, %s20155_s0  ;;  %16696 = vmatprep.subr.msk.bf16.mxu0 %vm17981_vm2, %v16694_v54 }
0x2671   :  { %16699 = vmatpush3.bf16.xpose.msk.msra.mxu0 %vm17981_vm2, %v16694_v54  ;;  %v5371_v54 = vld [vmem:[%s20113_s12 + $0x60] sm:$0xff] }
0x2672   :  { %15748 = vmatprep.subr.mxu1 %v5371_v54 }
0x2678   :  { %15739 = vmatmul.mubr.msk.f32.vlgmr.msra.gmra.mrb[48].mxu0 %vm387_vm1, %v18853_v43 }
0x26d6   :  { %v5941_v9 = vpop.permute.xlu1 %5940 }
0x26d7   :  { %15757 = vmatprep.mubr.msk.f32.mxu0 %vm387_vm1, %v5941_v9 }
0x26da   :  { %v5943_v18 = vpop.permute.xlu1 %5942 }
0x26e2   :  { %v17256_v15 = vpop.permute.xlu0 %17255 }
0x26e3   :  { %v17258_v13 = vunpack.i.h.bf16 %v17256_v15  ;;  %v17257_v30 = vunpack.i.l.bf16 %v17256_v15 }
0x26e5   :  { %v16704_v16 = vpack.c.bf16 %v17258_v13, %v17257_v30 }
0x26e7   :  { %16706 = vmatprep.subr.msk.bf16.mxu0 %vm17981_vm2, %v16704_v16 }
0x26e8   :  { %16709 = vmatpush3.bf16.xpose.msk.msra.mxu0 %vm17981_vm2, %v16704_v16 }
0x26ef   :  { %15758 = vmatmul.mubr.msk.f32.vlgmr.msra.gmra.mrb[50].mxu0 %vm387_vm1, %v5943_v18 }
0x274b   :  { %v15740_v20 = vpop.f32.mrb[48].mxu0 }
0x274c   :  { %v5751_v21 = vmul.f32 0.35355338, %v15740_v20  ;;  %v5741_v8 = vpop.f32.mrb[49].mxu0 }
0x274d   :  { %v5750_v23 = vmul.f32 0.35355338, %v5741_v8 }
0x274e   :  { %v5753_v19 = vadd.f32 %v5751_v21, %v18886_v7 }
0x274f   :  { %v5752_v4 = vadd.f32 %v5750_v23, %v18891_v22 }
0x2750   :  { %v5757_v24 = vsel %vm479_vm3, %v5753_v19, -inf }
0x2751   :  { %5758 = vmax.xlane.f32.xlu0 %v5757_v24  ;;  %v5754_v62 = vsel %vm479_vm3, %v5752_v4, -inf }
0x2752   :  { %5755 = vmax.xlane.f32.xlu1 %v5754_v62 }
0x2763   :  { %17260 = vrot.lane.b32.xlu1 %v18867_v55, %s20153_s28 }
0x2767   :  { %6231 = vrot.lane.b32.xlu1 %v18853_v43, %s20153_s28 }
0x27c2   :  { %v15759_v25 = vpop.f32.mrb[50].mxu0 }
0x27c3   :  { %v6022_v10 = vpop.f32.mrb[51].mxu0  ;;  %v6032_v56 = vmul.f32 0.35355338, %v15759_v25 }
0x27c4   :  { %v6031_v11 = vmul.f32 0.35355338, %v6022_v10 }
0x27c5   :  { %v6034_v58 = vadd.f32 %v6032_v56, %v18886_v7  ;;  %v14371_v56 = vld [vmem:[%s20113_s12 + $0x98] sm:$0xff] }
0x27c6   :  { %v6033_v57 = vadd.f32 %v6031_v11, %v18891_v22 }
0x27c7   :  { %v6038_v1 = vsel %vm479_vm3, %v6034_v58, -inf }
0x27c8   :  { %v6035_v27 = vsel %vm479_vm3, %v6033_v57, -inf }
0x27c9   :  { %6036 = vmax.xlane.f32.xlu1 %v6035_v27 }
0x27de   :  { %v5759_v53 = vpop.xlane.xlu0 %5758 }
0x27df   :  { %v5761_v6 = vsub.f32 %v5753_v19, %v5759_v53  ;;  %v5756_v28 = vpop.xlane.xlu1 %5755  ;;  %v14368_v53 = vld [vmem:[%s20113_s12 + $0x80] sm:$0xff] }
0x27e0   :  { %v5760_v29 = vsub.f32 %v5752_v4, %v5756_v28 }
0x27e1   :  { %v5764_v31 = vmul.f32 1.442695, %v5761_v6 }
0x27e2   :  { %v5762_v34 = vmul.f32 1.442695, %v5760_v29 }
0x27e3   :  { %v17261_v63 = vpop.permute.xlu1 %17260 }
0x27e4   :  { %17502 = vpow2.f32 %v5762_v34  ;;  %v17263_v36 = vunpack.i.h.bf16 %v17261_v63  ;;  %v17262_v40 = vunpack.i.l.bf16 %v17261_v63 }
0x27e5   :  { %17504 = vpow2.f32 %v5764_v31 }
0x27e6   :  { %v16714_v41 = vpack.c.bf16 %v17263_v36, %v17262_v40 }
0x27e7   :  { %v6232_v51 = vpop.permute.xlu1 %6231 }
0x27e8   :  { %16716 = vmatprep.subr.msk.bf16.mxu0 %vm17981_vm2, %v16714_v41 }
0x27e9   :  { %16719 = vmatpush3.bf16.xpose.msk.msra.mxu0 %vm17981_vm2, %v16714_v41 }
0x27ee   :  { %v17503_v5 = vpop.eup %17502 }
0x27ef   :  { %v5766_v42 = vsel %vm479_vm3, %v17503_v5, 0.0  ;;  %v17505_v17 = vpop.eup %17504 }
0x27f0   :  { %5767 = vadd.xlane.f32.xlu0 %v5766_v42  ;;  %v5769_v52 = vsel %vm479_vm3, %v17505_v17, 0.0 }
0x27f4   :  { %5770 = vadd.xlane.f32.xlu0 %v5769_v52  ;;  %v14370_v52 = vld [vmem:[%s20113_s12 + $0x90] sm:$0xff] }
0x280a   :  { %6229 = vrot.lane.b32.xlu0 %v18847_v38, %s20153_s28 }
0x2829   :  { %6039 = vmax.xlane.f32.xlu0 %v6038_v1 }
0x2856   :  { %v6037_v60 = vpop.xlane.xlu1 %6036 }
0x2857   :  { %v6041_v12 = vsub.f32 %v6033_v57, %v6037_v60 }
0x2859   :  { %v6043_v14 = vmul.f32 1.442695, %v6041_v12 }
0x285b   :  { %17506 = vpow2.f32 %v6043_v14  ;;  %v18959_v14 = vpack.c.bf16 %v14371_v56, %v14370_v52 }
0x2865   :  { %v18913_v47 = vpop.eup %17506 }
0x2866   :  { %v6047_v3 = vsel %vm479_vm3, %v18913_v47, 0.0 }
0x2867   :  { %6048 = vadd.xlane.f32.xlu0 %v6047_v3 }
0x287d   :  { %v5768_v9 = vpop.xlane.xlu0 %5767  ;;  %17265 = vrot.lane.b32.xlu0 %v18865_v50, %s20155_s0 }
0x287e   :  { %17508 = vrcp.f32 %v5768_v9 }
0x2881   :  { %v5771_v15 = vpop.xlane.xlu0 %5770 }
0x2882   :  { %17510 = vrcp.f32 %v5771_v15 }
0x2885   :  { %v6230_v13 = vpop.permute.xlu0 %6229 }
0x2886   :  { %15776 = vmatprep.mubr.msk.f32.mxu0 %vm387_vm1, %v6230_v13 }
0x2887   :  { %15777 = vmatmul.mubr.msk.f32.vlgmr.msra.gmra.mrb[52].mxu0 %vm387_vm1, %v6232_v51 }
0x2888   :  { %v17509_v30 = vpop.eup %17508 }
0x2889   :  { %v5774_v16 = vmul.f32 %v17509_v30, %v17503_v5 }
0x288b   :  { %15745 = vmatprep.mubr.msk.f32.mxu1 %vm479_vm3, %v5774_v16 }
0x288c   :  { %v17511_v18 = vpop.eup %17510 }
0x288d   :  { %v5775_v20 = vmul.f32 %v17511_v18, %v17505_v17 }
0x288f   :  { %15746 = vmatmul.mubr.msk.f32.vlgmr.msra.gmra.mrb[46].mxu1 %vm479_vm3, %v5775_v20 }
0x2890   :  { %15749 = vmatpush3.msra.mxu1 %v5371_v54 }
0x28b6   :  { %v6040_v21 = vpop.xlane.xlu0 %6039 }
0x28b7   :  { %v6042_v8 = vsub.f32 %v6034_v58, %v6040_v21 }
0x28b9   :  { %v6045_v23 = vmul.f32 1.442695, %v6042_v8 }
0x28bb   :  { %17512 = vpow2.f32 %v6045_v23 }
0x28c5   :  { %v17513_v19 = vpop.eup %17512 }
0x28c6   :  { %v6050_v4 = vsel %vm479_vm3, %v17513_v19, 0.0 }
0x28c7   :  { %6051 = vadd.xlane.f32.xlu1 %v6050_v4 }
0x28d8   :  { %17270 = vrot.lane.b32.xlu1 %v18867_v55, %s20154_s30 }
0x28dc   :  { %6516 = vrot.lane.b32.xlu1 %v18847_v38, %s20154_s30  ;;  %v14369_v38 = vld [vmem:[%s20113_s12 + $0x88] sm:$0xff] }
0x28dd   :  { %v18939_v34 = vpack.c.bf16 %v14369_v38, %v14368_v53 }
0x28e0   :  { %6518 = vrot.lane.b32.xlu1 %v18853_v43, %s20154_s30 }
0x28f4   :  { %v6049_v24 = vpop.xlane.xlu0 %6048 }
0x28f5   :  { %17514 = vrcp.f32 %v6049_v24 }
0x28f8   :  { %v17266_v62 = vpop.permute.xlu0 %17265 }
0x28f9   :  { %v17268_v25 = vunpack.i.h.bf16 %v17266_v62  ;;  %v17267_v10 = vunpack.i.l.bf16 %v17266_v62 }
0x28fb   :  { %v16710_v11 = vpack.c.bf16 %v17268_v25, %v17267_v10 }
0x28fd   :  { %16711 = vmatprep.subr.bf16.mxu1 %v16710_v11 }
0x28ff   :  { %v17515_v17 = vpop.eup %17514 }
0x2900   :  { %v6055_v12 = vmul.f32 %v17515_v17, %v18913_v47  ;;  %v5372_v47 = vld [vmem:[%s20113_s12 + $0x68] sm:$0xff] }
0x2954   :  { %v6052_v57 = vpop.xlane.xlu1 %6051 }
0x2955   :  { %17516 = vrcp.f32 %v6052_v57 }
0x2958   :  { %v17271_v27 = vpop.permute.xlu1 %17270 }
0x2959   :  { %v17273_v55 = vunpack.i.h.bf16 %v17271_v27  ;;  %v17272_v6 = vunpack.i.l.bf16 %v17271_v27 }
0x295a   :  { %v15778_v43 = vpop.f32.mrb[52].mxu0 }
0x295b   :  { %v16724_v28 = vpack.c.bf16 %v17273_v55, %v17272_v6  ;;  %v6321_v29 = vmul.f32 0.35355338, %v15778_v43  ;;  %v6311_v31 = vpop.f32.mrb[53].mxu0 }
0x295c   :  { %v6320_v63 = vmul.f32 0.35355338, %v6311_v31  ;;  %v6517_v36 = vpop.permute.xlu1 %6516 }
0x295d   :  { %v6323_v40 = vadd.f32 %v6321_v29, %v18886_v7  ;;  %16726 = vmatprep.subr.msk.bf16.mxu0 %vm17981_vm2, %v16724_v28  ;;  %15795 = vmatprep.mubr.msk.f32.mxu0 %vm387_vm1, %v6517_v36 }
0x295e   :  { %v6322_v41 = vadd.f32 %v6320_v63, %v18891_v22  ;;  %16729 = vmatpush3.bf16.xpose.msk.msra.mxu0 %vm17981_vm2, %v16724_v28 }
0x295f   :  { %v6327_v5 = vsel %vm479_vm3, %v6323_v40, -inf  ;;  %16735 = vmatprep.subr.bf16.mxu0 %v18939_v34  ;;  %v17517_v51 = vpop.eup %17516 }
0x2960   :  { %6328 = vmax.xlane.f32.xlu1 %v6327_v5  ;;  %v6324_v42 = vsel %vm479_vm3, %v6322_v41, -inf  ;;  %v6519_v60 = vpop.permute.xlu1 %6518  ;;  %v6056_v3 = vmul.f32 %v17517_v51, %v17513_v19 }
0x2961   :  { %6325 = vmax.xlane.f32.xlu0 %v6324_v42 }
0x2962   :  { %v15747_v58 = vpop.f32.mrb[46].mxu1 }
0x2963   :  { %v5848_v1 = vpop.f32.mrb[47].mxu1 }
0x2964   :  { %15750 = vmatprep.mubr.msk.f32.mxu1 %vm387_vm1, %v5848_v1  ;;  %v5373_v1 = vld [vmem:[%s20113_s12 + $0x70] sm:$0xff] }
0x2965   :  { %15751 = vmatmul.mubr.msk.f32.vlgmr.msra.gmra.mrb[48].mxu1 %vm387_vm1, %v15747_v58  ;;  %15796 = vmatmul.mubr.msk.f32.vlgmr.msra.gmra.mrb[54].mxu0 %vm387_vm1, %v6519_v60 }
0x2966   :  { %16713 = vmatpush3.bf16.msra.mxu1 %v16710_v11  ;;  %15764 = vmatprep.mubr.msk.f32.mxu1 %vm479_vm3, %v6055_v12 }
0x2967   :  { %16737 = vmatpush3.bf16.msra.mxu0 %v18939_v34  ;;  %15767 = vmatprep.subr.mxu1 %v5372_v47 }
0x2968   :  { %16739 = vmatprep.subr.bf16.mxu0 %v18959_v14 }
0x2969   :  { %15765 = vmatmul.mubr.msk.f32.vlgmr.msra.gmra.mrb[50].mxu1 %vm479_vm3, %v6056_v3 }
0x296a   :  { %15768 = vmatpush3.msra.mxu1 %v5372_v47 }
0x296b   :  { %16741 = vmatpush3.bf16.msra.mxu0 %v18959_v14 }
0x296c   :  { %16749 = vmatprep.subr.bf16.mxu0 %v18857_v45 }
0x29ed   :  { %v6329_v54 = vpop.xlane.xlu1 %6328 }
0x29ee   :  { %v6331_v9 = vsub.f32 %v6323_v40, %v6329_v54  ;;  %v6326_v15 = vpop.xlane.xlu0 %6325 }
0x29ef   :  { %v6330_v13 = vsub.f32 %v6322_v41, %v6326_v15 }
0x29f0   :  { %v6334_v30 = vmul.f32 1.442695, %v6331_v9 }
0x29f1   :  { %v6332_v16 = vmul.f32 1.442695, %v6330_v13  ;;  %v5374_v13 = vld [vmem:[%s20113_s12 + $0x78] sm:$0xff] }
0x29f2   :  { %17518 = vpow2.f32 %v6334_v30 }
0x29f3   :  { %17520 = vpow2.f32 %v6332_v16 }
0x29fc   :  { %v17519_v18 = vpop.eup %17518 }
0x29fd   :  { %v6339_v20 = vsel %vm479_vm3, %v17519_v18, 0.0  ;;  %v17521_v21 = vpop.eup %17520 }
0x29fe   :  { %6340 = vadd.xlane.f32.xlu0 %v6339_v20  ;;  %v6336_v8 = vsel %vm479_vm3, %v17521_v21, 0.0 }
0x2a02   :  { %6337 = vadd.xlane.f32.xlu0 %v6336_v8  ;;  %v5660_v8 = vrot.slane %v18837_v0, %v18110_v49 }
0x2a18   :  { %17275 = vrot.lane.b32.xlu0 %v18865_v50, %s20153_s28 }
0x2a38   :  { %v15797_v23 = vpop.f32.mrb[54].mxu0 }
0x2a39   :  { %v6598_v19 = vpop.f32.mrb[55].mxu0  ;;  %v6608_v4 = vmul.f32 0.35355338, %v15797_v23  ;;  %v5662_v23 = vadd.f32 %v5660_v8, %v18695_v44 }
0x2a3a   :  { %v6607_v24 = vmul.f32 0.35355338, %v6598_v19  ;;  %v5661_v19 = vadd.f32 %v5660_v8, %v18708_v59 }
0x2a3b   :  { %v6610_v11 = vadd.f32 %v6608_v4, %v18886_v7 }
0x2a3c   :  { %v6609_v62 = vadd.f32 %v6607_v24, %v18891_v22  ;;  %v15766_v25 = vpop.f32.mrb[50].mxu1 }
0x2a3d   :  { %v6137_v10 = vpop.f32.mrb[51].mxu1  ;;  %v6614_v27 = vsel %vm479_vm3, %v6610_v11, -inf }
0x2a3e   :  { %15769 = vmatprep.mubr.msk.f32.mxu1 %vm387_vm1, %v6137_v10  ;;  %v6611_v57 = vsel %vm479_vm3, %v6609_v62, -inf }
0x2a3f   :  { %15770 = vmatmul.mubr.msk.f32.vlgmr.msra.gmra.mrb[48].mxu1 %vm387_vm1, %v15766_v25  ;;  %6612 = vmax.xlane.f32.xlu1 %v6611_v57 }
0x2a43   :  { %6615 = vmax.xlane.f32.xlu1 %v6614_v27 }
0x2a8b   :  { %v6341_v53 = vpop.xlane.xlu0 %6340 }
0x2a8c   :  { %17522 = vrcp.f32 %v6341_v53 }
0x2a8f   :  { %v6338_v38 = vpop.xlane.xlu0 %6337 }
0x2a90   :  { %17524 = vrcp.f32 %v6338_v38 }
0x2a93   :  { %v17276_v55 = vpop.permute.xlu0 %17275 }
0x2a94   :  { %v17278_v22 = vunpack.i.h.bf16 %v17276_v55  ;;  %v17277_v6 = vunpack.i.l.bf16 %v17276_v55 }
0x2a96   :  { %v16720_v43 = vpack.c.bf16 %v17278_v22, %v17277_v6  ;;  %v17523_v7 = vpop.eup %17522 }
0x2a97   :  { %v6345_v31 = vmul.f32 %v17523_v7, %v17519_v18 }
0x2a98   :  { %16721 = vmatprep.subr.bf16.mxu1 %v16720_v43 }
0x2a99   :  { %16723 = vmatpush3.bf16.msra.mxu1 %v16720_v43 }
0x2a9a   :  { %v17525_v28 = vpop.eup %17524  ;;  %15786 = vmatprep.subr.mxu1 %v5373_v1 }
0x2a9b   :  { %v6344_v29 = vmul.f32 %v17525_v28, %v17521_v21 }
0x2a9d   :  { %15783 = vmatprep.mubr.msk.f32.mxu1 %vm479_vm3, %v6344_v29 }
0x2a9e   :  { %15784 = vmatmul.mubr.msk.f32.vlgmr.msra.gmra.mrb[52].mxu1 %vm479_vm3, %v6345_v31 }
0x2a9f   :  { %15787 = vmatpush3.msra.mxu1 %v5373_v1 }
0x2acc   :  { %v6613_v63 = vpop.xlane.xlu1 %6612 }
0x2acd   :  { %v6617_v36 = vsub.f32 %v6609_v62, %v6613_v63 }
0x2acf   :  { %v6619_v5 = vmul.f32 1.442695, %v6617_v36 }
0x2ad0   :  { %v6616_v40 = vpop.xlane.xlu1 %6615 }
0x2ad1   :  { %v6618_v41 = vsub.f32 %v6610_v11, %v6616_v40 }
0x2ad3   :  { %v6621_v42 = vmul.f32 1.442695, %v6618_v41 }
0x2ad5   :  { %17526 = vpow2.f32 %v6621_v42 }
0x2ad6   :  { %17528 = vpow2.f32 %v6619_v5 }
0x2adf   :  { %v17527_v17 = vpop.eup %17526 }
0x2ae0   :  { %v6626_v52 = vsel %vm479_vm3, %v17527_v17, 0.0  ;;  %v17529_v56 = vpop.eup %17528 }
0x2ae1   :  { %6627 = vadd.xlane.f32.xlu1 %v6626_v52  ;;  %v6623_v58 = vsel %vm479_vm3, %v17529_v56, 0.0 }
0x2ae5   :  { %6624 = vadd.xlane.f32.xlu1 %v6623_v58  ;;  %v19031_v58 = vrot.slane %v18830_v26, %v17943_v37  ;;  %v19046_v26 = vld [vmem:[%s20152_s6] sm:$0xff] }
0x2af6   :  { %17280 = vrot.lane.b32.xlu1 %v18865_v50, %s20154_s30 }
0x2b6e   :  { %v6628_v51 = vpop.xlane.xlu1 %6627 }
0x2b6f   :  { %17530 = vrcp.f32 %v6628_v51 }
0x2b71   :  { %v15785_v60 = vpop.f32.mrb[52].mxu1 }
0x2b72   :  { %v6625_v12 = vpop.xlane.xlu1 %6624  ;;  %v6424_v3 = vpop.f32.mrb[53].mxu1 }
0x2b73   :  { %17532 = vrcp.f32 %v6625_v12  ;;  %15788 = vmatprep.mubr.msk.f32.mxu1 %vm387_vm1, %v6424_v3 }
0x2b74   :  { %15789 = vmatmul.mubr.msk.f32.vlgmr.msra.gmra.mrb[48].mxu1 %vm387_vm1, %v15785_v60 }
0x2b76   :  { %v17281_v47 = vpop.permute.xlu1 %17280 }
0x2b77   :  { %v17283_v54 = vunpack.i.h.bf16 %v17281_v47  ;;  %v17282_v9 = vunpack.i.l.bf16 %v17281_v47 }
0x2b79   :  { %v16730_v15 = vpack.c.bf16 %v17283_v54, %v17282_v9  ;;  %v17531_v50 = vpop.eup %17530 }
0x2b7a   :  { %v6632_v18 = vmul.f32 %v17531_v50, %v17527_v17 }
0x2b7b   :  { %16731 = vmatprep.subr.bf16.mxu1 %v16730_v15 }
0x2b7c   :  { %16733 = vmatpush3.bf16.msra.mxu1 %v16730_v15 }
0x2b7d   :  { %v17533_v30 = vpop.eup %17532  ;;  %15805 = vmatprep.subr.mxu1 %v5374_v13 }
0x2b7e   :  { %v6631_v16 = vmul.f32 %v17533_v30, %v17529_v56 }
0x2b80   :  { %15802 = vmatprep.mubr.msk.f32.mxu1 %vm479_vm3, %v6631_v16 }
0x2b81   :  { %15803 = vmatmul.mubr.msk.f32.vlgmr.msra.gmra.mrb[54].mxu1 %vm479_vm3, %v6632_v18 }
0x2b82   :  { %15806 = vmatpush3.msra.mxu1 %v5374_v13  ;;  %v19052_v13 = vld [vmem:[%s20152_s6 + $0x8] sm:$0xff] }
0x2b83   :  { %16744 = vmatprep.subr.msk.bf16.mxu1 %vm17981_vm2, %v18841_v32 }
0x2c54   :  { %v15804_v20 = vpop.f32.mrb[54].mxu1 }
0x2c55   :  { %v6711_v21 = vpop.f32.mrb[55].mxu1 }
0x2c56   :  { %15807 = vmatprep.mubr.msk.f32.mxu1 %vm387_vm1, %v6711_v21 }
0x2c57   :  { %15808 = vmatmul.mubr.msk.f32.vlgmr.msra.gmra.mrb[48].mxu1 %vm387_vm1, %v15804_v20 }
0x2c58   :  { %16747 = vmatpush3.bf16.xpose.msk.msra.mxu1 %vm17981_vm2, %v18841_v32 }
0x2d2a   :  { %v15809_v4 = vpop.f32.mrb[48].mxu1 }
0x2d2b   :  { %v19010_v24 = vadd.f32 %v15809_v4, %v5662_v23  ;;  %v6792_v62 = vpop.f32.mrb[49].mxu1 }
0x2d2c   :  { %v19012_v25 = vadd.f32 %v6792_v62, %v5661_v19 }
0x2d2d   :  { %v6806_v10 = vsel %vm98_vm0, %v19010_v24, 0.0 }
0x2d2e   :  { %6807 = vadd.xlane.f32.xlu1 %v6806_v10  ;;  %v6803_v11 = vsel %vm98_vm0, %v19012_v25, 0.0 }
0x2d2f   :  { %6804 = vadd.xlane.f32.xlu0 %v6803_v11 }
0x2dbb   :  { %v6808_v57 = vpop.xlane.xlu1 %6807 }
0x2dbc   :  { %v6810_v0 = vmul.f32 0.03125, %v6808_v57  ;;  %v6805_v27 = vpop.xlane.xlu0 %6804 }
0x2dbd   :  { %v6809_v44 = vmul.f32 0.03125, %v6805_v27 }
0x2dbe   :  { %v6812_v59 = vsub.f32 %v19010_v24, %v6810_v0 }
0x2dbf   :  { %v6811_v53 = vsub.f32 %v19012_v25, %v6809_v44 }
0x2dc0   :  { %v6814_v22 = vmul.f32 %v6812_v59, %v6812_v59 }
0x2dc1   :  { %v6813_v38 = vmul.f32 %v6811_v53, %v6811_v53 }
0x2dc2   :  { %v6818_v6 = vsel %vm98_vm0, %v6814_v22, 0.0 }
0x2dc3   :  { %v6815_v55 = vsel %vm98_vm0, %v6813_v38, 0.0 }
0x2dc4   :  { %6816 = vadd.xlane.f32.xlu0 %v6815_v55 }
0x2dc8   :  { %6819 = vadd.xlane.f32.xlu0 %v6818_v6 }
0x2e51   :  { %v6817_v43 = vpop.xlane.xlu0 %6816 }
0x2e52   :  { %v6821_v7 = vmul.f32 0.03125, %v6817_v43 }
0x2e54   :  { %v6823_v28 = vadd.f32 1e-05, %v6821_v7 }
0x2e55   :  { %v6820_v29 = vpop.xlane.xlu0 %6819 }
0x2e56   :  { %17534 = vrsqrt.f32 %v6823_v28  ;;  %v6822_v31 = vmul.f32 0.03125, %v6820_v29 }
0x2e58   :  { %v6824_v63 = vadd.f32 1e-05, %v6822_v31 }
0x2e5a   :  { %17536 = vrsqrt.f32 %v6824_v63 }
0x2e60   :  { %v17535_v36 = vpop.eup %17534 }
0x2e61   :  { %v6827_v40 = vmul.f32 %v17535_v36, %v6811_v53 }
0x2e63   :  { %v6829_v41 = vmul.f32 %v6827_v40, %v18775_v46 }
0x2e64   :  { %v17537_v5 = vpop.eup %17536 }
0x2e65   :  { %v6828_v42 = vmul.f32 %v17537_v5, %v6812_v59  ;;  %v6831_v17 = vadd.f32 %v6829_v41, %v18779_v35  ;;  %v14380_v41 = vld [vmem:[%s20113_s12 + $0xe0] sm:$0xff] }
0x2e66   :  { %15835 = vmatprep.subr.mxu1 %v14380_v41 }
0x2e67   :  { %15818 = vmatprep.mubr.msk.f32.mxu0 %vm98_vm0, %v6831_v17  ;;  %v6830_v52 = vmul.f32 %v6828_v42, %v18775_v46 }
0x2e69   :  { %v6832_v56 = vadd.f32 %v6830_v52, %v18779_v35 }
0x2e6b   :  { %15819 = vmatmul.mubr.msk.f32.vlgmr.msra.gmra.mrb[56].mxu0 %vm98_vm0, %v6832_v56 }
0x2e6c   :  { %16751 = vmatpush3.bf16.msra.mxu0 %v18857_v45 }
0x2f3e   :  { %v15820_v1 = vpop.f32.mrb[56].mxu0 }
0x2f3f   :  { %v6909_v51 = vpop.f32.mrb[57].mxu0  ;;  %v19037_v12 = vadd.f32 %v15820_v1, %v19031_v58 }
0x2f40   :  { %v19034_v60 = vadd.f32 %v6909_v51, %v19031_v58 }
0x2f42   :  { %15825 = vmatprep.mubr.msk.f32.mxu1 %vm387_vm1, %v19034_v60 }
0x2f43   :  { %15826 = vmatmul.mubr.msk.f32.vlgmr.msra.gmra.mrb[56].mxu1 %vm387_vm1, %v19037_v12 }
0x2f44   :  { %15836 = vmatpush3.msra.mxu1 %v14380_v41 }
0x3016   :  { %v15827_v3 = vpop.f32.mrb[56].mxu1 }
0x3017   :  { %v7002_v47 = vpop.f32.mrb[57].mxu1  ;;  %v7012_v54 = vmul.f32 0.35355338, %v15827_v3 }
0x3018   :  { %v7011_v9 = vmul.f32 0.35355338, %v7002_v47 }
0x3019   :  { %v7014_v50 = vadd.f32 %v19052_v13, %v7012_v54 }
0x301a   :  { %v7013_v15 = vadd.f32 %v19046_v26, %v7011_v9 }
0x301b   :  { %v7018_v16 = vsel %vm479_vm3, %v7014_v50, -inf }
0x301c   :  { %v7015_v30 = vsel %vm479_vm3, %v7013_v15, -inf }
0x301d   :  { %7016 = vmax.xlane.f32.xlu0 %v7015_v30 }
0x3021   :  { %7019 = vmax.xlane.f32.xlu0 %v7018_v16 }
0x30aa   :  { %v7017_v18 = vpop.xlane.xlu0 %7016 }
0x30ab   :  { %v7021_v20 = vsub.f32 %v7013_v15, %v7017_v18 }
0x30ad   :  { %v7023_v21 = vmul.f32 1.442695, %v7021_v20 }
0x30ae   :  { %v7020_v8 = vpop.xlane.xlu0 %7019 }
0x30af   :  { %17538 = vpow2.f32 %v7023_v21  ;;  %v7022_v23 = vsub.f32 %v7014_v50, %v7020_v8 }
0x30b1   :  { %v7025_v19 = vmul.f32 1.442695, %v7022_v23 }
0x30b3   :  { %17540 = vpow2.f32 %v7025_v19 }
0x30b9   :  { %v17539_v4 = vpop.eup %17538 }
0x30ba   :  { %v7027_v62 = vsel %vm479_vm3, %v17539_v4, 0.0 }
0x30bb   :  { %7028 = vadd.xlane.f32.xlu0 %v7027_v62 }
0x30bd   :  { %v17541_v10 = vpop.eup %17540 }
0x30be   :  { %v7030_v11 = vsel %vm479_vm3, %v17541_v10, 0.0 }
0x30bf   :  { %7031 = vadd.xlane.f32.xlu1 %v7030_v11 }
0x30d0   :  { %7201 = vrot.lane.b32.xlu1 %v19034_v60, %s20155_s0 }
0x30d1   :  { %17285 = vrot.lane.b32.xlu0 %v18843_v33, %s20155_s0 }
0x30d4   :  { %7203 = vrot.lane.b32.xlu1 %v19037_v12, %s20155_s0 }
0x30d5   :  { %7490 = vrot.lane.b32.xlu0 %v19034_v60, %s20153_s28 }
0x30d8   :  { %17290 = vrot.lane.b32.xlu1 %v18843_v33, %s20153_s28 }
0x30dc   :  { %7492 = vrot.lane.b32.xlu1 %v19037_v12, %s20153_s28 }
0x3148   :  { %v7029_v57 = vpop.xlane.xlu0 %7028 }
0x3149   :  { %17542 = vrcp.f32 %v7029_v57 }
0x314c   :  { %v7032_v0 = vpop.xlane.xlu1 %7031  ;;  %v17286_v27 = vpop.permute.xlu0 %17285 }
0x314d   :  { %17544 = vrcp.f32 %v7032_v0  ;;  %v17288_v44 = vunpack.i.h.bf16 %v17286_v27  ;;  %v17287_v59 = vunpack.i.l.bf16 %v17286_v27 }
0x314f   :  { %v19071_v53 = vpack.c.bf16 %v17288_v44, %v17287_v59 }
0x3150   :  { %v7202_v38 = vpop.permute.xlu1 %7201  ;;  %v7491_v36 = vpop.permute.xlu0 %7490 }
0x3151   :  { %16754 = vmatprep.subr.msk.bf16.mxu0 %vm17981_vm2, %v19071_v53 }
0x3153   :  { %v17543_v55 = vpop.eup %17542 }
0x3154   :  { %v7204_v22 = vpop.permute.xlu1 %7203  ;;  %v7035_v6 = vmul.f32 %v17543_v55, %v17539_v4 }
0x3156   :  { %15832 = vmatprep.mubr.msk.f32.mxu0 %vm479_vm3, %v7035_v6 }
0x3157   :  { %v17545_v43 = vpop.eup %17544 }
0x3158   :  { %v17291_v7 = vpop.permute.xlu1 %17290  ;;  %v7036_v28 = vmul.f32 %v17545_v43, %v17541_v10 }
0x3159   :  { %v17293_v29 = vunpack.i.h.bf16 %v17291_v7  ;;  %v17292_v31 = vunpack.i.l.bf16 %v17291_v7 }
0x315a   :  { %15833 = vmatmul.mubr.msk.f32.vlgmr.msra.gmra.mrb[58].mxu0 %vm479_vm3, %v7036_v28 }
0x315b   :  { %v19078_v63 = vpack.c.bf16 %v17293_v29, %v17292_v31  ;;  %16757 = vmatpush3.bf16.xpose.msk.msra.mxu0 %vm17981_vm2, %v19071_v53  ;;  %15844 = vmatprep.mubr.msk.f32.mxu0 %vm387_vm1, %v7202_v38 }
0x315c   :  { %v7493_v40 = vpop.permute.xlu1 %7492 }
0x315d   :  { %16764 = vmatprep.subr.msk.bf16.mxu0 %vm17981_vm2, %v19078_v63 }
0x3162   :  { %15845 = vmatmul.mubr.msk.f32.vlgmr.msra.gmra.mrb[60].mxu0 %vm387_vm1, %v7204_v22 }
0x3163   :  { %16767 = vmatpush3.bf16.xpose.msk.msra.mxu0 %vm17981_vm2, %v19078_v63  ;;  %15863 = vmatprep.mubr.msk.f32.mxu0 %vm387_vm1, %v7491_v36 }
0x316a   :  { %15864 = vmatmul.mubr.msk.f32.vlgmr.msra.gmra.mrb[62].mxu0 %vm387_vm1, %v7493_v40 }
0x322d   :  { %v15834_v5 = vpop.f32.mrb[58].mxu0 }
0x322e   :  { %v7109_v42 = vpop.f32.mrb[59].mxu0 }
0x322f   :  { %15837 = vmatprep.mubr.msk.f32.mxu1 %vm387_vm1, %v7109_v42 }
0x3230   :  { %15838 = vmatmul.mubr.msk.f32.vlgmr.msra.gmra.mrb[58].mxu1 %vm387_vm1, %v15834_v5 }
0x3235   :  { %v15846_v17 = vpop.f32.mrb[60].mxu0 }
0x3236   :  { %v7293_v52 = vmul.f32 0.35355338, %v15846_v17  ;;  %v7283_v56 = vpop.f32.mrb[61].mxu0 }
0x3237   :  { %v7292_v1 = vmul.f32 0.35355338, %v7283_v56 }
0x3238   :  { %v7295_v51 = vadd.f32 %v19052_v13, %v7293_v52 }
0x3239   :  { %v7294_v3 = vadd.f32 %v19046_v26, %v7292_v1 }
0x323a   :  { %v7299_v47 = vsel %vm479_vm3, %v7295_v51, -inf }
0x323b   :  { %7300 = vmax.xlane.f32.xlu1 %v7299_v47  ;;  %v7296_v54 = vsel %vm479_vm3, %v7294_v3, -inf }
0x323c   :  { %7297 = vmax.xlane.f32.xlu0 %v7296_v54 }
0x323d   :  { %v15865_v9 = vpop.f32.mrb[62].mxu0 }
0x323e   :  { %v7572_v15 = vpop.f32.mrb[63].mxu0  ;;  %v7582_v50 = vmul.f32 0.35355338, %v15865_v9 }
0x323f   :  { %v7581_v55 = vmul.f32 0.35355338, %v7572_v15 }
0x3240   :  { %v7584_v30 = vadd.f32 %v19052_v13, %v7582_v50 }
0x3241   :  { %v7583_v22 = vadd.f32 %v19046_v26, %v7581_v55 }
0x3242   :  { %v7588_v16 = vsel %vm479_vm3, %v7584_v30, -inf }
0x3243   :  { %v7585_v6 = vsel %vm479_vm3, %v7583_v22, -inf }
0x324c   :  { %17300 = vrot.lane.b32.xlu1 %v18843_v33, %s20154_s30 }
0x3250   :  { %7777 = vrot.lane.b32.xlu1 %v19034_v60, %s20154_s30 }
0x3254   :  { %7779 = vrot.lane.b32.xlu1 %v19037_v12, %s20154_s30 }
0x3278   :  { %7589 = vmax.xlane.f32.xlu1 %v7588_v16 }
0x32c8   :  { %v7301_v18 = vpop.xlane.xlu1 %7300 }
0x32c9   :  { %v7303_v20 = vsub.f32 %v7295_v51, %v7301_v18  ;;  %v7298_v21 = vpop.xlane.xlu0 %7297 }
0x32ca   :  { %v7302_v8 = vsub.f32 %v7294_v3, %v7298_v21  ;;  %v14381_v21 = vld [vmem:[%s20113_s12 + $0xe8] sm:$0xff] }
0x32cb   :  { %v7306_v23 = vmul.f32 1.442695, %v7303_v20 }
0x32cc   :  { %v7304_v19 = vmul.f32 1.442695, %v7302_v8  ;;  %v17301_v4 = vpop.permute.xlu1 %17300 }
0x32cd   :  { %17546 = vpow2.f32 %v7306_v23  ;;  %v17303_v33 = vunpack.i.h.bf16 %v17301_v4  ;;  %v17302_v62 = vunpack.i.l.bf16 %v17301_v4 }
0x32ce   :  { %17548 = vpow2.f32 %v7304_v19 }
0x32cf   :  { %v19110_v60 = vpack.c.bf16 %v17303_v33, %v17302_v62 }
0x32d0   :  { %v7778_v12 = vpop.permute.xlu1 %7777 }
0x32d1   :  { %16774 = vmatprep.subr.msk.bf16.mxu0 %vm17981_vm2, %v19110_v60  ;;  %15882 = vmatprep.mubr.msk.f32.mxu0 %vm387_vm1, %v7778_v12 }
0x32d2   :  { %16777 = vmatpush3.bf16.xpose.msk.msra.mxu0 %vm17981_vm2, %v19110_v60 }
0x32d4   :  { %v7780_v11 = vpop.permute.xlu1 %7779 }
0x32d7   :  { %v17547_v10 = vpop.eup %17546 }
0x32d8   :  { %v7311_v57 = vsel %vm479_vm3, %v17547_v10, 0.0  ;;  %v17549_v0 = vpop.eup %17548 }
0x32d9   :  { %15883 = vmatmul.mubr.msk.f32.vlgmr.msra.gmra.mrb[64].mxu0 %vm387_vm1, %v7780_v11  ;;  %7312 = vadd.xlane.f32.xlu0 %v7311_v57  ;;  %v7308_v27 = vsel %vm479_vm3, %v17549_v0, 0.0 }
0x32dd   :  { %7309 = vadd.xlane.f32.xlu0 %v7308_v27 }
0x32f3   :  { %17295 = vrot.lane.b32.xlu0 %v18859_v48, %s20155_s0 }
0x3305   :  { %v7590_v44 = vpop.xlane.xlu1 %7589 }
0x3306   :  { %v7592_v59 = vsub.f32 %v7584_v30, %v7590_v44 }
0x3308   :  { %v7595_v38 = vmul.f32 1.442695, %v7592_v59 }
0x330a   :  { %17550 = vpow2.f32 %v7595_v38 }
0x3312   :  { %7586 = vmax.xlane.f32.xlu0 %v7585_v6 }
0x3314   :  { %v19126_v43 = vpop.eup %17550 }
0x3315   :  { %v7600_v7 = vsel %vm479_vm3, %v19126_v43, 0.0 }
0x3316   :  { %7601 = vadd.xlane.f32.xlu0 %v7600_v7 }
0x3366   :  { %v7313_v28 = vpop.xlane.xlu0 %7312 }
0x3367   :  { %17552 = vrcp.f32 %v7313_v28 }
0x336a   :  { %v7310_v29 = vpop.xlane.xlu0 %7309 }
0x336b   :  { %17554 = vrcp.f32 %v7310_v29  ;;  %v14382_v29 = vld [vmem:[%s20113_s12 + $0xf0] sm:$0xff] }
0x336e   :  { %v17296_v31 = vpop.permute.xlu0 %17295 }
0x336f   :  { %v17298_v36 = vunpack.i.h.bf16 %v17296_v31  ;;  %v17297_v40 = vunpack.i.l.bf16 %v17296_v31 }
0x3371   :  { %v19130_v41 = vpack.c.bf16 %v17298_v36, %v17297_v40  ;;  %v17553_v5 = vpop.eup %17552 }
0x3372   :  { %v7317_v52 = vmul.f32 %v17553_v5, %v17547_v10 }
0x3373   :  { %16759 = vmatprep.subr.bf16.mxu1 %v19130_v41 }
0x3374   :  { %16761 = vmatpush3.bf16.msra.mxu1 %v19130_v41 }
0x3375   :  { %v17555_v42 = vpop.eup %17554  ;;  %15854 = vmatprep.subr.mxu1 %v14381_v21 }
0x3376   :  { %v7316_v17 = vmul.f32 %v17555_v42, %v17549_v0 }
0x3378   :  { %15851 = vmatprep.mubr.msk.f32.mxu1 %vm479_vm3, %v7316_v17 }
0x3379   :  { %15852 = vmatmul.mubr.msk.f32.vlgmr.msra.gmra.mrb[60].mxu1 %vm479_vm3, %v7317_v52 }
0x337a   :  { %15855 = vmatpush3.msra.mxu1 %v14381_v21 }
0x339f   :  { %v7587_v56 = vpop.xlane.xlu0 %7586 }
0x33a0   :  { %v7591_v1 = vsub.f32 %v7583_v22, %v7587_v56 }
0x33a2   :  { %v7593_v51 = vmul.f32 1.442695, %v7591_v1 }
0x33a3   :  { %v7602_v8 = vpop.xlane.xlu0 %7601 }
0x33a4   :  { %17556 = vpow2.f32 %v7593_v51  ;;  %v14383_v51 = vld [vmem:[%s20113_s12 + $0xf8] sm:$0xff] }
0x33ac   :  { %v15884_v3 = vpop.f32.mrb[64].mxu0 }
0x33ad   :  { %v7859_v47 = vpop.f32.mrb[65].mxu0  ;;  %v7869_v9 = vmul.f32 0.35355338, %v15884_v3 }
0x33ae   :  { %v17557_v54 = vpop.eup %17556  ;;  %v7868_v15 = vmul.f32 0.35355338, %v7859_v47 }
0x33af   :  { %v7597_v50 = vsel %vm479_vm3, %v17557_v54, 0.0  ;;  %v7871_v16 = vadd.f32 %v19052_v13, %v7869_v9  ;;  %v17730_v9 = vld [vmem:[%s20114_s13 + $0x4] sm:$0xf] }
0x33b0   :  { %v7870_v30 = vadd.f32 %v19046_v26, %v7868_v15  ;;  %7598 = vadd.xlane.f32.xlu0 %v7597_v50  ;;  %v19179_v15 = vrot.slane %v17730_v9, %v18110_v49 }
0x33b1   :  { %v7875_v20 = vsel %vm479_vm3, %v7871_v16, -inf }
0x33b2   :  { %v7872_v18 = vsel %vm479_vm3, %v7870_v30, -inf  ;;  %v6923_v50 = vadd.f32 %v19010_v24, %v19179_v15 }
0x33b3   :  { %7873 = vmax.xlane.f32.xlu1 %v7872_v18 }
0x33b7   :  { %7876 = vmax.xlane.f32.xlu1 %v7875_v20 }
0x33c6   :  { %17305 = vrot.lane.b32.xlu0 %v18859_v48, %s20153_s28 }
0x343d   :  { %v7599_v26 = vpop.xlane.xlu0 %7598 }
0x343e   :  { %17558 = vrcp.f32 %v7599_v26 }
0x343f   :  { %17560 = vrcp.f32 %v7602_v8 }
0x3440   :  { %v7874_v23 = vpop.xlane.xlu1 %7873 }
0x3441   :  { %v17306_v13 = vpop.permute.xlu0 %17305  ;;  %v7878_v33 = vsub.f32 %v7870_v30, %v7874_v23 }
0x3442   :  { %v17308_v19 = vunpack.i.h.bf16 %v17306_v13  ;;  %v17307_v4 = vunpack.i.l.bf16 %v17306_v13 }
0x3443   :  { %v7880_v11 = vmul.f32 1.442695, %v7878_v33 }
0x3444   :  { %v19146_v62 = vpack.c.bf16 %v17308_v19, %v17307_v4  ;;  %v7877_v12 = vpop.xlane.xlu1 %7876 }
0x3445   :  { %v7879_v10 = vsub.f32 %v7871_v16, %v7877_v12  ;;  %v6922_v16 = vadd.f32 %v19012_v25, %v19179_v15 }
0x3446   :  { %16769 = vmatprep.subr.bf16.mxu1 %v19146_v62 }
0x3447   :  { %v7882_v57 = vmul.f32 1.442695, %v7879_v10 }
0x3448   :  { %v17559_v0 = vpop.eup %17558 }
0x3449   :  { %17562 = vpow2.f32 %v7882_v57  ;;  %v17561_v59 = vpop.eup %17560  ;;  %v7605_v38 = vmul.f32 %v17559_v0, %v17557_v54  ;;  %v8103_v57 = vld [vmem:[%s20116_s15] sm:$0xff]  ;;  %v8104_v0 = vld [vmem:[%s20116_s15 + $0x8] sm:$0xff] }
0x344a   :  { %17564 = vpow2.f32 %v7880_v11  ;;  %v7606_v55 = vmul.f32 %v17561_v59, %v19126_v43  ;;  %v8106_v59 = vld [vmem:[%s20116_s15 + $0x18] sm:$0xff] }
0x344c   :  { %v15853_v27 = vpop.f32.mrb[60].mxu1 }
0x344d   :  { %v7398_v44 = vpop.f32.mrb[61].mxu1 }
0x344e   :  { %15856 = vmatprep.mubr.msk.f32.mxu1 %vm387_vm1, %v7398_v44  ;;  %v8105_v44 = vld [vmem:[%s20116_s15 + $0x10] sm:$0xff] }
0x344f   :  { %15857 = vmatmul.mubr.msk.f32.vlgmr.msra.gmra.mrb[58].mxu1 %vm387_vm1, %v15853_v27  ;;  %v16782_v27 = vpack.c.bf16 %v8104_v0, %v8103_v57  ;;  %v14466_v57 = vld [vmem:[%s20119_s18] ss:$0 sm:$0xff] }
0x3450   :  { %16771 = vmatpush3.bf16.msra.mxu1 %v19146_v62  ;;  %15870 = vmatprep.mubr.msk.f32.mxu1 %vm479_vm3, %v7605_v38  ;;  %v16786_v38 = vpack.c.bf16 %v8106_v59, %v8105_v44 }
0x3451   :  { %15873 = vmatprep.subr.mxu1 %v14382_v29  ;;  %16783 = vmatprep.subr.bf16.mxu0 %v16782_v27 }
0x3452   :  { %16785 = vmatpush3.bf16.msra.mxu0 %v16782_v27 }
0x3453   :  { %v17563_v22 = vpop.eup %17562  ;;  %15871 = vmatmul.mubr.msk.f32.vlgmr.msra.gmra.mrb[62].mxu1 %vm479_vm3, %v7606_v55  ;;  %16787 = vmatprep.subr.bf16.mxu0 %v16786_v38  ;;  %v8197_v55 = vld [vmem:[%s20118_s17] sm:$0xff] }
0x3454   :  { %v7887_v6 = vsel %vm479_vm3, %v17563_v22, 0.0  ;;  %v17565_v7 = vpop.eup %17564  ;;  %15874 = vmatpush3.msra.mxu1 %v14382_v29 }
0x3455   :  { %7888 = vadd.xlane.f32.xlu1 %v7887_v6  ;;  %v7884_v28 = vsel %vm479_vm3, %v17565_v7, 0.0  ;;  %v8199_v6 = vld [vmem:[%s20118_s17 + $0x10] sm:$0xff] }
0x3456   :  { %16789 = vmatpush3.bf16.msra.mxu0 %v16786_v38 }
0x3459   :  { %7885 = vadd.xlane.f32.xlu1 %v7884_v28  ;;  %v8200_v28 = vld [vmem:[%s20118_s17 + $0x18] sm:$0xff] }
0x345a   :  { %v16794_v29 = vpack.c.bf16 %v8200_v28, %v8199_v6 }
0x346a   :  { %17310 = vrot.lane.b32.xlu1 %v18859_v48, %s20154_s30 }
0x34e2   :  { %v7889_v43 = vpop.xlane.xlu1 %7888 }
0x34e6   :  { %v7886_v31 = vpop.xlane.xlu1 %7885 }
0x34e7   :  { %17566 = vrcp.f32 %v7886_v31  ;;  %v8202_v31 = vld [vmem:[%s20118_s17 + $0x28] sm:$0xff] }
0x34e8   :  { %17568 = vrcp.f32 %v7889_v43  ;;  %v8201_v43 = vld [vmem:[%s20118_s17 + $0x20] sm:$0xff] }
0x34ea   :  { %v17311_v36 = vpop.permute.xlu1 %17310 }
0x34eb   :  { %v17313_v40 = vunpack.i.h.bf16 %v17311_v36  ;;  %v17312_v5 = vunpack.i.l.bf16 %v17311_v36  ;;  %v16798_v36 = vpack.c.bf16 %v8202_v31, %v8201_v43 }
0x34ed   :  { %v19162_v42 = vpack.c.bf16 %v17313_v40, %v17312_v5 }
0x34ef   :  { %16779 = vmatprep.subr.bf16.mxu1 %v19162_v42 }
0x34f1   :  { %v17567_v17 = vpop.eup %17566 }
0x34f2   :  { %v17569_v56 = vpop.eup %17568  ;;  %v7892_v1 = vmul.f32 %v17567_v17, %v17565_v7 }
0x34f3   :  { %v7893_v3 = vmul.f32 %v17569_v56, %v17563_v22  ;;  %v8198_v22 = vld [vmem:[%s20118_s17 + $0x8] sm:$0xff] }
0x34f4   :  { %v16790_v7 = vpack.c.bf16 %v8198_v22, %v8197_v55 }
0x3526   :  { %v15872_v52 = vpop.f32.mrb[62].mxu1 }
0x3527   :  { %v7685_v48 = vpop.f32.mrb[63].mxu1 }
0x3528   :  { %15875 = vmatprep.mubr.msk.f32.mxu1 %vm387_vm1, %v7685_v48 }
0x3529   :  { %15876 = vmatmul.mubr.msk.f32.vlgmr.msra.gmra.mrb[58].mxu1 %vm387_vm1, %v15872_v52 }
0x352a   :  { %16781 = vmatpush3.bf16.msra.mxu1 %v19162_v42  ;;  %15889 = vmatprep.mubr.msk.f32.mxu1 %vm479_vm3, %v7892_v1  ;;  %v8064_v1 = vld [vmem:[%s20120_s19] sm:$0x3] }
0x352b   :  { %15892 = vmatprep.subr.mxu1 %v14383_v51 }
0x352d   :  { %15890 = vmatmul.mubr.msk.f32.vlgmr.msra.gmra.mrb[64].mxu1 %vm479_vm3, %v7893_v3 }
0x352e   :  { %15893 = vmatpush3.msra.mxu1 %v14383_v51  ;;  %v8094_v51 = vrot.slane %v8064_v1, %v17943_v37 }
0x352f   :  { %16791 = vmatprep.subr.bf16.mxu1 %v16790_v7 }
0x3600   :  { %v15891_v47 = vpop.f32.mrb[64].mxu1 }
0x3601   :  { %v7972_v54 = vpop.f32.mrb[65].mxu1 }
0x3602   :  { %15894 = vmatprep.mubr.msk.f32.mxu1 %vm387_vm1, %v7972_v54  ;;  %v8100_v54 = vrot.slane %v8064_v1, %v17949_v39 }
0x3603   :  { %15895 = vmatmul.mubr.msk.f32.vlgmr.msra.gmra.mrb[58].mxu1 %vm387_vm1, %v15891_v47 }
0x3604   :  { %16793 = vmatpush3.bf16.msra.mxu1 %v16790_v7 }
0x3605   :  { %16795 = vmatprep.subr.bf16.mxu1 %v16794_v29 }
0x3608   :  { %16797 = vmatpush3.bf16.msra.mxu1 %v16794_v29 }
0x3609   :  { %16799 = vmatprep.subr.bf16.mxu1 %v16798_v36 }
0x360c   :  { %16801 = vmatpush3.bf16.msra.mxu1 %v16798_v36 }
0x36d6   :  { %v15896_v30 = vpop.f32.mrb[58].mxu1 }
0x36d7   :  { %v19185_v18 = vadd.f32 %v15896_v30, %v6923_v50  ;;  %v8053_v20 = vpop.f32.mrb[59].mxu1 }
0x36d8   :  { %v19187_v21 = vadd.f32 %v8053_v20, %v6922_v16 }
0x36d9   :  { %v8068_v8 = vsel %vm98_vm0, %v19185_v18, 0.0 }
0x36da   :  { %8069 = vadd.xlane.f32.xlu1 %v8068_v8  ;;  %v8065_v26 = vsel %vm98_vm0, %v19187_v21, 0.0 }
0x36db   :  { %8066 = vadd.xlane.f32.xlu0 %v8065_v26  ;;  %v8203_v26 = vld [vmem:[%s20118_s17 + $0x30] sm:$0xff] }
0x3767   :  { %v8070_v23 = vpop.xlane.xlu1 %8069 }
0x3768   :  { %v8072_v13 = vmul.f32 0.03125, %v8070_v23  ;;  %v8067_v24 = vpop.xlane.xlu0 %8066  ;;  %v8204_v23 = vld [vmem:[%s20118_s17 + $0x38] sm:$0xff] }
0x3769   :  { %v8071_v19 = vmul.f32 0.03125, %v8067_v24  ;;  %v14461_v24 = vld [vmem:[%s20117_s16] ss:$0 sm:$0xff] }
0x376a   :  { %v8074_v4 = vsub.f32 %v19185_v18, %v8072_v13  ;;  %v16802_v13 = vpack.c.bf16 %v8204_v23, %v8203_v26 }
0x376b   :  { %v8073_v25 = vsub.f32 %v19187_v21, %v8071_v19 }
0x376c   :  { %v8076_v10 = vmul.f32 %v8074_v4, %v8074_v4  ;;  %16803 = vmatprep.subr.bf16.mxu1 %v16802_v13 }
0x376d   :  { %v8075_v33 = vmul.f32 %v8073_v25, %v8073_v25  ;;  %16805 = vmatpush3.bf16.msra.mxu1 %v16802_v13 }
0x376e   :  { %v8080_v11 = vsel %vm98_vm0, %v8076_v10, 0.0 }
0x376f   :  { %v8077_v12 = vsel %vm98_vm0, %v8075_v33, 0.0 }
0x3770   :  { %8078 = vadd.xlane.f32.xlu0 %v8077_v12 }
0x3774   :  { %8081 = vadd.xlane.f32.xlu0 %v8080_v11 }
0x37fd   :  { %v8079_v40 = vpop.xlane.xlu0 %8078 }
0x37fe   :  { %v8083_v5 = vmul.f32 0.03125, %v8079_v40 }
0x3800   :  { %v8085_v17 = vadd.f32 1e-05, %v8083_v5  ;;  %v8298_v5 = vld [vmem:[%s20113_s12] sm:$0xff] }
0x3801   :  { %v8082_v52 = vpop.xlane.xlu0 %8081 }
0x3802   :  { %17570 = vrsqrt.f32 %v8085_v17  ;;  %v8084_v48 = vmul.f32 0.03125, %v8082_v52  ;;  %v8299_v17 = vld [vmem:[%s20113_s12 + $0x8] sm:$0xff] }
0x3803   :  { %v16806_v52 = vpack.c.bf16 %v8299_v17, %v8298_v5 }
0x3804   :  { %v8086_v56 = vadd.f32 1e-05, %v8084_v48  ;;  %v8306_v48 = vld [vmem:[%s20113_s12 + $0x40] sm:$0xff] }
0x3805   :  { %16807 = vmatprep.subr.bf16.mxu0 %v16806_v52 }
0x3806   :  { %17572 = vrsqrt.f32 %v8086_v56  ;;  %v8307_v56 = vld [vmem:[%s20113_s12 + $0x48] sm:$0xff] }
0x3807   :  { %v16822_v1 = vpack.c.bf16 %v8307_v56, %v8306_v48 }
0x3809   :  { %16823 = vmatprep.subr.bf16.mxu1 %v16822_v1 }
0x380c   :  { %v17571_v3 = vpop.eup %17570 }
0x380d   :  { %v8089_v47 = vmul.f32 %v17571_v3, %v8073_v25  ;;  %v8301_v3 = vld [vmem:[%s20113_s12 + $0x18] sm:$0xff] }
0x380f   :  { %v8095_v9 = vmul.f32 %v8094_v51, %v8089_v47 }
0x3810   :  { %v17573_v50 = vpop.eup %17572 }
0x3811   :  { %v8090_v30 = vmul.f32 %v17573_v50, %v8074_v4  ;;  %v8101_v16 = vadd.f32 %v8100_v54, %v8095_v9  ;;  %v8309_v9 = vld [vmem:[%s20113_s12 + $0x58] sm:$0xff] }
0x3813   :  { %v8096_v20 = vmul.f32 %v8094_v51, %v8090_v30  ;;  %15905 = vmatprep.mubr.msk.f32.mxu0 %vm98_vm0, %v8101_v16  ;;  %v8300_v51 = vld [vmem:[%s20113_s12 + $0x10] sm:$0xff]  ;;  %v8302_v30 = vld [vmem:[%s20113_s12 + $0x20] sm:$0xff]  ;;  %v8303_v16 = vld [vmem:[%s20113_s12 + $0x28] sm:$0xff] }
0x3814   :  { %v16810_v47 = vpack.c.bf16 %v8301_v3, %v8300_v51 }
0x3815   :  { %v8102_v8 = vadd.f32 %v8100_v54, %v8096_v20  ;;  %v8308_v54 = vld [vmem:[%s20113_s12 + $0x50] sm:$0xff]  ;;  %v16814_v20 = vpack.c.bf16 %v8303_v16, %v8302_v30 }
0x3816   :  { %v16826_v50 = vpack.c.bf16 %v8309_v9, %v8308_v54 }
0x3817   :  { %15906 = vmatmul.mubr.msk.f32.vlgmr.msra.gmra.mrb[66].mxu0 %vm98_vm0, %v8102_v8 }
0x3818   :  { %16809 = vmatpush3.bf16.msra.mxu0 %v16806_v52 }
0x3819   :  { %16811 = vmatprep.subr.bf16.mxu0 %v16810_v47 }
0x381c   :  { %16813 = vmatpush3.bf16.msra.mxu0 %v16810_v47 }
0x381d   :  { %16815 = vmatprep.subr.bf16.mxu0 %v16814_v20 }
0x38ea   :  { %v15907_v19 = vpop.f32.mrb[66].mxu0 }
0x38eb   :  { %v8192_v4 = vadd.f32 %v15907_v19, %v14461_v24  ;;  %v8186_v25 = vpop.f32.mrb[67].mxu0 }
0x38ec   :  { %v8187_v33 = vadd.f32 %v14461_v24, %v8186_v25 }
0x38ed   :  { %v8196_v10 = vmax.f32 %v8192_v4, 0.0  ;;  %v8297_v4 = vld [vmem:[%s20115_s14] sm:$0x3] }
0x38ee   :  { %v8195_v12 = vmax.f32 %v8187_v33, 0.0  ;;  %v8344_v25 = vrot.slane %v8297_v4, %v17943_v37 }
0x38f0   :  { %15924 = vmatprep.mubr.msk.f32.mxu1 %vm1670_vm4, %v8195_v12 }
0x38f1   :  { %15925 = vmatmul.mubr.msk.f32.vlgmr.msra.gmra.mrb[66].mxu1 %vm1670_vm4, %v8196_v10  ;;  %v8350_v10 = vrot.slane %v8297_v4, %v17949_v39 }
0x38f2   :  { %16825 = vmatpush3.bf16.msra.mxu1 %v16822_v1 }
0x38f3   :  { %16827 = vmatprep.subr.bf16.mxu1 %v16826_v50 }
0x38f6   :  { %16829 = vmatpush3.bf16.msra.mxu1 %v16826_v50 }
0x39c4   :  { %v15926_v11 = vpop.f32.mrb[66].mxu1 }
0x39c5   :  { %v8277_v0 = vpop.f32.mrb[67].mxu1  ;;  %v8287_v27 = vadd.f32 %v19185_v18, %v15926_v11 }
0x39c6   :  { %v8286_v44 = vadd.f32 %v19187_v21, %v8277_v0 }
0x39c7   :  { %v19252_v38 = vadd.f32 %v14466_v57, %v8287_v27 }
0x39c8   :  { %v19250_v59 = vadd.f32 %v14466_v57, %v8286_v44  ;;  %v8304_v44 = vld [vmem:[%s20113_s12 + $0x30] sm:$0xff] }
0x39c9   :  { %v8318_v22 = vsel %vm98_vm0, %v19252_v38, 0.0 }
0x39ca   :  { %v8315_v55 = vsel %vm98_vm0, %v19250_v59, 0.0 }
0x39cb   :  { %8316 = vadd.xlane.f32.xlu0 %v8315_v55  ;;  %v8305_v55 = vld [vmem:[%s20113_s12 + $0x38] sm:$0xff] }
0x39cf   :  { %8319 = vadd.xlane.f32.xlu0 %v8318_v22 }
0x3a58   :  { %v8317_v6 = vpop.xlane.xlu0 %8316 }
0x3a59   :  { %v8321_v7 = vmul.f32 0.03125, %v8317_v6 }
0x3a5b   :  { %v8323_v28 = vsub.f32 %v19250_v59, %v8321_v7  ;;  %v16818_v7 = vpack.c.bf16 %v8305_v55, %v8304_v44 }
0x3a5c   :  { %v8320_v29 = vpop.xlane.xlu0 %8319 }
0x3a5d   :  { %v8322_v18 = vmul.f32 0.03125, %v8320_v29  ;;  %v8325_v43 = vmul.f32 %v8323_v28, %v8323_v28 }
0x3a5f   :  { %v8324_v21 = vsub.f32 %v19252_v38, %v8322_v18  ;;  %v8327_v31 = vsel %vm98_vm0, %v8325_v43, 0.0 }
0x3a60   :  { %8328 = vadd.xlane.f32.xlu0 %v8327_v31 }
0x3a61   :  { %v8326_v36 = vmul.f32 %v8324_v21, %v8324_v21 }
0x3a63   :  { %v8330_v40 = vsel %vm98_vm0, %v8326_v36, 0.0 }
0x3a64   :  { %8331 = vadd.xlane.f32.xlu1 %v8330_v40 }
0x3aed   :  { %v8329_v8 = vpop.xlane.xlu0 %8328 }
0x3aee   :  { %v8333_v26 = vmul.f32 0.03125, %v8329_v8 }
0x3af0   :  { %v8335_v23 = vadd.f32 1e-05, %v8333_v26 }
0x3af1   :  { %v8332_v13 = vpop.xlane.xlu1 %8331 }
0x3af2   :  { %17574 = vrsqrt.f32 %v8335_v23  ;;  %v8334_v24 = vmul.f32 0.03125, %v8332_v13 }
0x3af4   :  { %v8336_v19 = vadd.f32 1e-05, %v8334_v24 }
0x3af6   :  { %17576 = vrsqrt.f32 %v8336_v19 }
0x3afc   :  { %v17575_v33 = vpop.eup %17574 }
0x3afd   :  { %v8339_v12 = vmul.f32 %v17575_v33, %v8323_v28  ;;  %v19312_v28 = vld [vmem:[%s20114_s13] sm:$0xf] }
0x3afe   :  { %v8520_v29 = vrot.slane %v19312_v28, %v17975_v61  ;;  %v8356_v18 = vrot.slane %v19312_v28, %v17943_v37  ;;  %v8441_v56 = vrot.slane %v19312_v28, %v17949_v39 }
0x3aff   :  { %v8345_v11 = vmul.f32 %v8344_v25, %v8339_v12  ;;  %v19357_v12 = vld [vmem:[%s20157_s5] sm:$0xff] }
0x3b00   :  { %v17577_v57 = vpop.eup %17576 }
0x3b01   :  { %v8340_v0 = vmul.f32 %v17577_v57, %v8324_v21  ;;  %v8351_v27 = vadd.f32 %v8350_v10, %v8345_v11 }
0x3b03   :  { %v8346_v22 = vmul.f32 %v8344_v25, %v8340_v0  ;;  %15935 = vmatprep.mubr.msk.f32.mxu0 %vm98_vm0, %v8351_v27  ;;  %15957 = vmatprep.mubr.msk.f32.mxu1 %vm98_vm0, %v8351_v27  ;;  %v19351_v25 = vld [vmem:[%s20157_s5 + $0x8] sm:$0xff] }
0x3b05   :  { %v8352_v6 = vadd.f32 %v8350_v10, %v8346_v22 }
0x3b07   :  { %15936 = vmatmul.mubr.msk.f32.vlgmr.msra.gmra.mrb[68].mxu0 %vm98_vm0, %v8352_v6  ;;  %15958 = vmatmul.mubr.msk.f32.vlgmr.msra.gmra.mrb[68].mxu1 %vm98_vm0, %v8352_v6 }
0x3b08   :  { %16817 = vmatpush3.bf16.msra.mxu0 %v16814_v20  ;;  %15946 = vmatprep.mubr.msk.f32.mxu0 %vm98_vm0, %v8351_v27 }
0x3b09   :  { %16819 = vmatprep.subr.bf16.mxu0 %v16818_v7 }
0x3b0c   :  { %16821 = vmatpush3.bf16.msra.mxu0 %v16818_v7 }
0x3b0f   :  { %15947 = vmatmul.mubr.msk.f32.vlgmr.msra.gmra.mrb[70].mxu0 %vm98_vm0, %v8352_v6 }
0x3bda   :  { %v15937_v43 = vpop.f32.mrb[68].mxu0  ;;  %v15959_v21 = vpop.f32.mrb[68].mxu1 }
0x3bdb   :  { %v8593_v31 = vadd.f32 %v15959_v21, %v8520_v29  ;;  %v8429_v36 = vpop.f32.mrb[69].mxu0  ;;  %v8587_v40 = vpop.f32.mrb[69].mxu1  ;;  %v19328_v1 = vadd.f32 %v15937_v43, %v8356_v18 }
0x3bdc   :  { %v19318_v5 = vadd.f32 %v8429_v36, %v8356_v18  ;;  %v8588_v17 = vadd.f32 %v8587_v40, %v8520_v29 }
0x3bde   :  { %8879 = vrot.lane.b32.xlu1 %v19318_v5, %s20155_s0  ;;  %15964 = vmatprep.mubr.msk.f32.mxu0 %vm387_vm1, %v19318_v5  ;;  %v16836_v52 = vpack.c.bf16 %v8593_v31, %v8588_v17  ;;  %v19324_v48 = vpack.i.bf16 %v8593_v31, %v8588_v17 }
0x3be0   :  { %16837 = vmatprep.subr.bf16.mxu1 %v16836_v52 }
0x3be1   :  { %16839 = vmatpush3.bf16.msra.mxu1 %v16836_v52 }
0x3be2   :  { %v15948_v51 = vpop.f32.mrb[70].mxu0  ;;  %8881 = vrot.lane.b32.xlu1 %v19328_v1, %s20155_s0 }
0x3be3   :  { %v8514_v3 = vadd.f32 %v15948_v51, %v8441_v56  ;;  %v8508_v47 = vpop.f32.mrb[71].mxu0 }
0x3be4   :  { %v8509_v54 = vadd.f32 %v8508_v47, %v8441_v56 }
0x3be6   :  { %v19332_v9 = vpack.i.bf16 %v8514_v3, %v8509_v54  ;;  %v16830_v50 = vpack.c.bf16 %v8514_v3, %v8509_v54 }
0x3be8   :  { %17315 = vrot.lane.b32.xlu0 %v19332_v9, %s20155_s0  ;;  %16832 = vmatprep.subr.msk.bf16.mxu0 %vm17981_vm2, %v16830_v50 }
0x3be9   :  { %16835 = vmatpush3.bf16.xpose.msk.msra.mxu0 %vm17981_vm2, %v16830_v50 }
0x3bf0   :  { %15965 = vmatmul.mubr.msk.f32.vlgmr.msra.gmra.mrb[72].mxu0 %vm387_vm1, %v19328_v1 }
0x3c50   :  { %v8880_v30 = vpop.permute.xlu1 %8879 }
0x3c51   :  { %15983 = vmatprep.mubr.msk.f32.mxu0 %vm387_vm1, %v8880_v30 }
0x3c54   :  { %v8882_v23 = vpop.permute.xlu1 %8881 }
0x3c5a   :  { %v17316_v16 = vpop.permute.xlu0 %17315 }
0x3c5b   :  { %v17318_v20 = vunpack.i.h.bf16 %v17316_v16  ;;  %v17317_v8 = vunpack.i.l.bf16 %v17316_v16 }
0x3c5d   :  { %v16840_v26 = vpack.c.bf16 %v17318_v20, %v17317_v8 }
0x3c5f   :  { %16842 = vmatprep.subr.msk.bf16.mxu0 %vm17981_vm2, %v16840_v26 }
0x3c60   :  { %16845 = vmatpush3.bf16.xpose.msk.msra.mxu0 %vm17981_vm2, %v16840_v26 }
0x3c67   :  { %15984 = vmatmul.mubr.msk.f32.vlgmr.msra.gmra.mrb[74].mxu0 %vm387_vm1, %v8882_v23 }
0x3cc3   :  { %v15966_v13 = vpop.f32.mrb[72].mxu0 }
0x3cc4   :  { %v8690_v24 = vmul.f32 0.35355338, %v15966_v13  ;;  %v8680_v19 = vpop.f32.mrb[73].mxu0  ;;  %v8310_v13 = vld [vmem:[%s20113_s12 + $0x60] sm:$0xff] }
0x3cc5   :  { %v8689_v4 = vmul.f32 0.35355338, %v8680_v19  ;;  %15974 = vmatprep.subr.mxu1 %v8310_v13 }
0x3cc6   :  { %v8692_v33 = vadd.f32 %v19351_v25, %v8690_v24 }
0x3cc7   :  { %v8691_v10 = vadd.f32 %v19357_v12, %v8689_v4 }
0x3cc8   :  { %v8696_v11 = vsel %vm479_vm3, %v8692_v33, -inf }
0x3cc9   :  { %8697 = vmax.xlane.f32.xlu0 %v8696_v11  ;;  %v8693_v57 = vsel %vm479_vm3, %v8691_v10, -inf }
0x3cca   :  { %8694 = vmax.xlane.f32.xlu1 %v8693_v57 }
0x3cdb   :  { %17320 = vrot.lane.b32.xlu1 %v19332_v9, %s20153_s28 }
0x3cdf   :  { %9170 = vrot.lane.b32.xlu1 %v19328_v1, %s20153_s28 }
0x3d3a   :  { %v15985_v0 = vpop.f32.mrb[74].mxu0 }
0x3d3b   :  { %v8961_v27 = vpop.f32.mrb[75].mxu0  ;;  %v8971_v47 = vmul.f32 0.35355338, %v15985_v0 }
0x3d3c   :  { %v8970_v44 = vmul.f32 0.35355338, %v8961_v27 }
0x3d3d   :  { %v8973_v54 = vadd.f32 %v19351_v25, %v8971_v47 }
0x3d3e   :  { %v8972_v55 = vadd.f32 %v19357_v12, %v8970_v44 }
0x3d3f   :  { %v8977_v50 = vsel %vm479_vm3, %v8973_v54, -inf }
0x3d40   :  { %v8974_v22 = vsel %vm479_vm3, %v8972_v55, -inf }
0x3d41   :  { %8975 = vmax.xlane.f32.xlu1 %v8974_v22 }
0x3d56   :  { %v8698_v6 = vpop.xlane.xlu0 %8697 }
0x3d57   :  { %v8700_v7 = vsub.f32 %v8692_v33, %v8698_v6  ;;  %v8695_v29 = vpop.xlane.xlu1 %8694 }
0x3d58   :  { %v8699_v18 = vsub.f32 %v8691_v10, %v8695_v29 }
0x3d59   :  { %v8703_v43 = vmul.f32 1.442695, %v8700_v7 }
0x3d5a   :  { %v8701_v21 = vmul.f32 1.442695, %v8699_v18 }
0x3d5b   :  { %v17321_v31 = vpop.permute.xlu1 %17320 }
0x3d5c   :  { %17578 = vpow2.f32 %v8701_v21  ;;  %v17323_v36 = vunpack.i.h.bf16 %v17321_v31  ;;  %v17322_v40 = vunpack.i.l.bf16 %v17321_v31 }
0x3d5d   :  { %17580 = vpow2.f32 %v8703_v43 }
0x3d5e   :  { %v16850_v17 = vpack.c.bf16 %v17323_v36, %v17322_v40 }
0x3d5f   :  { %v9171_v30 = vpop.permute.xlu1 %9170 }
0x3d60   :  { %16852 = vmatprep.subr.msk.bf16.mxu0 %vm17981_vm2, %v16850_v17 }
0x3d61   :  { %16855 = vmatpush3.bf16.xpose.msk.msra.mxu0 %vm17981_vm2, %v16850_v17 }
0x3d66   :  { %v17579_v52 = vpop.eup %17578 }
0x3d67   :  { %v8705_v56 = vsel %vm479_vm3, %v17579_v52, 0.0  ;;  %v17581_v51 = vpop.eup %17580 }
0x3d68   :  { %8706 = vadd.xlane.f32.xlu0 %v8705_v56  ;;  %v8708_v3 = vsel %vm479_vm3, %v17581_v51, 0.0 }
0x3d6c   :  { %8709 = vadd.xlane.f32.xlu0 %v8708_v3 }
0x3d82   :  { %9168 = vrot.lane.b32.xlu0 %v19318_v5, %s20153_s28 }
0x3da1   :  { %8978 = vmax.xlane.f32.xlu0 %v8977_v50 }
0x3dce   :  { %v8976_v16 = vpop.xlane.xlu1 %8975 }
0x3dcf   :  { %v8980_v20 = vsub.f32 %v8972_v55, %v8976_v16 }
0x3dd1   :  { %v8982_v8 = vmul.f32 1.442695, %v8980_v20 }
0x3dd3   :  { %17582 = vpow2.f32 %v8982_v8 }
0x3ddd   :  { %v19378_v26 = vpop.eup %17582 }
0x3dde   :  { %v8986_v23 = vsel %vm479_vm3, %v19378_v26, 0.0 }
0x3ddf   :  { %8987 = vadd.xlane.f32.xlu0 %v8986_v23 }
0x3df5   :  { %v8707_v24 = vpop.xlane.xlu0 %8706  ;;  %17325 = vrot.lane.b32.xlu0 %v19324_v48, %s20155_s0 }
0x3df6   :  { %17584 = vrcp.f32 %v8707_v24 }
0x3df9   :  { %v8710_v19 = vpop.xlane.xlu0 %8709 }
0x3dfa   :  { %17586 = vrcp.f32 %v8710_v19 }
0x3dfd   :  { %v9169_v4 = vpop.permute.xlu0 %9168 }
0x3dfe   :  { %16002 = vmatprep.mubr.msk.f32.mxu0 %vm387_vm1, %v9169_v4 }
0x3dff   :  { %16003 = vmatmul.mubr.msk.f32.vlgmr.msra.gmra.mrb[76].mxu0 %vm387_vm1, %v9171_v30 }
0x3e00   :  { %v17585_v33 = vpop.eup %17584 }
0x3e01   :  { %v8713_v10 = vmul.f32 %v17585_v33, %v17579_v52 }
0x3e03   :  { %15971 = vmatprep.mubr.msk.f32.mxu1 %vm479_vm3, %v8713_v10 }
0x3e04   :  { %v17587_v11 = vpop.eup %17586 }
0x3e05   :  { %v8714_v57 = vmul.f32 %v17587_v11, %v17581_v51 }
0x3e07   :  { %15972 = vmatmul.mubr.msk.f32.vlgmr.msra.gmra.mrb[70].mxu1 %vm479_vm3, %v8714_v57 }
0x3e08   :  { %15975 = vmatpush3.msra.mxu1 %v8310_v13 }
0x3e2e   :  { %v8979_v0 = vpop.xlane.xlu0 %8978 }
0x3e2f   :  { %v8981_v27 = vsub.f32 %v8973_v54, %v8979_v0 }
0x3e31   :  { %v8984_v44 = vmul.f32 1.442695, %v8981_v27 }
0x3e33   :  { %17588 = vpow2.f32 %v8984_v44 }
0x3e3d   :  { %v17589_v55 = vpop.eup %17588 }
0x3e3e   :  { %v8989_v22 = vsel %vm479_vm3, %v17589_v55, 0.0 }
0x3e3f   :  { %8990 = vadd.xlane.f32.xlu1 %v8989_v22 }
0x3e50   :  { %17330 = vrot.lane.b32.xlu1 %v19332_v9, %s20154_s30 }
0x3e54   :  { %9455 = vrot.lane.b32.xlu1 %v19318_v5, %s20154_s30 }
0x3e58   :  { %9457 = vrot.lane.b32.xlu1 %v19328_v1, %s20154_s30 }
0x3e6c   :  { %v8988_v6 = vpop.xlane.xlu0 %8987 }
0x3e6d   :  { %17590 = vrcp.f32 %v8988_v6 }
0x3e70   :  { %v17326_v7 = vpop.permute.xlu0 %17325 }
0x3e71   :  { %v17328_v29 = vunpack.i.h.bf16 %v17326_v7  ;;  %v17327_v18 = vunpack.i.l.bf16 %v17326_v7 }
0x3e73   :  { %v16846_v43 = vpack.c.bf16 %v17328_v29, %v17327_v18 }
0x3e75   :  { %16847 = vmatprep.subr.bf16.mxu1 %v16846_v43 }
0x3e77   :  { %v17591_v50 = vpop.eup %17590 }
0x3e78   :  { %v8994_v23 = vmul.f32 %v17591_v50, %v19378_v26  ;;  %v8311_v26 = vld [vmem:[%s20113_s12 + $0x68] sm:$0xff] }
0x3ecc   :  { %v8991_v21 = vpop.xlane.xlu1 %8990 }
0x3ecd   :  { %17592 = vrcp.f32 %v8991_v21 }
0x3ed0   :  { %v17331_v31 = vpop.permute.xlu1 %17330 }
0x3ed1   :  { %v17333_v36 = vunpack.i.h.bf16 %v17331_v31  ;;  %v17332_v40 = vunpack.i.l.bf16 %v17331_v31 }
0x3ed2   :  { %v16004_v17 = vpop.f32.mrb[76].mxu0 }
0x3ed3   :  { %v16860_v9 = vpack.c.bf16 %v17333_v36, %v17332_v40  ;;  %v9260_v52 = vmul.f32 0.35355338, %v16004_v17  ;;  %v9250_v56 = vpop.f32.mrb[77].mxu0 }
0x3ed4   :  { %v9259_v5 = vmul.f32 0.35355338, %v9250_v56  ;;  %v9456_v51 = vpop.permute.xlu1 %9455 }
0x3ed5   :  { %v9262_v1 = vadd.f32 %v19351_v25, %v9260_v52  ;;  %16862 = vmatprep.subr.msk.bf16.mxu0 %vm17981_vm2, %v16860_v9  ;;  %16021 = vmatprep.mubr.msk.f32.mxu0 %vm387_vm1, %v9456_v51 }
0x3ed6   :  { %v9261_v3 = vadd.f32 %v19357_v12, %v9259_v5  ;;  %16865 = vmatpush3.bf16.xpose.msk.msra.mxu0 %vm17981_vm2, %v16860_v9 }
0x3ed7   :  { %v9266_v47 = vsel %vm479_vm3, %v9262_v1, -inf  ;;  %16871 = vmatprep.subr.bf16.mxu0 %v18939_v34  ;;  %v17593_v20 = vpop.eup %17592 }
0x3ed8   :  { %9267 = vmax.xlane.f32.xlu1 %v9266_v47  ;;  %v9263_v54 = vsel %vm479_vm3, %v9261_v3, -inf  ;;  %v9458_v8 = vpop.permute.xlu1 %9457  ;;  %v8995_v13 = vmul.f32 %v17593_v20, %v17589_v55 }
0x3ed9   :  { %9264 = vmax.xlane.f32.xlu0 %v9263_v54 }
0x3eda   :  { %v15973_v30 = vpop.f32.mrb[70].mxu1 }
0x3edb   :  { %v8787_v16 = vpop.f32.mrb[71].mxu1 }
0x3edc   :  { %15976 = vmatprep.mubr.msk.f32.mxu1 %vm387_vm1, %v8787_v16 }
0x3edd   :  { %15977 = vmatmul.mubr.msk.f32.vlgmr.msra.gmra.mrb[72].mxu1 %vm387_vm1, %v15973_v30  ;;  %16022 = vmatmul.mubr.msk.f32.vlgmr.msra.gmra.mrb[78].mxu0 %vm387_vm1, %v9458_v8 }
0x3ede   :  { %16849 = vmatpush3.bf16.msra.mxu1 %v16846_v43  ;;  %15990 = vmatprep.mubr.msk.f32.mxu1 %vm479_vm3, %v8994_v23 }
0x3edf   :  { %16873 = vmatpush3.bf16.msra.mxu0 %v18939_v34  ;;  %15993 = vmatprep.subr.mxu1 %v8311_v26 }
0x3ee0   :  { %16875 = vmatprep.subr.bf16.mxu0 %v18959_v14 }
0x3ee1   :  { %15991 = vmatmul.mubr.msk.f32.vlgmr.msra.gmra.mrb[74].mxu1 %vm479_vm3, %v8995_v13 }
0x3ee2   :  { %15994 = vmatpush3.msra.mxu1 %v8311_v26  ;;  %v8312_v26 = vld [vmem:[%s20113_s12 + $0x70] sm:$0xff] }
0x3ee3   :  { %16877 = vmatpush3.bf16.msra.mxu0 %v18959_v14 }
0x3ee4   :  { %16885 = vmatprep.subr.bf16.mxu0 %v18857_v45 }
0x3f65   :  { %v9268_v24 = vpop.xlane.xlu1 %9267 }
0x3f66   :  { %v9270_v19 = vsub.f32 %v9262_v1, %v9268_v24  ;;  %v9265_v4 = vpop.xlane.xlu0 %9264 }
0x3f67   :  { %v9269_v33 = vsub.f32 %v9261_v3, %v9265_v4 }
0x3f68   :  { %v9273_v10 = vmul.f32 1.442695, %v9270_v19 }
0x3f69   :  { %v9271_v11 = vmul.f32 1.442695, %v9269_v33 }
0x3f6a   :  { %17594 = vpow2.f32 %v9273_v10 }
0x3f6b   :  { %17596 = vpow2.f32 %v9271_v11 }
0x3f74   :  { %v17595_v57 = vpop.eup %17594 }
0x3f75   :  { %v9278_v0 = vsel %vm479_vm3, %v17595_v57, 0.0  ;;  %v17597_v27 = vpop.eup %17596 }
0x3f76   :  { %9279 = vadd.xlane.f32.xlu0 %v9278_v0  ;;  %v9275_v44 = vsel %vm479_vm3, %v17597_v27, 0.0 }
0x3f7a   :  { %9276 = vadd.xlane.f32.xlu0 %v9275_v44 }
0x3f90   :  { %17335 = vrot.lane.b32.xlu0 %v19324_v48, %s20153_s28 }
0x3fb0   :  { %v16023_v55 = vpop.f32.mrb[78].mxu0 }
0x3fb1   :  { %v9537_v22 = vpop.f32.mrb[79].mxu0  ;;  %v9547_v6 = vmul.f32 0.35355338, %v16023_v55 }
0x3fb2   :  { %v9546_v7 = vmul.f32 0.35355338, %v9537_v22 }
0x3fb3   :  { %v9549_v21 = vadd.f32 %v19351_v25, %v9547_v6 }
0x3fb4   :  { %v9548_v29 = vadd.f32 %v19357_v12, %v9546_v7  ;;  %v15992_v18 = vpop.f32.mrb[74].mxu1 }
0x3fb5   :  { %v9076_v43 = vpop.f32.mrb[75].mxu1  ;;  %v9553_v36 = vsel %vm479_vm3, %v9549_v21, -inf }
0x3fb6   :  { %15995 = vmatprep.mubr.msk.f32.mxu1 %vm387_vm1, %v9076_v43  ;;  %v9550_v31 = vsel %vm479_vm3, %v9548_v29, -inf }
0x3fb7   :  { %15996 = vmatmul.mubr.msk.f32.vlgmr.msra.gmra.mrb[72].mxu1 %vm387_vm1, %v15992_v18  ;;  %9551 = vmax.xlane.f32.xlu1 %v9550_v31  ;;  %v8599_v18 = vrot.slane %v19312_v28, %v18110_v49 }
0x3fb9   :  { %v8601_v43 = vadd.f32 %v8599_v18, %v19252_v38  ;;  %v8600_v31 = vadd.f32 %v8599_v18, %v19250_v59 }
0x3fbb   :  { %9554 = vmax.xlane.f32.xlu1 %v9553_v36 }
0x4003   :  { %v9280_v40 = vpop.xlane.xlu0 %9279 }
0x4004   :  { %17598 = vrcp.f32 %v9280_v40 }
0x4007   :  { %v9277_v17 = vpop.xlane.xlu0 %9276 }
0x4008   :  { %17600 = vrcp.f32 %v9277_v17 }
0x400b   :  { %v17336_v9 = vpop.permute.xlu0 %17335 }
0x400c   :  { %v17338_v12 = vunpack.i.h.bf16 %v17336_v9  ;;  %v17337_v52 = vunpack.i.l.bf16 %v17336_v9 }
0x400e   :  { %v16856_v56 = vpack.c.bf16 %v17338_v12, %v17337_v52  ;;  %v17599_v25 = vpop.eup %17598 }
0x400f   :  { %v9284_v1 = vmul.f32 %v17599_v25, %v17595_v57 }
0x4010   :  { %16857 = vmatprep.subr.bf16.mxu1 %v16856_v56 }
0x4011   :  { %16859 = vmatpush3.bf16.msra.mxu1 %v16856_v56 }
0x4012   :  { %v17601_v5 = vpop.eup %17600  ;;  %16012 = vmatprep.subr.mxu1 %v8312_v26 }
0x4013   :  { %v9283_v51 = vmul.f32 %v17601_v5, %v17597_v27  ;;  %v8313_v27 = vld [vmem:[%s20113_s12 + $0x78] sm:$0xff] }
0x4015   :  { %16009 = vmatprep.mubr.msk.f32.mxu1 %vm479_vm3, %v9283_v51 }
0x4016   :  { %16010 = vmatmul.mubr.msk.f32.vlgmr.msra.gmra.mrb[76].mxu1 %vm479_vm3, %v9284_v1 }
0x4017   :  { %16013 = vmatpush3.msra.mxu1 %v8312_v26 }
0x4044   :  { %v9552_v3 = vpop.xlane.xlu1 %9551 }
0x4045   :  { %v9556_v47 = vsub.f32 %v9548_v29, %v9552_v3  ;;  %v17733_v29 = vld [vmem:[%s20113_s12 + $0xe0] sm:$0xff] }
0x4047   :  { %v9558_v30 = vmul.f32 1.442695, %v9556_v47 }
0x4048   :  { %v9555_v54 = vpop.xlane.xlu1 %9554 }
0x4049   :  { %v9557_v50 = vsub.f32 %v9549_v21, %v9555_v54 }
0x404b   :  { %v9560_v16 = vmul.f32 1.442695, %v9557_v50 }
0x404d   :  { %17602 = vpow2.f32 %v9560_v16 }
0x404e   :  { %17604 = vpow2.f32 %v9558_v30 }
0x4057   :  { %v17603_v20 = vpop.eup %17602 }
0x4058   :  { %v9565_v8 = vsel %vm479_vm3, %v17603_v20, 0.0  ;;  %v17605_v23 = vpop.eup %17604 }
0x4059   :  { %9566 = vadd.xlane.f32.xlu1 %v9565_v8  ;;  %v9562_v13 = vsel %vm479_vm3, %v17605_v23, 0.0 }
0x405d   :  { %9563 = vadd.xlane.f32.xlu1 %v9562_v13 }
0x406e   :  { %17340 = vrot.lane.b32.xlu1 %v19324_v48, %s20154_s30 }
0x40e6   :  { %v9567_v24 = vpop.xlane.xlu1 %9566 }
0x40e7   :  { %17606 = vrcp.f32 %v9567_v24 }
0x40e9   :  { %v16011_v19 = vpop.f32.mrb[76].mxu1 }
0x40ea   :  { %v9564_v4 = vpop.xlane.xlu1 %9563  ;;  %v9363_v33 = vpop.f32.mrb[77].mxu1 }
0x40eb   :  { %17608 = vrcp.f32 %v9564_v4  ;;  %16014 = vmatprep.mubr.msk.f32.mxu1 %vm387_vm1, %v9363_v33 }
0x40ec   :  { %16015 = vmatmul.mubr.msk.f32.vlgmr.msra.gmra.mrb[72].mxu1 %vm387_vm1, %v16011_v19 }
0x40ee   :  { %v17341_v10 = vpop.permute.xlu1 %17340 }
0x40ef   :  { %v17343_v11 = vunpack.i.h.bf16 %v17341_v10  ;;  %v17342_v57 = vunpack.i.l.bf16 %v17341_v10 }
0x40f1   :  { %v16866_v0 = vpack.c.bf16 %v17343_v11, %v17342_v57  ;;  %v17607_v48 = vpop.eup %17606 }
0x40f2   :  { %v9571_v22 = vmul.f32 %v17607_v48, %v17603_v20 }
0x40f3   :  { %16867 = vmatprep.subr.bf16.mxu1 %v16866_v0 }
0x40f4   :  { %16869 = vmatpush3.bf16.msra.mxu1 %v16866_v0 }
0x40f5   :  { %v17609_v44 = vpop.eup %17608  ;;  %16031 = vmatprep.subr.mxu1 %v8313_v27 }
0x40f6   :  { %v9570_v55 = vmul.f32 %v17609_v44, %v17605_v23 }
0x40f8   :  { %16028 = vmatprep.mubr.msk.f32.mxu1 %vm479_vm3, %v9570_v55 }
0x40f9   :  { %16029 = vmatmul.mubr.msk.f32.vlgmr.msra.gmra.mrb[78].mxu1 %vm479_vm3, %v9571_v22  ;;  %v19498_v22 = vld [vmem:[%s20152_s6] sm:$0xff] }
0x40fa   :  { %16032 = vmatpush3.msra.mxu1 %v8313_v27 }
0x40fb   :  { %16880 = vmatprep.subr.msk.bf16.mxu1 %vm17981_vm2, %v18841_v32 }
0x41cc   :  { %v16030_v6 = vpop.f32.mrb[78].mxu1 }
0x41cd   :  { %v9650_v7 = vpop.f32.mrb[79].mxu1 }
0x41ce   :  { %16033 = vmatprep.mubr.msk.f32.mxu1 %vm387_vm1, %v9650_v7  ;;  %v19504_v7 = vld [vmem:[%s20152_s6 + $0x8] sm:$0xff] }
0x41cf   :  { %16034 = vmatmul.mubr.msk.f32.vlgmr.msra.gmra.mrb[72].mxu1 %vm387_vm1, %v16030_v6 }
0x41d0   :  { %16883 = vmatpush3.bf16.xpose.msk.msra.mxu1 %vm17981_vm2, %v18841_v32 }
0x41d1   :  { %16061 = vmatprep.subr.mxu1 %v17733_v29 }
0x42a2   :  { %v16035_v21 = vpop.f32.mrb[72].mxu1 }
0x42a3   :  { %v19462_v36 = vadd.f32 %v16035_v21, %v8601_v43  ;;  %v9731_v40 = vpop.f32.mrb[73].mxu1 }
0x42a4   :  { %v19464_v17 = vadd.f32 %v9731_v40, %v8600_v31 }
0x42a5   :  { %v9745_v9 = vsel %vm98_vm0, %v19462_v36, 0.0 }
0x42a6   :  { %9746 = vadd.xlane.f32.xlu1 %v9745_v9  ;;  %v9742_v12 = vsel %vm98_vm0, %v19464_v17, 0.0 }
0x42a7   :  { %9743 = vadd.xlane.f32.xlu0 %v9742_v12 }
0x4333   :  { %v9747_v52 = vpop.xlane.xlu1 %9746 }
0x4334   :  { %v9749_v28 = vmul.f32 0.03125, %v9747_v52  ;;  %v9744_v56 = vpop.xlane.xlu0 %9743 }
0x4335   :  { %v9748_v38 = vmul.f32 0.03125, %v9744_v56 }
0x4336   :  { %v9751_v25 = vsub.f32 %v19462_v36, %v9749_v28 }
0x4337   :  { %v9750_v59 = vsub.f32 %v19464_v17, %v9748_v38 }
0x4338   :  { %v9753_v1 = vmul.f32 %v9751_v25, %v9751_v25 }
0x4339   :  { %v9752_v5 = vmul.f32 %v9750_v59, %v9750_v59 }
0x433a   :  { %v9757_v3 = vsel %vm98_vm0, %v9753_v1, 0.0 }
0x433b   :  { %v9754_v51 = vsel %vm98_vm0, %v9752_v5, 0.0 }
0x433c   :  { %9755 = vadd.xlane.f32.xlu0 %v9754_v51 }
0x4340   :  { %9758 = vadd.xlane.f32.xlu0 %v9757_v3 }
0x43c9   :  { %v9756_v47 = vpop.xlane.xlu0 %9755 }
0x43ca   :  { %v9760_v54 = vmul.f32 0.03125, %v9756_v47 }
0x43cc   :  { %v9762_v50 = vadd.f32 1e-05, %v9760_v54 }
0x43cd   :  { %v9759_v30 = vpop.xlane.xlu0 %9758 }
0x43ce   :  { %17610 = vrsqrt.f32 %v9762_v50  ;;  %v9761_v16 = vmul.f32 0.03125, %v9759_v30 }
0x43d0   :  { %v9763_v20 = vadd.f32 1e-05, %v9761_v16 }
0x43d2   :  { %17612 = vrsqrt.f32 %v9763_v20 }
0x43d8   :  { %v17611_v8 = vpop.eup %17610 }
0x43d9   :  { %v9766_v23 = vmul.f32 %v17611_v8, %v9750_v59 }
0x43db   :  { %v9768_v13 = vmul.f32 %v9766_v23, %v18775_v46  ;;  %v17736_v23 = vld [vmem:[%s20113_s12 + $0xe8] sm:$0xff] }
0x43dc   :  { %v17613_v26 = vpop.eup %17612 }
0x43dd   :  { %v9767_v24 = vmul.f32 %v17613_v26, %v9751_v25  ;;  %v9770_v19 = vadd.f32 %v9768_v13, %v18779_v35 }
0x43df   :  { %16044 = vmatprep.mubr.msk.f32.mxu0 %vm98_vm0, %v9770_v19  ;;  %v9769_v4 = vmul.f32 %v9767_v24, %v18775_v46 }
0x43e1   :  { %v9771_v33 = vadd.f32 %v9769_v4, %v18779_v35 }
0x43e3   :  { %16045 = vmatmul.mubr.msk.f32.vlgmr.msra.gmra.mrb[80].mxu0 %vm98_vm0, %v9771_v33 }
0x43e4   :  { %16887 = vmatpush3.bf16.msra.mxu0 %v18857_v45 }
0x43e5   :  { %16890 = vmatprep.subr.msk.bf16.mxu0 %vm17981_vm2, %v19071_v53 }
0x44b6   :  { %v16046_v10 = vpop.f32.mrb[80].mxu0 }
0x44b7   :  { %v9844_v11 = vpop.f32.mrb[81].mxu0  ;;  %v19488_v0 = vadd.f32 %v16046_v10, %v19031_v58 }
0x44b8   :  { %v19485_v57 = vadd.f32 %v9844_v11, %v19031_v58 }
0x44ba   :  { %16051 = vmatprep.mubr.msk.f32.mxu1 %vm387_vm1, %v19485_v57 }
0x44bb   :  { %16052 = vmatmul.mubr.msk.f32.vlgmr.msra.gmra.mrb[80].mxu1 %vm387_vm1, %v19488_v0 }
0x44bc   :  { %16062 = vmatpush3.msra.mxu1 %v17733_v29 }
0x44bd   :  { %16895 = vmatprep.subr.bf16.mxu1 %v19130_v41 }
0x458e   :  { %v16053_v27 = vpop.f32.mrb[80].mxu1 }
0x458f   :  { %v9927_v48 = vpop.f32.mrb[81].mxu1  ;;  %v9937_v44 = vmul.f32 0.35355338, %v16053_v27 }
0x4590   :  { %v9936_v55 = vmul.f32 0.35355338, %v9927_v48 }
0x4591   :  { %v9939_v29 = vadd.f32 %v19504_v7, %v9937_v44 }
0x4592   :  { %v9938_v6 = vadd.f32 %v19498_v22, %v9936_v55 }
0x4593   :  { %v9943_v43 = vsel %vm479_vm3, %v9939_v29, -inf }
0x4594   :  { %v9940_v18 = vsel %vm479_vm3, %v9938_v6, -inf }
0x4595   :  { %9941 = vmax.xlane.f32.xlu0 %v9940_v18 }
0x4599   :  { %9944 = vmax.xlane.f32.xlu0 %v9943_v43 }
0x4622   :  { %v9942_v21 = vpop.xlane.xlu0 %9941 }
0x4623   :  { %v9946_v31 = vsub.f32 %v9938_v6, %v9942_v21 }
0x4625   :  { %v9948_v40 = vmul.f32 1.442695, %v9946_v31 }
0x4626   :  { %v9945_v9 = vpop.xlane.xlu0 %9944 }
0x4627   :  { %17614 = vpow2.f32 %v9948_v40  ;;  %v9947_v12 = vsub.f32 %v9939_v29, %v9945_v9 }
0x4629   :  { %v9950_v52 = vmul.f32 1.442695, %v9947_v12 }
0x462b   :  { %17616 = vpow2.f32 %v9950_v52 }
0x4631   :  { %v17615_v28 = vpop.eup %17614 }
0x4632   :  { %v9952_v56 = vsel %vm479_vm3, %v17615_v28, 0.0 }
0x4633   :  { %9953 = vadd.xlane.f32.xlu0 %v9952_v56 }
0x4635   :  { %v17617_v38 = vpop.eup %17616 }
0x4636   :  { %v9955_v25 = vsel %vm479_vm3, %v17617_v38, 0.0 }
0x4637   :  { %9956 = vadd.xlane.f32.xlu1 %v9955_v25 }
0x4648   :  { %10128 = vrot.lane.b32.xlu1 %v19488_v0, %s20155_s0 }
0x4649   :  { %10126 = vrot.lane.b32.xlu0 %v19485_v57, %s20155_s0 }
0x464c   :  { %10399 = vrot.lane.b32.xlu1 %v19485_v57, %s20153_s28 }
0x4650   :  { %10401 = vrot.lane.b32.xlu1 %v19488_v0, %s20153_s28 }
0x46c0   :  { %v9954_v59 = vpop.xlane.xlu0 %9953 }
0x46c1   :  { %17618 = vrcp.f32 %v9954_v59 }
0x46c4   :  { %v9957_v5 = vpop.xlane.xlu1 %9956  ;;  %v10127_v54 = vpop.permute.xlu0 %10126 }
0x46c5   :  { %17620 = vrcp.f32 %v9957_v5 }
0x46c8   :  { %v10129_v50 = vpop.permute.xlu1 %10128 }
0x46cb   :  { %v17619_v51 = vpop.eup %17618 }
0x46cc   :  { %v9960_v1 = vmul.f32 %v17619_v51, %v17615_v28  ;;  %v10400_v30 = vpop.permute.xlu1 %10399 }
0x46ce   :  { %16058 = vmatprep.mubr.msk.f32.mxu0 %vm479_vm3, %v9960_v1 }
0x46cf   :  { %v17621_v3 = vpop.eup %17620 }
0x46d0   :  { %v9961_v47 = vmul.f32 %v17621_v3, %v17617_v38  ;;  %v10402_v16 = vpop.permute.xlu1 %10401 }
0x46d2   :  { %16059 = vmatmul.mubr.msk.f32.vlgmr.msra.gmra.mrb[82].mxu0 %vm479_vm3, %v9961_v47 }
0x46d3   :  { %16893 = vmatpush3.bf16.xpose.msk.msra.mxu0 %vm17981_vm2, %v19071_v53  ;;  %16070 = vmatprep.mubr.msk.f32.mxu0 %vm387_vm1, %v10127_v54 }
0x46d4   :  { %16900 = vmatprep.subr.msk.bf16.mxu0 %vm17981_vm2, %v19078_v63 }
0x46da   :  { %16071 = vmatmul.mubr.msk.f32.vlgmr.msra.gmra.mrb[84].mxu0 %vm387_vm1, %v10129_v50 }
0x46db   :  { %16903 = vmatpush3.bf16.xpose.msk.msra.mxu0 %vm17981_vm2, %v19078_v63  ;;  %16089 = vmatprep.mubr.msk.f32.mxu0 %vm387_vm1, %v10400_v30 }
0x46dc   :  { %16910 = vmatprep.subr.msk.bf16.mxu0 %vm17981_vm2, %v19110_v60 }
0x46e2   :  { %16090 = vmatmul.mubr.msk.f32.vlgmr.msra.gmra.mrb[86].mxu0 %vm387_vm1, %v10402_v16 }
0x46e3   :  { %16913 = vmatpush3.bf16.xpose.msk.msra.mxu0 %vm17981_vm2, %v19110_v60 }
0x47a5   :  { %v16060_v20 = vpop.f32.mrb[82].mxu0 }
0x47a6   :  { %v10034_v8 = vpop.f32.mrb[83].mxu0 }
0x47a7   :  { %16063 = vmatprep.mubr.msk.f32.mxu1 %vm387_vm1, %v10034_v8 }
0x47a8   :  { %16064 = vmatmul.mubr.msk.f32.vlgmr.msra.gmra.mrb[82].mxu1 %vm387_vm1, %v16060_v20 }
0x47a9   :  { %16897 = vmatpush3.bf16.msra.mxu1 %v19130_v41 }
0x47aa   :  { %16080 = vmatprep.subr.mxu1 %v17736_v23 }
0x47ad   :  { %v16072_v13 = vpop.f32.mrb[84].mxu0 }
0x47ae   :  { %v10210_v26 = vmul.f32 0.35355338, %v16072_v13  ;;  %v10200_v24 = vpop.f32.mrb[85].mxu0 }
0x47af   :  { %v10209_v19 = vmul.f32 0.35355338, %v10200_v24 }
0x47b0   :  { %v10212_v4 = vadd.f32 %v19504_v7, %v10210_v26 }
0x47b1   :  { %v10211_v33 = vadd.f32 %v19498_v22, %v10209_v19 }
0x47b2   :  { %v10216_v10 = vsel %vm479_vm3, %v10212_v4, -inf }
0x47b3   :  { %10217 = vmax.xlane.f32.xlu1 %v10216_v10  ;;  %v10213_v11 = vsel %vm479_vm3, %v10211_v33, -inf }
0x47b4   :  { %10214 = vmax.xlane.f32.xlu0 %v10213_v11 }
0x47b5   :  { %v16091_v27 = vpop.f32.mrb[86].mxu0 }
0x47b6   :  { %v10473_v48 = vpop.f32.mrb[87].mxu0  ;;  %v10483_v59 = vmul.f32 0.35355338, %v16091_v27 }
0x47b7   :  { %v10482_v44 = vmul.f32 0.35355338, %v10473_v48 }
0x47b8   :  { %v10485_v5 = vadd.f32 %v19504_v7, %v10483_v59 }
0x47b9   :  { %v10484_v55 = vadd.f32 %v19498_v22, %v10482_v44 }
0x47ba   :  { %v10489_v51 = vsel %vm479_vm3, %v10485_v5, -inf }
0x47bb   :  { %v10486_v6 = vsel %vm479_vm3, %v10484_v55, -inf }
0x47c4   :  { %10674 = vrot.lane.b32.xlu1 %v19488_v0, %s20154_s30 }
0x47e8   :  { %10487 = vmax.xlane.f32.xlu1 %v10486_v6 }
0x4840   :  { %v10218_v29 = vpop.xlane.xlu1 %10217 }
0x4841   :  { %v10220_v18 = vsub.f32 %v10212_v4, %v10218_v29  ;;  %v10215_v43 = vpop.xlane.xlu0 %10214 }
0x4842   :  { %v10219_v21 = vsub.f32 %v10211_v33, %v10215_v43 }
0x4843   :  { %v10223_v31 = vmul.f32 1.442695, %v10220_v18 }
0x4844   :  { %v10221_v40 = vmul.f32 1.442695, %v10219_v21  ;;  %v10675_v28 = vpop.permute.xlu1 %10674 }
0x4846   :  { %17622 = vpow2.f32 %v10221_v40 }
0x4847   :  { %17624 = vpow2.f32 %v10223_v31 }
0x4850   :  { %v17623_v9 = vpop.eup %17622 }
0x4851   :  { %v10225_v12 = vsel %vm479_vm3, %v17623_v9, 0.0  ;;  %v17625_v52 = vpop.eup %17624 }
0x4852   :  { %10226 = vadd.xlane.f32.xlu0 %v10225_v12  ;;  %v10228_v0 = vsel %vm479_vm3, %v17625_v52, 0.0 }
0x4856   :  { %10229 = vadd.xlane.f32.xlu0 %v10228_v0 }
0x486c   :  { %10672 = vrot.lane.b32.xlu0 %v19485_v57, %s20154_s30 }
0x4875   :  { %v10488_v56 = vpop.xlane.xlu1 %10487 }
0x4876   :  { %v10492_v38 = vsub.f32 %v10484_v55, %v10488_v56 }
0x4878   :  { %v10494_v25 = vmul.f32 1.442695, %v10492_v38 }
0x487a   :  { %17626 = vpow2.f32 %v10494_v25 }
0x4884   :  { %v17627_v1 = vpop.eup %17626 }
0x4885   :  { %v10498_v3 = vsel %vm479_vm3, %v17627_v1, 0.0 }
0x488b   :  { %10490 = vmax.xlane.f32.xlu0 %v10489_v51 }
0x488f   :  { %10499 = vadd.xlane.f32.xlu0 %v10498_v3 }
0x48df   :  { %v10227_v47 = vpop.xlane.xlu0 %10226 }
0x48e0   :  { %17628 = vrcp.f32 %v10227_v47 }
0x48e3   :  { %v10230_v54 = vpop.xlane.xlu0 %10229 }
0x48e4   :  { %17630 = vrcp.f32 %v10230_v54 }
0x48e7   :  { %v10673_v57 = vpop.permute.xlu0 %10672 }
0x48e8   :  { %16108 = vmatprep.mubr.msk.f32.mxu0 %vm387_vm1, %v10673_v57 }
0x48e9   :  { %16109 = vmatmul.mubr.msk.f32.vlgmr.msra.gmra.mrb[88].mxu0 %vm387_vm1, %v10675_v28 }
0x48ea   :  { %v17629_v50 = vpop.eup %17628 }
0x48eb   :  { %v10233_v30 = vmul.f32 %v17629_v50, %v17623_v9 }
0x48ed   :  { %16077 = vmatprep.mubr.msk.f32.mxu1 %vm479_vm3, %v10233_v30 }
0x48ee   :  { %v17631_v16 = vpop.eup %17630 }
0x48ef   :  { %v10234_v20 = vmul.f32 %v17631_v16, %v17625_v52 }
0x48f1   :  { %16078 = vmatmul.mubr.msk.f32.vlgmr.msra.gmra.mrb[84].mxu1 %vm479_vm3, %v10234_v20 }
0x48f2   :  { %16081 = vmatpush3.msra.mxu1 %v17736_v23 }
0x48f3   :  { %16905 = vmatprep.subr.bf16.mxu1 %v19146_v62 }
0x4918   :  { %v10491_v8 = vpop.xlane.xlu0 %10490 }
0x4919   :  { %v10493_v13 = vsub.f32 %v10485_v5, %v10491_v8  ;;  %v9854_v8 = vadd.f32 %v19462_v36, %v19179_v15 }
0x491b   :  { %v10496_v26 = vmul.f32 1.442695, %v10493_v13 }
0x491c   :  { %v10500_v4 = vpop.xlane.xlu0 %10499 }
0x491d   :  { %17632 = vpow2.f32 %v10496_v26  ;;  %v9853_v26 = vadd.f32 %v19464_v17, %v19179_v15 }
0x491e   :  { %17634 = vrcp.f32 %v10500_v4 }
0x4927   :  { %v17633_v24 = vpop.eup %17632 }
0x4928   :  { %v10501_v19 = vsel %vm479_vm3, %v17633_v24, 0.0  ;;  %v17635_v29 = vpop.eup %17634 }
0x4929   :  { %10502 = vadd.xlane.f32.xlu1 %v10501_v19  ;;  %v10506_v31 = vmul.f32 %v17635_v29, %v17627_v1  ;;  %v17738_v1 = vld [vmem:[%s20113_s12 + $0xf8] sm:$0xff] }
0x49b6   :  { %v10503_v33 = vpop.xlane.xlu1 %10502 }
0x49b7   :  { %17636 = vrcp.f32 %v10503_v33 }
0x49bc   :  { %v16110_v10 = vpop.f32.mrb[88].mxu0 }
0x49bd   :  { %v10756_v11 = vmul.f32 0.35355338, %v16110_v10  ;;  %v10746_v27 = vpop.f32.mrb[89].mxu0 }
0x49be   :  { %v10755_v48 = vmul.f32 0.35355338, %v10746_v27 }
0x49bf   :  { %v10758_v23 = vadd.f32 %v19504_v7, %v10756_v11  ;;  %v17737_v7 = vld [vmem:[%s20113_s12 + $0xf0] sm:$0xff] }
0x49c0   :  { %v10757_v44 = vadd.f32 %v19498_v22, %v10755_v48 }
0x49c1   :  { %v10762_v55 = vsel %vm479_vm3, %v10758_v23, -inf  ;;  %v17637_v21 = vpop.eup %17636 }
0x49c2   :  { %10763 = vmax.xlane.f32.xlu1 %v10762_v55  ;;  %v10759_v6 = vsel %vm479_vm3, %v10757_v44, -inf  ;;  %v10507_v22 = vmul.f32 %v17637_v21, %v17633_v24 }
0x49c3   :  { %10760 = vmax.xlane.f32.xlu0 %v10759_v6 }
0x49c4   :  { %v16079_v18 = vpop.f32.mrb[84].mxu1 }
0x49c5   :  { %v10307_v43 = vpop.f32.mrb[85].mxu1 }
0x49c6   :  { %16082 = vmatprep.mubr.msk.f32.mxu1 %vm387_vm1, %v10307_v43  ;;  %v10985_v43 = vld [vmem:[%s20116_s15 + $0x8] sm:$0xff] }
0x49c7   :  { %16083 = vmatmul.mubr.msk.f32.vlgmr.msra.gmra.mrb[82].mxu1 %vm387_vm1, %v16079_v18  ;;  %v10984_v18 = vld [vmem:[%s20116_s15] sm:$0xff] }
0x49c8   :  { %16907 = vmatpush3.bf16.msra.mxu1 %v19146_v62  ;;  %16096 = vmatprep.mubr.msk.f32.mxu1 %vm479_vm3, %v10506_v31  ;;  %v16918_v21 = vpack.c.bf16 %v10985_v43, %v10984_v18  ;;  %v10986_v31 = vld [vmem:[%s20116_s15 + $0x10] sm:$0xff]  ;;  %v14544_v18 = vld [vmem:[%s20119_s18] ss:$0 sm:$0xff] }
0x49c9   :  { %16099 = vmatprep.subr.mxu1 %v17737_v7 }
0x49ca   :  { %16919 = vmatprep.subr.bf16.mxu0 %v16918_v21 }
0x49cb   :  { %16097 = vmatmul.mubr.msk.f32.vlgmr.msra.gmra.mrb[86].mxu1 %vm479_vm3, %v10507_v22  ;;  %v10987_v22 = vld [vmem:[%s20116_s15 + $0x18] sm:$0xff]  ;;  %16921 = vmatpush3.bf16.msra.mxu0 %v16918_v21 }
0x49cc   :  { %16100 = vmatpush3.msra.mxu1 %v17737_v7  ;;  %v16922_v7 = vpack.c.bf16 %v10987_v22, %v10986_v31 }
0x49cd   :  { %16915 = vmatprep.subr.bf16.mxu1 %v19162_v42 }
0x49ce   :  { %16923 = vmatprep.subr.bf16.mxu0 %v16922_v7 }
0x49cf   :  { %16925 = vmatpush3.bf16.msra.mxu0 %v16922_v7 }
0x4a4f   :  { %v10764_v40 = vpop.xlane.xlu1 %10763 }
0x4a50   :  { %v10766_v9 = vsub.f32 %v10758_v23, %v10764_v40  ;;  %v10761_v12 = vpop.xlane.xlu0 %10760  ;;  %v11078_v40 = vld [vmem:[%s20118_s17] sm:$0xff] }
0x4a51   :  { %v10765_v52 = vsub.f32 %v10757_v44, %v10761_v12  ;;  %v11080_v12 = vld [vmem:[%s20118_s17 + $0x10] sm:$0xff] }
0x4a52   :  { %v10769_v0 = vmul.f32 1.442695, %v10766_v9  ;;  %v11079_v9 = vld [vmem:[%s20118_s17 + $0x8] sm:$0xff] }
0x4a53   :  { %v10767_v28 = vmul.f32 1.442695, %v10765_v52  ;;  %v16926_v52 = vpack.c.bf16 %v11079_v9, %v11078_v40 }
0x4a54   :  { %17638 = vpow2.f32 %v10769_v0  ;;  %v11081_v0 = vld [vmem:[%s20118_s17 + $0x18] sm:$0xff] }
0x4a55   :  { %17640 = vpow2.f32 %v10767_v28  ;;  %v16930_v28 = vpack.c.bf16 %v11081_v0, %v11080_v12 }
0x4a5e   :  { %v17639_v56 = vpop.eup %17638 }
0x4a5f   :  { %v17641_v38 = vpop.eup %17640  ;;  %v10774_v25 = vsel %vm479_vm3, %v17639_v56, 0.0 }
0x4a60   :  { %10775 = vadd.xlane.f32.xlu1 %v10774_v25  ;;  %v10771_v59 = vsel %vm479_vm3, %v17641_v38, 0.0 }
0x4a61   :  { %10772 = vadd.xlane.f32.xlu0 %v10771_v59 }
0x4a9e   :  { %v16098_v5 = vpop.f32.mrb[86].mxu1 }
0x4a9f   :  { %v10580_v51 = vpop.f32.mrb[87].mxu1 }
0x4aa0   :  { %16101 = vmatprep.mubr.msk.f32.mxu1 %vm387_vm1, %v10580_v51 }
0x4aa1   :  { %16102 = vmatmul.mubr.msk.f32.vlgmr.msra.gmra.mrb[82].mxu1 %vm387_vm1, %v16098_v5 }
0x4aa2   :  { %16917 = vmatpush3.bf16.msra.mxu1 %v19162_v42 }
0x4aa3   :  { %16118 = vmatprep.subr.mxu1 %v17738_v1 }
0x4aed   :  { %v10776_v3 = vpop.xlane.xlu1 %10775 }
0x4aee   :  { %17642 = vrcp.f32 %v10776_v3  ;;  %v10773_v47 = vpop.xlane.xlu0 %10772 }
0x4aef   :  { %17644 = vrcp.f32 %v10773_v47 }
0x4af8   :  { %v17643_v54 = vpop.eup %17642 }
0x4af9   :  { %v17645_v57 = vpop.eup %17644  ;;  %v10780_v30 = vmul.f32 %v17643_v54, %v17639_v56  ;;  %v11082_v56 = vld [vmem:[%s20118_s17 + $0x20] sm:$0xff] }
0x4afa   :  { %v10779_v50 = vmul.f32 %v17645_v57, %v17641_v38  ;;  %v11083_v38 = vld [vmem:[%s20118_s17 + $0x28] sm:$0xff]  ;;  %v10945_v54 = vld [vmem:[%s20120_s19] sm:$0x3] }
0x4afb   :  { %v16934_v25 = vpack.c.bf16 %v11083_v38, %v11082_v56  ;;  %v10975_v57 = vrot.slane %v10945_v54, %v17943_v37 }
0x4afc   :  { %16115 = vmatprep.mubr.msk.f32.mxu1 %vm479_vm3, %v10779_v50 }
0x4afd   :  { %16116 = vmatmul.mubr.msk.f32.vlgmr.msra.gmra.mrb[88].mxu1 %vm479_vm3, %v10780_v30 }
0x4afe   :  { %16119 = vmatpush3.msra.mxu1 %v17738_v1 }
0x4aff   :  { %16927 = vmatprep.subr.bf16.mxu1 %v16926_v52 }
0x4bd0   :  { %v16117_v16 = vpop.f32.mrb[88].mxu1 }
0x4bd1   :  { %v10853_v20 = vpop.f32.mrb[89].mxu1 }
0x4bd2   :  { %16120 = vmatprep.mubr.msk.f32.mxu1 %vm387_vm1, %v10853_v20 }
0x4bd3   :  { %16121 = vmatmul.mubr.msk.f32.vlgmr.msra.gmra.mrb[82].mxu1 %vm387_vm1, %v16117_v16 }
0x4bd4   :  { %16929 = vmatpush3.bf16.msra.mxu1 %v16926_v52 }
0x4bd5   :  { %16931 = vmatprep.subr.bf16.mxu1 %v16930_v28 }
0x4bd8   :  { %16933 = vmatpush3.bf16.msra.mxu1 %v16930_v28 }
0x4bd9   :  { %16935 = vmatprep.subr.bf16.mxu1 %v16934_v25 }
0x4bdc   :  { %16937 = vmatpush3.bf16.msra.mxu1 %v16934_v25 }
0x4ca6   :  { %v16122_v13 = vpop.f32.mrb[82].mxu1 }
0x4ca7   :  { %v19596_v24 = vadd.f32 %v16122_v13, %v9854_v8  ;;  %v10934_v19 = vpop.f32.mrb[83].mxu1  ;;  %v10981_v8 = vrot.slane %v10945_v54, %v17949_v39 }
0x4ca8   :  { %v19598_v4 = vadd.f32 %v10934_v19, %v9853_v26 }
0x4ca9   :  { %v10949_v33 = vsel %vm98_vm0, %v19596_v24, 0.0 }
0x4caa   :  { %10950 = vadd.xlane.f32.xlu1 %v10949_v33  ;;  %v10946_v10 = vsel %vm98_vm0, %v19598_v4, 0.0 }
0x4cab   :  { %10947 = vadd.xlane.f32.xlu0 %v10946_v10  ;;  %v11084_v10 = vld [vmem:[%s20118_s17 + $0x30] sm:$0xff] }
0x4d37   :  { %v10951_v11 = vpop.xlane.xlu1 %10950 }
0x4d38   :  { %v10953_v27 = vmul.f32 0.03125, %v10951_v11  ;;  %v10948_v36 = vpop.xlane.xlu0 %10947  ;;  %v11085_v11 = vld [vmem:[%s20118_s17 + $0x38] sm:$0xff] }
0x4d39   :  { %v10952_v48 = vmul.f32 0.03125, %v10948_v36  ;;  %v14539_v36 = vld [vmem:[%s20117_s16] ss:$0 sm:$0xff] }
0x4d3a   :  { %v10955_v23 = vsub.f32 %v19596_v24, %v10953_v27  ;;  %v16938_v27 = vpack.c.bf16 %v11085_v11, %v11084_v10 }
0x4d3b   :  { %v10954_v17 = vsub.f32 %v19598_v4, %v10952_v48 }
0x4d3c   :  { %v10957_v44 = vmul.f32 %v10955_v23, %v10955_v23  ;;  %16939 = vmatprep.subr.bf16.mxu1 %v16938_v27 }
0x4d3d   :  { %v10956_v55 = vmul.f32 %v10954_v17, %v10954_v17  ;;  %16941 = vmatpush3.bf16.msra.mxu1 %v16938_v27 }
0x4d3e   :  { %v10961_v6 = vsel %vm98_vm0, %v10957_v44, 0.0 }
0x4d3f   :  { %10962 = vadd.xlane.f32.xlu1 %v10961_v6  ;;  %v10958_v29 = vsel %vm98_vm0, %v10956_v55, 0.0 }
0x4d40   :  { %10959 = vadd.xlane.f32.xlu0 %v10958_v29 }
0x4dcc   :  { %v10963_v59 = vpop.xlane.xlu1 %10962 }
0x4dcd   :  { %v10965_v5 = vmul.f32 0.03125, %v10963_v59  ;;  %v10960_v51 = vpop.xlane.xlu0 %10959 }
0x4dce   :  { %v10964_v1 = vmul.f32 0.03125, %v10960_v51  ;;  %v11180_v51 = vld [vmem:[%s20113_s12 + $0x8] sm:$0xff] }
0x4dcf   :  { %v10967_v3 = vadd.f32 1e-05, %v10965_v5  ;;  %v11179_v5 = vld [vmem:[%s20113_s12] sm:$0xff] }
0x4dd0   :  { %v10966_v47 = vadd.f32 1e-05, %v10964_v1  ;;  %v16942_v1 = vpack.c.bf16 %v11180_v51, %v11179_v5 }
0x4dd1   :  { %17646 = vrsqrt.f32 %v10967_v3  ;;  %v11187_v3 = vld [vmem:[%s20113_s12 + $0x40] sm:$0xff] }
0x4dd2   :  { %17648 = vrsqrt.f32 %v10966_v47  ;;  %v11188_v47 = vld [vmem:[%s20113_s12 + $0x48] sm:$0xff]  ;;  %16943 = vmatprep.subr.bf16.mxu0 %v16942_v1 }
0x4dd3   :  { %v16958_v54 = vpack.c.bf16 %v11188_v47, %v11187_v3 }
0x4dd5   :  { %16959 = vmatprep.subr.bf16.mxu1 %v16958_v54 }
0x4ddb   :  { %v17647_v50 = vpop.eup %17646 }
0x4ddc   :  { %v17649_v30 = vpop.eup %17648  ;;  %v10971_v16 = vmul.f32 %v17647_v50, %v10955_v23  ;;  %v11182_v50 = vld [vmem:[%s20113_s12 + $0x18] sm:$0xff] }
0x4ddd   :  { %v10970_v20 = vmul.f32 %v17649_v30, %v10954_v17  ;;  %v11189_v30 = vld [vmem:[%s20113_s12 + $0x50] sm:$0xff] }
0x4dde   :  { %v10977_v13 = vmul.f32 %v10975_v57, %v10971_v16 }
0x4ddf   :  { %v10976_v26 = vmul.f32 %v10975_v57, %v10970_v20  ;;  %v11181_v57 = vld [vmem:[%s20113_s12 + $0x10] sm:$0xff]  ;;  %v11190_v20 = vld [vmem:[%s20113_s12 + $0x58] sm:$0xff] }
0x4de0   :  { %v10983_v33 = vadd.f32 %v10981_v8, %v10977_v13  ;;  %v16946_v16 = vpack.c.bf16 %v11182_v50, %v11181_v57  ;;  %v11183_v13 = vld [vmem:[%s20113_s12 + $0x20] sm:$0xff] }
0x4de1   :  { %v10982_v19 = vadd.f32 %v10981_v8, %v10976_v26  ;;  %v16962_v8 = vpack.c.bf16 %v11190_v20, %v11189_v30  ;;  %v11184_v26 = vld [vmem:[%s20113_s12 + $0x28] sm:$0xff] }
0x4de3   :  { %16131 = vmatprep.mubr.msk.f32.mxu0 %vm98_vm0, %v10982_v19  ;;  %v16950_v19 = vpack.c.bf16 %v11184_v26, %v11183_v13 }
0x4de4   :  { %16132 = vmatmul.mubr.msk.f32.vlgmr.msra.gmra.mrb[90].mxu0 %vm98_vm0, %v10983_v33 }
0x4de5   :  { %16945 = vmatpush3.bf16.msra.mxu0 %v16942_v1 }
0x4de6   :  { %16947 = vmatprep.subr.bf16.mxu0 %v16946_v16 }
0x4de9   :  { %16949 = vmatpush3.bf16.msra.mxu0 %v16946_v16 }
0x4dea   :  { %16951 = vmatprep.subr.bf16.mxu0 %v16950_v19 }
0x4eb7   :  { %v16133_v48 = vpop.f32.mrb[90].mxu0 }
0x4eb8   :  { %v11073_v23 = vadd.f32 %v16133_v48, %v14539_v36  ;;  %v11067_v17 = vpop.f32.mrb[91].mxu0 }
0x4eb9   :  { %v11068_v44 = vadd.f32 %v14539_v36, %v11067_v17 }
0x4eba   :  { %v11077_v6 = vmax.f32 %v11073_v23, 0.0  ;;  %v11178_v23 = vld [vmem:[%s20115_s14] sm:$0x3] }
0x4ebb   :  { %v11076_v55 = vmax.f32 %v11068_v44, 0.0  ;;  %v11225_v17 = vrot.slane %v11178_v23, %v17943_v37 }
0x4ebd   :  { %16150 = vmatprep.mubr.msk.f32.mxu1 %vm1670_vm4, %v11076_v55 }
0x4ebe   :  { %16151 = vmatmul.mubr.msk.f32.vlgmr.msra.gmra.mrb[90].mxu1 %vm1670_vm4, %v11077_v6 }
0x4ebf   :  { %16961 = vmatpush3.bf16.msra.mxu1 %v16958_v54 }
0x4ec0   :  { %16963 = vmatprep.subr.bf16.mxu1 %v16962_v8 }
0x4ec3   :  { %16965 = vmatpush3.bf16.msra.mxu1 %v16962_v8 }
0x4f91   :  { %v16152_v29 = vpop.f32.mrb[90].mxu1 }
0x4f92   :  { %v11168_v43 = vadd.f32 %v19596_v24, %v16152_v29  ;;  %v11158_v21 = vpop.f32.mrb[91].mxu1 }
0x4f93   :  { %v11167_v31 = vadd.f32 %v19598_v4, %v11158_v21 }
0x4f94   :  { %v19661_v22 = vadd.f32 %v14544_v18, %v11168_v43 }
0x4f95   :  { %v19663_v7 = vadd.f32 %v14544_v18, %v11167_v31  ;;  %v11231_v18 = vrot.slane %v11178_v23, %v17949_v39  ;;  %v11185_v31 = vld [vmem:[%s20113_s12 + $0x30] sm:$0xff]  ;;  %v19762_v23 = vld [vmem:[%s20157_s5 + $0x8] sm:$0xff] }
0x4f96   :  { %v11199_v40 = vsel %vm98_vm0, %v19661_v22, 0.0 }
0x4f97   :  { %11200 = vadd.xlane.f32.xlu1 %v11199_v40  ;;  %v11196_v9 = vsel %vm98_vm0, %v19663_v7, 0.0  ;;  %v11186_v40 = vld [vmem:[%s20113_s12 + $0x38] sm:$0xff] }
0x4f98   :  { %11197 = vadd.xlane.f32.xlu0 %v11196_v9 }
0x5024   :  { %v11201_v12 = vpop.xlane.xlu1 %11200 }
0x5025   :  { %v11203_v52 = vmul.f32 0.03125, %v11201_v12  ;;  %v11198_v0 = vpop.xlane.xlu0 %11197 }
0x5026   :  { %v11202_v28 = vmul.f32 0.03125, %v11198_v0  ;;  %v19723_v0 = vld [vmem:[%s20114_s13] sm:$0xf] }
0x5027   :  { %v11205_v24 = vsub.f32 %v19661_v22, %v11203_v52  ;;  %v16954_v52 = vpack.c.bf16 %v11186_v40, %v11185_v31 }
0x5028   :  { %v11204_v4 = vsub.f32 %v19663_v7, %v11202_v28  ;;  %v11401_v28 = vrot.slane %v19723_v0, %v17975_v61  ;;  %v11322_v61 = vrot.slane %v19723_v0, %v17949_v39 }
0x5029   :  { %v11207_v56 = vmul.f32 %v11205_v24, %v11205_v24 }
0x502a   :  { %v11206_v38 = vmul.f32 %v11204_v4, %v11204_v4 }
0x502b   :  { %v11211_v25 = vsel %vm98_vm0, %v11207_v56, 0.0 }
0x502c   :  { %11212 = vadd.xlane.f32.xlu1 %v11211_v25  ;;  %v11208_v59 = vsel %vm98_vm0, %v11206_v38, 0.0 }
0x502d   :  { %11209 = vadd.xlane.f32.xlu0 %v11208_v59 }
0x50b9   :  { %v11213_v33 = vpop.xlane.xlu1 %11212 }
0x50ba   :  { %v11215_v10 = vmul.f32 0.03125, %v11213_v33  ;;  %v11210_v11 = vpop.xlane.xlu0 %11209 }
0x50bb   :  { %v11214_v27 = vmul.f32 0.03125, %v11210_v11 }
0x50bc   :  { %v11217_v36 = vadd.f32 1e-05, %v11215_v10 }
0x50bd   :  { %v11216_v48 = vadd.f32 1e-05, %v11214_v27 }
0x50be   :  { %17650 = vrsqrt.f32 %v11217_v36 }
0x50bf   :  { %17652 = vrsqrt.f32 %v11216_v48 }
0x50c8   :  { %v17651_v44 = vpop.eup %17650 }
0x50c9   :  { %v17653_v55 = vpop.eup %17652  ;;  %v11221_v6 = vmul.f32 %v17651_v44, %v11205_v24  ;;  %v11237_v24 = vrot.slane %v19723_v0, %v17943_v37  ;;  %v19768_v44 = vld [vmem:[%s20157_s5] sm:$0xff] }
0x50ca   :  { %v11220_v29 = vmul.f32 %v17653_v55, %v11204_v4 }
0x50cb   :  { %v11227_v43 = vmul.f32 %v11225_v17, %v11221_v6 }
0x50cc   :  { %v11226_v21 = vmul.f32 %v11225_v17, %v11220_v29 }
0x50cd   :  { %v11233_v12 = vadd.f32 %v11231_v18, %v11227_v43 }
0x50ce   :  { %v11232_v9 = vadd.f32 %v11231_v18, %v11226_v21 }
0x50d0   :  { %16161 = vmatprep.mubr.msk.f32.mxu0 %vm98_vm0, %v11232_v9  ;;  %16183 = vmatprep.mubr.msk.f32.mxu1 %vm98_vm0, %v11232_v9 }
0x50d1   :  { %16162 = vmatmul.mubr.msk.f32.vlgmr.msra.gmra.mrb[92].mxu0 %vm98_vm0, %v11233_v12  ;;  %16184 = vmatmul.mubr.msk.f32.vlgmr.msra.gmra.mrb[92].mxu1 %vm98_vm0, %v11233_v12 }
0x50d2   :  { %16953 = vmatpush3.bf16.msra.mxu0 %v16950_v19  ;;  %16172 = vmatprep.mubr.msk.f32.mxu0 %vm98_vm0, %v11232_v9 }
0x50d3   :  { %16955 = vmatprep.subr.bf16.mxu0 %v16954_v52 }
0x50d6   :  { %16957 = vmatpush3.bf16.msra.mxu0 %v16954_v52 }
0x50d9   :  { %16173 = vmatmul.mubr.msk.f32.vlgmr.msra.gmra.mrb[94].mxu0 %vm98_vm0, %v11233_v12 }
0x51a4   :  { %v16163_v4 = vpop.f32.mrb[92].mxu0  ;;  %v16185_v56 = vpop.f32.mrb[92].mxu1 }
0x51a5   :  { %v11474_v38 = vadd.f32 %v16185_v56, %v11401_v28  ;;  %v11310_v25 = vpop.f32.mrb[93].mxu0  ;;  %v11468_v59 = vpop.f32.mrb[93].mxu1  ;;  %v19739_v47 = vadd.f32 %v16163_v4, %v11237_v24 }
0x51a6   :  { %v19729_v5 = vadd.f32 %v11310_v25, %v11237_v24  ;;  %v11469_v51 = vadd.f32 %v11468_v59, %v11401_v28 }
0x51a8   :  { %11760 = vrot.lane.b32.xlu1 %v19729_v5, %s20155_s0  ;;  %16190 = vmatprep.mubr.msk.f32.mxu0 %vm387_vm1, %v19729_v5  ;;  %v16972_v1 = vpack.c.bf16 %v11474_v38, %v11469_v51  ;;  %v19735_v3 = vpack.i.bf16 %v11474_v38, %v11469_v51 }
0x51aa   :  { %16973 = vmatprep.subr.bf16.mxu1 %v16972_v1 }
0x51ab   :  { %16975 = vmatpush3.bf16.msra.mxu1 %v16972_v1 }
0x51ac   :  { %v16174_v54 = vpop.f32.mrb[94].mxu0  ;;  %11762 = vrot.lane.b32.xlu1 %v19739_v47, %s20155_s0 }
0x51ad   :  { %v11395_v57 = vadd.f32 %v16174_v54, %v11322_v61  ;;  %v11389_v50 = vpop.f32.mrb[95].mxu0 }
0x51ae   :  { %v11390_v30 = vadd.f32 %v11389_v50, %v11322_v61 }
0x51b0   :  { %v19743_v16 = vpack.i.bf16 %v11395_v57, %v11390_v30  ;;  %v16966_v20 = vpack.c.bf16 %v11395_v57, %v11390_v30 }
0x51b2   :  { %17345 = vrot.lane.b32.xlu0 %v19743_v16, %s20155_s0  ;;  %16968 = vmatprep.subr.msk.bf16.mxu0 %vm17981_vm2, %v16966_v20 }
0x51b3   :  { %16971 = vmatpush3.bf16.xpose.msk.msra.mxu0 %vm17981_vm2, %v16966_v20 }
0x51ba   :  { %16191 = vmatmul.mubr.msk.f32.vlgmr.msra.gmra.mrb[96].mxu0 %vm387_vm1, %v19739_v47 }
0x521a   :  { %v11761_v8 = vpop.permute.xlu1 %11760 }
0x521b   :  { %16209 = vmatprep.mubr.msk.f32.mxu0 %vm387_vm1, %v11761_v8 }
0x521e   :  { %v11763_v10 = vpop.permute.xlu1 %11762 }
0x5224   :  { %v17346_v13 = vpop.permute.xlu0 %17345 }
0x5225   :  { %v17348_v26 = vunpack.i.h.bf16 %v17346_v13  ;;  %v17347_v19 = vunpack.i.l.bf16 %v17346_v13 }
0x5227   :  { %v16976_v33 = vpack.c.bf16 %v17348_v26, %v17347_v19 }
0x5229   :  { %16978 = vmatprep.subr.msk.bf16.mxu0 %vm17981_vm2, %v16976_v33 }
0x522a   :  { %16981 = vmatpush3.bf16.xpose.msk.msra.mxu0 %vm17981_vm2, %v16976_v33 }
0x5231   :  { %16210 = vmatmul.mubr.msk.f32.vlgmr.msra.gmra.mrb[98].mxu0 %vm387_vm1, %v11763_v10  ;;  %v11191_v10 = vld [vmem:[%s20113_s12 + $0x60] sm:$0xff] }
0x5232   :  { %16200 = vmatprep.subr.mxu1 %v11191_v10 }
0x528d   :  { %v16192_v11 = vpop.f32.mrb[96].mxu0 }
0x528e   :  { %v11571_v27 = vmul.f32 0.35355338, %v16192_v11  ;;  %v11561_v36 = vpop.f32.mrb[97].mxu0 }
0x528f   :  { %v11570_v48 = vmul.f32 0.35355338, %v11561_v36 }
0x5290   :  { %v11573_v17 = vadd.f32 %v19762_v23, %v11571_v27 }
0x5291   :  { %v11572_v55 = vadd.f32 %v19768_v44, %v11570_v48 }
0x5292   :  { %v11577_v6 = vsel %vm479_vm3, %v11573_v17, -inf }
0x5293   :  { %11578 = vmax.xlane.f32.xlu0 %v11577_v6  ;;  %v11574_v29 = vsel %vm479_vm3, %v11572_v55, -inf }
0x5294   :  { %11575 = vmax.xlane.f32.xlu1 %v11574_v29 }
0x52a5   :  { %17350 = vrot.lane.b32.xlu1 %v19743_v16, %s20153_s28 }
0x52a9   :  { %12051 = vrot.lane.b32.xlu1 %v19739_v47, %s20153_s28 }
0x5304   :  { %v16211_v18 = vpop.f32.mrb[98].mxu0 }
0x5305   :  { %v11842_v43 = vpop.f32.mrb[99].mxu0  ;;  %v11852_v57 = vmul.f32 0.35355338, %v16211_v18 }
0x5306   :  { %v11851_v21 = vmul.f32 0.35355338, %v11842_v43 }
0x5307   :  { %v11854_v50 = vadd.f32 %v19762_v23, %v11852_v57 }
0x5308   :  { %v11853_v31 = vadd.f32 %v19768_v44, %v11851_v21 }
0x5309   :  { %v11858_v30 = vsel %vm479_vm3, %v11854_v50, -inf }
0x530a   :  { %v11855_v40 = vsel %vm479_vm3, %v11853_v31, -inf }
0x530b   :  { %11856 = vmax.xlane.f32.xlu1 %v11855_v40 }
0x5320   :  { %v11579_v9 = vpop.xlane.xlu0 %11578 }
0x5321   :  { %v11581_v12 = vsub.f32 %v11573_v17, %v11579_v9  ;;  %v11576_v52 = vpop.xlane.xlu1 %11575 }
0x5322   :  { %v11580_v28 = vsub.f32 %v11572_v55, %v11576_v52 }
0x5323   :  { %v11584_v24 = vmul.f32 1.442695, %v11581_v12 }
0x5324   :  { %v11582_v4 = vmul.f32 1.442695, %v11580_v28 }
0x5325   :  { %v17351_v56 = vpop.permute.xlu1 %17350 }
0x5326   :  { %17654 = vpow2.f32 %v11582_v4  ;;  %v17353_v38 = vunpack.i.h.bf16 %v17351_v56  ;;  %v17352_v25 = vunpack.i.l.bf16 %v17351_v56 }
0x5327   :  { %17656 = vpow2.f32 %v11584_v24 }
0x5328   :  { %v16986_v59 = vpack.c.bf16 %v17353_v38, %v17352_v25 }
0x5329   :  { %v12052_v20 = vpop.permute.xlu1 %12051 }
0x532a   :  { %16988 = vmatprep.subr.msk.bf16.mxu0 %vm17981_vm2, %v16986_v59 }
0x532b   :  { %16991 = vmatpush3.bf16.xpose.msk.msra.mxu0 %vm17981_vm2, %v16986_v59 }
0x5330   :  { %v17655_v51 = vpop.eup %17654 }
0x5331   :  { %v11586_v1 = vsel %vm479_vm3, %v17655_v51, 0.0  ;;  %v17657_v61 = vpop.eup %17656 }
0x5332   :  { %11587 = vadd.xlane.f32.xlu0 %v11586_v1  ;;  %v11589_v54 = vsel %vm479_vm3, %v17657_v61, 0.0 }
0x5336   :  { %11590 = vadd.xlane.f32.xlu0 %v11589_v54 }
0x534c   :  { %12049 = vrot.lane.b32.xlu0 %v19729_v5, %s20153_s28 }
0x536b   :  { %11859 = vmax.xlane.f32.xlu0 %v11858_v30 }
0x5398   :  { %v11857_v8 = vpop.xlane.xlu1 %11856 }
0x5399   :  { %v11861_v13 = vsub.f32 %v11853_v31, %v11857_v8 }
0x539b   :  { %v11863_v26 = vmul.f32 1.442695, %v11861_v13 }
0x539d   :  { %17658 = vpow2.f32 %v11863_v26 }
0x53a7   :  { %v19789_v19 = vpop.eup %17658 }
0x53a8   :  { %v11867_v33 = vsel %vm479_vm3, %v19789_v19, 0.0 }
0x53a9   :  { %11868 = vadd.xlane.f32.xlu0 %v11867_v33 }
0x53bf   :  { %v11588_v11 = vpop.xlane.xlu0 %11587  ;;  %17355 = vrot.lane.b32.xlu0 %v19735_v3, %s20155_s0 }
0x53c0   :  { %17660 = vrcp.f32 %v11588_v11 }
0x53c3   :  { %v11591_v27 = vpop.xlane.xlu0 %11590 }
0x53c4   :  { %17662 = vrcp.f32 %v11591_v27 }
0x53c7   :  { %v12050_v36 = vpop.permute.xlu0 %12049 }
0x53c8   :  { %16228 = vmatprep.mubr.msk.f32.mxu0 %vm387_vm1, %v12050_v36 }
0x53c9   :  { %16229 = vmatmul.mubr.msk.f32.vlgmr.msra.gmra.mrb[100].mxu0 %vm387_vm1, %v12052_v20 }
0x53ca   :  { %v17661_v48 = vpop.eup %17660 }
0x53cb   :  { %v11594_v17 = vmul.f32 %v17661_v48, %v17655_v51 }
0x53cd   :  { %16197 = vmatprep.mubr.msk.f32.mxu1 %vm479_vm3, %v11594_v17 }
0x53ce   :  { %v17663_v55 = vpop.eup %17662 }
0x53cf   :  { %v11595_v6 = vmul.f32 %v17663_v55, %v17657_v61 }
0x53d1   :  { %16198 = vmatmul.mubr.msk.f32.vlgmr.msra.gmra.mrb[94].mxu1 %vm479_vm3, %v11595_v6 }
0x53d2   :  { %16201 = vmatpush3.msra.mxu1 %v11191_v10 }
0x53f8   :  { %v11860_v29 = vpop.xlane.xlu0 %11859 }
0x53f9   :  { %v11862_v18 = vsub.f32 %v11854_v50, %v11860_v29 }
0x53fb   :  { %v11865_v43 = vmul.f32 1.442695, %v11862_v18 }
0x53fd   :  { %17664 = vpow2.f32 %v11865_v43 }
0x5407   :  { %v17665_v21 = vpop.eup %17664 }
0x5408   :  { %v11870_v31 = vsel %vm479_vm3, %v17665_v21, 0.0 }
0x5409   :  { %11871 = vadd.xlane.f32.xlu1 %v11870_v31 }
0x541a   :  { %17360 = vrot.lane.b32.xlu1 %v19743_v16, %s20154_s30 }
0x541e   :  { %12336 = vrot.lane.b32.xlu1 %v19729_v5, %s20154_s30 }
0x5422   :  { %12338 = vrot.lane.b32.xlu1 %v19739_v47, %s20154_s30 }
0x5436   :  { %v11869_v40 = vpop.xlane.xlu0 %11868 }
0x5437   :  { %17666 = vrcp.f32 %v11869_v40 }
0x543a   :  { %v17356_v9 = vpop.permute.xlu0 %17355 }
0x543b   :  { %v17358_v12 = vunpack.i.h.bf16 %v17356_v9  ;;  %v17357_v52 = vunpack.i.l.bf16 %v17356_v9 }
0x543d   :  { %v16982_v28 = vpack.c.bf16 %v17358_v12, %v17357_v52 }
0x543f   :  { %16983 = vmatprep.subr.bf16.mxu1 %v16982_v28 }
0x5441   :  { %v17667_v50 = vpop.eup %17666 }
0x5442   :  { %v11875_v26 = vmul.f32 %v17667_v50, %v19789_v19  ;;  %v11192_v19 = vld [vmem:[%s20113_s12 + $0x68] sm:$0xff] }
0x5496   :  { %v11872_v24 = vpop.xlane.xlu1 %11871 }
0x5497   :  { %17668 = vrcp.f32 %v11872_v24 }
0x549a   :  { %v17361_v4 = vpop.permute.xlu1 %17360 }
0x549b   :  { %v17363_v56 = vunpack.i.h.bf16 %v17361_v4  ;;  %v17362_v38 = vunpack.i.l.bf16 %v17361_v4 }
0x549c   :  { %v16230_v25 = vpop.f32.mrb[100].mxu0 }
0x549d   :  { %v16996_v16 = vpack.c.bf16 %v17363_v56, %v17362_v38  ;;  %v12141_v59 = vmul.f32 0.35355338, %v16230_v25  ;;  %v12131_v51 = vpop.f32.mrb[101].mxu0 }
0x549e   :  { %v12140_v5 = vmul.f32 0.35355338, %v12131_v51  ;;  %v12337_v1 = vpop.permute.xlu1 %12336 }
0x549f   :  { %v12143_v47 = vadd.f32 %v19762_v23, %v12141_v59  ;;  %16998 = vmatprep.subr.msk.bf16.mxu0 %vm17981_vm2, %v16996_v16  ;;  %16247 = vmatprep.mubr.msk.f32.mxu0 %vm387_vm1, %v12337_v1 }
0x54a0   :  { %v12142_v61 = vadd.f32 %v19768_v44, %v12140_v5  ;;  %17001 = vmatpush3.bf16.xpose.msk.msra.mxu0 %vm17981_vm2, %v16996_v16 }
0x54a1   :  { %v12147_v54 = vsel %vm479_vm3, %v12143_v47, -inf  ;;  %17007 = vmatprep.subr.bf16.mxu0 %v18939_v34  ;;  %v17669_v8 = vpop.eup %17668 }
0x54a2   :  { %12148 = vmax.xlane.f32.xlu1 %v12147_v54  ;;  %v12144_v57 = vsel %vm479_vm3, %v12142_v61, -inf  ;;  %v12339_v13 = vpop.permute.xlu1 %12338  ;;  %v11876_v33 = vmul.f32 %v17669_v8, %v17665_v21 }
0x54a3   :  { %12145 = vmax.xlane.f32.xlu0 %v12144_v57 }
0x54a4   :  { %v16199_v30 = vpop.f32.mrb[94].mxu1 }
0x54a5   :  { %v11668_v20 = vpop.f32.mrb[95].mxu1 }
0x54a6   :  { %16202 = vmatprep.mubr.msk.f32.mxu1 %vm387_vm1, %v11668_v20 }
0x54a7   :  { %16203 = vmatmul.mubr.msk.f32.vlgmr.msra.gmra.mrb[96].mxu1 %vm387_vm1, %v16199_v30  ;;  %16248 = vmatmul.mubr.msk.f32.vlgmr.msra.gmra.mrb[102].mxu0 %vm387_vm1, %v12339_v13  ;;  %v11193_v13 = vld [vmem:[%s20113_s12 + $0x70] sm:$0xff] }
0x54a8   :  { %16985 = vmatpush3.bf16.msra.mxu1 %v16982_v28  ;;  %16216 = vmatprep.mubr.msk.f32.mxu1 %vm479_vm3, %v11875_v26 }
0x54a9   :  { %17009 = vmatpush3.bf16.msra.mxu0 %v18939_v34  ;;  %16219 = vmatprep.subr.mxu1 %v11192_v19 }
0x54aa   :  { %17011 = vmatprep.subr.bf16.mxu0 %v18959_v14 }
0x54ab   :  { %16217 = vmatmul.mubr.msk.f32.vlgmr.msra.gmra.mrb[98].mxu1 %vm479_vm3, %v11876_v33 }
0x54ac   :  { %16220 = vmatpush3.msra.mxu1 %v11192_v19 }
0x54ad   :  { %17013 = vmatpush3.bf16.msra.mxu0 %v18959_v14 }
0x54ae   :  { %17021 = vmatprep.subr.bf16.mxu0 %v18857_v45 }
0x552f   :  { %v12149_v10 = vpop.xlane.xlu1 %12148 }
0x5530   :  { %v12151_v11 = vsub.f32 %v12143_v47, %v12149_v10  ;;  %v12146_v27 = vpop.xlane.xlu0 %12145 }
0x5531   :  { %v12150_v36 = vsub.f32 %v12142_v61, %v12146_v27 }
0x5532   :  { %v12154_v48 = vmul.f32 1.442695, %v12151_v11 }
0x5533   :  { %v12152_v34 = vmul.f32 1.442695, %v12150_v36 }
0x5534   :  { %17670 = vpow2.f32 %v12154_v48 }
0x5535   :  { %17672 = vpow2.f32 %v12152_v34  ;;  %v11194_v34 = vld [vmem:[%s20113_s12 + $0x78] sm:$0xff] }
0x553e   :  { %v17671_v17 = vpop.eup %17670 }
0x553f   :  { %v12159_v55 = vsel %vm479_vm3, %v17671_v17, 0.0  ;;  %v17673_v14 = vpop.eup %17672 }
0x5540   :  { %12160 = vadd.xlane.f32.xlu0 %v12159_v55  ;;  %v12156_v6 = vsel %vm479_vm3, %v17673_v14, 0.0 }
0x5544   :  { %12157 = vadd.xlane.f32.xlu0 %v12156_v6 }
0x555a   :  { %17365 = vrot.lane.b32.xlu0 %v19735_v3, %s20153_s28 }
0x557a   :  { %v16249_v29 = vpop.f32.mrb[102].mxu0 }
0x557b   :  { %v12418_v18 = vpop.f32.mrb[103].mxu0  ;;  %v12428_v43 = vmul.f32 0.35355338, %v16249_v29 }
0x557c   :  { %v12427_v21 = vmul.f32 0.35355338, %v12418_v18  ;;  %v17741_v18 = vld [vmem:[%s20113_s12 + $0xe0] sm:$0xff] }
0x557d   :  { %v12430_v12 = vadd.f32 %v19762_v23, %v12428_v43  ;;  %v11480_v43 = vrot.slane %v19723_v0, %v18110_v49 }
0x557e   :  { %v12429_v31 = vadd.f32 %v19768_v44, %v12427_v21  ;;  %v16218_v40 = vpop.f32.mrb[98].mxu1 }
0x557f   :  { %v11957_v9 = vpop.f32.mrb[99].mxu1  ;;  %v12434_v28 = vsel %vm479_vm3, %v12430_v12, -inf  ;;  %v11482_v21 = vadd.f32 %v11480_v43, %v19661_v22 }
0x5580   :  { %16221 = vmatprep.mubr.msk.f32.mxu1 %vm387_vm1, %v11957_v9  ;;  %v12431_v52 = vsel %vm479_vm3, %v12429_v31, -inf }
0x5581   :  { %16222 = vmatmul.mubr.msk.f32.vlgmr.msra.gmra.mrb[96].mxu1 %vm387_vm1, %v16218_v40  ;;  %12432 = vmax.xlane.f32.xlu1 %v12431_v52  ;;  %v11481_v40 = vadd.f32 %v11480_v43, %v19663_v7 }
0x5585   :  { %12435 = vmax.xlane.f32.xlu1 %v12434_v28 }
0x55cd   :  { %v12161_v24 = vpop.xlane.xlu0 %12160 }
0x55ce   :  { %17674 = vrcp.f32 %v12161_v24 }
0x55d1   :  { %v12158_v4 = vpop.xlane.xlu0 %12157 }
0x55d2   :  { %17676 = vrcp.f32 %v12158_v4 }
0x55d5   :  { %v17366_v56 = vpop.permute.xlu0 %17365 }
0x55d6   :  { %v17368_v44 = vunpack.i.h.bf16 %v17366_v56  ;;  %v17367_v38 = vunpack.i.l.bf16 %v17366_v56 }
0x55d8   :  { %v16992_v25 = vpack.c.bf16 %v17368_v44, %v17367_v38  ;;  %v17675_v23 = vpop.eup %17674 }
0x55d9   :  { %v12165_v51 = vmul.f32 %v17675_v23, %v17671_v17 }
0x55da   :  { %16993 = vmatprep.subr.bf16.mxu1 %v16992_v25 }
0x55db   :  { %16995 = vmatpush3.bf16.msra.mxu1 %v16992_v25 }
0x55dc   :  { %v17677_v16 = vpop.eup %17676  ;;  %16238 = vmatprep.subr.mxu1 %v11193_v13 }
0x55dd   :  { %v12164_v59 = vmul.f32 %v17677_v16, %v17673_v14 }
0x55df   :  { %16235 = vmatprep.mubr.msk.f32.mxu1 %vm479_vm3, %v12164_v59 }
0x55e0   :  { %16236 = vmatmul.mubr.msk.f32.vlgmr.msra.gmra.mrb[100].mxu1 %vm479_vm3, %v12165_v51 }
0x55e1   :  { %16239 = vmatpush3.msra.mxu1 %v11193_v13 }
0x560e   :  { %v12433_v5 = vpop.xlane.xlu1 %12432 }
0x560f   :  { %v12437_v1 = vsub.f32 %v12429_v31, %v12433_v5 }
0x5611   :  { %v12439_v54 = vmul.f32 1.442695, %v12437_v1 }
0x5612   :  { %v12436_v47 = vpop.xlane.xlu1 %12435 }
0x5613   :  { %v12438_v61 = vsub.f32 %v12430_v12, %v12436_v47 }
0x5615   :  { %v12441_v57 = vmul.f32 1.442695, %v12438_v61 }
0x5617   :  { %17678 = vpow2.f32 %v12441_v57 }
0x5618   :  { %17680 = vpow2.f32 %v12439_v54 }
0x5621   :  { %v17679_v50 = vpop.eup %17678 }
0x5622   :  { %v12446_v30 = vsel %vm479_vm3, %v17679_v50, 0.0  ;;  %v17681_v20 = vpop.eup %17680 }
0x5623   :  { %12447 = vadd.xlane.f32.xlu1 %v12446_v30  ;;  %v12443_v8 = vsel %vm479_vm3, %v17681_v20, 0.0 }
0x5627   :  { %12444 = vadd.xlane.f32.xlu1 %v12443_v8 }
0x5638   :  { %17370 = vrot.lane.b32.xlu1 %v19735_v3, %s20154_s30 }
0x56b0   :  { %v12448_v26 = vpop.xlane.xlu1 %12447 }
0x56b1   :  { %17682 = vrcp.f32 %v12448_v26 }
0x56b3   :  { %v16237_v33 = vpop.f32.mrb[100].mxu1 }
0x56b4   :  { %v12445_v19 = vpop.xlane.xlu1 %12444  ;;  %v12244_v10 = vpop.f32.mrb[101].mxu1 }
0x56b5   :  { %17684 = vrcp.f32 %v12445_v19  ;;  %16240 = vmatprep.mubr.msk.f32.mxu1 %vm387_vm1, %v12244_v10 }
0x56b6   :  { %16241 = vmatmul.mubr.msk.f32.vlgmr.msra.gmra.mrb[96].mxu1 %vm387_vm1, %v16237_v33 }
0x56b8   :  { %v17371_v11 = vpop.permute.xlu1 %17370 }
0x56b9   :  { %v17373_v27 = vunpack.i.h.bf16 %v17371_v11  ;;  %v17372_v36 = vunpack.i.l.bf16 %v17371_v11  ;;  %v19909_v11 = vld [vmem:[%s20152_s6] sm:$0xff] }
0x56bb   :  { %v17002_v48 = vpack.c.bf16 %v17373_v27, %v17372_v36  ;;  %v17683_v3 = vpop.eup %17682  ;;  %v19915_v27 = vld [vmem:[%s20152_s6 + $0x8] sm:$0xff] }
0x56bc   :  { %v12452_v14 = vmul.f32 %v17683_v3, %v17679_v50 }
0x56bd   :  { %17003 = vmatprep.subr.bf16.mxu1 %v17002_v48 }
0x56be   :  { %17005 = vmatpush3.bf16.msra.mxu1 %v17002_v48 }
0x56bf   :  { %v17685_v17 = vpop.eup %17684  ;;  %16257 = vmatprep.subr.mxu1 %v11194_v34 }
0x56c0   :  { %v12451_v55 = vmul.f32 %v17685_v17, %v17681_v20 }
0x56c2   :  { %16254 = vmatprep.mubr.msk.f32.mxu1 %vm479_vm3, %v12451_v55 }
0x56c3   :  { %16255 = vmatmul.mubr.msk.f32.vlgmr.msra.gmra.mrb[102].mxu1 %vm479_vm3, %v12452_v14 }
0x56c4   :  { %16258 = vmatpush3.msra.mxu1 %v11194_v34 }
0x56c5   :  { %17016 = vmatprep.subr.msk.bf16.mxu1 %vm17981_vm2, %v18841_v32 }
0x5796   :  { %v16256_v6 = vpop.f32.mrb[102].mxu1 }
0x5797   :  { %v12531_v29 = vpop.f32.mrb[103].mxu1 }
0x5798   :  { %16259 = vmatprep.mubr.msk.f32.mxu1 %vm387_vm1, %v12531_v29 }
0x5799   :  { %16260 = vmatmul.mubr.msk.f32.vlgmr.msra.gmra.mrb[96].mxu1 %vm387_vm1, %v16256_v6 }
0x579a   :  { %17019 = vmatpush3.bf16.xpose.msk.msra.mxu1 %vm17981_vm2, %v18841_v32 }
0x579b   :  { %16287 = vmatprep.subr.mxu1 %v17741_v18 }
0x586c   :  { %v16261_v31 = vpop.f32.mrb[96].mxu1 }
0x586d   :  { %v19873_v9 = vadd.f32 %v16261_v31, %v11482_v21  ;;  %v12612_v12 = vpop.f32.mrb[97].mxu1 }
0x586e   :  { %v19875_v52 = vadd.f32 %v12612_v12, %v11481_v40 }
0x586f   :  { %v12626_v32 = vsel %vm98_vm0, %v19873_v9, 0.0 }
0x5870   :  { %12627 = vadd.xlane.f32.xlu1 %v12626_v32  ;;  %v12623_v28 = vsel %vm98_vm0, %v19875_v52, 0.0 }
0x5871   :  { %12624 = vadd.xlane.f32.xlu0 %v12623_v28 }
0x58fd   :  { %v12628_v24 = vpop.xlane.xlu1 %12627 }
0x58fe   :  { %v12630_v49 = vmul.f32 0.03125, %v12628_v24  ;;  %v12625_v0 = vpop.xlane.xlu0 %12624 }
0x58ff   :  { %v12629_v22 = vmul.f32 0.03125, %v12625_v0 }
0x5900   :  { %v12632_v4 = vsub.f32 %v19873_v9, %v12630_v49 }
0x5901   :  { %v12631_v7 = vsub.f32 %v19875_v52, %v12629_v22 }
0x5902   :  { %v12634_v38 = vmul.f32 %v12632_v4, %v12632_v4 }
0x5903   :  { %v12633_v56 = vmul.f32 %v12631_v7, %v12631_v7 }
0x5904   :  { %v12638_v25 = vsel %vm98_vm0, %v12634_v38, 0.0 }
0x5905   :  { %v12635_v44 = vsel %vm98_vm0, %v12633_v56, 0.0 }
0x5906   :  { %12636 = vadd.xlane.f32.xlu0 %v12635_v44 }
0x590a   :  { %12639 = vadd.xlane.f32.xlu0 %v12638_v25 }
0x5993   :  { %v12637_v23 = vpop.xlane.xlu0 %12636 }
0x5994   :  { %v12641_v16 = vmul.f32 0.03125, %v12637_v23 }
0x5996   :  { %v12643_v59 = vadd.f32 1e-05, %v12641_v16 }
0x5997   :  { %v12640_v51 = vpop.xlane.xlu0 %12639 }
0x5998   :  { %17686 = vrsqrt.f32 %v12643_v59  ;;  %v12642_v5 = vmul.f32 0.03125, %v12640_v51 }
0x599a   :  { %v12644_v1 = vadd.f32 1e-05, %v12642_v5 }
0x599c   :  { %17688 = vrsqrt.f32 %v12644_v1 }
0x59a2   :  { %v17687_v47 = vpop.eup %17686 }
0x59a3   :  { %v12647_v61 = vmul.f32 %v17687_v47, %v12631_v7 }
0x59a5   :  { %v12649_v54 = vmul.f32 %v12647_v61, %v18775_v46 }
0x59a6   :  { %v17689_v57 = vpop.eup %17688 }
0x59a7   :  { %v12648_v50 = vmul.f32 %v17689_v57, %v12632_v4  ;;  %v12651_v30 = vadd.f32 %v12649_v54, %v18779_v35 }
0x59a9   :  { %16270 = vmatprep.mubr.msk.f32.mxu0 %vm98_vm0, %v12651_v30  ;;  %v12650_v20 = vmul.f32 %v12648_v50, %v18775_v46 }
0x59ab   :  { %v12652_v8 = vadd.f32 %v12650_v20, %v18779_v35 }
0x59ad   :  { %16271 = vmatmul.mubr.msk.f32.vlgmr.msra.gmra.mrb[104].mxu0 %vm98_vm0, %v12652_v8 }
0x59ae   :  { %17023 = vmatpush3.bf16.msra.mxu0 %v18857_v45 }
0x59af   :  { %17026 = vmatprep.subr.msk.bf16.mxu0 %vm17981_vm2, %v19071_v53 }
0x5a80   :  { %v16272_v13 = vpop.f32.mrb[104].mxu0 }
0x5a81   :  { %v12725_v26 = vpop.f32.mrb[105].mxu0  ;;  %v19899_v19 = vadd.f32 %v16272_v13, %v19031_v58 }
0x5a82   :  { %v19896_v33 = vadd.f32 %v12725_v26, %v19031_v58 }
0x5a84   :  { %16277 = vmatprep.mubr.msk.f32.mxu1 %vm387_vm1, %v19896_v33 }
0x5a85   :  { %16278 = vmatmul.mubr.msk.f32.vlgmr.msra.gmra.mrb[104].mxu1 %vm387_vm1, %v19899_v19 }
0x5a86   :  { %16288 = vmatpush3.msra.mxu1 %v17741_v18 }
0x5a87   :  { %17031 = vmatprep.subr.bf16.mxu1 %v19130_v41 }
0x5b58   :  { %v16279_v46 = vpop.f32.mrb[104].mxu1 }
0x5b59   :  { %v12808_v35 = vpop.f32.mrb[105].mxu1  ;;  %v12818_v45 = vmul.f32 0.35355338, %v16279_v46 }
0x5b5a   :  { %v12817_v10 = vmul.f32 0.35355338, %v12808_v35 }
0x5b5b   :  { %v12820_v36 = vadd.f32 %v19915_v27, %v12818_v45 }
0x5b5c   :  { %v12819_v58 = vadd.f32 %v19909_v11, %v12817_v10 }
0x5b5d   :  { %v12824_v34 = vsel %vm479_vm3, %v12820_v36, -inf }
0x5b5e   :  { %v12821_v48 = vsel %vm479_vm3, %v12819_v58, -inf }
0x5b5f   :  { %12822 = vmax.xlane.f32.xlu0 %v12821_v48 }
0x5b63   :  { %12825 = vmax.xlane.f32.xlu0 %v12824_v34 }
0x5bec   :  { %v12823_v3 = vpop.xlane.xlu0 %12822 }
0x5bed   :  { %v12827_v17 = vsub.f32 %v12819_v58, %v12823_v3 }
0x5bef   :  { %v12829_v55 = vmul.f32 1.442695, %v12827_v17 }
0x5bf0   :  { %v12826_v14 = vpop.xlane.xlu0 %12825 }
0x5bf1   :  { %17690 = vpow2.f32 %v12829_v55  ;;  %v12828_v6 = vsub.f32 %v12820_v36, %v12826_v14 }
0x5bf3   :  { %v12831_v29 = vmul.f32 1.442695, %v12828_v6 }
0x5bf5   :  { %17692 = vpow2.f32 %v12831_v29 }
0x5bfb   :  { %v17691_v18 = vpop.eup %17690 }
0x5bfc   :  { %v12833_v43 = vsel %vm479_vm3, %v17691_v18, 0.0 }
0x5bfd   :  { %12834 = vadd.xlane.f32.xlu0 %v12833_v43 }
0x5bff   :  { %v17693_v21 = vpop.eup %17692 }
0x5c00   :  { %v12836_v31 = vsel %vm479_vm3, %v17693_v21, 0.0 }
0x5c01   :  { %12837 = vadd.xlane.f32.xlu1 %v12836_v31 }
0x5c12   :  { %13009 = vrot.lane.b32.xlu1 %v19899_v19, %s20155_s0 }
0x5c13   :  { %13007 = vrot.lane.b32.xlu0 %v19896_v33, %s20155_s0 }
0x5c16   :  { %13280 = vrot.lane.b32.xlu1 %v19896_v33, %s20153_s28 }
0x5c1a   :  { %13282 = vrot.lane.b32.xlu1 %v19899_v19, %s20153_s28 }
0x5c8a   :  { %v12835_v40 = vpop.xlane.xlu0 %12834 }
0x5c8b   :  { %17694 = vrcp.f32 %v12835_v40 }
0x5c8e   :  { %v12838_v12 = vpop.xlane.xlu1 %12837  ;;  %v13008_v0 = vpop.permute.xlu0 %13007 }
0x5c8f   :  { %17696 = vrcp.f32 %v12838_v12 }
0x5c92   :  { %v13010_v22 = vpop.permute.xlu1 %13009 }
0x5c95   :  { %v17695_v32 = vpop.eup %17694 }
0x5c96   :  { %v12841_v28 = vmul.f32 %v17695_v32, %v17691_v18  ;;  %v13281_v4 = vpop.permute.xlu1 %13280 }
0x5c98   :  { %16284 = vmatprep.mubr.msk.f32.mxu0 %vm479_vm3, %v12841_v28 }
0x5c99   :  { %v17697_v24 = vpop.eup %17696 }
0x5c9a   :  { %v12842_v49 = vmul.f32 %v17697_v24, %v17693_v21 }
0x5c9c   :  { %16285 = vmatmul.mubr.msk.f32.vlgmr.msra.gmra.mrb[106].mxu0 %vm479_vm3, %v12842_v49 }
0x5c9d   :  { %17029 = vmatpush3.bf16.xpose.msk.msra.mxu0 %vm17981_vm2, %v19071_v53  ;;  %16296 = vmatprep.mubr.msk.f32.mxu0 %vm387_vm1, %v13008_v0  ;;  %v13283_v53 = vpop.permute.xlu1 %13282 }
0x5c9e   :  { %17036 = vmatprep.subr.msk.bf16.mxu0 %vm17981_vm2, %v19078_v63 }
0x5ca4   :  { %16297 = vmatmul.mubr.msk.f32.vlgmr.msra.gmra.mrb[108].mxu0 %vm387_vm1, %v13010_v22 }
0x5ca5   :  { %17039 = vmatpush3.bf16.xpose.msk.msra.mxu0 %vm17981_vm2, %v19078_v63  ;;  %16315 = vmatprep.mubr.msk.f32.mxu0 %vm387_vm1, %v13281_v4  ;;  %v17744_v63 = vld [vmem:[%s20113_s12 + $0xe8] sm:$0xff] }
0x5ca6   :  { %17046 = vmatprep.subr.msk.bf16.mxu0 %vm17981_vm2, %v19110_v60 }
0x5cac   :  { %16316 = vmatmul.mubr.msk.f32.vlgmr.msra.gmra.mrb[110].mxu0 %vm387_vm1, %v13283_v53 }
0x5cad   :  { %17049 = vmatpush3.bf16.xpose.msk.msra.mxu0 %vm17981_vm2, %v19110_v60 }
0x5d6f   :  { %v16286_v7 = vpop.f32.mrb[106].mxu0 }
0x5d70   :  { %v12915_v56 = vpop.f32.mrb[107].mxu0 }
0x5d71   :  { %16289 = vmatprep.mubr.msk.f32.mxu1 %vm387_vm1, %v12915_v56 }
0x5d72   :  { %16290 = vmatmul.mubr.msk.f32.vlgmr.msra.gmra.mrb[106].mxu1 %vm387_vm1, %v16286_v7 }
0x5d73   :  { %17033 = vmatpush3.bf16.msra.mxu1 %v19130_v41 }
0x5d74   :  { %16306 = vmatprep.subr.mxu1 %v17744_v63 }
0x5d77   :  { %v16298_v44 = vpop.f32.mrb[108].mxu0 }
0x5d78   :  { %v13091_v38 = vmul.f32 0.35355338, %v16298_v44  ;;  %v13081_v25 = vpop.f32.mrb[109].mxu0 }
0x5d79   :  { %v13090_v23 = vmul.f32 0.35355338, %v13081_v25 }
0x5d7a   :  { %v13093_v2 = vadd.f32 %v19915_v27, %v13091_v38 }
0x5d7b   :  { %v13092_v60 = vadd.f32 %v19909_v11, %v13090_v23 }
0x5d7c   :  { %v13097_v16 = vsel %vm479_vm3, %v13093_v2, -inf }
0x5d7d   :  { %13098 = vmax.xlane.f32.xlu1 %v13097_v16  ;;  %v13094_v59 = vsel %vm479_vm3, %v13092_v60, -inf }
0x5d7e   :  { %13095 = vmax.xlane.f32.xlu0 %v13094_v59 }
0x5d7f   :  { %v16317_v41 = vpop.f32.mrb[110].mxu0 }
0x5d80   :  { %v13354_v51 = vpop.f32.mrb[111].mxu0  ;;  %v13364_v58 = vmul.f32 0.35355338, %v16317_v41 }
0x5d81   :  { %v13363_v5 = vmul.f32 0.35355338, %v13354_v51 }
0x5d82   :  { %v13366_v36 = vadd.f32 %v19915_v27, %v13364_v58 }
0x5d83   :  { %v13365_v1 = vadd.f32 %v19909_v11, %v13363_v5 }
0x5d84   :  { %v13370_v48 = vsel %vm479_vm3, %v13366_v36, -inf }
0x5d85   :  { %v13367_v47 = vsel %vm479_vm3, %v13365_v1, -inf }
0x5d8e   :  { %13555 = vrot.lane.b32.xlu1 %v19899_v19, %s20154_s30 }
0x5db2   :  { %13368 = vmax.xlane.f32.xlu1 %v13367_v47 }
0x5e0a   :  { %v13099_v61 = vpop.xlane.xlu1 %13098 }
0x5e0b   :  { %v13101_v54 = vsub.f32 %v13093_v2, %v13099_v61  ;;  %v13096_v57 = vpop.xlane.xlu0 %13095 }
0x5e0c   :  { %v13100_v50 = vsub.f32 %v13092_v60, %v13096_v57  ;;  %v17746_v57 = vld [vmem:[%s20113_s12 + $0xf8] sm:$0xff] }
0x5e0d   :  { %v13104_v30 = vmul.f32 1.442695, %v13101_v54 }
0x5e0e   :  { %v13102_v20 = vmul.f32 1.442695, %v13100_v50  ;;  %v13556_v46 = vpop.permute.xlu1 %13555 }
0x5e10   :  { %17698 = vpow2.f32 %v13102_v20 }
0x5e11   :  { %17700 = vpow2.f32 %v13104_v30 }
0x5e1a   :  { %v17699_v8 = vpop.eup %17698 }
0x5e1b   :  { %v13106_v13 = vsel %vm479_vm3, %v17699_v8, 0.0  ;;  %v17701_v26 = vpop.eup %17700 }
0x5e1c   :  { %13107 = vadd.xlane.f32.xlu0 %v13106_v13  ;;  %v13109_v19 = vsel %vm479_vm3, %v17701_v26, 0.0 }
0x5e20   :  { %13110 = vadd.xlane.f32.xlu0 %v13109_v19 }
0x5e36   :  { %13553 = vrot.lane.b32.xlu0 %v19896_v33, %s20154_s30 }
0x5e3f   :  { %v13369_v35 = vpop.xlane.xlu1 %13368 }
0x5e40   :  { %v13373_v45 = vsub.f32 %v13365_v1, %v13369_v35 }
0x5e42   :  { %v13375_v10 = vmul.f32 1.442695, %v13373_v45  ;;  %v12734_v45 = vadd.f32 %v19875_v52, %v19179_v15 }
0x5e44   :  { %17702 = vpow2.f32 %v13375_v10 }
0x5e4e   :  { %v17703_v34 = vpop.eup %17702 }
0x5e4f   :  { %v13379_v3 = vsel %vm479_vm3, %v17703_v34, 0.0 }
0x5e55   :  { %13371 = vmax.xlane.f32.xlu0 %v13370_v48 }
0x5e59   :  { %13380 = vadd.xlane.f32.xlu0 %v13379_v3 }
0x5ea9   :  { %v13108_v17 = vpop.xlane.xlu0 %13107 }
0x5eaa   :  { %17704 = vrcp.f32 %v13108_v17 }
0x5ead   :  { %v13111_v55 = vpop.xlane.xlu0 %13110 }
0x5eae   :  { %17706 = vrcp.f32 %v13111_v55 }
0x5eb1   :  { %v13554_v33 = vpop.permute.xlu0 %13553 }
0x5eb2   :  { %16334 = vmatprep.mubr.msk.f32.mxu0 %vm387_vm1, %v13554_v33 }
0x5eb3   :  { %16335 = vmatmul.mubr.msk.f32.vlgmr.msra.gmra.mrb[112].mxu0 %vm387_vm1, %v13556_v46  ;;  %v12735_v46 = vadd.f32 %v19873_v9, %v19179_v15 }
0x5eb4   :  { %v17705_v14 = vpop.eup %17704 }
0x5eb5   :  { %v13114_v6 = vmul.f32 %v17705_v14, %v17699_v8 }
0x5eb7   :  { %16303 = vmatprep.mubr.msk.f32.mxu1 %vm479_vm3, %v13114_v6 }
0x5eb8   :  { %v17707_v29 = vpop.eup %17706 }
0x5eb9   :  { %v13115_v18 = vmul.f32 %v17707_v29, %v17701_v26 }
0x5ebb   :  { %16304 = vmatmul.mubr.msk.f32.vlgmr.msra.gmra.mrb[108].mxu1 %vm479_vm3, %v13115_v18  ;;  %v13865_v18 = vld [vmem:[%s20116_s15] sm:$0xff] }
0x5ebc   :  { %16307 = vmatpush3.msra.mxu1 %v17744_v63 }
0x5ebd   :  { %17041 = vmatprep.subr.bf16.mxu1 %v19146_v62 }
0x5ee2   :  { %v13372_v43 = vpop.xlane.xlu0 %13371 }
0x5ee3   :  { %v13374_v21 = vsub.f32 %v13366_v36, %v13372_v43  ;;  %v13866_v43 = vld [vmem:[%s20116_s15 + $0x8] sm:$0xff] }
0x5ee5   :  { %v13377_v31 = vmul.f32 1.442695, %v13374_v21  ;;  %v17054_v21 = vpack.c.bf16 %v13866_v43, %v13865_v18 }
0x5ee6   :  { %v13381_v32 = vpop.xlane.xlu0 %13380 }
0x5ee7   :  { %17708 = vpow2.f32 %v13377_v31  ;;  %v13867_v31 = vld [vmem:[%s20116_s15 + $0x10] sm:$0xff]  ;;  %17055 = vmatprep.subr.bf16.mxu0 %v17054_v21 }
0x5ee8   :  { %17710 = vrcp.f32 %v13381_v32  ;;  %17057 = vmatpush3.bf16.msra.mxu0 %v17054_v21  ;;  %v13959_v32 = vld [vmem:[%s20118_s17] sm:$0xff] }
0x5ef1   :  { %v17709_v40 = vpop.eup %17708 }
0x5ef2   :  { %v13382_v12 = vsel %vm479_vm3, %v17709_v40, 0.0  ;;  %v17711_v63 = vpop.eup %17710 }
0x5ef3   :  { %13383 = vadd.xlane.f32.xlu1 %v13382_v12  ;;  %v13387_v23 = vmul.f32 %v17711_v63, %v17703_v34 }
0x5f80   :  { %v13384_v28 = vpop.xlane.xlu1 %13383 }
0x5f81   :  { %17712 = vrcp.f32 %v13384_v28  ;;  %v13960_v28 = vld [vmem:[%s20118_s17 + $0x8] sm:$0xff] }
0x5f86   :  { %v16336_v24 = vpop.f32.mrb[112].mxu0 }
0x5f87   :  { %v13637_v49 = vmul.f32 0.35355338, %v16336_v24  ;;  %v13627_v0 = vpop.f32.mrb[113].mxu0  ;;  %v13961_v24 = vld [vmem:[%s20118_s17 + $0x10] sm:$0xff] }
0x5f88   :  { %v13636_v22 = vmul.f32 0.35355338, %v13627_v0  ;;  %v13962_v0 = vld [vmem:[%s20118_s17 + $0x18] sm:$0xff] }
0x5f89   :  { %v13639_v4 = vadd.f32 %v19915_v27, %v13637_v49  ;;  %v17745_v27 = vld [vmem:[%s20113_s12 + $0xf0] sm:$0xff]  ;;  %v17062_v49 = vpack.c.bf16 %v13960_v28, %v13959_v32 }
0x5f8a   :  { %v13638_v53 = vadd.f32 %v19909_v11, %v13636_v22  ;;  %v17066_v22 = vpack.c.bf16 %v13962_v0, %v13961_v24 }
0x5f8b   :  { %v13643_v7 = vsel %vm479_vm3, %v13639_v4, -inf  ;;  %v17713_v25 = vpop.eup %17712 }
0x5f8c   :  { %13644 = vmax.xlane.f32.xlu1 %v13643_v7  ;;  %v13640_v56 = vsel %vm479_vm3, %v13638_v53, -inf  ;;  %v13388_v11 = vmul.f32 %v17713_v25, %v17709_v40  ;;  %v13868_v40 = vld [vmem:[%s20116_s15 + $0x18] sm:$0xff] }
0x5f8d   :  { %13641 = vmax.xlane.f32.xlu0 %v13640_v56  ;;  %v17058_v12 = vpack.c.bf16 %v13868_v40, %v13867_v31 }
0x5f8e   :  { %v16305_v44 = vpop.f32.mrb[108].mxu1 }
0x5f8f   :  { %v13188_v38 = vpop.f32.mrb[109].mxu1  ;;  %17059 = vmatprep.subr.bf16.mxu0 %v17058_v12 }
0x5f90   :  { %16308 = vmatprep.mubr.msk.f32.mxu1 %vm387_vm1, %v13188_v38  ;;  %17061 = vmatpush3.bf16.msra.mxu0 %v17058_v12 }
0x5f91   :  { %16309 = vmatmul.mubr.msk.f32.vlgmr.msra.gmra.mrb[106].mxu1 %vm387_vm1, %v16305_v44 }
0x5f92   :  { %17043 = vmatpush3.bf16.msra.mxu1 %v19146_v62  ;;  %16322 = vmatprep.mubr.msk.f32.mxu1 %vm479_vm3, %v13387_v23 }
0x5f93   :  { %16325 = vmatprep.subr.mxu1 %v17745_v27 }
0x5f95   :  { %16323 = vmatmul.mubr.msk.f32.vlgmr.msra.gmra.mrb[110].mxu1 %vm479_vm3, %v13388_v11  ;;  %v13826_v11 = vld [vmem:[%s20120_s19] sm:$0x3] }
0x5f96   :  { %16326 = vmatpush3.msra.mxu1 %v17745_v27  ;;  %v13856_v27 = vrot.slane %v13826_v11, %v17943_v37  ;;  %v13966_v37 = vld [vmem:[%s20118_s17 + $0x38] sm:$0xff] }
0x5f97   :  { %17051 = vmatprep.subr.bf16.mxu1 %v19162_v42 }
0x6019   :  { %v13645_v2 = vpop.xlane.xlu1 %13644 }
0x601a   :  { %v13647_v60 = vsub.f32 %v13639_v4, %v13645_v2  ;;  %v13642_v16 = vpop.xlane.xlu0 %13641  ;;  %v13963_v4 = vld [vmem:[%s20118_s17 + $0x20] sm:$0xff] }
0x601b   :  { %v13646_v59 = vsub.f32 %v13638_v53, %v13642_v16  ;;  %v13964_v53 = vld [vmem:[%s20118_s17 + $0x28] sm:$0xff] }
0x601c   :  { %v13650_v41 = vmul.f32 1.442695, %v13647_v60  ;;  %v17070_v7 = vpack.c.bf16 %v13964_v53, %v13963_v4 }
0x601d   :  { %v13648_v51 = vmul.f32 1.442695, %v13646_v59 }
0x601e   :  { %17714 = vpow2.f32 %v13650_v41  ;;  %v13862_v41 = vrot.slane %v13826_v11, %v17949_v39  ;;  %v14059_v39 = vld [vmem:[%s20121_s20] sm:$0xff] }
0x601f   :  { %17716 = vpow2.f32 %v13648_v51 }
0x6028   :  { %v17715_v62 = vpop.eup %17714 }
0x6029   :  { %v17717_v5 = vpop.eup %17716  ;;  %v13655_v1 = vsel %vm479_vm3, %v17715_v62, 0.0 }
0x602a   :  { %13656 = vadd.xlane.f32.xlu1 %v13655_v1  ;;  %v13652_v47 = vsel %vm479_vm3, %v17717_v5, 0.0 }
0x602b   :  { %13653 = vadd.xlane.f32.xlu0 %v13652_v47  ;;  %v13965_v47 = vld [vmem:[%s20118_s17 + $0x30] sm:$0xff] }
0x6068   :  { %v16324_v61 = vpop.f32.mrb[110].mxu1 }
0x6069   :  { %v13461_v54 = vpop.f32.mrb[111].mxu1 }
0x606a   :  { %16327 = vmatprep.mubr.msk.f32.mxu1 %vm387_vm1, %v13461_v54  ;;  %v14060_v54 = vld [vmem:[%s20121_s20 + $0x8] sm:$0xff] }
0x606b   :  { %16328 = vmatmul.mubr.msk.f32.vlgmr.msra.gmra.mrb[106].mxu1 %vm387_vm1, %v16324_v61  ;;  %v17074_v61 = vpack.c.bf16 %v13966_v37, %v13965_v47 }
0x606c   :  { %17053 = vmatpush3.bf16.msra.mxu1 %v19162_v42 }
0x606d   :  { %16344 = vmatprep.subr.mxu1 %v17746_v57 }
0x60b7   :  { %v13657_v50 = vpop.xlane.xlu1 %13656 }
0x60b8   :  { %17718 = vrcp.f32 %v13657_v50  ;;  %v13654_v30 = vpop.xlane.xlu0 %13653  ;;  %v14617_v50 = vld [vmem:[%s20117_s16] ss:$0 sm:$0xff] }
0x60b9   :  { %17720 = vrcp.f32 %v13654_v30 }
0x60c2   :  { %v17719_v20 = vpop.eup %17718 }
0x60c3   :  { %v17721_v8 = vpop.eup %17720  ;;  %v13661_v26 = vmul.f32 %v17719_v20, %v17715_v62 }
0x60c4   :  { %v13660_v13 = vmul.f32 %v17721_v8, %v17717_v5 }
0x60c6   :  { %16341 = vmatprep.mubr.msk.f32.mxu1 %vm479_vm3, %v13660_v13 }
0x60c7   :  { %16342 = vmatmul.mubr.msk.f32.vlgmr.msra.gmra.mrb[112].mxu1 %vm479_vm3, %v13661_v26 }
0x60c8   :  { %16345 = vmatpush3.msra.mxu1 %v17746_v57  ;;  %v17078_v57 = vpack.c.bf16 %v14060_v54, %v14059_v39 }
0x60c9   :  { %17063 = vmatprep.subr.bf16.mxu1 %v17062_v49 }
0x60ca   :  { %17079 = vmatprep.subr.bf16.mxu0 %v17078_v57 }
0x619a   :  { %v16343_v19 = vpop.f32.mrb[112].mxu1 }
0x619b   :  { %v13734_v42 = vpop.f32.mrb[113].mxu1 }
0x619c   :  { %16346 = vmatprep.mubr.msk.f32.mxu1 %vm387_vm1, %v13734_v42  ;;  %v14061_v42 = vld [vmem:[%s20121_s20 + $0x10] sm:$0xff] }
0x619d   :  { %16347 = vmatmul.mubr.msk.f32.vlgmr.msra.gmra.mrb[106].mxu1 %vm387_vm1, %v16343_v19 }
0x619e   :  { %17065 = vmatpush3.bf16.msra.mxu1 %v17062_v49 }
0x619f   :  { %17067 = vmatprep.subr.bf16.mxu1 %v17066_v22 }
0x61a2   :  { %17069 = vmatpush3.bf16.msra.mxu1 %v17066_v22 }
0x61a3   :  { %17071 = vmatprep.subr.bf16.mxu1 %v17070_v7 }
0x61a6   :  { %17073 = vmatpush3.bf16.msra.mxu1 %v17070_v7 }
0x61a7   :  { %17075 = vmatprep.subr.bf16.mxu1 %v17074_v61 }
0x61aa   :  { %17077 = vmatpush3.bf16.msra.mxu1 %v17074_v61 }
0x6270   :  { %v16348_v35 = vpop.f32.mrb[106].mxu1 }
0x6271   :  { %v20007_v10 = vadd.f32 %v16348_v35, %v12735_v46  ;;  %v13815_v58 = vpop.f32.mrb[107].mxu1  ;;  %v14062_v46 = vld [vmem:[%s20121_s20 + $0x18] sm:$0xff] }
0x6272   :  { %v20009_v36 = vadd.f32 %v13815_v58, %v12734_v45  ;;  %v17082_v35 = vpack.c.bf16 %v14062_v46, %v14061_v42 }
0x6273   :  { %v13830_v48 = vsel %vm98_vm0, %v20007_v10, 0.0 }
0x6274   :  { %13831 = vadd.xlane.f32.xlu1 %v13830_v48  ;;  %v13827_v34 = vsel %vm98_vm0, %v20009_v36, 0.0  ;;  %v14622_v48 = vld [vmem:[%s20119_s18] ss:$0 sm:$0xff]  ;;  %s17747_s18 = scalar_lea.vmem %s14159_s26, 256 }
0x6275   :  { %13828 = vadd.xlane.f32.xlu0 %v13827_v34  ;;  %p17748_p0 = scmp.ne.s32.totalorder %s14159_s26, %s17747_s18  ;;  %p17753_p2 = scmp.lt.s32.totalorder %s17747_s18, %s17747_s18 }
0x6277   :  { %p17754_p3 = por %p17753_p2, %p17752_p1 }
0x6279   :  { %p17755_p4 = pnand %p17754_p3, %p17748_p0 }
0x6301   :  { %v13832_v3 = vpop.xlane.xlu1 %13831 }
0x6302   :  { %v13834_v17 = vmul.f32 0.03125, %v13832_v3  ;;  %v13829_v9 = vpop.xlane.xlu0 %13828 }
0x6303   :  { %v13833_v55 = vmul.f32 0.03125, %v13829_v9 }
0x6304   :  { %v13836_v33 = vsub.f32 %v20007_v10, %v13834_v17 }
0x6305   :  { %v13835_v15 = vsub.f32 %v20009_v36, %v13833_v55  ;;  %v14623_v55 = vld [vmem:[%s20122_s21] ss:$0 sm:$0xff] }
0x6306   :  { %v13838_v52 = vmul.f32 %v13836_v33, %v13836_v33 }
0x6307   :  { %v13837_v14 = vmul.f32 %v13835_v15, %v13835_v15 }
0x6308   :  { %v13842_v6 = vsel %vm98_vm0, %v13838_v52, 0.0 }
0x6309   :  { %13843 = vadd.xlane.f32.xlu1 %v13842_v6  ;;  %v13839_v29 = vsel %vm98_vm0, %v13837_v14, 0.0 }
0x630a   :  { %13840 = vadd.xlane.f32.xlu0 %v13839_v29 }
0x6396   :  { %v13844_v56 = vpop.xlane.xlu1 %13843 }
0x6397   :  { %v13846_v63 = vmul.f32 0.03125, %v13844_v56  ;;  %v13841_v44 = vpop.xlane.xlu0 %13840 }
0x6398   :  { %v13845_v38 = vmul.f32 0.03125, %v13841_v44 }
0x6399   :  { %v13848_v25 = vadd.f32 1e-05, %v13846_v63 }
0x639a   :  { %v13847_v23 = vadd.f32 1e-05, %v13845_v38 }
0x639b   :  { %17722 = vrsqrt.f32 %v13848_v25 }
0x639c   :  { %17724 = vrsqrt.f32 %v13847_v23 }
0x63a5   :  { %v17723_v2 = vpop.eup %17722 }
0x63a6   :  { %v17725_v60 = vpop.eup %17724  ;;  %v13852_v16 = vmul.f32 %v17723_v2, %v13836_v33 }
0x63a7   :  { %v13851_v59 = vmul.f32 %v17725_v60, %v13835_v15 }
0x63a8   :  { %v13858_v51 = vmul.f32 %v13856_v27, %v13852_v16 }
0x63a9   :  { %v13857_v62 = vmul.f32 %v13856_v27, %v13851_v59 }
0x63aa   :  { %v13864_v1 = vadd.f32 %v13862_v41, %v13858_v51 }
0x63ab   :  { %v13863_v5 = vadd.f32 %v13862_v41, %v13857_v62 }
0x63ad   :  { %16357 = vmatprep.mubr.msk.f32.mxu0 %vm98_vm0, %v13863_v5 }
0x63ae   :  { %16358 = vmatmul.mubr.msk.f32.vlgmr.msra.gmra.mrb[114].mxu0 %vm98_vm0, %v13864_v1 }
0x63af   :  { %17081 = vmatpush3.bf16.msra.mxu0 %v17078_v57 }
0x63b0   :  { %17083 = vmatprep.subr.bf16.mxu0 %v17082_v35 }
0x63b3   :  { %17085 = vmatpush3.bf16.msra.mxu0 %v17082_v35 }
0x6481   :  { %v16359_v30 = vpop.f32.mrb[114].mxu0 }
0x6482   :  { %v13954_v20 = vadd.f32 %v16359_v30, %v14617_v50  ;;  %v13948_v8 = vpop.f32.mrb[115].mxu0 }
0x6483   :  { %v13949_v13 = vadd.f32 %v14617_v50, %v13948_v8 }
0x6484   :  { %v13958_v19 = vmax.f32 %v13954_v20, 0.0 }
0x6485   :  { %v13957_v26 = vmax.f32 %v13949_v13, 0.0 }
0x6487   :  { %16376 = vmatprep.mubr.msk.f32.mxu1 %vm1670_vm4, %v13957_v26 }
0x6488   :  { %16377 = vmatmul.mubr.msk.f32.vlgmr.msra.gmra.mrb[114].mxu1 %vm1670_vm4, %v13958_v19 }
0x655b   :  { %v16378_v45 = vpop.f32.mrb[114].mxu1 }
0x655c   :  { %v14049_v58 = vadd.f32 %v20007_v10, %v16378_v45  ;;  %v14039_v34 = vpop.f32.mrb[115].mxu1 }
0x655d   :  { %v14048_v3 = vadd.f32 %v20009_v36, %v14039_v34 }
0x655e   :  { %v14058_v9 = vadd.f32 %v14622_v48, %v14049_v58 }
0x655f   :  { %v14057_v17 = vadd.f32 %v14622_v48, %v14048_v3 }
0x6561   :  { %16387 = vmatprep.mubr.msk.f32.mxu0 %vm98_vm0, %v14057_v17 }
0x6562   :  { %16388 = vmatmul.mubr.msk.f32.vlgmr.msra.gmra.mrb[116].mxu0 %vm98_vm0, %v14058_v9 }
0x6635   :  { %v16389_v10 = vpop.f32.mrb[116].mxu0 }
0x6636   :  { %v14148_v33 = vadd.f32 %v16389_v10, %v14623_v55  ;;  %v14142_v15 = vpop.f32.mrb[117].mxu0 }
0x6637   :  { %v14143_v52 = vadd.f32 %v14623_v55, %v14142_v15 }
0x6638   :  { %14152 = vst [vmem:[#allocation2 + $0x8] sm:$0xff] %v14148_v33 }
0x6639   :  { %14151 = vst [vmem:[#allocation2] sm:$0xff] %v14143_v52 }
0x663a   :  { %17758 = shalt.err (!%p17755_p4)
}
0x663b   :  { %s20158_s15 = sld [smem:[#allocation12_spill]] }
0x6641   :  { %s17759_s21 = scalar_lea.hbm %s20158_s15, 256 }
0x6642   :  { %p17760_p5 = scmp.ne.s32.totalorder %s20158_s15, %s17759_s21  ;;  %p17763_p6 = scmp.lt.u32.totalorder %s17759_s21, %s20158_s15 }
0x6644   :  { %p17765_p7 = pnand %p17763_p6, %p17760_p5 }
0x6646   :  { %17768 = shalt.err (!%p17765_p7)
}
0x6647   :  { %s17775_s28 = smov 128   ;;  %s17776_s30 = smov 8  }
0x6648   :  { %14164 = dma.vmem_to_hbm [thread:$0]  %s14159_s26, 256, %s20158_s15, [#allocation3], %s17775_s28, %s17775_s28, %s17776_s30  }
0x6649   :  { %17769 = dma.done.wait [#allocation3], 256  }
0x664a   :  { %17770 = vsyncadd [#allocation3], 4294967040 }
0x664b   :  { %14168 = vsyncpa [#allocation3], 1 }

</bundles_post_ra>
